<compile_context>
chip_gen: v7x
topology: tpu7x:2x2x1
jax: 0.10.0
libtpu: 0.0.40
codegen_flags: <defaults>
</compile_context>

<pallas_src>
import functools
import math

import jax
import jax.numpy as jnp
from jax import lax
from jax.experimental import pallas as pl
from jax.experimental.pallas import tpu as pltpu


# ---------------------------------------------------------------------------
# In-kernel helpers
# ---------------------------------------------------------------------------
def _erf_poly(x):
    # TODO(synk): no exact erf primitive guaranteed in Mosaic; Abramowitz & Stegun
    # 7.1.26 polynomial (max abs err ~1.5e-7), built from exp only.
    a1, a2, a3, a4, a5 = 0.254829592, -0.284496736, 1.421413741, -1.453152027, 1.061405429
    p = 0.3275911
    ax = jnp.abs(x)
    t = 1.0 / (1.0 + p * ax)
    poly = ((((a5 * t + a4) * t + a3) * t + a2) * t + a1) * t
    y = 1.0 - poly * jnp.exp(-ax * ax)
    return jnp.where(x >= 0.0, y, -y)


def _gelu_exact(x):
    # matches torch nn.GELU() (erf formulation) up to ~1e-7
    return 0.5 * x * (1.0 + _erf_poly(x * (1.0 / math.sqrt(2.0))))


def _make_kernel(C, heads, dh, HW, eps=1e-5):
    def mm(a, b, dn):
        return lax.dot_general(a, b, dn, preferred_element_type=jnp.float32)

    def kernel(x_ref, x1_ref, x2_ref, mask_ref,
               wqkv_ref, w1_ref, b1_ref, w2p_ref, bpf_ref,
               out_ref):
        # ------------- one full sample, channel-major, NCHW position order ---------------
        x = x_ref[0]                                   # (C, HW), HW on the lane axis
        bias = mask_ref[...]                           # (HW, HW) additive same-window mask

        # ------------- QKV projection (Q scale pre-folded into W rows) -------------------
        qkv = mm(wqkv_ref[...], x, (((1,), (0,)), ((), ())))          # (3C, HW)

        # ------------- fc1, channel-major (lane-dense) -----------------------------------
        h1 = mm(w1_ref[...], x, (((1,), (0,)), ((), ()))) + b1_ref[...]   # (2C, HW)

        # ------------- windowed MHSA as masked dense attention ---------------------------
        # head split on the sublane (row) axis; context comes out channel-major directly.
        ctx_heads = []
        for h in range(heads):                          # static, == 4
            r = h * dh
            q_h = qkv[r:r + dh, :]                      # (dh, HW)
            k_h = qkv[C + r:C + r + dh, :]
            v_h = qkv[2 * C + r:2 * C + r + dh, :]
            s = mm(q_h, k_h, (((0,), (0,)), ((), ()))) + bias          # (HW, HW)
            m = jnp.max(s, axis=-1, keepdims=True)                     # within-window max
            p = jnp.exp(s - m)                                         # cross-window -> 0
            l = jnp.sum(p, axis=-1, keepdims=True)
            p = p * pl.reciprocal(l, approx=True)                      # EUP, ~free slot
            ctx_heads.append(mm(v_h, p, (((1,), (1,)), ((), ()))))     # (dh, HW)
        ctx = jnp.concatenate(ctx_heads, axis=0)                       # (C, HW), (h d) order

        # ------------- InstanceNorm (biased var) + exact GELU + fused fc2∘proj -----------
        mean = jnp.mean(h1, axis=1, keepdims=True)                     # per (channel)
        var = jnp.mean((h1 - mean) ** 2, axis=1, keepdims=True)
        hn = (h1 - mean) * lax.rsqrt(var + eps)
        ha = _gelu_exact(hn)                                           # (2C, HW)
        bit = mm(w2p_ref[...], ha, (((1,), (0,)), ((), ()))) + bpf_ref[...]   # (1, HW)
        bit = jnp.maximum(bit, 0.0)

        # ------------- gate + blend + lane-dense store ------------------------------------
        gate = jax.nn.sigmoid(bit * ctx)                               # (C, HW)
        out_ref[0] = x1_ref[0] * gate + x2_ref[0] * (1.0 - gate)

    return kernel


def _pick_vmem_limit():
    """Generation-aware scoped-VMEM limit (~44 MiB on v7x, ~88 MiB on v5e/v6e)."""
    phys = 64 * 1024 * 1024
    try:
        info = pltpu.get_tpu_info()
        phys = int(getattr(info, "vmem_capacity_bytes", phys))
    except Exception:
        pass
    limit = (phys * 11) // 16
    return max(32 * 1024 * 1024, min(limit, 100 * 1024 * 1024))


# ---------------------------------------------------------------------------
# JAX host glue (free reshapes only — no relayout HBM traffic)
# ---------------------------------------------------------------------------
@functools.partial(jax.jit, static_argnames=("ws",))
def frnet_modified_forward(x_img, x_img1, x_img2, params, ws=8):
    B, C, H, W = x_img.shape
    assert H % ws == 0 and W % ws == 0
    assert C % 4 == 0 and C >= 4, "head split requires C % 4 == 0"
    heads = C // (C // 4)                      # == 4
    dh = C // heads
    scale = float((C // 4) ** (-0.5))
    HW = H * W                                 # lane axis; multiple of 128 when (H/ws)*(W/ws) even

    # free metadata reshapes: everything stays in NCHW order
    x_cm = x_img.reshape(B, C, HW)
    x1_cm = x_img1.reshape(B, C, HW)
    x2_cm = x_img2.reshape(B, C, HW)

    # additive same-window mask: 0 within a ws x ws window, -1e9 across windows
    pos = jnp.arange(HW, dtype=jnp.int32)
    win_id = (pos // W) // ws * (W // ws) + (pos % W) // ws
    mask = jnp.where(win_id[:, None] == win_id[None, :], 0.0, -1e9).astype(jnp.float32)

    # ---- exact host-side weight folds ----
    row_scale = jnp.concatenate([jnp.full((C, 1), scale, jnp.float32),
                                 jnp.ones((2 * C, 1), jnp.float32)], axis=0)
    wqkv = params["wqkv"] * row_scale                                  # (3C, C), Q rows scaled
    w1 = params["w1"]                                                  # (2C, C)
    b1 = params["b1"].reshape(-1, 1)                                   # (2C, 1)
    w2p = params["wp"] @ params["w2"]                                  # (1, 2C)   fc2 ∘ proj
    bpf = params["wp"] @ params["b2"].reshape(-1, 1) + params["bp"].reshape(1, 1)   # (1, 1)

    kernel = _make_kernel(C, heads, dh, HW)

    img_spec = pl.BlockSpec((1, C, HW), lambda i: (i, 0, 0))

    def w_spec(a):
        n = a.ndim
        return pl.BlockSpec(a.shape, lambda i, _n=n: (0,) * _n)

    out_cm = pl.pallas_call(
        kernel,
        out_shape=jax.ShapeDtypeStruct((B, C, HW), jnp.float32),
        grid=(B,),
        in_specs=[img_spec, img_spec, img_spec,
                  w_spec(mask), w_spec(wqkv), w_spec(w1), w_spec(b1),
                  w_spec(w2p), w_spec(bpf)],
        out_specs=img_spec,
        compiler_params=pltpu.CompilerParams(
            dimension_semantics=("parallel",),
            vmem_limit_bytes=_pick_vmem_limit()),
    )(x_cm, x1_cm, x2_cm, mask, wqkv, w1, b1, w2p, bpf)

    return out_cm.reshape(B, C, H, W)


# ---------------------------------------------------------------------------
# Pure-JAX reference (mirrors the PyTorch module in NCHW)
# ---------------------------------------------------------------------------
def reference_forward(x, x1, x2, p, ws=8):
    B, C, H, W = x.shape
    heads = C // (C // 4)
    dh = C // heads
    scale = (C // 4) ** (-0.5)
    nx, ny = H // ws, W // ws

    # --- multi_head_SelfAttentionIEU ---
    xw = x.reshape(B, C, nx, ws, ny, ws).transpose(0, 2, 4, 3, 5, 1).reshape(B * nx * ny, ws * ws, C)
    qkv = xw @ p["wqkv"].T
    q, k, v = jnp.split(qkv, 3, axis=-1)

    def sh(t):
        return t.reshape(t.shape[0], t.shape[1], heads, dh).transpose(0, 2, 1, 3)

    q, k, v = sh(q) * scale, sh(k), sh(v)
    att = jnp.einsum('bhid,bhjd->bhij', q, k)
    prob = jax.nn.softmax(att, axis=-1)
    ctx = jnp.einsum('bhij,bhjd->bhid', prob, v)
    out = ctx.transpose(0, 2, 1, 3).reshape(B * nx * ny, ws, ws, C)
    x_vec = out.reshape(B, nx, ny, ws, ws, C).transpose(0, 5, 1, 3, 2, 4).reshape(B, C, H, W)

    # --- Mlp + bit projection ---
    xt = x.reshape(B, C, H * W).transpose(0, 2, 1)            # (B, HW, C)
    h = xt @ p["w1"].T + p["b1"]                              # (B, HW, 2C)
    hn = h.transpose(0, 2, 1).reshape(B, 2 * C, H, W)
    mean = hn.mean(axis=(2, 3), keepdims=True)
    var = hn.var(axis=(2, 3), keepdims=True)
    hn = (hn - mean) / jnp.sqrt(var + 1e-5)
    h = hn.reshape(B, 2 * C, H * W).transpose(0, 2, 1)
    h = 0.5 * h * (1.0 + jax.scipy.special.erf(h / jnp.sqrt(2.0)))   # exact GELU
    y = h @ p["w2"].T + p["b2"]                               # (B, HW, C)
    bit = y @ p["wp"].T + p["bp"]                             # (B, HW, 1)
    bit = bit.transpose(0, 2, 1).reshape(B, 1, H, W)
    bit = jnp.maximum(bit, 0.0)

    wmat = jax.nn.sigmoid(bit * x_vec)
    return x1 * wmat + x2 * (1.0 - wmat)


# ---------------------------------------------------------------------------
# Deterministic parameter init (only IEU_W's params are used by forward)
# ---------------------------------------------------------------------------
def init_params(key, C):
    ks = jax.random.split(key, 7)

    def u(k, shape, fan_in):
        bound = 1.0 / math.sqrt(fan_in)
        return jax.random.uniform(k, shape, jnp.float32, -bound, bound)

    return {
        "wqkv": u(ks[0], (3 * C, C), C),     # to_qkv (no bias)
        "w1":   u(ks[1], (2 * C, C), C),     # Mlp.fc1
        "b1":   u(ks[2], (2 * C,), C),
        "w2":   u(ks[3], (C, 2 * C), 2 * C), # Mlp.fc2
        "b2":   u(ks[4], (C,), 2 * C),
        "wp":   u(ks[5], (1, C), C),         # bit_projection_mlp
        "bp":   u(ks[6], (1,), C),
    }


if __name__ == "__main__":
    B, C, H, W = 2, 8, 16, 16   # ws=8 -> 2x2 windows of 64 tokens, heads=4, dh=2, HW=256
    key = jax.random.PRNGKey(0)
    k0, k1, k2, kp = jax.random.split(key, 4)
    x_img = jax.random.normal(k0, (B, C, H, W), jnp.float32)
    x_img1 = jax.random.normal(k1, (B, C, H, W), jnp.float32)
    x_img2 = jax.random.normal(k2, (B, C, H, W), jnp.float32)
    params = init_params(kp, C)

    out = frnet_modified_forward(x_img, x_img1, x_img2, params)
    out = jax.block_until_ready(out)

    ref = reference_forward(x_img, x_img1, x_img2, params)
    assert out.shape == (B, C, H, W)
    max_err = float(jnp.max(jnp.abs(out - ref)))
    # tolerance covers the EUP approximate-reciprocal softmax path and the erf polynomial
    if max_err < 1e-2:
        print("KERNEL_OK")
    else:
        print(f"MISMATCH max_err={max_err}")
</pallas_src>

<mosaic_0001>
module attributes {stable_mosaic.version = 11 : i64} {
  func.func @kernel(%arg0: i32, %arg1: memref<1x8x256xf32, #tpu.memory_space<vmem>>, %arg2: memref<1x8x256xf32, #tpu.memory_space<vmem>>, %arg3: memref<1x8x256xf32, #tpu.memory_space<vmem>>, %arg4: memref<256x256xf32, #tpu.memory_space<vmem>>, %arg5: memref<24x8xf32, #tpu.memory_space<vmem>>, %arg6: memref<16x8xf32, #tpu.memory_space<vmem>>, %arg7: memref<16x1xf32, #tpu.memory_space<vmem>>, %arg8: memref<1x16xf32, #tpu.memory_space<vmem>>, %arg9: memref<1x1xf32, #tpu.memory_space<vmem>>, %arg10: memref<1x8x256xf32, #tpu.memory_space<vmem>>) attributes {dimension_semantics = [#tpu.dimension_semantics<parallel>], iteration_bounds = array<i64: 2>, scalar_prefetch = 0 : i64, scratch_operands = 0 : i64, tpu.core_type = #tpu.core_type<tc>, window_params = [{transform_indices = @transform_0, window_bounds = array<i64: 1, 8, 256>}, {transform_indices = @transform_1, window_bounds = array<i64: 1, 8, 256>}, {transform_indices = @transform_2, window_bounds = array<i64: 1, 8, 256>}, {pipeline_mode = #tpu.pipeline_mode<synchronous>, transform_indices = @transform_3, window_bounds = array<i64: 256, 256>}, {pipeline_mode = #tpu.pipeline_mode<synchronous>, transform_indices = @transform_4, window_bounds = array<i64: 24, 8>}, {pipeline_mode = #tpu.pipeline_mode<synchronous>, transform_indices = @transform_5, window_bounds = array<i64: 16, 8>}, {pipeline_mode = #tpu.pipeline_mode<synchronous>, transform_indices = @transform_6, window_bounds = array<i64: 16, 1>}, {pipeline_mode = #tpu.pipeline_mode<synchronous>, transform_indices = @transform_7, window_bounds = array<i64: 1, 16>}, {pipeline_mode = #tpu.pipeline_mode<synchronous>, transform_indices = @transform_8, window_bounds = array<i64: 1, 1>}, {transform_indices = @transform_9, window_bounds = array<i64: 1, 8, 256>}]} {
    %c0 = arith.constant 0 : index
    %c0_0 = arith.constant 0 : index
    %c0_1 = arith.constant 0 : index
    %0 = vector.load %arg1[%c0, %c0_0, %c0_1] : memref<1x8x256xf32, #tpu.memory_space<vmem>>, vector<1x8x256xf32>
    %1 = vector.shape_cast %0 : vector<1x8x256xf32> to vector<8x256xf32>
    %c0_2 = arith.constant 0 : index
    %c0_3 = arith.constant 0 : index
    %2 = vector.load %arg4[%c0_2, %c0_3] : memref<256x256xf32, #tpu.memory_space<vmem>>, vector<256x256xf32>
    %c0_4 = arith.constant 0 : index
    %c0_5 = arith.constant 0 : index
    %3 = vector.load %arg5[%c0_4, %c0_5] : memref<24x8xf32, #tpu.memory_space<vmem>>, vector<24x8xf32>
    %cst = arith.constant dense<0.000000e+00> : vector<24x256xf32>
    %4 = tpu.matmul %3, %1, %cst {dimension_numbers = #tpu.dot_dimension_numbers<[1], [0], [0], [1], [0, 0, 1, 1], [], []>} : vector<24x8xf32>, vector<8x256xf32>, vector<24x256xf32> -> vector<24x256xf32>
    %c0_6 = arith.constant 0 : index
    %c0_7 = arith.constant 0 : index
    %5 = vector.load %arg6[%c0_6, %c0_7] : memref<16x8xf32, #tpu.memory_space<vmem>>, vector<16x8xf32>
    %cst_8 = arith.constant dense<0.000000e+00> : vector<16x256xf32>
    %6 = tpu.matmul %5, %1, %cst_8 {dimension_numbers = #tpu.dot_dimension_numbers<[1], [0], [0], [1], [0, 0, 1, 1], [], []>} : vector<16x8xf32>, vector<8x256xf32>, vector<16x256xf32> -> vector<16x256xf32>
    %c0_9 = arith.constant 0 : index
    %c0_10 = arith.constant 0 : index
    %7 = vector.load %arg7[%c0_9, %c0_10] : memref<16x1xf32, #tpu.memory_space<vmem>>, vector<16x1xf32>
    %8 = vector.broadcast %7 : vector<16x1xf32> to vector<16x256xf32>
    %9 = arith.addf %6, %8 : vector<16x256xf32>
    %10 = vector.extract_strided_slice %4 {offsets = [0, 0], sizes = [2, 256], strides = [1, 1]} : vector<24x256xf32> to vector<2x256xf32>
    %11 = vector.extract_strided_slice %4 {offsets = [8, 0], sizes = [2, 256], strides = [1, 1]} : vector<24x256xf32> to vector<2x256xf32>
    %12 = vector.extract_strided_slice %4 {offsets = [16, 0], sizes = [2, 256], strides = [1, 1]} : vector<24x256xf32> to vector<2x256xf32>
    %cst_11 = arith.constant dense<0.000000e+00> : vector<256x256xf32>
    %13 = tpu.matmul %10, %11, %cst_11 {dimension_numbers = #tpu.dot_dimension_numbers<[0], [0], [1], [1], [0, 1, 1, 1], [], []>} : vector<2x256xf32>, vector<2x256xf32>, vector<256x256xf32> -> vector<256x256xf32>
    %14 = arith.addf %13, %2 : vector<256x256xf32>
    %cst_12 = arith.constant dense<0xFF800000> : vector<256xf32>
    %15 = vector.multi_reduction <maximumf>, %14, %cst_12 [1] : vector<256x256xf32> to vector<256xf32>
    %16 = vector.shape_cast %15 : vector<256xf32> to vector<256x1xf32>
    %17 = vector.broadcast %16 : vector<256x1xf32> to vector<256x256xf32>
    %18 = arith.subf %14, %17 : vector<256x256xf32>
    %19 = math.exp %18 : vector<256x256xf32>
    %cst_13 = arith.constant dense<0.000000e+00> : vector<256xf32>
    %20 = vector.multi_reduction <add>, %19, %cst_13 [1] : vector<256x256xf32> to vector<256xf32>
    %21 = vector.shape_cast %20 : vector<256xf32> to vector<256x1xf32>
    %22 = tpu.reciprocal %21 {approx = true} : vector<256x1xf32> -> vector<256x1xf32>
    %23 = vector.broadcast %22 : vector<256x1xf32> to vector<256x256xf32>
    %24 = arith.mulf %19, %23 : vector<256x256xf32>
    %cst_14 = arith.constant dense<0.000000e+00> : vector<2x256xf32>
    %25 = tpu.matmul %12, %24, %cst_14 {dimension_numbers = #tpu.dot_dimension_numbers<[1], [1], [0], [0], [0, 0, 1, 0], [], []>} : vector<2x256xf32>, vector<256x256xf32>, vector<2x256xf32> -> vector<2x256xf32>
    %26 = vector.extract_strided_slice %4 {offsets = [2, 0], sizes = [2, 256], strides = [1, 1]} : vector<24x256xf32> to vector<2x256xf32>
    %27 = vector.extract_strided_slice %4 {offsets = [10, 0], sizes = [2, 256], strides = [1, 1]} : vector<24x256xf32> to vector<2x256xf32>
    %28 = vector.extract_strided_slice %4 {offsets = [18, 0], sizes = [2, 256], strides = [1, 1]} : vector<24x256xf32> to vector<2x256xf32>
    %cst_15 = arith.constant dense<0.000000e+00> : vector<256x256xf32>
    %29 = tpu.matmul %26, %27, %cst_15 {dimension_numbers = #tpu.dot_dimension_numbers<[0], [0], [1], [1], [0, 1, 1, 1], [], []>} : vector<2x256xf32>, vector<2x256xf32>, vector<256x256xf32> -> vector<256x256xf32>
    %30 = arith.addf %29, %2 : vector<256x256xf32>
    %cst_16 = arith.constant dense<0xFF800000> : vector<256xf32>
    %31 = vector.multi_reduction <maximumf>, %30, %cst_16 [1] : vector<256x256xf32> to vector<256xf32>
    %32 = vector.shape_cast %31 : vector<256xf32> to vector<256x1xf32>
    %33 = vector.broadcast %32 : vector<256x1xf32> to vector<256x256xf32>
    %34 = arith.subf %30, %33 : vector<256x256xf32>
    %35 = math.exp %34 : vector<256x256xf32>
    %cst_17 = arith.constant dense<0.000000e+00> : vector<256xf32>
    %36 = vector.multi_reduction <add>, %35, %cst_17 [1] : vector<256x256xf32> to vector<256xf32>
    %37 = vector.shape_cast %36 : vector<256xf32> to vector<256x1xf32>
    %38 = tpu.reciprocal %37 {approx = true} : vector<256x1xf32> -> vector<256x1xf32>
    %39 = vector.broadcast %38 : vector<256x1xf32> to vector<256x256xf32>
    %40 = arith.mulf %35, %39 : vector<256x256xf32>
    %cst_18 = arith.constant dense<0.000000e+00> : vector<2x256xf32>
    %41 = tpu.matmul %28, %40, %cst_18 {dimension_numbers = #tpu.dot_dimension_numbers<[1], [1], [0], [0], [0, 0, 1, 0], [], []>} : vector<2x256xf32>, vector<256x256xf32>, vector<2x256xf32> -> vector<2x256xf32>
    %42 = vector.extract_strided_slice %4 {offsets = [4, 0], sizes = [2, 256], strides = [1, 1]} : vector<24x256xf32> to vector<2x256xf32>
    %43 = vector.extract_strided_slice %4 {offsets = [12, 0], sizes = [2, 256], strides = [1, 1]} : vector<24x256xf32> to vector<2x256xf32>
    %44 = vector.extract_strided_slice %4 {offsets = [20, 0], sizes = [2, 256], strides = [1, 1]} : vector<24x256xf32> to vector<2x256xf32>
    %cst_19 = arith.constant dense<0.000000e+00> : vector<256x256xf32>
    %45 = tpu.matmul %42, %43, %cst_19 {dimension_numbers = #tpu.dot_dimension_numbers<[0], [0], [1], [1], [0, 1, 1, 1], [], []>} : vector<2x256xf32>, vector<2x256xf32>, vector<256x256xf32> -> vector<256x256xf32>
    %46 = arith.addf %45, %2 : vector<256x256xf32>
    %cst_20 = arith.constant dense<0xFF800000> : vector<256xf32>
    %47 = vector.multi_reduction <maximumf>, %46, %cst_20 [1] : vector<256x256xf32> to vector<256xf32>
    %48 = vector.shape_cast %47 : vector<256xf32> to vector<256x1xf32>
    %49 = vector.broadcast %48 : vector<256x1xf32> to vector<256x256xf32>
    %50 = arith.subf %46, %49 : vector<256x256xf32>
    %51 = math.exp %50 : vector<256x256xf32>
    %cst_21 = arith.constant dense<0.000000e+00> : vector<256xf32>
    %52 = vector.multi_reduction <add>, %51, %cst_21 [1] : vector<256x256xf32> to vector<256xf32>
    %53 = vector.shape_cast %52 : vector<256xf32> to vector<256x1xf32>
    %54 = tpu.reciprocal %53 {approx = true} : vector<256x1xf32> -> vector<256x1xf32>
    %55 = vector.broadcast %54 : vector<256x1xf32> to vector<256x256xf32>
    %56 = arith.mulf %51, %55 : vector<256x256xf32>
    %cst_22 = arith.constant dense<0.000000e+00> : vector<2x256xf32>
    %57 = tpu.matmul %44, %56, %cst_22 {dimension_numbers = #tpu.dot_dimension_numbers<[1], [1], [0], [0], [0, 0, 1, 0], [], []>} : vector<2x256xf32>, vector<256x256xf32>, vector<2x256xf32> -> vector<2x256xf32>
    %58 = vector.extract_strided_slice %4 {offsets = [6, 0], sizes = [2, 256], strides = [1, 1]} : vector<24x256xf32> to vector<2x256xf32>
    %59 = vector.extract_strided_slice %4 {offsets = [14, 0], sizes = [2, 256], strides = [1, 1]} : vector<24x256xf32> to vector<2x256xf32>
    %60 = vector.extract_strided_slice %4 {offsets = [22, 0], sizes = [2, 256], strides = [1, 1]} : vector<24x256xf32> to vector<2x256xf32>
    %cst_23 = arith.constant dense<0.000000e+00> : vector<256x256xf32>
    %61 = tpu.matmul %58, %59, %cst_23 {dimension_numbers = #tpu.dot_dimension_numbers<[0], [0], [1], [1], [0, 1, 1, 1], [], []>} : vector<2x256xf32>, vector<2x256xf32>, vector<256x256xf32> -> vector<256x256xf32>
    %62 = arith.addf %61, %2 : vector<256x256xf32>
    %cst_24 = arith.constant dense<0xFF800000> : vector<256xf32>
    %63 = vector.multi_reduction <maximumf>, %62, %cst_24 [1] : vector<256x256xf32> to vector<256xf32>
    %64 = vector.shape_cast %63 : vector<256xf32> to vector<256x1xf32>
    %65 = vector.broadcast %64 : vector<256x1xf32> to vector<256x256xf32>
    %66 = arith.subf %62, %65 : vector<256x256xf32>
    %67 = math.exp %66 : vector<256x256xf32>
    %cst_25 = arith.constant dense<0.000000e+00> : vector<256xf32>
    %68 = vector.multi_reduction <add>, %67, %cst_25 [1] : vector<256x256xf32> to vector<256xf32>
    %69 = vector.shape_cast %68 : vector<256xf32> to vector<256x1xf32>
    %70 = tpu.reciprocal %69 {approx = true} : vector<256x1xf32> -> vector<256x1xf32>
    %71 = vector.broadcast %70 : vector<256x1xf32> to vector<256x256xf32>
    %72 = arith.mulf %67, %71 : vector<256x256xf32>
    %cst_26 = arith.constant dense<0.000000e+00> : vector<2x256xf32>
    %73 = tpu.matmul %60, %72, %cst_26 {dimension_numbers = #tpu.dot_dimension_numbers<[1], [1], [0], [0], [0, 0, 1, 0], [], []>} : vector<2x256xf32>, vector<256x256xf32>, vector<2x256xf32> -> vector<2x256xf32>
    %74 = tpu.concatenate %25, %41, %57, %73 in 0 : vector<2x256xf32>, vector<2x256xf32>, vector<2x256xf32>, vector<2x256xf32> -> vector<8x256xf32>
    %cst_27 = arith.constant dense<0.000000e+00> : vector<16xf32>
    %75 = vector.multi_reduction <add>, %9, %cst_27 [1] : vector<16x256xf32> to vector<16xf32>
    %76 = vector.shape_cast %75 : vector<16xf32> to vector<16x1xf32>
    %cst_28 = arith.constant 2.560000e+02 : f32
    %77 = vector.broadcast %cst_28 : f32 to vector<16x1xf32>
    %78 = arith.divf %76, %77 : vector<16x1xf32>
    %79 = vector.broadcast %78 : vector<16x1xf32> to vector<16x256xf32>
    %80 = arith.subf %9, %79 : vector<16x256xf32>
    %81 = arith.mulf %80, %80 : vector<16x256xf32>
    %cst_29 = arith.constant dense<0.000000e+00> : vector<16xf32>
    %82 = vector.multi_reduction <add>, %81, %cst_29 [1] : vector<16x256xf32> to vector<16xf32>
    %83 = vector.shape_cast %82 : vector<16xf32> to vector<16x1xf32>
    %cst_30 = arith.constant 2.560000e+02 : f32
    %84 = vector.broadcast %cst_30 : f32 to vector<16x1xf32>
    %85 = arith.divf %83, %84 : vector<16x1xf32>
    %86 = vector.broadcast %78 : vector<16x1xf32> to vector<16x256xf32>
    %87 = arith.subf %9, %86 : vector<16x256xf32>
    %cst_31 = arith.constant 9.99999974E-6 : f32
    %88 = vector.broadcast %cst_31 : f32 to vector<16x1xf32>
    %89 = arith.addf %85, %88 : vector<16x1xf32>
    %90 = math.rsqrt %89 : vector<16x1xf32>
    %91 = vector.broadcast %90 : vector<16x1xf32> to vector<16x256xf32>
    %92 = arith.mulf %87, %91 : vector<16x256xf32>
    %cst_32 = arith.constant 5.000000e-01 : f32
    %93 = vector.broadcast %cst_32 : f32 to vector<16x256xf32>
    %94 = arith.mulf %93, %92 : vector<16x256xf32>
    %cst_33 = arith.constant 0.707106769 : f32
    %95 = vector.broadcast %cst_33 : f32 to vector<16x256xf32>
    %96 = arith.mulf %92, %95 : vector<16x256xf32>
    %97 = math.absf %96 : vector<16x256xf32>
    %cst_34 = arith.constant 0.327591091 : f32
    %98 = vector.broadcast %cst_34 : f32 to vector<16x256xf32>
    %99 = arith.mulf %98, %97 : vector<16x256xf32>
    %cst_35 = arith.constant 1.000000e+00 : f32
    %100 = vector.broadcast %cst_35 : f32 to vector<16x256xf32>
    %101 = arith.addf %100, %99 : vector<16x256xf32>
    %cst_36 = arith.constant 1.000000e+00 : f32
    %102 = vector.broadcast %cst_36 : f32 to vector<16x256xf32>
    %103 = arith.divf %102, %101 : vector<16x256xf32>
    %cst_37 = arith.constant 1.06140542 : f32
    %104 = vector.broadcast %cst_37 : f32 to vector<16x256xf32>
    %105 = arith.mulf %104, %103 : vector<16x256xf32>
    %cst_38 = arith.constant -1.45315206 : f32
    %106 = vector.broadcast %cst_38 : f32 to vector<16x256xf32>
    %107 = arith.addf %105, %106 : vector<16x256xf32>
    %108 = arith.mulf %107, %103 : vector<16x256xf32>
    %cst_39 = arith.constant 1.42141378 : f32
    %109 = vector.broadcast %cst_39 : f32 to vector<16x256xf32>
    %110 = arith.addf %108, %109 : vector<16x256xf32>
    %111 = arith.mulf %110, %103 : vector<16x256xf32>
    %cst_40 = arith.constant -0.284496725 : f32
    %112 = vector.broadcast %cst_40 : f32 to vector<16x256xf32>
    %113 = arith.addf %111, %112 : vector<16x256xf32>
    %114 = arith.mulf %113, %103 : vector<16x256xf32>
    %cst_41 = arith.constant 0.254829586 : f32
    %115 = vector.broadcast %cst_41 : f32 to vector<16x256xf32>
    %116 = arith.addf %114, %115 : vector<16x256xf32>
    %117 = arith.mulf %116, %103 : vector<16x256xf32>
    %cst_42 = arith.constant 0.000000e+00 : f32
    %118 = vector.broadcast %cst_42 : f32 to vector<16x256xf32>
    %119 = arith.subf %118, %97 : vector<16x256xf32>
    %120 = arith.mulf %119, %97 : vector<16x256xf32>
    %121 = math.exp %120 : vector<16x256xf32>
    %122 = arith.mulf %117, %121 : vector<16x256xf32>
    %cst_43 = arith.constant 1.000000e+00 : f32
    %123 = vector.broadcast %cst_43 : f32 to vector<16x256xf32>
    %124 = arith.subf %123, %122 : vector<16x256xf32>
    %cst_44 = arith.constant 0.000000e+00 : f32
    %125 = vector.broadcast %cst_44 : f32 to vector<16x256xf32>
    %126 = arith.cmpf oge, %96, %125 : vector<16x256xf32>
    %cst_45 = arith.constant 0.000000e+00 : f32
    %127 = vector.broadcast %cst_45 : f32 to vector<16x256xf32>
    %128 = arith.subf %127, %124 : vector<16x256xf32>
    %129 = arith.select %126, %124, %128 : vector<16x256xi1>, vector<16x256xf32>
    %cst_46 = arith.constant 1.000000e+00 : f32
    %130 = vector.broadcast %cst_46 : f32 to vector<16x256xf32>
    %131 = arith.addf %130, %129 : vector<16x256xf32>
    %132 = arith.mulf %94, %131 : vector<16x256xf32>
    %c0_47 = arith.constant 0 : index
    %c0_48 = arith.constant 0 : index
    %133 = vector.load %arg8[%c0_47, %c0_48] : memref<1x16xf32, #tpu.memory_space<vmem>>, vector<1x16xf32>
    %cst_49 = arith.constant dense<0.000000e+00> : vector<1x256xf32>
    %134 = tpu.matmul %133, %132, %cst_49 {dimension_numbers = #tpu.dot_dimension_numbers<[1], [0], [0], [1], [0, 0, 1, 1], [], []>} : vector<1x16xf32>, vector<16x256xf32>, vector<1x256xf32> -> vector<1x256xf32>
    %c0_50 = arith.constant 0 : index
    %c0_51 = arith.constant 0 : index
    %135 = vector.load %arg9[%c0_50, %c0_51] : memref<1x1xf32, #tpu.memory_space<vmem>>, vector<1x1xf32>
    %136 = vector.broadcast %135 : vector<1x1xf32> to vector<1x256xf32>
    %137 = arith.addf %134, %136 : vector<1x256xf32>
    %cst_52 = arith.constant 0.000000e+00 : f32
    %138 = vector.broadcast %cst_52 : f32 to vector<1x256xf32>
    %139 = arith.maximumf %137, %138 : vector<1x256xf32>
    %140 = vector.broadcast %139 : vector<1x256xf32> to vector<8x256xf32>
    %141 = arith.mulf %140, %74 : vector<8x256xf32>
    %142 = arith.negf %141 : vector<8x256xf32>
    %143 = math.exp %142 : vector<8x256xf32>
    %cst_53 = arith.constant 1.000000e+00 : f32
    %144 = vector.broadcast %cst_53 : f32 to vector<8x256xf32>
    %145 = arith.addf %144, %143 : vector<8x256xf32>
    %146 = arith.divf %144, %145 : vector<8x256xf32>
    %c0_54 = arith.constant 0 : index
    %c0_55 = arith.constant 0 : index
    %c0_56 = arith.constant 0 : index
    %147 = vector.load %arg2[%c0_54, %c0_55, %c0_56] : memref<1x8x256xf32, #tpu.memory_space<vmem>>, vector<1x8x256xf32>
    %148 = vector.shape_cast %147 : vector<1x8x256xf32> to vector<8x256xf32>
    %149 = arith.mulf %148, %146 : vector<8x256xf32>
    %c0_57 = arith.constant 0 : index
    %c0_58 = arith.constant 0 : index
    %c0_59 = arith.constant 0 : index
    %150 = vector.load %arg3[%c0_57, %c0_58, %c0_59] : memref<1x8x256xf32, #tpu.memory_space<vmem>>, vector<1x8x256xf32>
    %151 = vector.shape_cast %150 : vector<1x8x256xf32> to vector<8x256xf32>
    %cst_60 = arith.constant 1.000000e+00 : f32
    %152 = vector.broadcast %cst_60 : f32 to vector<8x256xf32>
    %153 = arith.subf %152, %146 : vector<8x256xf32>
    %154 = arith.mulf %151, %153 : vector<8x256xf32>
    %155 = arith.addf %149, %154 : vector<8x256xf32>
    %c0_61 = arith.constant 0 : index
    %c0_62 = arith.constant 0 : index
    %c0_63 = arith.constant 0 : index
    %156 = vector.load %arg10[%c0_61, %c0_62, %c0_63] : memref<1x8x256xf32, #tpu.memory_space<vmem>>, vector<1x8x256xf32>
    %157 = vector.shape_cast %156 : vector<1x8x256xf32> to vector<8x256xf32>
    %158 = vector.shape_cast %155 : vector<8x256xf32> to vector<1x8x256xf32>
    tpu.vector_store %arg10[%c0_61, %c0_62, %c0_63], %158 {strides = array<i32>} : memref<1x8x256xf32, #tpu.memory_space<vmem>>, vector<1x8x256xf32>,
    return
  }
  func.func @transform_0(%arg0: i32) -> (i32, i32, i32) {
    %c0_i32 = arith.constant 0 : i32
    %c0_i32_0 = arith.constant 0 : i32
    %c0_i32_1 = arith.constant 0 : i32
    return %arg0, %c0_i32, %c0_i32_0 : i32, i32, i32
  }
  func.func @transform_1(%arg0: i32) -> (i32, i32, i32) {
    %c0_i32 = arith.constant 0 : i32
    %c0_i32_0 = arith.constant 0 : i32
    %c0_i32_1 = arith.constant 0 : i32
    return %arg0, %c0_i32, %c0_i32_0 : i32, i32, i32
  }
  func.func @transform_2(%arg0: i32) -> (i32, i32, i32) {
    %c0_i32 = arith.constant 0 : i32
    %c0_i32_0 = arith.constant 0 : i32
    %c0_i32_1 = arith.constant 0 : i32
    return %arg0, %c0_i32, %c0_i32_0 : i32, i32, i32
  }
  func.func @transform_3(%arg0: i32) -> (i32, i32) {
    %c0_i32 = arith.constant 0 : i32
    %c0_i32_0 = arith.constant 0 : i32
    %c0_i32_1 = arith.constant 0 : i32
    return %c0_i32, %c0_i32_0 : i32, i32
  }
  func.func @transform_4(%arg0: i32) -> (i32, i32) {
    %c0_i32 = arith.constant 0 : i32
    %c0_i32_0 = arith.constant 0 : i32
    %c0_i32_1 = arith.constant 0 : i32
    return %c0_i32, %c0_i32_0 : i32, i32
  }
  func.func @transform_5(%arg0: i32) -> (i32, i32) {
    %c0_i32 = arith.constant 0 : i32
    %c0_i32_0 = arith.constant 0 : i32
    %c0_i32_1 = arith.constant 0 : i32
    return %c0_i32, %c0_i32_0 : i32, i32
  }
  func.func @transform_6(%arg0: i32) -> (i32, i32) {
    %c0_i32 = arith.constant 0 : i32
    %c0_i32_0 = arith.constant 0 : i32
    %c0_i32_1 = arith.constant 0 : i32
    return %c0_i32, %c0_i32_0 : i32, i32
  }
  func.func @transform_7(%arg0: i32) -> (i32, i32) {
    %c0_i32 = arith.constant 0 : i32
    %c0_i32_0 = arith.constant 0 : i32
    %c0_i32_1 = arith.constant 0 : i32
    return %c0_i32, %c0_i32_0 : i32, i32
  }
  func.func @transform_8(%arg0: i32) -> (i32, i32) {
    %c0_i32 = arith.constant 0 : i32
    %c0_i32_0 = arith.constant 0 : i32
    %c0_i32_1 = arith.constant 0 : i32
    return %c0_i32, %c0_i32_0 : i32, i32
  }
  func.func @transform_9(%arg0: i32) -> (i32, i32, i32) {
    %c0_i32 = arith.constant 0 : i32
    %c0_i32_0 = arith.constant 0 : i32
    %c0_i32_1 = arith.constant 0 : i32
    return %arg0, %c0_i32, %c0_i32_0 : i32, i32, i32
  }
}

</mosaic_0001>

<bundles_post_ra>
// kernel: frnet_modified_forward.1
= control target key start
LH: loop header
LB: loop body
LE: loop exit
PB: predicated region body
PF: predicated region fallthrough
CT: control target
= control target key end

     0   :  { %s6416_s11 = smov 0   ;;  %s9897_s0 = inlined_call_operand.vmem [shape: f32[2,8,256], index: 0, kind: input, shape index: {}]   ;;  %s9898_s1 = inlined_call_operand.vmem [shape: f32[2,8,256], index: 1, kind: input, shape index: {}]   ;;  %s9899_s2 = inlined_call_operand.vmem [shape: f32[2,8,256], index: 2, kind: input, shape index: {}]   ;;  %s9900_s3 = inlined_call_operand.vmem [shape: f32[256,256], index: 3, kind: input, shape index: {}]   ;;  %s9901_s4 = inlined_call_operand.vmem [shape: f32[24,8], index: 4, kind: input, shape index: {}]   ;;  %s9902_s5 = inlined_call_operand.vmem [shape: f32[16,8], index: 5, kind: input, shape index: {}]   ;;  %s9903_s6 = inlined_call_operand.vmem [shape: f32[16,1], index: 6, kind: input, shape index: {}]   ;;  %s9904_s7 = inlined_call_operand.vmem [shape: f32[1,16], index: 7, kind: input, shape index: {}]   ;;  %s9905_s8 = inlined_call_operand.<no memory space> [shape: f32[1,1], index: 8, kind: input, shape index: {}]   ;;  %s9906_s9 = inlined_call_operand.vmem [shape: f32[2,8,256], index: 9, kind: output, shape index: {}]  }
   0x1   :  { %v14_v0 = vstv %s9905_s8 }
   0x2   :  { %15 = vst [vmem:[#allocation2] sm:$0x1] %v14_v0 }
   0x3 LB: > { %s4930_s12 = sadd.s32 4294967295, %s6359_s11   ;;  %p4934_p0 = scmp.ge.s32.totalorder %s6359_s11, 1  ;;  %s6359_s11 = sphi %s6416_s11, %s21_s11  }
   0x4   : > { %p309_p1 = scmp.lt.s32.totalorder %s6359_s11, 3 }
   0x6   : > { %p310_p2 = pnand %p4934_p0, %p309_p1 }
   0x8   : > { %313 = sbr.rel (%p310_p2) target bundleno = 3552 (0xde0), region = 56 }
   0xf   : > { %p355_p3 = scmp.lt.s32.totalorder %s4930_s12, 1  ;;  %v9907_v1 = vmov 0.0   ;;  %v441_v3 = vld [vmem:[%s9901_s4] sm:$0xff]  ;;  %vm444_vm0 = vcmask 64512   ;;  %v442_v5 = vld [vmem:[%s9901_s4 + $0x8] sm:$0xff]  ;;  %v443_v6 = vld [vmem:[%s9901_s4 + $0x10] sm:$0xff] }
  0x10   : > { %518 = vmatprep.mubr.f32.mxu1 %v9907_v1  ;;  %v537_v7 = vld [vmem:[%s9902_s5] sm:$0xff]  ;;  %v538_v8 = vld [vmem:[%s9902_s5 + $0x8] sm:$0xff]  ;;  %vm795_vm1 = vcmask 1041408   ;;  %vm698_vm2 = vcmask 15360   ;;  %v379_v58 = vld [vmem:[%s9900_s3 + $0x10] sm:$0xff]  ;;  %vm4580_vm3 = vcmask 1043456  }
  0x11   : > { %s10322_s12 = smov (!%p355_p3, %s4930_s12), 1  ;;  %v377_v52 = vld [vmem:[%s9900_s3] sm:$0xff]  ;;  %v378_v53 = vld [vmem:[%s9900_s3 + $0x8] sm:$0xff]  ;;  %v380_v59 = vld [vmem:[%s9900_s3 + $0x18] sm:$0xff]  ;;  %vm4738_vm8 = vcmask 130048   ;;  %vm4583_vm9 = vcmask 1045504  }
  0x12   : > { %s6425_s8 = sshll.u32 %s10322_s12, 4 }
  0x13   : > { %s359_s15 = scalar_lea.vmem %s9897_s0, %s6425_s8  ;;  %s364_s26 = scalar_lea.vmem %s9898_s1, %s6425_s8 }
  0x14   : > { %v376_v2 = vld [vmem:[%s359_s15 + $0x8] sm:$0xff]  ;;  %v375_v4 = vld [vmem:[%s359_s15] sm:$0xff]  ;;  %s369_s29 = scalar_lea.vmem %s9899_s2, %s6425_s8  ;;  %s374_s12 = scalar_lea.vmem %s9906_s9, %s6425_s8 }
  0x15   : > { %454 = vmatprep.subr.mxu1 %v376_v2 }
  0x16   : > { %455 = vmatpush1.msra.mxu1 %v375_v4 }
  0x17   : > { %4943 = vmatmul.mubr.msk.f32.vlgmr.msra.gmra.mrb[0].mxu1 %vm444_vm0, %v441_v3  ;;  %557 = vmatprep.subr.mxu1 %v376_v2  ;;  %v381_v2 = vld [vmem:[%s9900_s3 + $0x20] sm:$0xff]  ;;  %v382_v3 = vld [vmem:[%s9900_s3 + $0x28] sm:$0xff] }
  0x18   : > { %524 = vmatprep.mubr.f32.mxu1 %v9907_v1  ;;  %558 = vmatpush1.msra.mxu1 %v375_v4 }
  0x1b   : > { %4944 = vmatmul.mubr.msk.f32.gmra.mrb[2].mxu1 %vm444_vm0, %v442_v5 }
  0x1c   : > { %530 = vmatprep.mubr.f32.mxu1 %v9907_v1 }
  0x1f   : > { %4945 = vmatmul.mubr.msk.f32.gmra.mrb[4].mxu1 %vm444_vm0, %v443_v6 }
  0x20   : > { %621 = vmatprep.mubr.f32.mxu1 %v9907_v1 }
  0x23   : > { %4946 = vmatmul.mubr.msk.f32.vlgmr.msra.gmra.mrb[6].mxu1 %vm444_vm0, %v537_v7 }
  0x24   : > { %627 = vmatprep.mubr.f32.mxu1 %v9907_v1 }
  0x27   : > { %4947 = vmatmul.mubr.msk.f32.gmra.mrb[8].mxu1 %vm444_vm0, %v538_v8 }
  0x28   : > { %866 = vmatprep.mubr.f32.mxu1 %v9907_v1 }
  0xea   : > { %v6456_v9 = vpop.f32.mrb[0].mxu1 }
  0xeb   : > { %10039 = vst [vmem:[#allocation3_spill] sm:$0xff] %v6456_v9  ;;  %634 = vxpose.xlu0.b32.start.end [1/1] (short) %v6456_v9, 128  ;;  %v6459_v10 = vpop.f32.mrb[1].mxu1 }
  0xec   : > { %10040 = vst [vmem:[#allocation4_spill] sm:$0xff] %v6459_v10 }
  0xee   : > { %v6461_v11 = vpop.f32.mrb[2].mxu1 }
  0xef   : > { %10041 = vst [vmem:[#allocation5_spill] sm:$0xff] %v6461_v11  ;;  %v6463_v12 = vpop.f32.mrb[3].mxu1 }
  0xf0   : > { %10042 = vst [vmem:[#allocation6_spill] sm:$0xff] %v6463_v12  ;;  %4948 = vmatprep.subr.msk.mxu1 %vm795_vm1, %v6463_v12 }
  0xf1   : > { %4949 = vmatpush1.msk.msra.mxu1 %vm795_vm1, %v6461_v11 }
  0xf2   : > { %v6479_v18 = vpop.f32.mrb[4].mxu1 }
  0xf3   : > { %10043 = vst [vmem:[#allocation7_spill] sm:$0xff] %v6479_v18  ;;  %v6482_v19 = vpop.f32.mrb[5].mxu1 }
  0xf4   : > { %10044 = vst [vmem:[#allocation8_spill] sm:$0xff] %v6482_v19  ;;  %1603 = vmatprep.mubr.f32.mxu0 %v6482_v19  ;;  %v2522_v50 = vrot.slane %v6482_v19, 2 }
  0xf6   : > { %v6486_v21 = vpop.f32.mrb[6].mxu1 }
  0xf7   : > { %10045 = vst [vmem:[#allocation9_spill] sm:$0xff] %v6486_v21  ;;  %v6489_v22 = vpop.f32.mrb[7].mxu1 }
  0xf8   : > { %10046 = vst [vmem:[#allocation10_spill] sm:$0xff] %v6489_v22 }
  0xfa   : > { %v6492_v24 = vpop.f32.mrb[8].mxu1 }
  0xfb   : > { %10047 = vst [vmem:[#allocation11_spill] sm:$0xff] %v6492_v24  ;;  %v6495_v25 = vpop.f32.mrb[9].mxu1 }
  0xfc   : > { %10048 = vst [vmem:[#allocation12_spill] sm:$0xff] %v6495_v25 }
 0x128   : > { %666 = vxpose.xlu0.b32.start.end [1/1] (short) %v6459_v10, 128 }
 0x16b   : > { %v650_v13 = vpop.trf.xlu0 }
 0x16c   : > { %4950 = vmatmul.mubr.msk.f32.vlgmr.msra.gmra.mrb[10].mxu1 %vm698_vm2, %v650_v13  ;;  %v383_v13 = vld [vmem:[%s9900_s3 + $0x30] sm:$0xff] }
 0x16d   : > { %872 = vmatprep.mubr.f32.mxu1 %v9907_v1 }
 0x16f   : > { %v651_v14 = vpop.trf.xlu0 }
 0x170   : > { %4951 = vmatmul.mubr.msk.f32.gmra.mrb[12].mxu1 %vm698_vm2, %v651_v14  ;;  %v384_v14 = vld [vmem:[%s9900_s3 + $0x38] sm:$0xff] }
 0x171   : > { %878 = vmatprep.mubr.f32.mxu1 %v9907_v1 }
 0x173   : > { %v652_v15 = vpop.trf.xlu0 }
 0x174   : > { %4952 = vmatmul.mubr.msk.f32.gmra.mrb[14].mxu1 %vm698_vm2, %v652_v15 }
 0x175   : > { %884 = vmatprep.mubr.f32.mxu1 %v9907_v1 }
 0x177   : > { %v653_v16 = vpop.trf.xlu0 }
 0x178   : > { %4953 = vmatmul.mubr.msk.f32.gmra.mrb[16].mxu1 %vm698_vm2, %v653_v16 }
 0x179   : > { %890 = vmatprep.mubr.f32.mxu1 %v9907_v1 }
 0x17b   : > { %v654_v17 = vpop.trf.xlu0 }
 0x17c   : > { %4954 = vmatmul.mubr.msk.f32.gmra.mrb[18].mxu1 %vm698_vm2, %v654_v17 }
 0x17d   : > { %896 = vmatprep.mubr.f32.mxu1 %v9907_v1 }
 0x17f   : > { %v655_v20 = vpop.trf.xlu0 }
 0x180   : > { %4955 = vmatmul.mubr.msk.f32.gmra.mrb[20].mxu1 %vm698_vm2, %v655_v20 }
 0x181   : > { %902 = vmatprep.mubr.f32.mxu1 %v9907_v1 }
 0x183   : > { %v656_v23 = vpop.trf.xlu0 }
 0x184   : > { %4956 = vmatmul.mubr.msk.f32.gmra.mrb[22].mxu1 %vm698_vm2, %v656_v23 }
 0x185   : > { %908 = vmatprep.mubr.f32.mxu1 %v9907_v1 }
 0x187   : > { %v657_v26 = vpop.trf.xlu0 }
 0x188   : > { %4957 = vmatmul.mubr.msk.f32.gmra.mrb[24].mxu1 %vm698_vm2, %v657_v26  ;;  %v385_v26 = vld [vmem:[%s9900_s3 + $0x40] sm:$0xff] }
 0x189   : > { %914 = vmatprep.mubr.f32.mxu1 %v9907_v1 }
 0x18b   : > { %v658_v27 = vpop.trf.xlu0 }
 0x18c   : > { %4958 = vmatmul.mubr.msk.f32.gmra.mrb[26].mxu1 %vm698_vm2, %v658_v27  ;;  %v386_v27 = vld [vmem:[%s9900_s3 + $0x48] sm:$0xff] }
 0x18d   : > { %920 = vmatprep.mubr.f32.mxu1 %v9907_v1 }
 0x18f   : > { %v659_v28 = vpop.trf.xlu0 }
 0x190   : > { %4959 = vmatmul.mubr.msk.f32.gmra.mrb[28].mxu1 %vm698_vm2, %v659_v28 }
 0x191   : > { %926 = vmatprep.mubr.f32.mxu1 %v9907_v1 }
 0x193   : > { %v660_v29 = vpop.trf.xlu0 }
 0x194   : > { %4960 = vmatmul.mubr.msk.f32.gmra.mrb[30].mxu1 %vm698_vm2, %v660_v29 }
 0x195   : > { %932 = vmatprep.mubr.f32.mxu1 %v9907_v1 }
 0x197   : > { %v661_v30 = vpop.trf.xlu0 }
 0x198   : > { %4961 = vmatmul.mubr.msk.f32.gmra.mrb[32].mxu1 %vm698_vm2, %v661_v30 }
 0x199   : > { %938 = vmatprep.mubr.f32.mxu1 %v9907_v1 }
 0x19b   : > { %v662_v31 = vpop.trf.xlu0 }
 0x19c   : > { %4962 = vmatmul.mubr.msk.f32.gmra.mrb[34].mxu1 %vm698_vm2, %v662_v31 }
 0x19d   : > { %944 = vmatprep.mubr.f32.mxu1 %v9907_v1 }
 0x19f   : > { %v663_v32 = vpop.trf.xlu0 }
 0x1a0   : > { %4963 = vmatmul.mubr.msk.f32.gmra.mrb[36].mxu1 %vm698_vm2, %v663_v32 }
 0x1a1   : > { %950 = vmatprep.mubr.f32.mxu1 %v9907_v1 }
 0x1a3   : > { %v664_v33 = vpop.trf.xlu0 }
 0x1a4   : > { %4964 = vmatmul.mubr.msk.f32.gmra.mrb[38].mxu1 %vm698_vm2, %v664_v33  ;;  %v387_v33 = vld [vmem:[%s9900_s3 + $0x50] sm:$0xff] }
 0x1a5   : > { %956 = vmatprep.mubr.f32.mxu1 %v9907_v1 }
 0x1a7   : > { %v665_v34 = vpop.trf.xlu0 }
 0x1a8   : > { %4965 = vmatmul.mubr.msk.f32.gmra.mrb[40].mxu1 %vm698_vm2, %v665_v34  ;;  %v388_v34 = vld [vmem:[%s9900_s3 + $0x58] sm:$0xff] }
 0x1a9   : > { %962 = vmatprep.mubr.f32.mxu1 %v9907_v1 }
 0x1ab   : > { %v682_v35 = vpop.trf.xlu0 }
 0x1ac   : > { %4966 = vmatmul.mubr.msk.f32.gmra.mrb[42].mxu1 %vm698_vm2, %v682_v35 }
 0x1ad   : > { %968 = vmatprep.mubr.f32.mxu1 %v9907_v1 }
 0x1af   : > { %v683_v36 = vpop.trf.xlu0 }
 0x1b0   : > { %4967 = vmatmul.mubr.msk.f32.gmra.mrb[44].mxu1 %vm698_vm2, %v683_v36 }
 0x1b1   : > { %974 = vmatprep.mubr.f32.mxu1 %v9907_v1 }
 0x1b3   : > { %v684_v37 = vpop.trf.xlu0 }
 0x1b4   : > { %4968 = vmatmul.mubr.msk.f32.gmra.mrb[46].mxu1 %vm698_vm2, %v684_v37 }
 0x1b5   : > { %980 = vmatprep.mubr.f32.mxu1 %v9907_v1 }
 0x1b7   : > { %v685_v38 = vpop.trf.xlu0 }
 0x1b8   : > { %4969 = vmatmul.mubr.msk.f32.gmra.mrb[48].mxu1 %vm698_vm2, %v685_v38 }
 0x1b9   : > { %986 = vmatprep.mubr.f32.mxu1 %v9907_v1 }
 0x1bb   : > { %v686_v39 = vpop.trf.xlu0 }
 0x1bc   : > { %4970 = vmatmul.mubr.msk.f32.gmra.mrb[50].mxu1 %vm698_vm2, %v686_v39 }
 0x1bd   : > { %992 = vmatprep.mubr.f32.mxu1 %v9907_v1 }
 0x1bf   : > { %v687_v40 = vpop.trf.xlu0 }
 0x1c0   : > { %4971 = vmatmul.mubr.msk.f32.gmra.mrb[52].mxu1 %vm698_vm2, %v687_v40  ;;  %v389_v40 = vld [vmem:[%s9900_s3 + $0x60] sm:$0xff] }
 0x1c1   : > { %998 = vmatprep.mubr.f32.mxu1 %v9907_v1 }
 0x1c3   : > { %v688_v41 = vpop.trf.xlu0 }
 0x1c4   : > { %4972 = vmatmul.mubr.msk.f32.gmra.mrb[54].mxu1 %vm698_vm2, %v688_v41  ;;  %v390_v41 = vld [vmem:[%s9900_s3 + $0x68] sm:$0xff] }
 0x1c5   : > { %1004 = vmatprep.mubr.f32.mxu1 %v9907_v1 }
 0x1c7   : > { %v689_v42 = vpop.trf.xlu0 }
 0x1c8   : > { %4973 = vmatmul.mubr.msk.f32.gmra.mrb[56].mxu1 %vm698_vm2, %v689_v42 }
 0x1c9   : > { %1010 = vmatprep.mubr.f32.mxu1 %v9907_v1 }
 0x1cb   : > { %v690_v43 = vpop.trf.xlu0 }
 0x1cc   : > { %4974 = vmatmul.mubr.msk.f32.gmra.mrb[58].mxu1 %vm698_vm2, %v690_v43 }
 0x1cd   : > { %1016 = vmatprep.mubr.f32.mxu1 %v9907_v1 }
 0x1cf   : > { %v691_v44 = vpop.trf.xlu0 }
 0x1d0   : > { %4975 = vmatmul.mubr.msk.f32.gmra.mrb[60].mxu1 %vm698_vm2, %v691_v44 }
 0x1d1   : > { %1022 = vmatprep.mubr.f32.mxu1 %v9907_v1 }
 0x1d3   : > { %v692_v45 = vpop.trf.xlu0 }
 0x1d4   : > { %4976 = vmatmul.mubr.msk.f32.gmra.mrb[62].mxu1 %vm698_vm2, %v692_v45 }
 0x1d5   : > { %1028 = vmatprep.mubr.f32.mxu1 %v9907_v1 }
 0x1d7   : > { %v693_v46 = vpop.trf.xlu0 }
 0x1d8   : > { %4977 = vmatmul.mubr.msk.f32.gmra.mrb[64].mxu1 %vm698_vm2, %v693_v46 }
 0x1d9   : > { %1034 = vmatprep.mubr.f32.mxu1 %v9907_v1 }
 0x1db   : > { %v694_v47 = vpop.trf.xlu0 }
 0x1dc   : > { %4978 = vmatmul.mubr.msk.f32.gmra.mrb[66].mxu1 %vm698_vm2, %v694_v47  ;;  %v391_v47 = vld [vmem:[%s9900_s3 + $0x70] sm:$0xff] }
 0x1dd   : > { %1040 = vmatprep.mubr.f32.mxu1 %v9907_v1 }
 0x1df   : > { %v695_v48 = vpop.trf.xlu0 }
 0x1e0   : > { %4979 = vmatmul.mubr.msk.f32.gmra.mrb[68].mxu1 %vm698_vm2, %v695_v48  ;;  %v392_v48 = vld [vmem:[%s9900_s3 + $0x78] sm:$0xff] }
 0x1e1   : > { %1046 = vmatprep.mubr.f32.mxu1 %v9907_v1 }
 0x1e3   : > { %v696_v49 = vpop.trf.xlu0 }
 0x1e4   : > { %4980 = vmatmul.mubr.msk.f32.gmra.mrb[70].mxu1 %vm698_vm2, %v696_v49 }
 0x1e5   : > { %1052 = vmatprep.mubr.f32.mxu1 %v9907_v1 }
 0x1e7   : > { %v697_v51 = vpop.trf.xlu0 }
 0x1e8   : > { %4981 = vmatmul.mubr.msk.f32.gmra.mrb[72].mxu1 %vm698_vm2, %v697_v51 }
 0x1e9   : > { %2589 = vmatprep.mubr.f32.mxu1 %v2522_v50 }
 0x23f   : > { %v868_v54 = vpop.f32.mrb[10].mxu1 }
 0x240   : > { %v6553_v55 = vadd.f32 %v868_v54, %v377_v52  ;;  %v870_v56 = vpop.f32.mrb[11].mxu1  ;;  %v393_v54 = vld [vmem:[%s9900_s3 + $0x80] sm:$0xff] }
 0x241   : > { %v6555_v57 = vadd.f32 %v870_v56, %v378_v53  ;;  %v394_v56 = vld [vmem:[%s9900_s3 + $0x88] sm:$0xff] }
 0x243   : > { %v874_v60 = vpop.f32.mrb[12].mxu1  ;;  %v1059_v61 = vmax.f32 %v6553_v55, %v6555_v57 }
 0x244   : > { %v6565_v62 = vadd.f32 %v874_v60, %v379_v58  ;;  %v876_v63 = vpop.f32.mrb[13].mxu1 }
 0x245   : > { %v6567_v0 = vadd.f32 %v876_v63, %v380_v59  ;;  %1060 = vmax.xlane.f32.xlu1 %v1059_v61 }
 0x247   : > { %v880_v4 = vpop.f32.mrb[14].mxu1  ;;  %v1062_v5 = vmax.f32 %v6565_v62, %v6567_v0 }
 0x248   : > { %v6577_v6 = vadd.f32 %v880_v4, %v381_v2  ;;  %v882_v7 = vpop.f32.mrb[15].mxu1  ;;  %v395_v2 = vld [vmem:[%s9900_s3 + $0x90] sm:$0xff] }
 0x249   : > { %v6579_v8 = vadd.f32 %v882_v7, %v382_v3  ;;  %1063 = vmax.xlane.f32.xlu1 %v1062_v5  ;;  %v396_v3 = vld [vmem:[%s9900_s3 + $0x98] sm:$0xff] }
 0x24b   : > { %v886_v15 = vpop.f32.mrb[16].mxu1  ;;  %v1065_v16 = vmax.f32 %v6577_v6, %v6579_v8 }
 0x24c   : > { %v6589_v17 = vadd.f32 %v886_v15, %v383_v13  ;;  %v888_v20 = vpop.f32.mrb[17].mxu1  ;;  %v397_v15 = vld [vmem:[%s9900_s3 + $0xa0] sm:$0xff] }
 0x24d   : > { %v6591_v23 = vadd.f32 %v888_v20, %v384_v14  ;;  %1066 = vmax.xlane.f32.xlu1 %v1065_v16  ;;  %v398_v16 = vld [vmem:[%s9900_s3 + $0xa8] sm:$0xff] }
 0x24f   : > { %v892_v28 = vpop.f32.mrb[18].mxu1  ;;  %v1068_v29 = vmax.f32 %v6589_v17, %v6591_v23 }
 0x250   : > { %v6601_v30 = vadd.f32 %v892_v28, %v385_v26  ;;  %v894_v31 = vpop.f32.mrb[19].mxu1 }
 0x251   : > { %v6603_v32 = vadd.f32 %v894_v31, %v386_v27  ;;  %1069 = vmax.xlane.f32.xlu1 %v1068_v29  ;;  %v399_v31 = vld [vmem:[%s9900_s3 + $0xb0] sm:$0xff] }
 0x253   : > { %v898_v35 = vpop.f32.mrb[20].mxu1  ;;  %v1071_v36 = vmax.f32 %v6601_v30, %v6603_v32 }
 0x254   : > { %v6613_v37 = vadd.f32 %v898_v35, %v387_v33  ;;  %v900_v38 = vpop.f32.mrb[21].mxu1  ;;  %v400_v33 = vld [vmem:[%s9900_s3 + $0xb8] sm:$0xff] }
 0x255   : > { %v6615_v39 = vadd.f32 %v900_v38, %v388_v34  ;;  %1072 = vmax.xlane.f32.xlu1 %v1071_v36 }
 0x257   : > { %v904_v42 = vpop.f32.mrb[22].mxu1  ;;  %v1074_v43 = vmax.f32 %v6613_v37, %v6615_v39 }
 0x258   : > { %v6625_v44 = vadd.f32 %v904_v42, %v389_v40  ;;  %v906_v45 = vpop.f32.mrb[23].mxu1  ;;  %v402_v42 = vld [vmem:[%s9900_s3 + $0xc8] sm:$0xff] }
 0x259   : > { %v6627_v46 = vadd.f32 %v906_v45, %v390_v41  ;;  %1075 = vmax.xlane.f32.xlu1 %v1074_v43  ;;  %v401_v41 = vld [vmem:[%s9900_s3 + $0xc0] sm:$0xff] }
 0x25b   : > { %v910_v49 = vpop.f32.mrb[24].mxu1  ;;  %v1077_v50 = vmax.f32 %v6625_v44, %v6627_v46 }
 0x25c   : > { %v6637_v51 = vadd.f32 %v910_v49, %v391_v47  ;;  %v912_v52 = vpop.f32.mrb[25].mxu1 }
 0x25d   : > { %v6639_v53 = vadd.f32 %v912_v52, %v392_v48  ;;  %1078 = vmax.xlane.f32.xlu1 %v1077_v50  ;;  %v403_v50 = vld [vmem:[%s9900_s3 + $0xd0] sm:$0xff]  ;;  %v404_v52 = vld [vmem:[%s9900_s3 + $0xd8] sm:$0xff] }
 0x25f   : > { %v916_v58 = vpop.f32.mrb[26].mxu1  ;;  %v1080_v59 = vmax.f32 %v6637_v51, %v6639_v53 }
 0x260   : > { %v6649_v60 = vadd.f32 %v916_v58, %v393_v54  ;;  %v918_v61 = vpop.f32.mrb[27].mxu1 }
 0x261   : > { %v6651_v63 = vadd.f32 %v918_v61, %v394_v56  ;;  %1081 = vmax.xlane.f32.xlu1 %v1080_v59 }
 0x263   : > { %v922_v4 = vpop.f32.mrb[28].mxu1  ;;  %v1083_v5 = vmax.f32 %v6649_v60, %v6651_v63 }
 0x264   : > { %v6661_v7 = vadd.f32 %v922_v4, %v395_v2  ;;  %v924_v13 = vpop.f32.mrb[29].mxu1  ;;  %v405_v2 = vld [vmem:[%s9900_s3 + $0xe0] sm:$0xff] }
 0x265   : > { %v6663_v14 = vadd.f32 %v924_v13, %v396_v3  ;;  %1084 = vmax.xlane.f32.xlu1 %v1083_v5  ;;  %v406_v3 = vld [vmem:[%s9900_s3 + $0xe8] sm:$0xff] }
 0x267   : > { %v928_v20 = vpop.f32.mrb[30].mxu1  ;;  %v1086_v26 = vmax.f32 %v6661_v7, %v6663_v14 }
 0x268   : > { %v6673_v27 = vadd.f32 %v928_v20, %v397_v15  ;;  %v930_v28 = vpop.f32.mrb[31].mxu1  ;;  %v407_v20 = vld [vmem:[%s9900_s3 + $0xf0] sm:$0xff] }
 0x269   : > { %v6675_v29 = vadd.f32 %v930_v28, %v398_v16  ;;  %1087 = vmax.xlane.f32.xlu1 %v1086_v26  ;;  %v408_v26 = vld [vmem:[%s9900_s3 + $0xf8] sm:$0xff] }
 0x26b   : > { %v934_v34 = vpop.f32.mrb[32].mxu1  ;;  %v1089_v35 = vmax.f32 %v6673_v27, %v6675_v29 }
 0x26c   : > { %v6685_v36 = vadd.f32 %v934_v34, %v399_v31  ;;  %v936_v38 = vpop.f32.mrb[33].mxu1 }
 0x26d   : > { %v6687_v40 = vadd.f32 %v936_v38, %v400_v33  ;;  %1090 = vmax.xlane.f32.xlu1 %v1089_v35  ;;  %v409_v38 = vld [vmem:[%s9900_s3 + $0x100] sm:$0xff] }
 0x26f   : > { %v940_v43 = vpop.f32.mrb[34].mxu1  ;;  %v1092_v45 = vmax.f32 %v6685_v36, %v6687_v40 }
 0x270   : > { %v6697_v47 = vadd.f32 %v940_v43, %v401_v41  ;;  %v942_v48 = vpop.f32.mrb[35].mxu1  ;;  %v410_v41 = vld [vmem:[%s9900_s3 + $0x108] sm:$0xff] }
 0x271   : > { %v6699_v49 = vadd.f32 %v942_v48, %v402_v42  ;;  %1093 = vmax.xlane.f32.xlu1 %v1092_v45 }
 0x273   : > { %v946_v54 = vpop.f32.mrb[36].mxu1  ;;  %v1095_v56 = vmax.f32 %v6697_v47, %v6699_v49 }
 0x274   : > { %v6709_v58 = vadd.f32 %v946_v54, %v403_v50  ;;  %v948_v59 = vpop.f32.mrb[37].mxu1  ;;  %v412_v54 = vld [vmem:[%s9900_s3 + $0x118] sm:$0xff] }
 0x275   : > { %v6711_v61 = vadd.f32 %v948_v59, %v404_v52  ;;  %1096 = vmax.xlane.f32.xlu1 %v1095_v56  ;;  %v411_v52 = vld [vmem:[%s9900_s3 + $0x110] sm:$0xff] }
 0x277   : > { %v952_v4 = vpop.f32.mrb[38].mxu1  ;;  %v1098_v5 = vmax.f32 %v6709_v58, %v6711_v61 }
 0x278   : > { %v6721_v13 = vadd.f32 %v952_v4, %v405_v2  ;;  %v954_v15 = vpop.f32.mrb[39].mxu1 }
 0x279   : > { %v6723_v16 = vadd.f32 %v954_v15, %v406_v3  ;;  %1099 = vmax.xlane.f32.xlu1 %v1098_v5  ;;  %v413_v5 = vld [vmem:[%s9900_s3 + $0x120] sm:$0xff]  ;;  %v414_v15 = vld [vmem:[%s9900_s3 + $0x128] sm:$0xff] }
 0x27b   : > { %v958_v28 = vpop.f32.mrb[40].mxu1  ;;  %v1101_v31 = vmax.f32 %v6721_v13, %v6723_v16 }
 0x27c   : > { %v6733_v33 = vadd.f32 %v958_v28, %v407_v20  ;;  %v960_v34 = vpop.f32.mrb[41].mxu1 }
 0x27d   : > { %v6735_v35 = vadd.f32 %v960_v34, %v408_v26  ;;  %1102 = vmax.xlane.f32.xlu1 %v1101_v31 }
 0x27f   : > { %v964_v42 = vpop.f32.mrb[42].mxu1  ;;  %v1104_v43 = vmax.f32 %v6733_v33, %v6735_v35 }
 0x280   : > { %v6745_v45 = vadd.f32 %v964_v42, %v409_v38  ;;  %v966_v48 = vpop.f32.mrb[43].mxu1  ;;  %v415_v38 = vld [vmem:[%s9900_s3 + $0x130] sm:$0xff] }
 0x281   : > { %v6747_v50 = vadd.f32 %v966_v48, %v410_v41  ;;  %1105 = vmax.xlane.f32.xlu1 %v1104_v43  ;;  %v416_v41 = vld [vmem:[%s9900_s3 + $0x138] sm:$0xff] }
 0x283   : > { %v970_v56 = vpop.f32.mrb[44].mxu1  ;;  %v1107_v59 = vmax.f32 %v6745_v45, %v6747_v50 }
 0x284   : > { %v6757_v2 = vadd.f32 %v970_v56, %v411_v52  ;;  %v972_v3 = vpop.f32.mrb[45].mxu1  ;;  %v417_v56 = vld [vmem:[%s9900_s3 + $0x140] sm:$0xff] }
 0x285   : > { %v6759_v4 = vadd.f32 %v972_v3, %v412_v54  ;;  %1108 = vmax.xlane.f32.xlu1 %v1107_v59  ;;  %v418_v59 = vld [vmem:[%s9900_s3 + $0x148] sm:$0xff] }
 0x287   : > { %v976_v20 = vpop.f32.mrb[46].mxu1  ;;  %v1110_v26 = vmax.f32 %v6757_v2, %v6759_v4 }
 0x288   : > { %v6769_v28 = vadd.f32 %v976_v20, %v413_v5  ;;  %v978_v31 = vpop.f32.mrb[47].mxu1 }
 0x289   : > { %v6771_v34 = vadd.f32 %v978_v31, %v414_v15  ;;  %1111 = vmax.xlane.f32.xlu0 %v1110_v26  ;;  %v419_v31 = vld [vmem:[%s9900_s3 + $0x150] sm:$0xff] }
 0x28b   : > { %v982_v42 = vpop.f32.mrb[48].mxu1  ;;  %v1113_v43 = vmax.f32 %v6769_v28, %v6771_v34 }
 0x28c   : > { %v6781_v48 = vadd.f32 %v982_v42, %v415_v38  ;;  %v984_v52 = vpop.f32.mrb[49].mxu1  ;;  %v420_v38 = vld [vmem:[%s9900_s3 + $0x158] sm:$0xff] }
 0x28d   : > { %v6783_v54 = vadd.f32 %v984_v52, %v416_v41  ;;  %1114 = vmax.xlane.f32.xlu1 %v1113_v43 }
 0x28f   : > { %v988_v3 = vpop.f32.mrb[50].mxu1  ;;  %v1116_v5 = vmax.f32 %v6781_v48, %v6783_v54 }
 0x290   : > { %v6793_v15 = vadd.f32 %v988_v3, %v417_v56  ;;  %v990_v20 = vpop.f32.mrb[51].mxu1  ;;  %v422_v3 = vld [vmem:[%s9900_s3 + $0x168] sm:$0xff] }
 0x291   : > { %v6795_v26 = vadd.f32 %v990_v20, %v418_v59  ;;  %1117 = vmax.xlane.f32.xlu1 %v1116_v5  ;;  %v421_v59 = vld [vmem:[%s9900_s3 + $0x160] sm:$0xff] }
 0x293   : > { %v994_v41 = vpop.f32.mrb[52].mxu1  ;;  %v1119_v42 = vmax.f32 %v6793_v15, %v6795_v26 }
 0x294   : > { %v6805_v43 = vadd.f32 %v994_v41, %v419_v31  ;;  %v996_v52 = vpop.f32.mrb[53].mxu1 }
 0x295   : > { %v6807_v56 = vadd.f32 %v996_v52, %v420_v38  ;;  %1120 = vmax.xlane.f32.xlu1 %v1119_v42  ;;  %v423_v38 = vld [vmem:[%s9900_s3 + $0x170] sm:$0xff]  ;;  %v424_v42 = vld [vmem:[%s9900_s3 + $0x178] sm:$0xff] }
 0x297   : > { %v1000_v5 = vpop.f32.mrb[54].mxu1  ;;  %v1122_v20 = vmax.f32 %v6805_v43, %v6807_v56 }
 0x298   : > { %v6817_v1 = vadd.f32 %v1000_v5, %v421_v59  ;;  %v1002_v31 = vpop.f32.mrb[55].mxu1 }
 0x299   : > { %v6819_v41 = vadd.f32 %v1002_v31, %v422_v3  ;;  %1123 = vmax.xlane.f32.xlu1 %v1122_v20  ;;  %v425_v3 = vld [vmem:[%s9900_s3 + $0x180] sm:$0xff]  ;;  %v426_v20 = vld [vmem:[%s9900_s3 + $0x188] sm:$0xff] }
 0x29b   : > { %v1006_v52 = vpop.f32.mrb[56].mxu1  ;;  %v1125_v25 = vmax.f32 %v6817_v1, %v6819_v41 }
 0x29c   : > { %v6829_v24 = vadd.f32 %v1006_v52, %v423_v38  ;;  %v1008_v59 = vpop.f32.mrb[57].mxu1 }
 0x29d   : > { %v6831_v5 = vadd.f32 %v1008_v59, %v424_v42  ;;  %1126 = vmax.xlane.f32.xlu1 %v1125_v25  ;;  %v427_v25 = vld [vmem:[%s9900_s3 + $0x190] sm:$0xff]  ;;  %v428_v42 = vld [vmem:[%s9900_s3 + $0x198] sm:$0xff] }
 0x29f   : > { %v1012_v31 = vpop.f32.mrb[58].mxu1  ;;  %v1128_v22 = vmax.f32 %v6829_v24, %v6831_v5 }
 0x2a0   : > { %v6841_v21 = vadd.f32 %v1012_v31, %v425_v3  ;;  %v1014_v38 = vpop.f32.mrb[59].mxu1 }
 0x2a1   : > { %v6843_v52 = vadd.f32 %v1014_v38, %v426_v20  ;;  %1129 = vmax.xlane.f32.xlu1 %v1128_v22  ;;  %v429_v22 = vld [vmem:[%s9900_s3 + $0x1a0] sm:$0xff]  ;;  %v430_v20 = vld [vmem:[%s9900_s3 + $0x1a8] sm:$0xff] }
 0x2a2   : > { %10049 = vst [vmem:[#allocation13_spill] sm:$0xff] %v6841_v21 }
 0x2a3   : > { %10050 = vst [vmem:[#allocation14_spill] sm:$0xff] %v6843_v52  ;;  %v1018_v59 = vpop.f32.mrb[60].mxu1  ;;  %v1131_v19 = vmax.f32 %v6841_v21, %v6843_v52 }
 0x2a4   : > { %v6853_v18 = vadd.f32 %v1018_v59, %v427_v25  ;;  %v1020_v3 = vpop.f32.mrb[61].mxu1 }
 0x2a5   : > { %v6855_v31 = vadd.f32 %v1020_v3, %v428_v42  ;;  %1132 = vmax.xlane.f32.xlu1 %v1131_v19  ;;  %v431_v19 = vld [vmem:[%s9900_s3 + $0x1b0] sm:$0xff]  ;;  %v432_v42 = vld [vmem:[%s9900_s3 + $0x1b8] sm:$0xff] }
 0x2a6   : > { %10051 = vst [vmem:[#allocation15_spill] sm:$0xff] %v6853_v18 }
 0x2a7   : > { %10052 = vst [vmem:[#allocation16_spill] sm:$0xff] %v6855_v31  ;;  %v1024_v38 = vpop.f32.mrb[62].mxu1  ;;  %v1134_v11 = vmax.f32 %v6853_v18, %v6855_v31 }
 0x2a8   : > { %v6865_v12 = vadd.f32 %v1024_v38, %v429_v22  ;;  %v1026_v25 = vpop.f32.mrb[63].mxu1 }
 0x2a9   : > { %v6867_v59 = vadd.f32 %v1026_v25, %v430_v20  ;;  %1135 = vmax.xlane.f32.xlu1 %v1134_v11  ;;  %v433_v11 = vld [vmem:[%s9900_s3 + $0x1c0] sm:$0xff]  ;;  %v434_v20 = vld [vmem:[%s9900_s3 + $0x1c8] sm:$0xff] }
 0x2aa   : > { %10053 = vst [vmem:[#allocation17_spill] sm:$0xff] %v6865_v12 }
 0x2ab   : > { %10054 = vst [vmem:[#allocation18_spill] sm:$0xff] %v6867_v59  ;;  %v1030_v3 = vpop.f32.mrb[64].mxu1  ;;  %v1137_v10 = vmax.f32 %v6865_v12, %v6867_v59 }
 0x2ac   : > { %v6877_v9 = vadd.f32 %v1030_v3, %v431_v19  ;;  %v1032_v22 = vpop.f32.mrb[65].mxu1 }
 0x2ad   : > { %v6879_v38 = vadd.f32 %v1032_v22, %v432_v42  ;;  %1138 = vmax.xlane.f32.xlu1 %v1137_v10  ;;  %v435_v10 = vld [vmem:[%s9900_s3 + $0x1d0] sm:$0xff]  ;;  %v436_v42 = vld [vmem:[%s9900_s3 + $0x1d8] sm:$0xff] }
 0x2ae   : > { %10055 = vst [vmem:[#allocation19_spill] sm:$0xff] %v6877_v9 }
 0x2af   : > { %10056 = vst [vmem:[#allocation20_spill] sm:$0xff] %v6879_v38  ;;  %v1036_v25 = vpop.f32.mrb[66].mxu1  ;;  %v1140_v31 = vmax.f32 %v6877_v9, %v6879_v38 }
 0x2b0   : > { %v6889_v18 = vadd.f32 %v1036_v25, %v433_v11  ;;  %v1038_v19 = vpop.f32.mrb[67].mxu1 }
 0x2b1   : > { %v6891_v3 = vadd.f32 %v1038_v19, %v434_v20  ;;  %1141 = vmax.xlane.f32.xlu1 %v1140_v31  ;;  %v437_v31 = vld [vmem:[%s9900_s3 + $0x1e0] sm:$0xff]  ;;  %v438_v20 = vld [vmem:[%s9900_s3 + $0x1e8] sm:$0xff] }
 0x2b2   : > { %10057 = vst [vmem:[#allocation21_spill] sm:$0xff] %v6889_v18 }
 0x2b3   : > { %10058 = vst [vmem:[#allocation22_spill] sm:$0xff] %v6891_v3  ;;  %v1042_v22 = vpop.f32.mrb[68].mxu1  ;;  %v1143_v59 = vmax.f32 %v6889_v18, %v6891_v3 }
 0x2b4   : > { %v6901_v12 = vadd.f32 %v1042_v22, %v435_v10  ;;  %v1044_v11 = vpop.f32.mrb[69].mxu1 }
 0x2b5   : > { %v6903_v25 = vadd.f32 %v1044_v11, %v436_v42  ;;  %1144 = vmax.xlane.f32.xlu1 %v1143_v59  ;;  %v439_v59 = vld [vmem:[%s9900_s3 + $0x1f0] sm:$0xff]  ;;  %v440_v42 = vld [vmem:[%s9900_s3 + $0x1f8] sm:$0xff] }
 0x2b6   : > { %10059 = vst [vmem:[#allocation23_spill] sm:$0xff] %v6901_v12 }
 0x2b7   : > { %10060 = vst [vmem:[#allocation24_spill] sm:$0xff] %v6903_v25  ;;  %v1048_v19 = vpop.f32.mrb[70].mxu1  ;;  %v1146_v38 = vmax.f32 %v6901_v12, %v6903_v25 }
 0x2b8   : > { %v6913_v9 = vadd.f32 %v1048_v19, %v437_v31  ;;  %v1050_v10 = vpop.f32.mrb[71].mxu1 }
 0x2b9   : > { %v6915_v22 = vadd.f32 %v1050_v10, %v438_v20  ;;  %1147 = vmax.xlane.f32.xlu1 %v1146_v38 }
 0x2bb   : > { %v1054_v11 = vpop.f32.mrb[72].mxu1  ;;  %v1149_v3 = vmax.f32 %v6913_v9, %v6915_v22 }
 0x2bc   : > { %v6925_v18 = vadd.f32 %v1054_v11, %v439_v59  ;;  %v1056_v31 = vpop.f32.mrb[73].mxu1 }
 0x2bd   : > { %v6927_v19 = vadd.f32 %v1056_v31, %v440_v42  ;;  %1150 = vmax.xlane.f32.xlu1 %v1149_v3 }
 0x2bf   : > { %10061 = vst [vmem:[#allocation25_spill] sm:$0xff] %v6927_v19  ;;  %v1152_v38 = vmax.f32 %v6925_v18, %v6927_v19 }
 0x2c1   : > { %1153 = vmax.xlane.f32.xlu1 %v1152_v38 }
 0x2d2   : > { %v1061_v20 = vpop.xlane.xlu1 %1060 }
 0x2d3   : > { %v1155_v10 = vsub.f32 %v6553_v55, %v1061_v20  ;;  %v1156_v25 = vsub.f32 %v6555_v57, %v1061_v20 }
 0x2d5   : > { %v1219_v12 = vmul.f32 1.442695, %v1155_v10  ;;  %v1221_v52 = vmul.f32 1.442695, %v1156_v25 }
 0x2d6   : > { %v1064_v21 = vpop.xlane.xlu1 %1063 }
 0x2d7   : > { %5365 = vpow2.f32 %v1219_v12  ;;  %v1157_v59 = vsub.f32 %v6565_v62, %v1064_v21  ;;  %v1158_v11 = vsub.f32 %v6567_v0, %v1064_v21 }
 0x2d8   : > { %5367 = vpow2.f32 %v1221_v52 }
 0x2d9   : > { %v1223_v42 = vmul.f32 1.442695, %v1157_v59  ;;  %v1225_v3 = vmul.f32 1.442695, %v1158_v11 }
 0x2da   : > { %v1067_v31 = vpop.xlane.xlu1 %1066 }
 0x2db   : > { %5369 = vpow2.f32 %v1223_v42  ;;  %v1159_v38 = vsub.f32 %v6577_v6, %v1067_v31  ;;  %v1160_v19 = vsub.f32 %v6579_v8, %v1067_v31 }
 0x2dc   : > { %5371 = vpow2.f32 %v1225_v3 }
 0x2dd   : > { %v1227_v55 = vmul.f32 1.442695, %v1159_v38  ;;  %v1229_v57 = vmul.f32 1.442695, %v1160_v19 }
 0x2de   : > { %v1070_v20 = vpop.xlane.xlu1 %1069 }
 0x2df   : > { %5373 = vpow2.f32 %v1227_v55  ;;  %v1161_v12 = vsub.f32 %v6589_v17, %v1070_v20  ;;  %v1162_v62 = vsub.f32 %v6591_v23, %v1070_v20 }
 0x2e0   : > { %5375 = vpow2.f32 %v1229_v57 }
 0x2e1   : > { %v6939_v21 = vpop.eup %5365  ;;  %v1231_v0 = vmul.f32 1.442695, %v1161_v12  ;;  %v1233_v52 = vmul.f32 1.442695, %v1162_v62 }
 0x2e2   : > { %v6941_v25 = vpop.eup %5367  ;;  %v1073_v10 = vpop.xlane.xlu1 %1072 }
 0x2e3   : > { %5377 = vpow2.f32 %v1231_v0  ;;  %v1163_v6 = vsub.f32 %v6601_v30, %v1073_v10  ;;  %v1164_v8 = vsub.f32 %v6603_v32, %v1073_v10  ;;  %v1347_v19 = vadd.f32 %v6941_v25, %v6939_v21 }
 0x2e4   : > { %5379 = vpow2.f32 %v1233_v52 }
 0x2e5   : > { %v6947_v17 = vpop.eup %5369  ;;  %v1235_v23 = vmul.f32 1.442695, %v1163_v6  ;;  %v1237_v59 = vmul.f32 1.442695, %v1164_v8  ;;  %1348 = vadd.xlane.f32.xlu1 %v1347_v19 }
 0x2e6   : > { %v6949_v11 = vpop.eup %5371  ;;  %v1076_v42 = vpop.xlane.xlu1 %1075 }
 0x2e7   : > { %5381 = vpow2.f32 %v1235_v23  ;;  %v1165_v3 = vsub.f32 %v6613_v37, %v1076_v42  ;;  %v1166_v31 = vsub.f32 %v6615_v39, %v1076_v42  ;;  %v1350_v30 = vadd.f32 %v6949_v11, %v6947_v17 }
 0x2e8   : > { %5383 = vpow2.f32 %v1237_v59 }
 0x2e9   : > { %v6955_v32 = vpop.eup %5373  ;;  %v1239_v38 = vmul.f32 1.442695, %v1165_v3  ;;  %v1241_v55 = vmul.f32 1.442695, %v1166_v31  ;;  %1351 = vadd.xlane.f32.xlu1 %v1350_v30 }
 0x2ea   : > { %v6957_v57 = vpop.eup %5375  ;;  %v1079_v20 = vpop.xlane.xlu1 %1078 }
 0x2eb   : > { %5385 = vpow2.f32 %v1239_v38  ;;  %v1167_v12 = vsub.f32 %v6625_v44, %v1079_v20  ;;  %v1168_v62 = vsub.f32 %v6627_v46, %v1079_v20  ;;  %v1353_v37 = vadd.f32 %v6957_v57, %v6955_v32 }
 0x2ec   : > { %5387 = vpow2.f32 %v1241_v55 }
 0x2ed   : > { %v6963_v39 = vpop.eup %5377  ;;  %v1243_v0 = vmul.f32 1.442695, %v1167_v12  ;;  %v1245_v52 = vmul.f32 1.442695, %v1168_v62  ;;  %1354 = vadd.xlane.f32.xlu1 %v1353_v37 }
 0x2ee   : > { %v6965_v10 = vpop.eup %5379  ;;  %v1082_v6 = vpop.xlane.xlu1 %1081 }
 0x2ef   : > { %5389 = vpow2.f32 %v1243_v0  ;;  %v1169_v8 = vsub.f32 %v6637_v51, %v1082_v6  ;;  %v1170_v19 = vsub.f32 %v6639_v53, %v1082_v6  ;;  %v1356_v44 = vadd.f32 %v6965_v10, %v6963_v39 }
 0x2f0   : > { %5391 = vpow2.f32 %v1245_v52 }
 0x2f1   : > { %v6971_v46 = vpop.eup %5381  ;;  %v1247_v23 = vmul.f32 1.442695, %v1169_v8  ;;  %v1249_v59 = vmul.f32 1.442695, %v1170_v19  ;;  %1357 = vadd.xlane.f32.xlu1 %v1356_v44 }
 0x2f2   : > { %v6973_v42 = vpop.eup %5383  ;;  %v1085_v3 = vpop.xlane.xlu1 %1084 }
 0x2f3   : > { %5393 = vpow2.f32 %v1247_v23  ;;  %v1171_v31 = vsub.f32 %v6649_v60, %v1085_v3  ;;  %v1172_v30 = vsub.f32 %v6651_v63, %v1085_v3  ;;  %v1359_v51 = vadd.f32 %v6973_v42, %v6971_v46 }
 0x2f4   : > { %5395 = vpow2.f32 %v1249_v59 }
 0x2f5   : > { %v6979_v53 = vpop.eup %5385  ;;  %v1251_v38 = vmul.f32 1.442695, %v1171_v31  ;;  %v1253_v55 = vmul.f32 1.442695, %v1172_v30  ;;  %1360 = vadd.xlane.f32.xlu1 %v1359_v51 }
 0x2f6   : > { %v6981_v20 = vpop.eup %5387  ;;  %v1088_v12 = vpop.xlane.xlu1 %1087 }
 0x2f7   : > { %5397 = vpow2.f32 %v1251_v38  ;;  %v1173_v62 = vsub.f32 %v6661_v7, %v1088_v12  ;;  %v1174_v37 = vsub.f32 %v6663_v14, %v1088_v12  ;;  %v1362_v60 = vadd.f32 %v6981_v20, %v6979_v53 }
 0x2f8   : > { %5399 = vpow2.f32 %v1253_v55 }
 0x2f9   : > { %v6987_v63 = vpop.eup %5389  ;;  %v1255_v0 = vmul.f32 1.442695, %v1173_v62  ;;  %v1257_v52 = vmul.f32 1.442695, %v1174_v37  ;;  %1363 = vadd.xlane.f32.xlu1 %v1362_v60 }
 0x2fa   : > { %v6989_v6 = vpop.eup %5391  ;;  %v1091_v8 = vpop.xlane.xlu1 %1090 }
 0x2fb   : > { %5401 = vpow2.f32 %v1255_v0  ;;  %v1175_v19 = vsub.f32 %v6673_v27, %v1091_v8  ;;  %v1176_v44 = vsub.f32 %v6675_v29, %v1091_v8  ;;  %v1365_v7 = vadd.f32 %v6989_v6, %v6987_v63 }
 0x2fc   : > { %5403 = vpow2.f32 %v1257_v52 }
 0x2fd   : > { %v6995_v14 = vpop.eup %5393  ;;  %v1259_v23 = vmul.f32 1.442695, %v1175_v19  ;;  %v1261_v59 = vmul.f32 1.442695, %v1176_v44  ;;  %1366 = vadd.xlane.f32.xlu1 %v1365_v7 }
 0x2fe   : > { %v6997_v3 = vpop.eup %5395  ;;  %v1094_v31 = vpop.xlane.xlu1 %1093 }
 0x2ff   : > { %5405 = vpow2.f32 %v1259_v23  ;;  %v1177_v30 = vsub.f32 %v6685_v36, %v1094_v31  ;;  %v1178_v51 = vsub.f32 %v6687_v40, %v1094_v31  ;;  %v1368_v27 = vadd.f32 %v6997_v3, %v6995_v14 }
 0x300   : > { %5407 = vpow2.f32 %v1261_v59 }
 0x301   : > { %v7003_v29 = vpop.eup %5397  ;;  %v1263_v38 = vmul.f32 1.442695, %v1177_v30  ;;  %v1265_v55 = vmul.f32 1.442695, %v1178_v51  ;;  %1369 = vadd.xlane.f32.xlu1 %v1368_v27 }
 0x302   : > { %v7005_v12 = vpop.eup %5399  ;;  %v1097_v62 = vpop.xlane.xlu1 %1096 }
 0x303   : > { %5409 = vpow2.f32 %v1263_v38  ;;  %v1179_v37 = vsub.f32 %v6697_v47, %v1097_v62  ;;  %v1180_v60 = vsub.f32 %v6699_v49, %v1097_v62  ;;  %v1371_v36 = vadd.f32 %v7005_v12, %v7003_v29 }
 0x304   : > { %5411 = vpow2.f32 %v1265_v55 }
 0x305   : > { %v7011_v40 = vpop.eup %5401  ;;  %v1267_v0 = vmul.f32 1.442695, %v1179_v37  ;;  %v1269_v52 = vmul.f32 1.442695, %v1180_v60  ;;  %1372 = vadd.xlane.f32.xlu1 %v1371_v36 }
 0x306   : > { %v7013_v8 = vpop.eup %5403  ;;  %v1100_v19 = vpop.xlane.xlu1 %1099 }
 0x307   : > { %5413 = vpow2.f32 %v1267_v0  ;;  %v1181_v44 = vsub.f32 %v6709_v58, %v1100_v19  ;;  %v1182_v7 = vsub.f32 %v6711_v61, %v1100_v19  ;;  %v1374_v47 = vadd.f32 %v7013_v8, %v7011_v40 }
 0x308   : > { %5415 = vpow2.f32 %v1269_v52 }
 0x309   : > { %v7019_v49 = vpop.eup %5405  ;;  %v1271_v23 = vmul.f32 1.442695, %v1181_v44  ;;  %v1273_v59 = vmul.f32 1.442695, %v1182_v7  ;;  %1375 = vadd.xlane.f32.xlu1 %v1374_v47 }
 0x30a   : > { %v7021_v31 = vpop.eup %5407  ;;  %v1103_v30 = vpop.xlane.xlu1 %1102 }
 0x30b   : > { %5417 = vpow2.f32 %v1271_v23  ;;  %v1183_v51 = vsub.f32 %v6721_v13, %v1103_v30  ;;  %v1184_v27 = vsub.f32 %v6723_v16, %v1103_v30  ;;  %v1377_v58 = vadd.f32 %v7021_v31, %v7019_v49 }
 0x30c   : > { %5419 = vpow2.f32 %v1273_v59 }
 0x30d   : > { %v7027_v61 = vpop.eup %5409  ;;  %v1275_v38 = vmul.f32 1.442695, %v1183_v51  ;;  %v1277_v55 = vmul.f32 1.442695, %v1184_v27  ;;  %1378 = vadd.xlane.f32.xlu1 %v1377_v58 }
 0x30e   : > { %v7029_v62 = vpop.eup %5411  ;;  %v1106_v37 = vpop.xlane.xlu1 %1105 }
 0x30f   : > { %5421 = vpow2.f32 %v1275_v38  ;;  %v1185_v60 = vsub.f32 %v6733_v33, %v1106_v37  ;;  %v1186_v36 = vsub.f32 %v6735_v35, %v1106_v37  ;;  %v1380_v13 = vadd.f32 %v7029_v62, %v7027_v61 }
 0x310   : > { %5423 = vpow2.f32 %v1277_v55 }
 0x311   : > { %v7035_v16 = vpop.eup %5413  ;;  %v1279_v0 = vmul.f32 1.442695, %v1185_v60  ;;  %v1281_v52 = vmul.f32 1.442695, %v1186_v36  ;;  %1381 = vadd.xlane.f32.xlu1 %v1380_v13 }
 0x312   : > { %v7037_v19 = vpop.eup %5415  ;;  %v1109_v44 = vpop.xlane.xlu1 %1108 }
 0x313   : > { %5425 = vpow2.f32 %v1279_v0  ;;  %v1187_v7 = vsub.f32 %v6745_v45, %v1109_v44  ;;  %v1188_v47 = vsub.f32 %v6747_v50, %v1109_v44  ;;  %v1383_v33 = vadd.f32 %v7037_v19, %v7035_v16 }
 0x314   : > { %5427 = vpow2.f32 %v1281_v52 }
 0x315   : > { %v7043_v35 = vpop.eup %5417  ;;  %v1283_v23 = vmul.f32 1.442695, %v1187_v7  ;;  %v1285_v59 = vmul.f32 1.442695, %v1188_v47  ;;  %1384 = vadd.xlane.f32.xlu0 %v1383_v33 }
 0x316   : > { %v7045_v30 = vpop.eup %5419  ;;  %v1112_v51 = vpop.xlane.xlu0 %1111 }
 0x317   : > { %5429 = vpow2.f32 %v1283_v23  ;;  %v1189_v27 = vsub.f32 %v6757_v2, %v1112_v51  ;;  %v1190_v58 = vsub.f32 %v6759_v4, %v1112_v51  ;;  %v1386_v45 = vadd.f32 %v7045_v30, %v7043_v35 }
 0x318   : > { %5431 = vpow2.f32 %v1285_v59 }
 0x319   : > { %v7051_v50 = vpop.eup %5421  ;;  %v1287_v38 = vmul.f32 1.442695, %v1189_v27  ;;  %v1289_v55 = vmul.f32 1.442695, %v1190_v58  ;;  %1387 = vadd.xlane.f32.xlu1 %v1386_v45 }
 0x31a   : > { %v7053_v37 = vpop.eup %5423  ;;  %v1115_v60 = vpop.xlane.xlu1 %1114 }
 0x31b   : > { %5433 = vpow2.f32 %v1287_v38  ;;  %v1191_v36 = vsub.f32 %v6769_v28, %v1115_v60  ;;  %v1192_v13 = vsub.f32 %v6771_v34, %v1115_v60  ;;  %v1389_v2 = vadd.f32 %v7053_v37, %v7051_v50 }
 0x31c   : > { %5435 = vpow2.f32 %v1289_v55 }
 0x31d   : > { %v7059_v4 = vpop.eup %5425  ;;  %v1291_v0 = vmul.f32 1.442695, %v1191_v36  ;;  %v1293_v52 = vmul.f32 1.442695, %v1192_v13  ;;  %1390 = vadd.xlane.f32.xlu0 %v1389_v2 }
 0x31e   : > { %v7061_v44 = vpop.eup %5427  ;;  %v1118_v7 = vpop.xlane.xlu1 %1117 }
 0x31f   : > { %5437 = vpow2.f32 %v1291_v0  ;;  %v1193_v47 = vsub.f32 %v6781_v48, %v1118_v7  ;;  %v1194_v33 = vsub.f32 %v6783_v54, %v1118_v7  ;;  %v1392_v28 = vadd.f32 %v7061_v44, %v7059_v4 }
 0x320   : > { %5439 = vpow2.f32 %v1293_v52 }
 0x321   : > { %v7067_v34 = vpop.eup %5429  ;;  %v1295_v23 = vmul.f32 1.442695, %v1193_v47  ;;  %v1297_v59 = vmul.f32 1.442695, %v1194_v33  ;;  %1393 = vadd.xlane.f32.xlu1 %v1392_v28 }
 0x322   : > { %v7069_v51 = vpop.eup %5431  ;;  %v1121_v27 = vpop.xlane.xlu1 %1120 }
 0x323   : > { %5441 = vpow2.f32 %v1295_v23  ;;  %v1195_v58 = vsub.f32 %v6793_v15, %v1121_v27  ;;  %v1196_v45 = vsub.f32 %v6795_v26, %v1121_v27  ;;  %v1395_v48 = vadd.f32 %v7069_v51, %v7067_v34 }
 0x324   : > { %5443 = vpow2.f32 %v1297_v59 }
 0x325   : > { %v7075_v54 = vpop.eup %5433  ;;  %v1299_v38 = vmul.f32 1.442695, %v1195_v58  ;;  %v1301_v55 = vmul.f32 1.442695, %v1196_v45  ;;  %1396 = vadd.xlane.f32.xlu0 %v1395_v48 }
 0x326   : > { %v7077_v60 = vpop.eup %5435  ;;  %v1124_v36 = vpop.xlane.xlu1 %1123 }
 0x327   : > { %5445 = vpow2.f32 %v1299_v38  ;;  %v1197_v13 = vsub.f32 %v6805_v43, %v1124_v36  ;;  %v1198_v2 = vsub.f32 %v6807_v56, %v1124_v36  ;;  %v1398_v15 = vadd.f32 %v7077_v60, %v7075_v54 }
 0x328   : > { %5447 = vpow2.f32 %v1301_v55 }
 0x329   : > { %v7083_v26 = vpop.eup %5437  ;;  %v1303_v0 = vmul.f32 1.442695, %v1197_v13  ;;  %v1305_v52 = vmul.f32 1.442695, %v1198_v2  ;;  %1399 = vadd.xlane.f32.xlu1 %v1398_v15  ;;  %v10062_v2 = vld [vmem:[#allocation13_spill] sm:$0xff] }
 0x32a   : > { %v7085_v7 = vpop.eup %5439  ;;  %v1127_v47 = vpop.xlane.xlu1 %1126 }
 0x32b   : > { %5449 = vpow2.f32 %v1303_v0  ;;  %v1199_v33 = vsub.f32 %v6817_v1, %v1127_v47  ;;  %v1200_v28 = vsub.f32 %v6819_v41, %v1127_v47  ;;  %v1401_v43 = vadd.f32 %v7085_v7, %v7083_v26  ;;  %v10063_v0 = vld [vmem:[#allocation14_spill] sm:$0xff] }
 0x32c   : > { %5451 = vpow2.f32 %v1305_v52 }
 0x32d   : > { %v7091_v56 = vpop.eup %5441  ;;  %v1307_v23 = vmul.f32 1.442695, %v1199_v33  ;;  %v1309_v59 = vmul.f32 1.442695, %v1200_v28  ;;  %1402 = vadd.xlane.f32.xlu0 %v1401_v43 }
 0x32e   : > { %v7093_v27 = vpop.eup %5443  ;;  %v1130_v58 = vpop.xlane.xlu1 %1129 }
 0x32f   : > { %5453 = vpow2.f32 %v1307_v23  ;;  %v1201_v45 = vsub.f32 %v6829_v24, %v1130_v58  ;;  %v1202_v48 = vsub.f32 %v6831_v5, %v1130_v58  ;;  %v1404_v1 = vadd.f32 %v7093_v27, %v7091_v56  ;;  %v10065_v23 = vld [vmem:[#allocation15_spill] sm:$0xff]  ;;  %v10066_v58 = vld [vmem:[#allocation16_spill] sm:$0xff] }
 0x330   : > { %5455 = vpow2.f32 %v1309_v59 }
 0x331   : > { %v7099_v41 = vpop.eup %5445  ;;  %v1311_v38 = vmul.f32 1.442695, %v1201_v45  ;;  %v1313_v55 = vmul.f32 1.442695, %v1202_v48  ;;  %1405 = vadd.xlane.f32.xlu1 %v1404_v1 }
 0x332   : > { %v7101_v36 = vpop.eup %5447  ;;  %v1133_v13 = vpop.xlane.xlu1 %1132 }
 0x333   : > { %5457 = vpow2.f32 %v1311_v38  ;;  %v1203_v15 = vsub.f32 %v10062_v2, %v1133_v13  ;;  %v1204_v52 = vsub.f32 %v10063_v0, %v1133_v13  ;;  %v1407_v24 = vadd.f32 %v7101_v36, %v7099_v41 }
 0x334   : > { %5459 = vpow2.f32 %v1313_v55 }
 0x335   : > { %v7107_v5 = vpop.eup %5449  ;;  %v1315_v47 = vmul.f32 1.442695, %v1203_v15  ;;  %v1317_v33 = vmul.f32 1.442695, %v1204_v52  ;;  %1408 = vadd.xlane.f32.xlu0 %v1407_v24  ;;  %v10069_v15 = vld [vmem:[#allocation17_spill] sm:$0xff]  ;;  %v10070_v52 = vld [vmem:[#allocation18_spill] sm:$0xff] }
 0x336   : > { %10064 = vst [vmem:[#allocation13_spill] sm:$0xff] %v7107_v5  ;;  %v7109_v28 = vpop.eup %5451  ;;  %v1136_v43 = vpop.xlane.xlu1 %1135 }
 0x337   : > { %5461 = vpow2.f32 %v1315_v47  ;;  %v1205_v59 = vsub.f32 %v10065_v23, %v1136_v43  ;;  %v1206_v45 = vsub.f32 %v10066_v58, %v1136_v43  ;;  %v1410_v48 = vadd.f32 %v7109_v28, %v7107_v5 }
 0x338   : > { %5463 = vpow2.f32 %v1317_v33 }
 0x339   : > { %v7115_v1 = vpop.eup %5453  ;;  %v1319_v38 = vmul.f32 1.442695, %v1205_v59  ;;  %v1321_v55 = vmul.f32 1.442695, %v1206_v45  ;;  %1411 = vadd.xlane.f32.xlu1 %v1410_v48  ;;  %v10073_v45 = vld [vmem:[#allocation19_spill] sm:$0xff] }
 0x33a   : > { %10067 = vst [vmem:[#allocation14_spill] sm:$0xff] %v7115_v1  ;;  %v7117_v13 = vpop.eup %5455  ;;  %v1139_v2 = vpop.xlane.xlu1 %1138 }
 0x33b   : > { %10068 = vst [vmem:[#allocation15_spill] sm:$0xff] %v7117_v13  ;;  %5465 = vpow2.f32 %v1319_v38  ;;  %v1207_v0 = vsub.f32 %v10069_v15, %v1139_v2  ;;  %v1208_v24 = vsub.f32 %v10070_v52, %v1139_v2  ;;  %v1413_v47 = vadd.f32 %v7117_v13, %v7115_v1  ;;  %v10074_v38 = vld [vmem:[#allocation20_spill] sm:$0xff] }
 0x33c   : > { %5467 = vpow2.f32 %v1321_v55 }
 0x33d   : > { %v7123_v43 = vpop.eup %5457  ;;  %v1323_v33 = vmul.f32 1.442695, %v1207_v0  ;;  %v1325_v23 = vmul.f32 1.442695, %v1208_v24  ;;  %1414 = vadd.xlane.f32.xlu0 %v1413_v47  ;;  %v10075_v47 = vld [vmem:[#allocation21_spill] sm:$0xff] }
 0x33e   : > { %10071 = vst [vmem:[#allocation16_spill] sm:$0xff] %v7123_v43  ;;  %v7125_v59 = vpop.eup %5459  ;;  %v1142_v58 = vpop.xlane.xlu1 %1141 }
 0x33f   : > { %10072 = vst [vmem:[#allocation17_spill] sm:$0xff] %v7125_v59  ;;  %5469 = vpow2.f32 %v1323_v33  ;;  %v1209_v48 = vsub.f32 %v10073_v45, %v1142_v58  ;;  %v1210_v5 = vsub.f32 %v10074_v38, %v1142_v58  ;;  %v1416_v2 = vadd.f32 %v7125_v59, %v7123_v43  ;;  %v10076_v33 = vld [vmem:[#allocation22_spill] sm:$0xff] }
 0x340   : > { %5471 = vpow2.f32 %v1325_v23 }
 0x341   : > { %v7131_v15 = vpop.eup %5461  ;;  %v1327_v55 = vmul.f32 1.442695, %v1209_v48  ;;  %v1329_v52 = vmul.f32 1.442695, %v1210_v5  ;;  %1417 = vadd.xlane.f32.xlu1 %v1416_v2  ;;  %v10078_v2 = vld [vmem:[#allocation23_spill] sm:$0xff] }
 0x342   : > { %v7133_v0 = vpop.eup %5463  ;;  %v1145_v24 = vpop.xlane.xlu1 %1144 }
 0x343   : > { %5473 = vpow2.f32 %v1327_v55  ;;  %v1211_v1 = vsub.f32 %v10075_v47, %v1145_v24  ;;  %v1212_v13 = vsub.f32 %v10076_v33, %v1145_v24  ;;  %v1419_v58 = vadd.f32 %v7133_v0, %v7131_v15  ;;  %v10079_v55 = vld [vmem:[#allocation24_spill] sm:$0xff] }
 0x344   : > { %5475 = vpow2.f32 %v1329_v52 }
 0x345   : > { %v7139_v45 = vpop.eup %5465  ;;  %v1331_v23 = vmul.f32 1.442695, %v1211_v1  ;;  %v1333_v38 = vmul.f32 1.442695, %v1212_v13  ;;  %1420 = vadd.xlane.f32.xlu0 %v1419_v58 }
 0x346   : > { %10077 = vst [vmem:[#allocation18_spill] sm:$0xff] %v7139_v45  ;;  %v7141_v48 = vpop.eup %5467  ;;  %v1148_v5 = vpop.xlane.xlu1 %1147 }
 0x347   : > { %5477 = vpow2.f32 %v1331_v23  ;;  %v1213_v43 = vsub.f32 %v10078_v2, %v1148_v5  ;;  %v1214_v59 = vsub.f32 %v10079_v55, %v1148_v5  ;;  %v1422_v24 = vadd.f32 %v7141_v48, %v7139_v45 }
 0x348   : > { %5479 = vpow2.f32 %v1333_v38 }
 0x349   : > { %v7147_v47 = vpop.eup %5469  ;;  %v1335_v52 = vmul.f32 1.442695, %v1213_v43  ;;  %v1337_v33 = vmul.f32 1.442695, %v1214_v59  ;;  %1423 = vadd.xlane.f32.xlu1 %v1422_v24 }
 0x34a   : > { %v7149_v1 = vpop.eup %5471  ;;  %v1151_v13 = vpop.xlane.xlu1 %1150 }
 0x34b   : > { %5481 = vpow2.f32 %v1335_v52  ;;  %v1215_v58 = vsub.f32 %v6913_v9, %v1151_v13  ;;  %v1216_v23 = vsub.f32 %v6915_v22, %v1151_v13  ;;  %v1425_v5 = vadd.f32 %v7149_v1, %v7147_v47  ;;  %v10081_v52 = vld [vmem:[#allocation25_spill] sm:$0xff] }
 0x34c   : > { %5483 = vpow2.f32 %v1337_v33 }
 0x34d   : > { %v7155_v2 = vpop.eup %5473  ;;  %v1339_v38 = vmul.f32 1.442695, %v1215_v58  ;;  %v1341_v55 = vmul.f32 1.442695, %v1216_v23  ;;  %1426 = vadd.xlane.f32.xlu0 %v1425_v5 }
 0x34e   : > { %10080 = vst [vmem:[#allocation19_spill] sm:$0xff] %v7155_v2  ;;  %v7157_v43 = vpop.eup %5475  ;;  %v1154_v59 = vpop.xlane.xlu1 %1153 }
 0x34f   : > { %5485 = vpow2.f32 %v1339_v38  ;;  %v1217_v24 = vsub.f32 %v6925_v18, %v1154_v59  ;;  %v1218_v45 = vsub.f32 %v10081_v52, %v1154_v59  ;;  %v1428_v9 = vadd.f32 %v7157_v43, %v7155_v2 }
 0x350   : > { %5487 = vpow2.f32 %v1341_v55 }
 0x351   : > { %v7163_v22 = vpop.eup %5477  ;;  %v1343_v33 = vmul.f32 1.442695, %v1217_v24  ;;  %v1345_v13 = vmul.f32 1.442695, %v1218_v45  ;;  %1429 = vadd.xlane.f32.xlu1 %v1428_v9 }
 0x352   : > { %10082 = vst [vmem:[#allocation20_spill] sm:$0xff] %v7163_v22  ;;  %v7165_v58 = vpop.eup %5479 }
 0x353   : > { %10083 = vst [vmem:[#allocation21_spill] sm:$0xff] %v7165_v58  ;;  %5489 = vpow2.f32 %v1343_v33  ;;  %v1431_v23 = vadd.f32 %v7165_v58, %v7163_v22 }
 0x354   : > { %5491 = vpow2.f32 %v1345_v13 }
 0x355   : > { %v7169_v5 = vpop.eup %5481  ;;  %1432 = vadd.xlane.f32.xlu0 %v1431_v23 }
 0x356   : > { %10084 = vst [vmem:[#allocation22_spill] sm:$0xff] %v7169_v5  ;;  %v7171_v18 = vpop.eup %5483 }
 0x357   : > { %10085 = vst [vmem:[#allocation23_spill] sm:$0xff] %v7171_v18  ;;  %v1434_v38 = vadd.f32 %v7171_v18, %v7169_v5 }
 0x359   : > { %v7175_v55 = vpop.eup %5485  ;;  %1435 = vadd.xlane.f32.xlu1 %v1434_v38 }
 0x35a   : > { %10086 = vst [vmem:[#allocation24_spill] sm:$0xff] %v7175_v55  ;;  %v7177_v45 = vpop.eup %5487 }
 0x35b   : > { %10087 = vst [vmem:[#allocation25_spill] sm:$0xff] %v7177_v45  ;;  %v1437_v59 = vadd.f32 %v7177_v45, %v7175_v55 }
 0x35d   : > { %v7181_v24 = vpop.eup %5489  ;;  %1438 = vadd.xlane.f32.xlu0 %v1437_v59 }
 0x35e   : > { %10088 = vst [vmem:[#allocation26_spill] sm:$0xff] %v7181_v24  ;;  %v7183_v52 = vpop.eup %5491 }
 0x35f   : > { %10089 = vst [vmem:[#allocation27_spill] sm:$0xff] %v7183_v52  ;;  %v1440_v9 = vadd.f32 %v7183_v52, %v7181_v24 }
 0x361   : > { %1441 = vadd.xlane.f32.xlu1 %v1440_v9 }
 0x372   : > { %v1349_v33 = vpop.xlane.xlu1 %1348 }
 0x373   : > { %5493 = vrcp.f32 %v1349_v33 }
 0x376   : > { %v1352_v13 = vpop.xlane.xlu1 %1351 }
 0x377   : > { %5495 = vrcp.f32 %v1352_v13 }
 0x37a   : > { %v1355_v23 = vpop.xlane.xlu1 %1354 }
 0x37b   : > { %5497 = vrcp.f32 %v1355_v23  ;;  %v10090_v23 = vld [vmem:[#allocation3_spill] sm:$0xff] }
 0x37d   : > { %v5494_v5 = vpop.eup %5493 }
 0x37e   : > { %v1358_v38 = vpop.xlane.xlu1 %1357  ;;  %v1476_v45 = vmul.f32 %v5494_v5, %v6941_v25  ;;  %v1475_v18 = vmul.f32 %v5494_v5, %v6939_v21 }
 0x37f   : > { %5499 = vrcp.f32 %v1358_v38  ;;  %v1612_v38 = vrot.slane %v10090_v23, 2 }
 0x381   : > { %v5496_v22 = vpop.eup %5495 }
 0x382   : > { %v1361_v55 = vpop.xlane.xlu1 %1360  ;;  %v1478_v59 = vmul.f32 %v5496_v22, %v6949_v11  ;;  %v1477_v24 = vmul.f32 %v5496_v22, %v6947_v17 }
 0x383   : > { %5501 = vrcp.f32 %v1361_v55 }
 0x384   : > { %v5093_v9 = vpack.c.bf16 %v1478_v59, %v1476_v45  ;;  %v5095_v52 = vpack.c.bf16 %v1477_v24, %v1475_v18  ;;  %v10091_v24 = vld [vmem:[#allocation4_spill] sm:$0xff] }
 0x385   : > { %v5498_v13 = vpop.eup %5497 }
 0x386   : > { %5094 = vmatprep.subr.bf16.mxu0 %v5093_v9  ;;  %v1364_v33 = vpop.xlane.xlu1 %1363  ;;  %v1480_v25 = vmul.f32 %v5498_v13, %v6957_v57  ;;  %v1479_v21 = vmul.f32 %v5498_v13, %v6955_v32 }
 0x387   : > { %5503 = vrcp.f32 %v1364_v33  ;;  %5096 = vmatpush1.bf16.xpose.msra.mxu0 %v5095_v52  ;;  %v1613_v52 = vrot.slane %v10091_v24, 2 }
 0x389   : > { %v5500_v58 = vpop.eup %5499 }
 0x38a   : > { %1616 = vxpose.xlu0.b32.start.end [1/1] (short) %v1612_v38, 128  ;;  %v1367_v2 = vpop.xlane.xlu1 %1366  ;;  %v1482_v11 = vmul.f32 %v5500_v58, %v6965_v10  ;;  %v1481_v17 = vmul.f32 %v5500_v58, %v6963_v39 }
 0x38b   : > { %5505 = vrcp.f32 %v1367_v2 }
 0x38c   : > { %v5097_v22 = vpack.c.bf16 %v1482_v11, %v1480_v25  ;;  %v5099_v5 = vpack.c.bf16 %v1481_v17, %v1479_v21 }
 0x38d   : > { %v5502_v55 = vpop.eup %5501 }
 0x38e   : > { %5098 = vmatprep.subr.bf16.mxu0 %v5097_v22  ;;  %v1370_v18 = vpop.xlane.xlu1 %1369  ;;  %v1484_v57 = vmul.f32 %v5502_v55, %v6973_v42  ;;  %v1483_v32 = vmul.f32 %v5502_v55, %v6971_v46 }
 0x38f   : > { %5507 = vrcp.f32 %v1370_v18  ;;  %5100 = vmatpush1.bf16.xpose.msra.mxu0 %v5099_v5 }
 0x391   : > { %v5504_v45 = vpop.eup %5503 }
 0x392   : > { %v1373_v59 = vpop.xlane.xlu1 %1372  ;;  %v1486_v10 = vmul.f32 %v5504_v45, %v6981_v20  ;;  %v1485_v39 = vmul.f32 %v5504_v45, %v6979_v53 }
 0x393   : > { %5509 = vrcp.f32 %v1373_v59 }
 0x394   : > { %1648 = vxpose.xlu1.b32.start.end [1/1] (short) %v1613_v52, 128  ;;  %v5101_v58 = vpack.c.bf16 %v1486_v10, %v1484_v57  ;;  %v5103_v2 = vpack.c.bf16 %v1485_v39, %v1483_v32 }
 0x395   : > { %v5506_v33 = vpop.eup %5505 }
 0x396   : > { %5102 = vmatprep.subr.bf16.mxu0 %v5101_v58  ;;  %v1376_v9 = vpop.xlane.xlu1 %1375  ;;  %v1488_v25 = vmul.f32 %v5506_v33, %v6989_v6  ;;  %v1487_v20 = vmul.f32 %v5506_v33, %v6987_v63 }
 0x397   : > { %5511 = vrcp.f32 %v1376_v9  ;;  %5104 = vmatpush1.bf16.xpose.msra.mxu0 %v5103_v2 }
 0x399   : > { %v5508_v13 = vpop.eup %5507 }
 0x39a   : > { %v1379_v38 = vpop.xlane.xlu1 %1378  ;;  %v1490_v42 = vmul.f32 %v5508_v13, %v6997_v3  ;;  %v1489_v46 = vmul.f32 %v5508_v13, %v6995_v14 }
 0x39b   : > { %5513 = vrcp.f32 %v1379_v38 }
 0x39c   : > { %v5105_v53 = vpack.c.bf16 %v1490_v42, %v1488_v25  ;;  %v5107_v11 = vpack.c.bf16 %v1489_v46, %v1487_v20 }
 0x39d   : > { %v5510_v17 = vpop.eup %5509 }
 0x39e   : > { %5106 = vmatprep.subr.bf16.mxu0 %v5105_v53  ;;  %v1382_v21 = vpop.xlane.xlu1 %1381  ;;  %v1492_v18 = vmul.f32 %v5510_v17, %v7005_v12  ;;  %v1491_v3 = vmul.f32 %v5510_v17, %v7003_v29 }
 0x39f   : > { %5515 = vrcp.f32 %v1382_v21  ;;  %5108 = vmatpush1.bf16.xpose.msra.mxu0 %v5107_v11 }
 0x3a1   : > { %v5512_v22 = vpop.eup %5511 }
 0x3a2   : > { %v1385_v5 = vpop.xlane.xlu0 %1384  ;;  %v1494_v6 = vmul.f32 %v5512_v22, %v7013_v8  ;;  %v1493_v63 = vmul.f32 %v5512_v22, %v7011_v40 }
 0x3a3   : > { %5517 = vrcp.f32 %v1385_v5 }
 0x3a4   : > { %v5109_v55 = vpack.c.bf16 %v1494_v6, %v1492_v18  ;;  %v5111_v14 = vpack.c.bf16 %v1493_v63, %v1491_v3 }
 0x3a5   : > { %v5514_v52 = vpop.eup %5513 }
 0x3a6   : > { %5110 = vmatprep.subr.bf16.mxu0 %v5109_v55  ;;  %v1388_v45 = vpop.xlane.xlu1 %1387  ;;  %v1496_v10 = vmul.f32 %v5514_v52, %v7021_v31  ;;  %v1495_v8 = vmul.f32 %v5514_v52, %v7019_v49 }
 0x3a7   : > { %5519 = vrcp.f32 %v1388_v45  ;;  %5112 = vmatpush1.bf16.xpose.msra.mxu0 %v5111_v14 }
 0x3a9   : > { %v5516_v59 = vpop.eup %5515 }
 0x3aa   : > { %v1391_v57 = vpop.xlane.xlu0 %1390  ;;  %v1498_v12 = vmul.f32 %v5516_v59, %v7029_v62  ;;  %v1497_v29 = vmul.f32 %v5516_v59, %v7027_v61 }
 0x3ab   : > { %5521 = vrcp.f32 %v1391_v57 }
 0x3ac   : > { %v5113_v32 = vpack.c.bf16 %v1498_v12, %v1496_v10  ;;  %v5115_v40 = vpack.c.bf16 %v1497_v29, %v1495_v8  ;;  %v10092_v8 = vld [vmem:[#allocation13_spill] sm:$0xff] }
 0x3ad   : > { %v5518_v58 = vpop.eup %5517 }
 0x3ae   : > { %5114 = vmatprep.subr.bf16.mxu0 %v5113_v32  ;;  %v1394_v39 = vpop.xlane.xlu1 %1393  ;;  %v1500_v33 = vmul.f32 %v5518_v58, %v7037_v19  ;;  %v1499_v62 = vmul.f32 %v5518_v58, %v7035_v16 }
 0x3af   : > { %5523 = vrcp.f32 %v1394_v39  ;;  %5116 = vmatpush1.bf16.xpose.msra.mxu0 %v5115_v40 }
 0x3b1   : > { %v5520_v2 = vpop.eup %5519 }
 0x3b2   : > { %v1397_v9 = vpop.xlane.xlu0 %1396  ;;  %v1502_v31 = vmul.f32 %v5520_v2, %v7045_v30  ;;  %v1501_v49 = vmul.f32 %v5520_v2, %v7043_v35  ;;  %v10093_v2 = vld [vmem:[#allocation15_spill] sm:$0xff] }
 0x3b3   : > { %5525 = vrcp.f32 %v1397_v9 }
 0x3b4   : > { %v5117_v13 = vpack.c.bf16 %v1502_v31, %v1500_v33  ;;  %v5119_v61 = vpack.c.bf16 %v1501_v49, %v1499_v62  ;;  %v10094_v33 = vld [vmem:[#allocation17_spill] sm:$0xff]  ;;  %v10095_v31 = vld [vmem:[#allocation14_spill] sm:$0xff]  ;;  %v10096_v62 = vld [vmem:[#allocation16_spill] sm:$0xff] }
 0x3b5   : > { %v5522_v25 = vpop.eup %5521 }
 0x3b6   : > { %5118 = vmatprep.subr.bf16.mxu0 %v5117_v13  ;;  %v1400_v38 = vpop.xlane.xlu1 %1399  ;;  %v1504_v46 = vmul.f32 %v5522_v25, %v7053_v37  ;;  %v1503_v30 = vmul.f32 %v5522_v25, %v7051_v50 }
 0x3b7   : > { %5527 = vrcp.f32 %v1400_v38  ;;  %5120 = vmatpush1.bf16.xpose.msra.mxu0 %v5119_v61 }
 0x3b9   : > { %v5524_v42 = vpop.eup %5523 }
 0x3ba   : > { %v1403_v20 = vpop.xlane.xlu0 %1402  ;;  %v1506_v19 = vmul.f32 %v5524_v42, %v7061_v44  ;;  %v1505_v16 = vmul.f32 %v5524_v42, %v7059_v4 }
 0x3bb   : > { %5529 = vrcp.f32 %v1403_v20 }
 0x3bc   : > { %v5121_v53 = vpack.c.bf16 %v1506_v19, %v1504_v46  ;;  %v5123_v35 = vpack.c.bf16 %v1505_v16, %v1503_v30  ;;  %v10097_v30 = vld [vmem:[#allocation18_spill] sm:$0xff] }
 0x3bd   : > { %v5526_v21 = vpop.eup %5525 }
 0x3be   : > { %5122 = vmatprep.subr.bf16.mxu0 %v5121_v53  ;;  %v1406_v11 = vpop.xlane.xlu1 %1405  ;;  %v1508_v5 = vmul.f32 %v5526_v21, %v7069_v51  ;;  %v1507_v44 = vmul.f32 %v5526_v21, %v7067_v34 }
 0x3bf   : > { %5531 = vrcp.f32 %v1406_v11  ;;  %5124 = vmatpush1.bf16.xpose.msra.mxu0 %v5123_v35 }
 0x3c1   : > { %v5528_v17 = vpop.eup %5527 }
 0x3c2   : > { %v1409_v22 = vpop.xlane.xlu0 %1408  ;;  %v1510_v37 = vmul.f32 %v5528_v17, %v7077_v60  ;;  %v1509_v50 = vmul.f32 %v5528_v17, %v7075_v54 }
 0x3c3   : > { %5533 = vrcp.f32 %v1409_v22 }
 0x3c4   : > { %v5125_v18 = vpack.c.bf16 %v1510_v37, %v1508_v5  ;;  %v5127_v4 = vpack.c.bf16 %v1509_v50, %v1507_v44  ;;  %v10098_v37 = vld [vmem:[#allocation19_spill] sm:$0xff] }
 0x3c5   : > { %v5530_v3 = vpop.eup %5529 }
 0x3c6   : > { %5126 = vmatprep.subr.bf16.mxu0 %v5125_v18  ;;  %v1412_v6 = vpop.xlane.xlu1 %1411  ;;  %v1512_v14 = vmul.f32 %v5530_v3, %v7085_v7  ;;  %v1511_v60 = vmul.f32 %v5530_v3, %v7083_v26  ;;  %v10099_v3 = vld [vmem:[#allocation21_spill] sm:$0xff] }
 0x3c7   : > { %5535 = vrcp.f32 %v1412_v6  ;;  %5128 = vmatpush1.bf16.xpose.msra.mxu0 %v5127_v4 }
 0x3c9   : > { %v5532_v63 = vpop.eup %5531 }
 0x3ca   : > { %v1415_v55 = vpop.xlane.xlu0 %1414  ;;  %v1514_v51 = vmul.f32 %v5532_v63, %v7093_v27  ;;  %v1513_v34 = vmul.f32 %v5532_v63, %v7091_v56 }
 0x3cb   : > { %5537 = vrcp.f32 %v1415_v55  ;;  %v10100_v55 = vld [vmem:[#allocation23_spill] sm:$0xff] }
 0x3cc   : > { %v5129_v45 = vpack.c.bf16 %v1514_v51, %v1512_v14  ;;  %v5131_v54 = vpack.c.bf16 %v1513_v34, %v1511_v60 }
 0x3cd   : > { %v5534_v59 = vpop.eup %5533 }
 0x3ce   : > { %5130 = vmatprep.subr.bf16.mxu0 %v5129_v45  ;;  %v1418_v52 = vpop.xlane.xlu1 %1417  ;;  %v1516_v12 = vmul.f32 %v5534_v59, %v7101_v36  ;;  %v1515_v27 = vmul.f32 %v5534_v59, %v7099_v41 }
 0x3cf   : > { %5539 = vrcp.f32 %v1418_v52  ;;  %5132 = vmatpush1.bf16.xpose.msra.mxu0 %v5131_v54  ;;  %v10103_v52 = vld [vmem:[#allocation25_spill] sm:$0xff] }
 0x3d1   : > { %v5536_v57 = vpop.eup %5535 }
 0x3d2   : > { %v1421_v10 = vpop.xlane.xlu0 %1420  ;;  %v1518_v7 = vmul.f32 %v5536_v57, %v7109_v28  ;;  %v1517_v26 = vmul.f32 %v5536_v57, %v10092_v8  ;;  %v10104_v57 = vld [vmem:[#allocation27_spill] sm:$0xff] }
 0x3d3   : > { %5541 = vrcp.f32 %v1421_v10 }
 0x3d4   : > { %v5133_v29 = vpack.c.bf16 %v1518_v7, %v1516_v12  ;;  %v5135_v56 = vpack.c.bf16 %v1517_v26, %v1515_v27  ;;  %v10105_v12 = vld [vmem:[#allocation24_spill] sm:$0xff]  ;;  %v10106_v27 = vld [vmem:[#allocation26_spill] sm:$0xff] }
 0x3d5   : > { %v5538_v40 = vpop.eup %5537 }
 0x3d6   : > { %5134 = vmatprep.subr.bf16.mxu0 %v5133_v29  ;;  %v1424_v32 = vpop.xlane.xlu1 %1423  ;;  %v1520_v9 = vmul.f32 %v5538_v40, %v10093_v2  ;;  %v1519_v28 = vmul.f32 %v5538_v40, %v10095_v31  ;;  %v10108_v40 = vld [vmem:[#allocation5_spill] sm:$0xff]  ;;  %v10110_v2 = vmov 0.0  }
 0x3d7   : > { %5543 = vrcp.f32 %v1424_v32  ;;  %5136 = vmatpush1.bf16.xpose.msra.mxu0 %v5135_v56  ;;  %v10107_v56 = vld [vmem:[#allocation6_spill] sm:$0xff] }
 0x3d8   : > { %v1681_v32 = vrot.slane %v10107_v56, 2 }
 0x3d9   : > { %v5540_v39 = vpop.eup %5539 }
 0x3da   : > { %v1427_v58 = vpop.xlane.xlu0 %1426  ;;  %v1522_v36 = vmul.f32 %v5540_v39, %v10094_v33  ;;  %v1521_v41 = vmul.f32 %v5540_v39, %v10096_v62  ;;  %v1680_v39 = vrot.slane %v10108_v40, 2 }
 0x3db   : > { %5545 = vrcp.f32 %v1427_v58  ;;  %v10109_v58 = vld [vmem:[#allocation7_spill] sm:$0xff] }
 0x3dc   : > { %v5137_v49 = vpack.c.bf16 %v1522_v36, %v1520_v9  ;;  %v5139_v13 = vpack.c.bf16 %v1521_v41, %v1519_v28 }
 0x3dd   : > { %v5542_v38 = vpop.eup %5541 }
 0x3de   : > { %5138 = vmatprep.subr.bf16.mxu0 %v5137_v49  ;;  %v1430_v61 = vpop.xlane.xlu1 %1429  ;;  %v1524_v20 = vmul.f32 %v5542_v38, %v7133_v0  ;;  %v1523_v19 = vmul.f32 %v5542_v38, %v7131_v15 }
 0x3df   : > { %5547 = vrcp.f32 %v1430_v61  ;;  %5140 = vmatpush1.bf16.xpose.msra.mxu0 %v5139_v13 }
 0x3e1   : > { %v5544_v25 = vpop.eup %5543 }
 0x3e2   : > { %v1433_v42 = vpop.xlane.xlu0 %1432  ;;  %v1526_v46 = vmul.f32 %v5544_v25, %v7141_v48  ;;  %v1525_v16 = vmul.f32 %v5544_v25, %v10097_v30 }
 0x3e3   : > { %5549 = vrcp.f32 %v1433_v42 }
 0x3e4   : > { %v5141_v53 = vpack.c.bf16 %v1526_v46, %v1524_v20  ;;  %v5143_v35 = vpack.c.bf16 %v1525_v16, %v1523_v19 }
 0x3e5   : > { %v5546_v21 = vpop.eup %5545 }
 0x3e6   : > { %5142 = vmatprep.subr.bf16.mxu0 %v5141_v53  ;;  %v1436_v11 = vpop.xlane.xlu1 %1435  ;;  %v1528_v5 = vmul.f32 %v5546_v21, %v7149_v1  ;;  %v1527_v48 = vmul.f32 %v5546_v21, %v7147_v47  ;;  %v10101_v1 = vld [vmem:[#allocation20_spill] sm:$0xff] }
 0x3e7   : > { %5551 = vrcp.f32 %v1436_v11  ;;  %5144 = vmatpush1.bf16.xpose.msra.mxu0 %v5143_v35 }
 0x3e9   : > { %v5548_v17 = vpop.eup %5547 }
 0x3ea   : > { %v1439_v22 = vpop.xlane.xlu0 %1438  ;;  %v1530_v0 = vmul.f32 %v5548_v17, %v7157_v43  ;;  %v1529_v15 = vmul.f32 %v5548_v17, %v10098_v37  ;;  %v10102_v43 = vld [vmem:[#allocation22_spill] sm:$0xff] }
 0x3eb   : > { %5553 = vrcp.f32 %v1439_v22 }
 0x3ec   : > { %v5145_v44 = vpack.c.bf16 %v1530_v0, %v1528_v5  ;;  %v5147_v50 = vpack.c.bf16 %v1529_v15, %v1527_v48 }
 0x3ed   : > { %v5550_v4 = vpop.eup %5549 }
 0x3ee   : > { %5146 = vmatprep.subr.bf16.mxu0 %v5145_v44  ;;  %v1442_v18 = vpop.xlane.xlu1 %1441  ;;  %v1532_v63 = vmul.f32 %v5550_v4, %v10099_v3  ;;  %v1531_v51 = vmul.f32 %v5550_v4, %v10101_v1  ;;  %v10111_v4 = vld [vmem:[#allocation8_spill] sm:$0xff] }
 0x3ef   : > { %5555 = vrcp.f32 %v1442_v18  ;;  %5148 = vmatpush1.bf16.xpose.msra.mxu0 %v5147_v50 }
 0x3f1   : > { %v5552_v6 = vpop.eup %5551 }
 0x3f2   : > { %v1534_v14 = vmul.f32 %v5552_v6, %v10100_v55  ;;  %v1533_v60 = vmul.f32 %v5552_v6, %v10102_v43  ;;  %v3504_v6 = vrot.slane %v10111_v4, 4  ;;  %v6162_v43 = vld [vmem:[%s9900_s3 + $0x8] sm:$0xff] }
 0x3f4   : > { %v5149_v47 = vpack.c.bf16 %v1534_v14, %v1532_v63  ;;  %v5151_v34 = vpack.c.bf16 %v1533_v60, %v1531_v51  ;;  %v6161_v14 = vld [vmem:[%s9900_s3] sm:$0xff] }
 0x3f5   : > { %v5554_v45 = vpop.eup %5553 }
 0x3f6   : > { %5150 = vmatprep.subr.bf16.mxu0 %v5149_v47  ;;  %v1536_v59 = vmul.f32 %v5554_v45, %v10103_v52  ;;  %v1535_v7 = vmul.f32 %v5554_v45, %v10105_v12  ;;  %v6163_v45 = vld [vmem:[%s9900_s3 + $0x10] sm:$0xff] }
 0x3f7   : > { %5152 = vmatpush1.bf16.xpose.msra.mxu0 %v5151_v34 }
 0x3f9   : > { %v5556_v54 = vpop.eup %5555 }
 0x3fa   : > { %v1538_v10 = vmul.f32 %v5556_v54, %v10104_v57  ;;  %v1537_v8 = vmul.f32 %v5556_v54, %v10106_v27 }
 0x3fc   : > { %v5153_v26 = vpack.c.bf16 %v1538_v10, %v1536_v59  ;;  %v5155_v29 = vpack.c.bf16 %v1537_v8, %v1535_v7  ;;  %v6164_v59 = vld [vmem:[%s9900_s3 + $0x18] sm:$0xff]  ;;  %v6165_v7 = vld [vmem:[%s9900_s3 + $0x20] sm:$0xff] }
 0x3fe   : > { %5154 = vmatprep.subr.bf16.mxu0 %v5153_v26  ;;  %v6166_v26 = vld [vmem:[%s9900_s3 + $0x28] sm:$0xff] }
 0x3ff   : > { %5156 = vmatpush1.bf16.xpose.msra.mxu0 %v5155_v29 }
 0x400   : > { %4982 = vmatprep.subr.msk.mxu0 %vm795_vm1, %v1681_v32 }
 0x406   : > { %1604 = vmatmul.mubr.f32.vlgmr.msra.gmra.mrb[0].mxu0 %v10109_v58 }
 0x407   : > { %4983 = vmatpush1.msk.msra.mxu0 %vm795_vm1, %v1680_v39  ;;  %1846 = vmatprep.mubr.f32.mxu0 %v10110_v2 }
 0x40a   : > { %v1632_v9 = vpop.trf.xlu0 }
 0x40b   : > { %4984 = vmatmul.mubr.msk.f32.vlgmr.msra.gmra.mrb[2].mxu0 %vm698_vm2, %v1632_v9  ;;  %v6167_v9 = vld [vmem:[%s9900_s3 + $0x30] sm:$0xff] }
 0x40c   : > { %1852 = vmatprep.mubr.f32.mxu0 %v10110_v2 }
 0x40e   : > { %v1633_v33 = vpop.trf.xlu0 }
 0x40f   : > { %4985 = vmatmul.mubr.msk.f32.gmra.mrb[4].mxu0 %vm698_vm2, %v1633_v33 }
 0x410   : > { %1858 = vmatprep.mubr.f32.mxu0 %v10110_v2 }
 0x412   : > { %v1634_v36 = vpop.trf.xlu0 }
 0x413   : > { %4986 = vmatmul.mubr.msk.f32.gmra.mrb[6].mxu0 %vm698_vm2, %v1634_v36 }
 0x414   : > { %1864 = vmatprep.mubr.f32.mxu0 %v10110_v2  ;;  %v1664_v61 = vpop.trf.xlu1 }
 0x416   : > { %v1635_v31 = vpop.trf.xlu0 }
 0x417   : > { %4987 = vmatmul.mubr.msk.f32.gmra.mrb[8].mxu0 %vm698_vm2, %v1635_v31  ;;  %v6168_v31 = vld [vmem:[%s9900_s3 + $0x38] sm:$0xff] }
 0x418   : > { %1870 = vmatprep.mubr.f32.mxu0 %v10110_v2  ;;  %v1665_v25 = vpop.trf.xlu1 }
 0x41a   : > { %v1636_v28 = vpop.trf.xlu0 }
 0x41b   : > { %4988 = vmatmul.mubr.msk.f32.gmra.mrb[10].mxu0 %vm698_vm2, %v1636_v28 }
 0x41c   : > { %1876 = vmatprep.mubr.f32.mxu0 %v10110_v2  ;;  %v1666_v46 = vpop.trf.xlu1 }
 0x41e   : > { %v1637_v62 = vpop.trf.xlu0 }
 0x41f   : > { %4989 = vmatmul.mubr.msk.f32.gmra.mrb[12].mxu0 %vm698_vm2, %v1637_v62 }
 0x420   : > { %1882 = vmatprep.mubr.f32.mxu0 %v10110_v2  ;;  %v1667_v30 = vpop.trf.xlu1 }
 0x422   : > { %v1638_v41 = vpop.trf.xlu0 }
 0x423   : > { %4990 = vmatmul.mubr.msk.f32.gmra.mrb[14].mxu0 %vm698_vm2, %v1638_v41 }
 0x424   : > { %1888 = vmatprep.mubr.f32.mxu0 %v10110_v2  ;;  %v1668_v35 = vpop.trf.xlu1 }
 0x426   : > { %v1639_v49 = vpop.trf.xlu0 }
 0x427   : > { %4991 = vmatmul.mubr.msk.f32.gmra.mrb[16].mxu0 %vm698_vm2, %v1639_v49  ;;  %v6169_v49 = vld [vmem:[%s9900_s3 + $0x40] sm:$0xff] }
 0x428   : > { %1894 = vmatprep.mubr.f32.mxu0 %v10110_v2  ;;  %v1669_v21 = vpop.trf.xlu1 }
 0x42a   : > { %v1640_v13 = vpop.trf.xlu0 }
 0x42b   : > { %4992 = vmatmul.mubr.msk.f32.gmra.mrb[18].mxu0 %vm698_vm2, %v1640_v13 }
 0x42c   : > { %1900 = vmatprep.mubr.f32.mxu0 %v10110_v2  ;;  %v1670_v17 = vpop.trf.xlu1 }
 0x42e   : > { %v1641_v38 = vpop.trf.xlu0 }
 0x42f   : > { %4993 = vmatmul.mubr.msk.f32.gmra.mrb[20].mxu0 %vm698_vm2, %v1641_v38  ;;  %v6170_v38 = vld [vmem:[%s9900_s3 + $0x48] sm:$0xff] }
 0x430   : > { %1906 = vmatprep.mubr.f32.mxu0 %v10110_v2  ;;  %v1671_v22 = vpop.trf.xlu1 }
 0x432   : > { %v1642_v42 = vpop.trf.xlu0 }
 0x433   : > { %4994 = vmatmul.mubr.msk.f32.gmra.mrb[22].mxu0 %vm698_vm2, %v1642_v42 }
 0x434   : > { %1912 = vmatprep.mubr.f32.mxu0 %v10110_v2  ;;  %v1672_v5 = vpop.trf.xlu1 }
 0x436   : > { %v1643_v20 = vpop.trf.xlu0 }
 0x437   : > { %4995 = vmatmul.mubr.msk.f32.gmra.mrb[24].mxu0 %vm698_vm2, %v1643_v20 }
 0x438   : > { %1918 = vmatprep.mubr.f32.mxu0 %v10110_v2  ;;  %v1673_v0 = vpop.trf.xlu1 }
 0x43a   : > { %v1644_v19 = vpop.trf.xlu0 }
 0x43b   : > { %4996 = vmatmul.mubr.msk.f32.gmra.mrb[26].mxu0 %vm698_vm2, %v1644_v19 }
 0x43c   : > { %1924 = vmatprep.mubr.f32.mxu0 %v10110_v2  ;;  %v1674_v48 = vpop.trf.xlu1 }
 0x43e   : > { %v1645_v16 = vpop.trf.xlu0 }
 0x43f   : > { %4997 = vmatmul.mubr.msk.f32.gmra.mrb[28].mxu0 %vm698_vm2, %v1645_v16  ;;  %v6172_v16 = vld [vmem:[%s9900_s3 + $0x58] sm:$0xff] }
 0x440   : > { %1930 = vmatprep.mubr.f32.mxu0 %v10110_v2  ;;  %v1675_v37 = vpop.trf.xlu1 }
 0x442   : > { %v1646_v53 = vpop.trf.xlu0 }
 0x443   : > { %4998 = vmatmul.mubr.msk.f32.gmra.mrb[30].mxu0 %vm698_vm2, %v1646_v53 }
 0x444   : > { %1936 = vmatprep.mubr.f32.mxu0 %v10110_v2  ;;  %v1676_v15 = vpop.trf.xlu1 }
 0x446   : > { %v1647_v11 = vpop.trf.xlu0 }
 0x447   : > { %4999 = vmatmul.mubr.msk.f32.gmra.mrb[32].mxu0 %vm698_vm2, %v1647_v11 }
 0x448   : > { %1942 = vmatprep.mubr.f32.mxu0 %v10110_v2  ;;  %v1677_v44 = vpop.trf.xlu1 }
 0x44b   : > { %5000 = vmatmul.mubr.msk.f32.gmra.mrb[34].mxu0 %vm698_vm2, %v1664_v61 }
 0x44c   : > { %1948 = vmatprep.mubr.f32.mxu0 %v10110_v2  ;;  %v1678_v50 = vpop.trf.xlu1 }
 0x44f   : > { %5001 = vmatmul.mubr.msk.f32.gmra.mrb[36].mxu0 %vm698_vm2, %v1665_v25 }
 0x450   : > { %1954 = vmatprep.mubr.f32.mxu0 %v10110_v2  ;;  %v1679_v18 = vpop.trf.xlu1 }
 0x453   : > { %5002 = vmatmul.mubr.msk.f32.gmra.mrb[38].mxu0 %vm698_vm2, %v1666_v46  ;;  %v6171_v46 = vld [vmem:[%s9900_s3 + $0x50] sm:$0xff] }
 0x454   : > { %1960 = vmatprep.mubr.f32.mxu0 %v10110_v2 }
 0x457   : > { %5003 = vmatmul.mubr.msk.f32.gmra.mrb[40].mxu0 %vm698_vm2, %v1667_v30 }
 0x458   : > { %1966 = vmatprep.mubr.f32.mxu0 %v10110_v2 }
 0x45b   : > { %5004 = vmatmul.mubr.msk.f32.gmra.mrb[42].mxu0 %vm698_vm2, %v1668_v35 }
 0x45c   : > { %1972 = vmatprep.mubr.f32.mxu0 %v10110_v2 }
 0x45f   : > { %5005 = vmatmul.mubr.msk.f32.gmra.mrb[44].mxu0 %vm698_vm2, %v1669_v21  ;;  %v6173_v21 = vld [vmem:[%s9900_s3 + $0x60] sm:$0xff] }
 0x460   : > { %1978 = vmatprep.mubr.f32.mxu0 %v10110_v2 }
 0x463   : > { %5006 = vmatmul.mubr.msk.f32.gmra.mrb[46].mxu0 %vm698_vm2, %v1670_v17 }
 0x464   : > { %1984 = vmatprep.mubr.f32.mxu0 %v10110_v2 }
 0x467   : > { %5007 = vmatmul.mubr.msk.f32.gmra.mrb[48].mxu0 %vm698_vm2, %v1671_v22 }
 0x468   : > { %1990 = vmatprep.mubr.f32.mxu0 %v10110_v2 }
 0x46b   : > { %5008 = vmatmul.mubr.msk.f32.gmra.mrb[50].mxu0 %vm698_vm2, %v1672_v5  ;;  %v6174_v5 = vld [vmem:[%s9900_s3 + $0x68] sm:$0xff] }
 0x46c   : > { %1996 = vmatprep.mubr.f32.mxu0 %v10110_v2 }
 0x46f   : > { %5009 = vmatmul.mubr.msk.f32.gmra.mrb[52].mxu0 %vm698_vm2, %v1673_v0 }
 0x470   : > { %2002 = vmatprep.mubr.f32.mxu0 %v10110_v2 }
 0x473   : > { %5010 = vmatmul.mubr.msk.f32.gmra.mrb[54].mxu0 %vm698_vm2, %v1674_v48 }
 0x474   : > { %2008 = vmatprep.mubr.f32.mxu0 %v10110_v2 }
 0x477   : > { %5011 = vmatmul.mubr.msk.f32.gmra.mrb[56].mxu0 %vm698_vm2, %v1675_v37 }
 0x478   : > { %2014 = vmatprep.mubr.f32.mxu0 %v10110_v2 }
 0x47b   : > { %5012 = vmatmul.mubr.msk.f32.gmra.mrb[58].mxu0 %vm698_vm2, %v1676_v15  ;;  %v6175_v15 = vld [vmem:[%s9900_s3 + $0x70] sm:$0xff] }
 0x47c   : > { %2020 = vmatprep.mubr.f32.mxu0 %v10110_v2 }
 0x47f   : > { %5013 = vmatmul.mubr.msk.f32.gmra.mrb[60].mxu0 %vm698_vm2, %v1677_v44 }
 0x480   : > { %2026 = vmatprep.mubr.f32.mxu0 %v10110_v2 }
 0x483   : > { %5014 = vmatmul.mubr.msk.f32.gmra.mrb[62].mxu0 %vm698_vm2, %v1678_v50 }
 0x484   : > { %2032 = vmatprep.mubr.f32.mxu0 %v10110_v2 }
 0x487   : > { %5015 = vmatmul.mubr.msk.f32.gmra.mrb[64].mxu0 %vm698_vm2, %v1679_v18  ;;  %v6176_v18 = vld [vmem:[%s9900_s3 + $0x78] sm:$0xff] }
 0x488   : > { %3571 = vmatprep.mubr.f32.mxu0 %v3504_v6 }
 0x4d9   : > { %v7323_v3 = vpop.f32.mrb[0].mxu0 }
 0x4da   : > { %10112 = vst [vmem:[#allocation13_spill] sm:$0xff] %v7323_v3  ;;  %v7325_v63 = vpop.f32.mrb[1].mxu0 }
 0x4db   : > { %10113 = vst [vmem:[#allocation15_spill] sm:$0xff] %v7325_v63 }
 0x4de   : > { %v1848_v55 = vpop.f32.mrb[2].mxu0 }
 0x4df   : > { %v7330_v1 = vadd.f32 %v6161_v14, %v1848_v55  ;;  %v1850_v51 = vpop.f32.mrb[3].mxu0 }
 0x4e0   : > { %v7335_v60 = vadd.f32 %v6162_v43, %v1850_v51  ;;  %v6177_v51 = vld [vmem:[%s9900_s3 + $0x80] sm:$0xff] }
 0x4e2   : > { %v2039_v47 = vmax.f32 %v7330_v1, %v7335_v60  ;;  %v1854_v34 = vpop.f32.mrb[4].mxu0 }
 0x4e3   : > { %v7342_v54 = vadd.f32 %v6163_v45, %v1854_v34  ;;  %v1856_v52 = vpop.f32.mrb[5].mxu0  ;;  %v6178_v34 = vld [vmem:[%s9900_s3 + $0x88] sm:$0xff] }
 0x4e4   : > { %v7347_v57 = vadd.f32 %v6164_v59, %v1856_v52  ;;  %2040 = vmax.xlane.f32.xlu0 %v2039_v47 }
 0x4e6   : > { %v2042_v10 = vmax.f32 %v7342_v54, %v7347_v57  ;;  %v1860_v12 = vpop.f32.mrb[6].mxu0 }
 0x4e7   : > { %v7354_v27 = vadd.f32 %v6165_v7, %v1860_v12  ;;  %v1862_v8 = vpop.f32.mrb[7].mxu0 }
 0x4e8   : > { %v7359_v29 = vadd.f32 %v6166_v26, %v1862_v8  ;;  %2043 = vmax.xlane.f32.xlu1 %v2042_v10  ;;  %v6179_v10 = vld [vmem:[%s9900_s3 + $0x90] sm:$0xff]  ;;  %v6180_v8 = vld [vmem:[%s9900_s3 + $0x98] sm:$0xff] }
 0x4ea   : > { %v2045_v32 = vmax.f32 %v7354_v27, %v7359_v29  ;;  %v1866_v39 = vpop.f32.mrb[8].mxu0 }
 0x4eb   : > { %v7366_v33 = vadd.f32 %v6167_v9, %v1866_v39  ;;  %v1868_v36 = vpop.f32.mrb[9].mxu0  ;;  %v6181_v9 = vld [vmem:[%s9900_s3 + $0xa0] sm:$0xff] }
 0x4ec   : > { %v7371_v28 = vadd.f32 %v6168_v31, %v1868_v36  ;;  %2046 = vmax.xlane.f32.xlu0 %v2045_v32 }
 0x4ee   : > { %v2048_v62 = vmax.f32 %v7366_v33, %v7371_v28  ;;  %v1872_v41 = vpop.f32.mrb[10].mxu0 }
 0x4ef   : > { %v7378_v13 = vadd.f32 %v6169_v49, %v1872_v41  ;;  %v1874_v61 = vpop.f32.mrb[11].mxu0 }
 0x4f0   : > { %v7383_v25 = vadd.f32 %v6170_v38, %v1874_v61  ;;  %2049 = vmax.xlane.f32.xlu1 %v2048_v62  ;;  %v6182_v62 = vld [vmem:[%s9900_s3 + $0xa8] sm:$0xff]  ;;  %v6183_v38 = vld [vmem:[%s9900_s3 + $0xb0] sm:$0xff] }
 0x4f2   : > { %v2051_v42 = vmax.f32 %v7378_v13, %v7383_v25  ;;  %v1878_v20 = vpop.f32.mrb[12].mxu0 }
 0x4f3   : > { %v7390_v19 = vadd.f32 %v6171_v46, %v1878_v20  ;;  %v1880_v30 = vpop.f32.mrb[13].mxu0  ;;  %v6184_v46 = vld [vmem:[%s9900_s3 + $0xb8] sm:$0xff] }
 0x4f4   : > { %v7395_v53 = vadd.f32 %v6172_v16, %v1880_v30  ;;  %2052 = vmax.xlane.f32.xlu0 %v2051_v42 }
 0x4f6   : > { %v2054_v35 = vmax.f32 %v7390_v19, %v7395_v53  ;;  %v1884_v11 = vpop.f32.mrb[14].mxu0 }
 0x4f7   : > { %v7402_v17 = vadd.f32 %v6173_v21, %v1884_v11  ;;  %v1886_v22 = vpop.f32.mrb[15].mxu0  ;;  %v6185_v11 = vld [vmem:[%s9900_s3 + $0xc0] sm:$0xff] }
 0x4f8   : > { %v7407_v0 = vadd.f32 %v6174_v5, %v1886_v22  ;;  %2055 = vmax.xlane.f32.xlu1 %v2054_v35  ;;  %v6186_v5 = vld [vmem:[%s9900_s3 + $0xc8] sm:$0xff] }
 0x4fa   : > { %v2057_v48 = vmax.f32 %v7402_v17, %v7407_v0  ;;  %v1890_v37 = vpop.f32.mrb[16].mxu0 }
 0x4fb   : > { %v7414_v44 = vadd.f32 %v6175_v15, %v1890_v37  ;;  %v1892_v50 = vpop.f32.mrb[17].mxu0 }
 0x4fc   : > { %v7419_v6 = vadd.f32 %v6176_v18, %v1892_v50  ;;  %2058 = vmax.xlane.f32.xlu0 %v2057_v48  ;;  %v6187_v50 = vld [vmem:[%s9900_s3 + $0xd0] sm:$0xff] }
 0x4fe   : > { %v2060_v55 = vmax.f32 %v7414_v44, %v7419_v6  ;;  %v1896_v14 = vpop.f32.mrb[18].mxu0 }
 0x4ff   : > { %v7426_v43 = vadd.f32 %v6177_v51, %v1896_v14  ;;  %v1898_v47 = vpop.f32.mrb[19].mxu0  ;;  %v6188_v14 = vld [vmem:[%s9900_s3 + $0xd8] sm:$0xff] }
 0x500   : > { %v7431_v45 = vadd.f32 %v6178_v34, %v1898_v47  ;;  %2061 = vmax.xlane.f32.xlu1 %v2060_v55 }
 0x502   : > { %v2063_v52 = vmax.f32 %v7426_v43, %v7431_v45  ;;  %v1902_v59 = vpop.f32.mrb[20].mxu0 }
 0x503   : > { %v7438_v12 = vadd.f32 %v6179_v10, %v1902_v59  ;;  %v1904_v7 = vpop.f32.mrb[21].mxu0 }
 0x504   : > { %v7443_v26 = vadd.f32 %v6180_v8, %v1904_v7  ;;  %2064 = vmax.xlane.f32.xlu0 %v2063_v52  ;;  %v6189_v52 = vld [vmem:[%s9900_s3 + $0xe0] sm:$0xff]  ;;  %v6190_v7 = vld [vmem:[%s9900_s3 + $0xe8] sm:$0xff] }
 0x506   : > { %v2066_v32 = vmax.f32 %v7438_v12, %v7443_v26  ;;  %v1908_v39 = vpop.f32.mrb[22].mxu0 }
 0x507   : > { %v7450_v36 = vadd.f32 %v6181_v9, %v1908_v39  ;;  %v1910_v31 = vpop.f32.mrb[23].mxu0  ;;  %v6191_v9 = vld [vmem:[%s9900_s3 + $0xf0] sm:$0xff] }
 0x508   : > { %v7455_v41 = vadd.f32 %v6182_v62, %v1910_v31  ;;  %2067 = vmax.xlane.f32.xlu1 %v2066_v32 }
 0x50a   : > { %v2069_v49 = vmax.f32 %v7450_v36, %v7455_v41  ;;  %v1914_v61 = vpop.f32.mrb[24].mxu0 }
 0x50b   : > { %v7462_v42 = vadd.f32 %v6183_v38, %v1914_v61  ;;  %v1916_v20 = vpop.f32.mrb[25].mxu0 }
 0x50c   : > { %v7467_v30 = vadd.f32 %v6184_v46, %v1916_v20  ;;  %2070 = vmax.xlane.f32.xlu0 %v2069_v49  ;;  %v6192_v49 = vld [vmem:[%s9900_s3 + $0xf8] sm:$0xff]  ;;  %v6193_v46 = vld [vmem:[%s9900_s3 + $0x100] sm:$0xff] }
 0x50e   : > { %v2072_v16 = vmax.f32 %v7462_v42, %v7467_v30  ;;  %v1920_v35 = vpop.f32.mrb[26].mxu0 }
 0x50f   : > { %v7474_v21 = vadd.f32 %v6185_v11, %v1920_v35  ;;  %v1922_v22 = vpop.f32.mrb[27].mxu0  ;;  %v6194_v11 = vld [vmem:[%s9900_s3 + $0x108] sm:$0xff] }
 0x510   : > { %v7479_v48 = vadd.f32 %v6186_v5, %v1922_v22  ;;  %2073 = vmax.xlane.f32.xlu1 %v2072_v16 }
 0x512   : > { %v2075_v37 = vmax.f32 %v7474_v21, %v7479_v48  ;;  %v1926_v15 = vpop.f32.mrb[28].mxu0 }
 0x513   : > { %v7486_v18 = vadd.f32 %v6187_v50, %v1926_v15  ;;  %v1928_v55 = vpop.f32.mrb[29].mxu0  ;;  %v6195_v15 = vld [vmem:[%s9900_s3 + $0x110] sm:$0xff] }
 0x514   : > { %v7491_v51 = vadd.f32 %v6188_v14, %v1928_v55  ;;  %2076 = vmax.xlane.f32.xlu0 %v2075_v37  ;;  %v6196_v14 = vld [vmem:[%s9900_s3 + $0x118] sm:$0xff] }
 0x516   : > { %v2078_v47 = vmax.f32 %v7486_v18, %v7491_v51  ;;  %v1932_v34 = vpop.f32.mrb[30].mxu0 }
 0x517   : > { %v7498_v59 = vadd.f32 %v6189_v52, %v1932_v34  ;;  %v1934_v10 = vpop.f32.mrb[31].mxu0 }
 0x518   : > { %v7503_v8 = vadd.f32 %v6190_v7, %v1934_v10  ;;  %2079 = vmax.xlane.f32.xlu1 %v2078_v47  ;;  %v6197_v10 = vld [vmem:[%s9900_s3 + $0x120] sm:$0xff] }
 0x51a   : > { %v2081_v32 = vmax.f32 %v7498_v59, %v7503_v8  ;;  %v1938_v39 = vpop.f32.mrb[32].mxu0 }
 0x51b   : > { %v7510_v31 = vadd.f32 %v6191_v9, %v1938_v39  ;;  %v1940_v62 = vpop.f32.mrb[33].mxu0  ;;  %v6198_v39 = vld [vmem:[%s9900_s3 + $0x128] sm:$0xff] }
 0x51c   : > { %v7515_v61 = vadd.f32 %v6192_v49, %v1940_v62  ;;  %2082 = vmax.xlane.f32.xlu0 %v2081_v32 }
 0x51e   : > { %v2084_v38 = vmax.f32 %v7510_v31, %v7515_v61  ;;  %v1944_v20 = vpop.f32.mrb[34].mxu0 }
 0x51f   : > { %v7522_v16 = vadd.f32 %v6193_v46, %v1944_v20  ;;  %v1946_v35 = vpop.f32.mrb[35].mxu0 }
 0x520   : > { %v7527_v22 = vadd.f32 %v6194_v11, %v1946_v35  ;;  %2085 = vmax.xlane.f32.xlu1 %v2084_v38  ;;  %v6199_v38 = vld [vmem:[%s9900_s3 + $0x130] sm:$0xff]  ;;  %v6200_v35 = vld [vmem:[%s9900_s3 + $0x138] sm:$0xff] }
 0x522   : > { %v2087_v5 = vmax.f32 %v7522_v16, %v7527_v22  ;;  %v1950_v37 = vpop.f32.mrb[36].mxu0 }
 0x523   : > { %v7534_v50 = vadd.f32 %v6195_v15, %v1950_v37  ;;  %v1952_v55 = vpop.f32.mrb[37].mxu0  ;;  %v6201_v15 = vld [vmem:[%s9900_s3 + $0x140] sm:$0xff] }
 0x524   : > { %v7539_v47 = vadd.f32 %v6196_v14, %v1952_v55  ;;  %2088 = vmax.xlane.f32.xlu0 %v2087_v5 }
 0x526   : > { %10114 = vst [vmem:[#allocation17_spill] sm:$0xff] %v7539_v47  ;;  %v2090_v34 = vmax.f32 %v7534_v50, %v7539_v47  ;;  %v1956_v52 = vpop.f32.mrb[38].mxu0 }
 0x527   : > { %v7546_v7 = vadd.f32 %v6197_v10, %v1956_v52  ;;  %v1958_v32 = vpop.f32.mrb[39].mxu0 }
 0x528   : > { %v7551_v9 = vadd.f32 %v6198_v39, %v1958_v32  ;;  %2091 = vmax.xlane.f32.xlu1 %v2090_v34  ;;  %v6202_v34 = vld [vmem:[%s9900_s3 + $0x148] sm:$0xff]  ;;  %v6203_v39 = vld [vmem:[%s9900_s3 + $0x150] sm:$0xff] }
 0x529   : > { %10115 = vst [vmem:[#allocation14_spill] sm:$0xff] %v7546_v7 }
 0x52a   : > { %10116 = vst [vmem:[#allocation16_spill] sm:$0xff] %v7551_v9  ;;  %v2093_v62 = vmax.f32 %v7546_v7, %v7551_v9  ;;  %v1962_v49 = vpop.f32.mrb[40].mxu0 }
 0x52b   : > { %v7558_v20 = vadd.f32 %v6199_v38, %v1962_v49  ;;  %v1964_v46 = vpop.f32.mrb[41].mxu0  ;;  %v6204_v38 = vld [vmem:[%s9900_s3 + $0x158] sm:$0xff] }
 0x52c   : > { %v7563_v11 = vadd.f32 %v6200_v35, %v1964_v46  ;;  %2094 = vmax.xlane.f32.xlu0 %v2093_v62 }
 0x52d   : > { %10117 = vst [vmem:[#allocation18_spill] sm:$0xff] %v7558_v20 }
 0x52e   : > { %10118 = vst [vmem:[#allocation19_spill] sm:$0xff] %v7563_v11  ;;  %v2096_v5 = vmax.f32 %v7558_v20, %v7563_v11  ;;  %v1968_v37 = vpop.f32.mrb[42].mxu0 }
 0x52f   : > { %v7570_v55 = vadd.f32 %v6201_v15, %v1968_v37  ;;  %v1970_v14 = vpop.f32.mrb[43].mxu0  ;;  %v6205_v37 = vld [vmem:[%s9900_s3 + $0x160] sm:$0xff] }
 0x530   : > { %v7575_v52 = vadd.f32 %v6202_v34, %v1970_v14  ;;  %2097 = vmax.xlane.f32.xlu1 %v2096_v5  ;;  %v6206_v34 = vld [vmem:[%s9900_s3 + $0x168] sm:$0xff] }
 0x531   : > { %10119 = vst [vmem:[#allocation21_spill] sm:$0xff] %v7570_v55 }
 0x532   : > { %10120 = vst [vmem:[#allocation23_spill] sm:$0xff] %v7575_v52  ;;  %v2099_v10 = vmax.f32 %v7570_v55, %v7575_v52  ;;  %v1974_v32 = vpop.f32.mrb[44].mxu0 }
 0x533   : > { %v7582_v62 = vadd.f32 %v6203_v39, %v1974_v32  ;;  %v1976_v49 = vpop.f32.mrb[45].mxu0 }
 0x534   : > { %v7587_v46 = vadd.f32 %v6204_v38, %v1976_v49  ;;  %2100 = vmax.xlane.f32.xlu0 %v2099_v10  ;;  %v6207_v49 = vld [vmem:[%s9900_s3 + $0x170] sm:$0xff] }
 0x535   : > { %10121 = vst [vmem:[#allocation20_spill] sm:$0xff] %v7582_v62 }
 0x536   : > { %10122 = vst [vmem:[#allocation22_spill] sm:$0xff] %v7587_v46  ;;  %v2102_v35 = vmax.f32 %v7582_v62, %v7587_v46  ;;  %v1980_v5 = vpop.f32.mrb[46].mxu0 }
 0x537   : > { %v7594_v15 = vadd.f32 %v6205_v37, %v1980_v5  ;;  %v1982_v14 = vpop.f32.mrb[47].mxu0  ;;  %v6208_v37 = vld [vmem:[%s9900_s3 + $0x178] sm:$0xff] }
 0x538   : > { %v7599_v32 = vadd.f32 %v6206_v34, %v1982_v14  ;;  %2103 = vmax.xlane.f32.xlu1 %v2102_v35 }
 0x539   : > { %10123 = vst [vmem:[#allocation25_spill] sm:$0xff] %v7594_v15 }
 0x53a   : > { %10124 = vst [vmem:[#allocation27_spill] sm:$0xff] %v7599_v32  ;;  %v2105_v10 = vmax.f32 %v7594_v15, %v7599_v32  ;;  %v1986_v39 = vpop.f32.mrb[48].mxu0 }
 0x53b   : > { %v7606_v38 = vadd.f32 %v6207_v49, %v1986_v39  ;;  %v1988_v5 = vpop.f32.mrb[49].mxu0 }
 0x53c   : > { %v7611_v63 = vadd.f32 %v6208_v37, %v1988_v5  ;;  %2106 = vmax.xlane.f32.xlu0 %v2105_v10 }
 0x53d   : > { %10125 = vst [vmem:[#allocation24_spill] sm:$0xff] %v7606_v38 }
 0x53e   : > { %10126 = vst [vmem:[#allocation26_spill] sm:$0xff] %v7611_v63  ;;  %v2108_v35 = vmax.f32 %v7606_v38, %v7611_v63  ;;  %v1992_v14 = vpop.f32.mrb[50].mxu0 }
 0x53f   : > { %v1994_v34 = vpop.f32.mrb[51].mxu0 }
 0x540   : > { %2109 = vmax.xlane.f32.xlu1 %v2108_v35 }
 0x542   : > { %v1998_v3 = vpop.f32.mrb[52].mxu0 }
 0x543   : > { %v2000_v4 = vpop.f32.mrb[53].mxu0 }
 0x546   : > { %v7615_v2 = vpop.f32.mrb[54].mxu0 }
 0x547   : > { %v7617_v39 = vpop.f32.mrb[55].mxu0 }
 0x54a   : > { %v7619_v49 = vpop.f32.mrb[56].mxu0 }
 0x54b   : > { %v7621_v40 = vpop.f32.mrb[57].mxu0 }
 0x54e   : > { %v7623_v58 = vpop.f32.mrb[58].mxu0 }
 0x54f   : > { %v7625_v5 = vpop.f32.mrb[59].mxu0 }
 0x552   : > { %v7627_v10 = vpop.f32.mrb[60].mxu0 }
 0x553   : > { %v7629_v37 = vpop.f32.mrb[61].mxu0 }
 0x556   : > { %v7631_v56 = vpop.f32.mrb[62].mxu0 }
 0x557   : > { %v7633_v35 = vpop.f32.mrb[63].mxu0 }
 0x55a   : > { %v7635_v24 = vpop.f32.mrb[64].mxu0 }
 0x55b   : > { %v7637_v23 = vpop.f32.mrb[65].mxu0 }
 0x571   : > { %v2041_v63 = vpop.xlane.xlu0 %2040 }
 0x572   : > { %v2135_v38 = vsub.f32 %v7330_v1, %v2041_v63  ;;  %v2136_v32 = vsub.f32 %v7335_v60, %v2041_v63 }
 0x574   : > { %v2199_v15 = vmul.f32 1.442695, %v2135_v38  ;;  %v2201_v46 = vmul.f32 1.442695, %v2136_v32 }
 0x575   : > { %v2044_v62 = vpop.xlane.xlu1 %2043 }
 0x576   : > { %5557 = vpow2.f32 %v2199_v15  ;;  %v2137_v52 = vsub.f32 %v7342_v54, %v2044_v62  ;;  %v2138_v55 = vsub.f32 %v7347_v57, %v2044_v62  ;;  %v6209_v57 = vld [vmem:[%s9900_s3 + $0x180] sm:$0xff] }
 0x577   : > { %5559 = vpow2.f32 %v2201_v46 }
 0x578   : > { %v2203_v11 = vmul.f32 1.442695, %v2137_v52  ;;  %v2205_v20 = vmul.f32 1.442695, %v2138_v55  ;;  %v7650_v55 = vadd.f32 %v6209_v57, %v1992_v14  ;;  %v6211_v14 = vld [vmem:[%s9900_s3 + $0x190] sm:$0xff] }
 0x579   : > { %v2047_v9 = vpop.xlane.xlu0 %2046 }
 0x57a   : > { %5561 = vpow2.f32 %v2203_v11  ;;  %v2139_v7 = vsub.f32 %v7354_v27, %v2047_v9  ;;  %v2140_v47 = vsub.f32 %v7359_v29, %v2047_v9  ;;  %v6210_v27 = vld [vmem:[%s9900_s3 + $0x188] sm:$0xff] }
 0x57b   : > { %5563 = vpow2.f32 %v2205_v20  ;;  %v7655_v29 = vadd.f32 %v6210_v27, %v1994_v34  ;;  %v7672_v34 = vadd.f32 %v6211_v14, %v1998_v3  ;;  %v6213_v3 = vld [vmem:[%s9900_s3 + $0x1a0] sm:$0xff]  ;;  %v6215_v14 = vld [vmem:[%s9900_s3 + $0x1b0] sm:$0xff] }
 0x57c   : > { %v2207_v1 = vmul.f32 1.442695, %v2139_v7  ;;  %v2209_v63 = vmul.f32 1.442695, %v2140_v47  ;;  %v7689_v57 = vadd.f32 %v6213_v3, %v7615_v2 }
 0x57d   : > { %v2050_v60 = vpop.xlane.xlu1 %2049  ;;  %v2111_v62 = vmax.f32 %v7650_v55, %v7655_v29 }
 0x57e   : > { %5565 = vpow2.f32 %v2207_v1  ;;  %v2141_v15 = vsub.f32 %v7366_v33, %v2050_v60  ;;  %v2142_v54 = vsub.f32 %v7371_v28, %v2050_v60 }
 0x57f   : > { %5567 = vpow2.f32 %v2209_v63 }
 0x580   : > { %v7657_v47 = vpop.eup %5557  ;;  %v2211_v7 = vmul.f32 1.442695, %v2141_v15  ;;  %v2213_v9 = vmul.f32 1.442695, %v2142_v54 }
 0x581   : > { %v7659_v33 = vpop.eup %5559  ;;  %v2053_v28 = vpop.xlane.xlu0 %2052 }
 0x582   : > { %5569 = vpow2.f32 %v2211_v7  ;;  %v2143_v20 = vsub.f32 %v7378_v13, %v2053_v28  ;;  %v2144_v11 = vsub.f32 %v7383_v25, %v2053_v28  ;;  %v2327_v52 = vadd.f32 %v7659_v33, %v7657_v47  ;;  %v6212_v13 = vld [vmem:[%s9900_s3 + $0x198] sm:$0xff] }
 0x583   : > { %5571 = vpow2.f32 %v2213_v9  ;;  %v7677_v25 = vadd.f32 %v6212_v13, %v2000_v4  ;;  %v6214_v4 = vld [vmem:[%s9900_s3 + $0x1a8] sm:$0xff] }
 0x584   : > { %v7667_v46 = vpop.eup %5561  ;;  %v2215_v32 = vmul.f32 1.442695, %v2143_v20  ;;  %v2217_v38 = vmul.f32 1.442695, %v2144_v11  ;;  %2328 = vadd.xlane.f32.xlu0 %v2327_v52  ;;  %v7695_v27 = vadd.f32 %v6214_v4, %v7617_v39 }
 0x585   : > { %v7679_v1 = vpop.eup %5563  ;;  %v2056_v63 = vpop.xlane.xlu1 %2055 }
 0x586   : > { %5573 = vpow2.f32 %v2215_v32  ;;  %v2145_v60 = vsub.f32 %v7390_v19, %v2056_v63  ;;  %v2146_v15 = vsub.f32 %v7395_v53, %v2056_v63  ;;  %v2330_v54 = vadd.f32 %v7679_v1, %v7667_v46 }
 0x587   : > { %5575 = vpow2.f32 %v2217_v38  ;;  %v2114_v53 = vmax.f32 %v7672_v34, %v7677_v25  ;;  %v2117_v52 = vmax.f32 %v7689_v57, %v7695_v27 }
 0x588   : > { %v7697_v19 = vpop.eup %5565  ;;  %v2219_v7 = vmul.f32 1.442695, %v2145_v60  ;;  %v2221_v9 = vmul.f32 1.442695, %v2146_v15  ;;  %2112 = vmax.xlane.f32.xlu0 %v2111_v62  ;;  %2331 = vadd.xlane.f32.xlu1 %v2330_v54 }
 0x589   : > { %v7701_v28 = vpop.eup %5567  ;;  %v2059_v2 = vpop.xlane.xlu0 %2058 }
 0x58a   : > { %5577 = vpow2.f32 %v2219_v7  ;;  %v2147_v20 = vsub.f32 %v7402_v17, %v2059_v2  ;;  %v2148_v11 = vsub.f32 %v7407_v0, %v2059_v2  ;;  %v2333_v39 = vadd.f32 %v7701_v28, %v7697_v19  ;;  %v6216_v0 = vld [vmem:[%s9900_s3 + $0x1b8] sm:$0xff] }
 0x58b   : > { %5579 = vpow2.f32 %v2221_v9  ;;  %v7715_v17 = vadd.f32 %v6215_v14, %v7619_v49  ;;  %v7721_v13 = vadd.f32 %v6216_v0, %v7621_v40  ;;  %v6217_v49 = vld [vmem:[%s9900_s3 + $0x1c0] sm:$0xff]  ;;  %v6218_v40 = vld [vmem:[%s9900_s3 + $0x1c8] sm:$0xff]  ;;  %v6219_v14 = vld [vmem:[%s9900_s3 + $0x1d0] sm:$0xff] }
 0x58c   : > { %v7709_v32 = vpop.eup %5569  ;;  %v2223_v38 = vmul.f32 1.442695, %v2147_v20  ;;  %v2225_v62 = vmul.f32 1.442695, %v2148_v11  ;;  %2334 = vadd.xlane.f32.xlu0 %v2333_v39  ;;  %2115 = vmax.xlane.f32.xlu1 %v2114_v53  ;;  %v7733_v4 = vadd.f32 %v6217_v49, %v7623_v58  ;;  %v7739_v53 = vadd.f32 %v6218_v40, %v7625_v5 }
 0x58d   : > { %v7723_v63 = vpop.eup %5571  ;;  %v2062_v60 = vpop.xlane.xlu1 %2061 }
 0x58e   : > { %5581 = vpow2.f32 %v2223_v38  ;;  %v2149_v15 = vsub.f32 %v7414_v44, %v2062_v60  ;;  %v2150_v54 = vsub.f32 %v7419_v6, %v2062_v60  ;;  %v2336_v3 = vadd.f32 %v7723_v63, %v7709_v32 }
 0x58f   : > { %5583 = vpow2.f32 %v2225_v62  ;;  %v2120_v6 = vmax.f32 %v7715_v17, %v7721_v13  ;;  %v2123_v39 = vmax.f32 %v7733_v4, %v7739_v53 }
 0x590   : > { %v7741_v44 = vpop.eup %5573  ;;  %v2227_v7 = vmul.f32 1.442695, %v2149_v15  ;;  %v2229_v9 = vmul.f32 1.442695, %v2150_v54  ;;  %2118 = vmax.xlane.f32.xlu0 %v2117_v52  ;;  %2337 = vadd.xlane.f32.xlu1 %v2336_v3 }
 0x591   : > { %v7745_v2 = vpop.eup %5575  ;;  %v2065_v58 = vpop.xlane.xlu0 %2064 }
 0x592   : > { %5585 = vpow2.f32 %v2227_v7  ;;  %v2151_v20 = vsub.f32 %v7426_v43, %v2065_v58  ;;  %v2152_v11 = vsub.f32 %v7431_v45, %v2065_v58  ;;  %v2339_v5 = vadd.f32 %v7745_v2, %v7741_v44  ;;  %v6220_v45 = vld [vmem:[%s9900_s3 + $0x1d8] sm:$0xff] }
 0x593   : > { %5587 = vpow2.f32 %v2229_v9  ;;  %v7759_v43 = vadd.f32 %v6219_v14, %v7627_v10  ;;  %v7765_v0 = vadd.f32 %v6220_v45, %v7629_v37  ;;  %v6221_v10 = vld [vmem:[%s9900_s3 + $0x1e0] sm:$0xff]  ;;  %v6222_v37 = vld [vmem:[%s9900_s3 + $0x1e8] sm:$0xff]  ;;  %v6223_v14 = vld [vmem:[%s9900_s3 + $0x1f0] sm:$0xff] }
 0x594   : > { %v7753_v38 = vpop.eup %5577  ;;  %v2231_v62 = vmul.f32 1.442695, %v2151_v20  ;;  %v2233_v52 = vmul.f32 1.442695, %v2152_v11  ;;  %2340 = vadd.xlane.f32.xlu0 %v2339_v5  ;;  %2121 = vmax.xlane.f32.xlu1 %v2120_v6  ;;  %v7777_v40 = vadd.f32 %v6221_v10, %v7631_v56  ;;  %v7783_v6 = vadd.f32 %v6222_v37, %v7633_v35 }
 0x595   : > { %v7767_v60 = vpop.eup %5579  ;;  %v2068_v15 = vpop.xlane.xlu1 %2067 }
 0x596   : > { %5589 = vpow2.f32 %v2231_v62  ;;  %v2153_v54 = vsub.f32 %v7438_v12, %v2068_v15  ;;  %v2154_v3 = vsub.f32 %v7443_v26, %v2068_v15  ;;  %v2342_v49 = vadd.f32 %v7767_v60, %v7753_v38 }
 0x597   : > { %5591 = vpow2.f32 %v2233_v52  ;;  %v2126_v26 = vmax.f32 %v7759_v43, %v7765_v0  ;;  %v2129_v5 = vmax.f32 %v7777_v40, %v7783_v6 }
 0x598   : > { %v7785_v12 = vpop.eup %5581  ;;  %v2235_v7 = vmul.f32 1.442695, %v2153_v54  ;;  %v2237_v9 = vmul.f32 1.442695, %v2154_v3  ;;  %2124 = vmax.xlane.f32.xlu0 %v2123_v39  ;;  %2343 = vadd.xlane.f32.xlu1 %v2342_v49 }
 0x599   : > { %v7789_v58 = vpop.eup %5583  ;;  %v2071_v56 = vpop.xlane.xlu0 %2070 }
 0x59a   : > { %5593 = vpow2.f32 %v2235_v7  ;;  %v2155_v20 = vsub.f32 %v7450_v36, %v2071_v56  ;;  %v2156_v11 = vsub.f32 %v7455_v41, %v2071_v56  ;;  %v2345_v35 = vadd.f32 %v7789_v58, %v7785_v12  ;;  %v6224_v41 = vld [vmem:[%s9900_s3 + $0x1f8] sm:$0xff] }
 0x59b   : > { %5595 = vpow2.f32 %v2237_v9  ;;  %v7803_v36 = vadd.f32 %v6223_v14, %v7635_v24  ;;  %v7809_v45 = vadd.f32 %v6224_v41, %v7637_v23 }
 0x59c   : > { %v7797_v62 = vpop.eup %5585  ;;  %v2239_v52 = vmul.f32 1.442695, %v2155_v20  ;;  %v2241_v39 = vmul.f32 1.442695, %v2156_v11  ;;  %2346 = vadd.xlane.f32.xlu0 %v2345_v35  ;;  %2127 = vmax.xlane.f32.xlu1 %v2126_v26 }
 0x59d   : > { %v7811_v15 = vpop.eup %5587  ;;  %v2074_v54 = vpop.xlane.xlu1 %2073  ;;  %v2132_v23 = vmax.f32 %v7803_v36, %v7809_v45 }
 0x59e   : > { %5597 = vpow2.f32 %v2239_v52  ;;  %v2157_v3 = vsub.f32 %v7462_v42, %v2074_v54  ;;  %v2158_v49 = vsub.f32 %v7467_v30, %v2074_v54  ;;  %v2348_v10 = vadd.f32 %v7811_v15, %v7797_v62 }
 0x59f   : > { %5599 = vpow2.f32 %v2241_v39 }
 0x5a0   : > { %v7817_v24 = vpop.eup %5589  ;;  %v2243_v37 = vmul.f32 1.442695, %v2157_v3  ;;  %v2245_v26 = vmul.f32 1.442695, %v2158_v49  ;;  %2130 = vmax.xlane.f32.xlu0 %v2129_v5  ;;  %2349 = vadd.xlane.f32.xlu1 %v2348_v10 }
 0x5a1   : > { %v7821_v7 = vpop.eup %5591  ;;  %v2077_v9 = vpop.xlane.xlu0 %2076 }
 0x5a2   : > { %5601 = vpow2.f32 %v2243_v37  ;;  %v2159_v42 = vsub.f32 %v7474_v21, %v2077_v9  ;;  %v2160_v30 = vsub.f32 %v7479_v48, %v2077_v9  ;;  %v2351_v56 = vadd.f32 %v7821_v7, %v7817_v24 }
 0x5a3   : > { %5603 = vpow2.f32 %v2245_v26 }
 0x5a4   : > { %v7827_v20 = vpop.eup %5593  ;;  %v2247_v11 = vmul.f32 1.442695, %v2159_v42  ;;  %v2249_v35 = vmul.f32 1.442695, %v2160_v30  ;;  %2352 = vadd.xlane.f32.xlu0 %v2351_v56  ;;  %2133 = vmax.xlane.f32.xlu1 %v2132_v23 }
 0x5a5   : > { %v7829_v5 = vpop.eup %5595  ;;  %v2080_v52 = vpop.xlane.xlu1 %2079 }
 0x5a6   : > { %5605 = vpow2.f32 %v2247_v11  ;;  %v2161_v39 = vsub.f32 %v7486_v18, %v2080_v52  ;;  %v2162_v21 = vsub.f32 %v7491_v51, %v2080_v52  ;;  %v2354_v48 = vadd.f32 %v7829_v5, %v7827_v20 }
 0x5a7   : > { %5607 = vpow2.f32 %v2249_v35 }
 0x5a8   : > { %v7835_v14 = vpop.eup %5597  ;;  %v2251_v41 = vmul.f32 1.442695, %v2161_v39  ;;  %v2253_v54 = vmul.f32 1.442695, %v2162_v21  ;;  %2355 = vadd.xlane.f32.xlu1 %v2354_v48 }
 0x5a9   : > { %v7837_v3 = vpop.eup %5599  ;;  %v2083_v49 = vpop.xlane.xlu0 %2082 }
 0x5aa   : > { %5609 = vpow2.f32 %v2251_v41  ;;  %v2163_v10 = vsub.f32 %v7498_v59, %v2083_v49  ;;  %v2164_v37 = vsub.f32 %v7503_v8, %v2083_v49  ;;  %v2357_v18 = vadd.f32 %v7837_v3, %v7835_v14 }
 0x5ab   : > { %5611 = vpow2.f32 %v2253_v54 }
 0x5ac   : > { %v7843_v51 = vpop.eup %5601  ;;  %v2255_v26 = vmul.f32 1.442695, %v2163_v10  ;;  %v2257_v23 = vmul.f32 1.442695, %v2164_v37  ;;  %2358 = vadd.xlane.f32.xlu0 %v2357_v18  ;;  %v10127_v18 = vld [vmem:[#allocation17_spill] sm:$0xff] }
 0x5ad   : > { %v7845_v9 = vpop.eup %5603  ;;  %v2086_v42 = vpop.xlane.xlu1 %2085 }
 0x5ae   : > { %5613 = vpow2.f32 %v2255_v26  ;;  %v2165_v30 = vsub.f32 %v7510_v31, %v2086_v42  ;;  %v2166_v56 = vsub.f32 %v7515_v61, %v2086_v42  ;;  %v2360_v59 = vadd.f32 %v7845_v9, %v7843_v51 }
 0x5af   : > { %5615 = vpow2.f32 %v2257_v23 }
 0x5b0   : > { %v7851_v8 = vpop.eup %5605  ;;  %v2259_v11 = vmul.f32 1.442695, %v2165_v30  ;;  %v2261_v35 = vmul.f32 1.442695, %v2166_v56  ;;  %2361 = vadd.xlane.f32.xlu1 %v2360_v59  ;;  %v10129_v59 = vld [vmem:[#allocation14_spill] sm:$0xff] }
 0x5b1   : > { %v7853_v52 = vpop.eup %5607  ;;  %v2089_v39 = vpop.xlane.xlu0 %2088 }
 0x5b2   : > { %5617 = vpow2.f32 %v2259_v11  ;;  %v2167_v21 = vsub.f32 %v7522_v16, %v2089_v39  ;;  %v2168_v48 = vsub.f32 %v7527_v22, %v2089_v39  ;;  %v2363_v31 = vadd.f32 %v7853_v52, %v7851_v8 }
 0x5b3   : > { %5619 = vpow2.f32 %v2261_v35  ;;  %v10130_v35 = vld [vmem:[#allocation16_spill] sm:$0xff] }
 0x5b4   : > { %v7859_v61 = vpop.eup %5609  ;;  %v2263_v41 = vmul.f32 1.442695, %v2167_v21  ;;  %v2265_v54 = vmul.f32 1.442695, %v2168_v48  ;;  %2364 = vadd.xlane.f32.xlu0 %v2363_v31 }
 0x5b5   : > { %v7861_v49 = vpop.eup %5611  ;;  %v2092_v10 = vpop.xlane.xlu1 %2091 }
 0x5b6   : > { %5621 = vpow2.f32 %v2263_v41  ;;  %v2169_v37 = vsub.f32 %v7534_v50, %v2092_v10  ;;  %v2170_v26 = vsub.f32 %v10127_v18, %v2092_v10  ;;  %v2366_v16 = vadd.f32 %v7861_v49, %v7859_v61  ;;  %v10132_v10 = vld [vmem:[#allocation18_spill] sm:$0xff]  ;;  %v10133_v18 = vld [vmem:[#allocation19_spill] sm:$0xff] }
 0x5b7   : > { %5623 = vpow2.f32 %v2265_v54 }
 0x5b8   : > { %v7867_v22 = vpop.eup %5613  ;;  %v2267_v23 = vmul.f32 1.442695, %v2169_v37  ;;  %v2269_v42 = vmul.f32 1.442695, %v2170_v26  ;;  %2367 = vadd.xlane.f32.xlu1 %v2366_v16 }
 0x5b9   : > { %10128 = vst [vmem:[#allocation17_spill] sm:$0xff] %v7867_v22  ;;  %v7869_v30 = vpop.eup %5615  ;;  %v2095_v56 = vpop.xlane.xlu0 %2094 }
 0x5ba   : > { %5625 = vpow2.f32 %v2267_v23  ;;  %v2171_v11 = vsub.f32 %v10129_v59, %v2095_v56  ;;  %v2172_v39 = vsub.f32 %v10130_v35, %v2095_v56  ;;  %v2369_v50 = vadd.f32 %v7869_v30, %v7867_v22  ;;  %v10136_v35 = vld [vmem:[#allocation21_spill] sm:$0xff] }
 0x5bb   : > { %5627 = vpow2.f32 %v2269_v42 }
 0x5bc   : > { %v7875_v21 = vpop.eup %5617  ;;  %v2271_v48 = vmul.f32 1.442695, %v2171_v11  ;;  %v2273_v31 = vmul.f32 1.442695, %v2172_v39  ;;  %2370 = vadd.xlane.f32.xlu0 %v2369_v50  ;;  %v10137_v50 = vld [vmem:[#allocation23_spill] sm:$0xff] }
 0x5bd   : > { %10131 = vst [vmem:[#allocation14_spill] sm:$0xff] %v7875_v21  ;;  %v7877_v41 = vpop.eup %5619  ;;  %v2098_v54 = vpop.xlane.xlu1 %2097 }
 0x5be   : > { %5629 = vpow2.f32 %v2271_v48  ;;  %v2173_v37 = vsub.f32 %v10132_v10, %v2098_v54  ;;  %v2174_v26 = vsub.f32 %v10133_v18, %v2098_v54  ;;  %v2372_v16 = vadd.f32 %v7877_v41, %v7875_v21 }
 0x5bf   : > { %5631 = vpow2.f32 %v2273_v31 }
 0x5c0   : > { %v7883_v23 = vpop.eup %5621  ;;  %v2275_v42 = vmul.f32 1.442695, %v2173_v37  ;;  %v2277_v56 = vmul.f32 1.442695, %v2174_v26  ;;  %2373 = vadd.xlane.f32.xlu1 %v2372_v16  ;;  %v10140_v16 = vld [vmem:[#allocation20_spill] sm:$0xff] }
 0x5c1   : > { %10134 = vst [vmem:[#allocation16_spill] sm:$0xff] %v7883_v23  ;;  %v7885_v59 = vpop.eup %5623  ;;  %v2101_v11 = vpop.xlane.xlu0 %2100 }
 0x5c2   : > { %10135 = vst [vmem:[#allocation18_spill] sm:$0xff] %v7885_v59  ;;  %5633 = vpow2.f32 %v2275_v42  ;;  %v2175_v39 = vsub.f32 %v10136_v35, %v2101_v11  ;;  %v2176_v48 = vsub.f32 %v10137_v50, %v2101_v11  ;;  %v2375_v54 = vadd.f32 %v7885_v59, %v7883_v23  ;;  %v10141_v42 = vld [vmem:[#allocation22_spill] sm:$0xff] }
 0x5c3   : > { %5635 = vpow2.f32 %v2277_v56 }
 0x5c4   : > { %v7891_v10 = vpop.eup %5625  ;;  %v2279_v31 = vmul.f32 1.442695, %v2175_v39  ;;  %v2281_v18 = vmul.f32 1.442695, %v2176_v48  ;;  %2376 = vadd.xlane.f32.xlu0 %v2375_v54  ;;  %v10143_v54 = vld [vmem:[#allocation25_spill] sm:$0xff] }
 0x5c5   : > { %10138 = vst [vmem:[#allocation19_spill] sm:$0xff] %v7891_v10  ;;  %v7893_v37 = vpop.eup %5627  ;;  %v2104_v26 = vpop.xlane.xlu1 %2103 }
 0x5c6   : > { %10139 = vst [vmem:[#allocation21_spill] sm:$0xff] %v7893_v37  ;;  %5637 = vpow2.f32 %v2279_v31  ;;  %v2177_v22 = vsub.f32 %v10140_v16, %v2104_v26  ;;  %v2178_v21 = vsub.f32 %v10141_v42, %v2104_v26  ;;  %v2378_v11 = vadd.f32 %v7893_v37, %v7891_v10  ;;  %v10144_v31 = vld [vmem:[#allocation27_spill] sm:$0xff] }
 0x5c7   : > { %5639 = vpow2.f32 %v2281_v18 }
 0x5c8   : > { %v7899_v35 = vpop.eup %5629  ;;  %v2283_v56 = vmul.f32 1.442695, %v2177_v22  ;;  %v2285_v50 = vmul.f32 1.442695, %v2178_v21  ;;  %2379 = vadd.xlane.f32.xlu1 %v2378_v11  ;;  %v10145_v11 = vld [vmem:[#allocation24_spill] sm:$0xff] }
 0x5c9   : > { %10142 = vst [vmem:[#allocation23_spill] sm:$0xff] %v7899_v35  ;;  %v7901_v39 = vpop.eup %5631  ;;  %v2107_v48 = vpop.xlane.xlu0 %2106 }
 0x5ca   : > { %5641 = vpow2.f32 %v2283_v56  ;;  %v2179_v23 = vsub.f32 %v10143_v54, %v2107_v48  ;;  %v2180_v59 = vsub.f32 %v10144_v31, %v2107_v48  ;;  %v2381_v26 = vadd.f32 %v7901_v39, %v7899_v35  ;;  %v10146_v56 = vld [vmem:[#allocation26_spill] sm:$0xff] }
 0x5cb   : > { %5643 = vpow2.f32 %v2285_v50 }
 0x5cc   : > { %v7907_v16 = vpop.eup %5633  ;;  %v2287_v18 = vmul.f32 1.442695, %v2179_v23  ;;  %v2289_v42 = vmul.f32 1.442695, %v2180_v59  ;;  %2382 = vadd.xlane.f32.xlu0 %v2381_v26 }
 0x5cd   : > { %v7909_v22 = vpop.eup %5635  ;;  %v2110_v21 = vpop.xlane.xlu1 %2109 }
 0x5ce   : > { %5645 = vpow2.f32 %v2287_v18  ;;  %v2181_v10 = vsub.f32 %v10145_v11, %v2110_v21  ;;  %v2182_v37 = vsub.f32 %v10146_v56, %v2110_v21  ;;  %v2384_v48 = vadd.f32 %v7909_v22, %v7907_v16 }
 0x5cf   : > { %5647 = vpow2.f32 %v2289_v42 }
 0x5d0   : > { %v7915_v54 = vpop.eup %5637  ;;  %v2291_v50 = vmul.f32 1.442695, %v2181_v10  ;;  %v2293_v31 = vmul.f32 1.442695, %v2182_v37  ;;  %2385 = vadd.xlane.f32.xlu1 %v2384_v48 }
 0x5d1   : > { %10147 = vst [vmem:[#allocation20_spill] sm:$0xff] %v7915_v54  ;;  %v7917_v23 = vpop.eup %5639 }
 0x5d2   : > { %10148 = vst [vmem:[#allocation22_spill] sm:$0xff] %v7917_v23  ;;  %5649 = vpow2.f32 %v2291_v50  ;;  %v2387_v59 = vadd.f32 %v7917_v23, %v7915_v54 }
 0x5d3   : > { %5651 = vpow2.f32 %v2293_v31 }
 0x5d4   : > { %v7921_v26 = vpop.eup %5641  ;;  %2388 = vadd.xlane.f32.xlu0 %v2387_v59 }
 0x5d5   : > { %10149 = vst [vmem:[#allocation25_spill] sm:$0xff] %v7921_v26  ;;  %v7923_v18 = vpop.eup %5643 }
 0x5d6   : > { %10150 = vst [vmem:[#allocation27_spill] sm:$0xff] %v7923_v18  ;;  %v2390_v42 = vadd.f32 %v7923_v18, %v7921_v26 }
 0x5d8   : > { %v7927_v21 = vpop.eup %5645  ;;  %2391 = vadd.xlane.f32.xlu1 %v2390_v42 }
 0x5d9   : > { %10151 = vst [vmem:[#allocation24_spill] sm:$0xff] %v7927_v21  ;;  %v7929_v10 = vpop.eup %5647 }
 0x5da   : > { %10152 = vst [vmem:[#allocation26_spill] sm:$0xff] %v7929_v10  ;;  %v2393_v37 = vadd.f32 %v7929_v10, %v7927_v21 }
 0x5dc   : > { %v7933_v11 = vpop.eup %5649  ;;  %2394 = vadd.xlane.f32.xlu0 %v2393_v37 }
 0x5dd   : > { %10153 = vst [vmem:[#allocation28_spill] sm:$0xff] %v7933_v11  ;;  %v7935_v56 = vpop.eup %5651 }
 0x5de   : > { %10154 = vst [vmem:[#allocation29_spill] sm:$0xff] %v7935_v56  ;;  %v2396_v48 = vadd.f32 %v7935_v56, %v7933_v11 }
 0x5e0   : > { %2397 = vadd.xlane.f32.xlu1 %v2396_v48 }
 0x611   : > { %v2329_v50 = vpop.xlane.xlu0 %2328 }
 0x612   : > { %5653 = vrcp.f32 %v2329_v50 }
 0x615   : > { %v2113_v31 = vpop.xlane.xlu0 %2112  ;;  %v2332_v59 = vpop.xlane.xlu1 %2331 }
 0x616   : > { %v2183_v42 = vsub.f32 %v7650_v55, %v2113_v31  ;;  %v2184_v54 = vsub.f32 %v7655_v29, %v2113_v31  ;;  %5655 = vrcp.f32 %v2332_v59 }
 0x618   : > { %v2295_v26 = vmul.f32 1.442695, %v2183_v42  ;;  %v2297_v21 = vmul.f32 1.442695, %v2184_v54 }
 0x619   : > { %v2335_v10 = vpop.xlane.xlu0 %2334  ;;  %v2116_v18 = vpop.xlane.xlu1 %2115 }
 0x61a   : > { %5657 = vpow2.f32 %v2295_v26  ;;  %v2185_v37 = vsub.f32 %v7672_v34, %v2116_v18  ;;  %v2186_v23 = vsub.f32 %v7677_v25, %v2116_v18 }
 0x61b   : > { %5659 = vpow2.f32 %v2297_v21 }
 0x61c   : > { %5661 = vrcp.f32 %v2335_v10  ;;  %v2299_v48 = vmul.f32 1.442695, %v2185_v37  ;;  %v2301_v50 = vmul.f32 1.442695, %v2186_v23  ;;  %v5654_v35 = vpop.eup %5653 }
 0x61d   : > { %v2119_v11 = vpop.xlane.xlu0 %2118  ;;  %v2338_v56 = vpop.xlane.xlu1 %2337  ;;  %v2456_v25 = vmul.f32 %v5654_v35, %v7659_v33  ;;  %v2455_v23 = vmul.f32 %v5654_v35, %v7657_v47 }
 0x61e   : > { %5663 = vpow2.f32 %v2299_v48  ;;  %v2187_v55 = vsub.f32 %v7689_v57, %v2119_v11  ;;  %v2188_v29 = vsub.f32 %v7695_v27, %v2119_v11 }
 0x61f   : > { %5665 = vpow2.f32 %v2301_v50 }
 0x620   : > { %v5656_v54 = vpop.eup %5655  ;;  %v2303_v31 = vmul.f32 1.442695, %v2187_v55  ;;  %v2305_v26 = vmul.f32 1.442695, %v2188_v29  ;;  %5667 = vrcp.f32 %v2338_v56 }
 0x621   : > { %v2341_v34 = vpop.xlane.xlu0 %2340  ;;  %v2122_v59 = vpop.xlane.xlu1 %2121  ;;  %v2458_v18 = vmul.f32 %v5656_v54, %v7679_v1  ;;  %v2457_v21 = vmul.f32 %v5656_v54, %v7667_v46 }
 0x622   : > { %5669 = vpow2.f32 %v2303_v31  ;;  %v2189_v57 = vsub.f32 %v7715_v17, %v2122_v59  ;;  %v2190_v27 = vsub.f32 %v7721_v13, %v2122_v59 }
 0x623   : > { %5671 = vpow2.f32 %v2305_v26  ;;  %v5157_v10 = vpack.c.bf16 %v2458_v18, %v2456_v25  ;;  %v5159_v11 = vpack.c.bf16 %v2457_v21, %v2455_v23 }
 0x624   : > { %v7951_v42 = vpop.eup %5657  ;;  %5673 = vrcp.f32 %v2341_v34  ;;  %v2307_v56 = vmul.f32 1.442695, %v2189_v57  ;;  %v2309_v37 = vmul.f32 1.442695, %v2190_v27 }
 0x625   : > { %v7953_v33 = vpop.eup %5659  ;;  %v2125_v1 = vpop.xlane.xlu0 %2124  ;;  %5158 = vmatprep.subr.bf16.mxu1 %v5157_v10 }
 0x626   : > { %v2344_v47 = vpop.xlane.xlu1 %2343  ;;  %v5662_v35 = vpop.eup %5661  ;;  %5675 = vpow2.f32 %v2307_v56  ;;  %v2191_v46 = vsub.f32 %v7733_v4, %v2125_v1  ;;  %v2192_v17 = vsub.f32 %v7739_v53, %v2125_v1  ;;  %5160 = vmatpush1.bf16.xpose.msra.mxu1 %v5159_v11  ;;  %v2399_v13 = vadd.f32 %v7953_v33, %v7951_v42 }
 0x627   : > { %5677 = vpow2.f32 %v2309_v37  ;;  %v2460_v26 = vmul.f32 %v5662_v35, %v7701_v28  ;;  %v2459_v18 = vmul.f32 %v5662_v35, %v7697_v19 }
 0x628   : > { %v7959_v48 = vpop.eup %5663  ;;  %v2311_v50 = vmul.f32 1.442695, %v2191_v46  ;;  %v2313_v55 = vmul.f32 1.442695, %v2192_v17  ;;  %5679 = vrcp.f32 %v2344_v47  ;;  %2400 = vadd.xlane.f32.xlu0 %v2399_v13 }
 0x629   : > { %v7961_v29 = vpop.eup %5665  ;;  %v2347_v54 = vpop.xlane.xlu0 %2346 }
 0x62a   : > { %v2128_v31 = vpop.xlane.xlu1 %2127  ;;  %v5668_v4 = vpop.eup %5667  ;;  %5681 = vpow2.f32 %v2311_v50  ;;  %v2402_v59 = vadd.f32 %v7961_v29, %v7959_v48 }
 0x62b   : > { %v2193_v53 = vsub.f32 %v7759_v43, %v2128_v31  ;;  %v2194_v34 = vsub.f32 %v7765_v0, %v2128_v31  ;;  %5683 = vpow2.f32 %v2313_v55  ;;  %v2462_v25 = vmul.f32 %v5668_v4, %v7723_v63 }
 0x62c   : > { %v2461_v23 = vmul.f32 %v5668_v4, %v7709_v32  ;;  %v7971_v21 = vpop.eup %5669  ;;  %2403 = vadd.xlane.f32.xlu1 %v2402_v59  ;;  %5685 = vrcp.f32 %v2347_v54 }
 0x62d   : > { %v2315_v57 = vmul.f32 1.442695, %v2193_v53  ;;  %v2317_v28 = vmul.f32 1.442695, %v2194_v34  ;;  %v7973_v27 = vpop.eup %5671  ;;  %v2131_v43 = vpop.xlane.xlu0 %2130  ;;  %v5161_v0 = vpack.c.bf16 %v2462_v25, %v2460_v26 }
 0x62e   : > { %v2350_v10 = vpop.xlane.xlu1 %2349  ;;  %v5163_v11 = vpack.c.bf16 %v2461_v23, %v2459_v18  ;;  %v5674_v56 = vpop.eup %5673  ;;  %v2195_v63 = vsub.f32 %v7777_v40, %v2131_v43  ;;  %v2196_v19 = vsub.f32 %v7783_v6, %v2131_v43  ;;  %v2405_v32 = vadd.f32 %v7973_v27, %v7971_v21 }
 0x62f   : > { %5687 = vpow2.f32 %v2315_v57  ;;  %5162 = vmatprep.subr.bf16.mxu1 %v5161_v0  ;;  %v2464_v17 = vmul.f32 %v5674_v56, %v7745_v2  ;;  %v2463_v31 = vmul.f32 %v5674_v56, %v7741_v44 }
 0x630   : > { %5689 = vpow2.f32 %v2317_v28  ;;  %v7979_v37 = vpop.eup %5675  ;;  %v2319_v1 = vmul.f32 1.442695, %v2195_v63  ;;  %v2321_v47 = vmul.f32 1.442695, %v2196_v19  ;;  %5164 = vmatpush1.bf16.xpose.msra.mxu1 %v5163_v11  ;;  %2406 = vadd.xlane.f32.xlu0 %v2405_v32 }
 0x631   : > { %5691 = vrcp.f32 %v2350_v10  ;;  %v7981_v35 = vpop.eup %5677  ;;  %v2353_v6 = vpop.xlane.xlu0 %2352 }
 0x632   : > { %v2134_v46 = vpop.xlane.xlu1 %2133  ;;  %v5680_v40 = vpop.eup %5679  ;;  %5693 = vpow2.f32 %v2319_v1  ;;  %v2408_v55 = vadd.f32 %v7981_v35, %v7979_v37 }
 0x633   : > { %v2197_v13 = vsub.f32 %v7803_v36, %v2134_v46  ;;  %v2198_v50 = vsub.f32 %v7809_v45, %v2134_v46  ;;  %5695 = vpow2.f32 %v2321_v47  ;;  %v2466_v54 = vmul.f32 %v5680_v40, %v7767_v60 }
 0x634   : > { %v2465_v26 = vmul.f32 %v5680_v40, %v7753_v38  ;;  %v7991_v4 = vpop.eup %5681  ;;  %2409 = vadd.xlane.f32.xlu1 %v2408_v55  ;;  %5697 = vrcp.f32 %v2353_v6 }
 0x635   : > { %v2323_v2 = vmul.f32 1.442695, %v2197_v13  ;;  %v2325_v53 = vmul.f32 1.442695, %v2198_v50  ;;  %v7993_v34 = vpop.eup %5683  ;;  %v5165_v36 = vpack.c.bf16 %v2466_v54, %v2464_v17 }
 0x636   : > { %v2356_v45 = vpop.xlane.xlu1 %2355  ;;  %v5167_v59 = vpack.c.bf16 %v2465_v26, %v2463_v31  ;;  %v2411_v25 = vadd.f32 %v7993_v34, %v7991_v4  ;;  %v5686_v60 = vpop.eup %5685 }
 0x637   : > { %5699 = vpow2.f32 %v2323_v2  ;;  %5166 = vmatprep.subr.bf16.mxu1 %v5165_v36  ;;  %v2468_v28 = vmul.f32 %v5686_v60, %v7789_v58  ;;  %v2467_v0 = vmul.f32 %v5686_v60, %v7785_v12 }
 0x638   : > { %5701 = vpow2.f32 %v2325_v53  ;;  %5168 = vmatpush1.bf16.xpose.msra.mxu1 %v5167_v59  ;;  %2412 = vadd.xlane.f32.xlu0 %v2411_v25 }
 0x639   : > { %v7997_v44 = vpop.eup %5687  ;;  %5703 = vrcp.f32 %v2356_v45  ;;  %v2359_v18 = vpop.xlane.xlu0 %2358 }
 0x63a   : > { %v7999_v38 = vpop.eup %5689  ;;  %5705 = vrcp.f32 %v2359_v18 }
 0x63b   : > { %v5692_v23 = vpop.eup %5691  ;;  %v2414_v57 = vadd.f32 %v7999_v38, %v7997_v44 }
 0x63c   : > { %v2470_v43 = vmul.f32 %v5692_v23, %v7811_v15  ;;  %v2469_v10 = vmul.f32 %v5692_v23, %v7797_v62  ;;  %v8007_v11 = vpop.eup %5693 }
 0x63d   : > { %2415 = vadd.xlane.f32.xlu1 %v2414_v57  ;;  %v8009_v56 = vpop.eup %5695  ;;  %v2362_v19 = vpop.xlane.xlu1 %2361 }
 0x63e   : > { %v5169_v63 = vpack.c.bf16 %v2470_v43, %v2468_v28  ;;  %v5171_v32 = vpack.c.bf16 %v2469_v10, %v2467_v0  ;;  %5707 = vrcp.f32 %v2362_v19  ;;  %v2417_v1 = vadd.f32 %v8009_v56, %v8007_v11  ;;  %v5698_v58 = vpop.eup %5697  ;;  %v10156_v19 = vld [vmem:[#allocation17_spill] sm:$0xff] }
 0x63f   : > { %v2472_v17 = vmul.f32 %v5698_v58, %v7821_v7  ;;  %v2471_v6 = vmul.f32 %v5698_v58, %v7817_v24 }
 0x640   : > { %5170 = vmatprep.subr.bf16.mxu1 %v5169_v63  ;;  %2418 = vadd.xlane.f32.xlu0 %v2417_v1  ;;  %v10155_v63 = vld [vmem:[#allocation14_spill] sm:$0xff] }
 0x641   : > { %v8013_v15 = vpop.eup %5699  ;;  %5172 = vmatpush1.bf16.xpose.msra.mxu1 %v5171_v32  ;;  %v2365_v62 = vpop.xlane.xlu0 %2364 }
 0x642   : > { %v8015_v12 = vpop.eup %5701  ;;  %5709 = vrcp.f32 %v2365_v62 }
 0x643   : > { %v5704_v47 = vpop.eup %5703  ;;  %v2420_v46 = vadd.f32 %v8015_v12, %v8013_v15 }
 0x644   : > { %v2474_v40 = vmul.f32 %v5704_v47, %v7829_v5  ;;  %v2473_v13 = vmul.f32 %v5704_v47, %v7827_v20  ;;  %v5706_v31 = vpop.eup %5705 }
 0x645   : > { %2421 = vadd.xlane.f32.xlu1 %v2420_v46  ;;  %v2368_v55 = vpop.xlane.xlu1 %2367  ;;  %v2476_v53 = vmul.f32 %v5706_v31, %v7837_v3  ;;  %v2475_v24 = vmul.f32 %v5706_v31, %v7835_v14  ;;  %v10157_v46 = vld [vmem:[#allocation18_spill] sm:$0xff] }
 0x646   : > { %v5173_v50 = vpack.c.bf16 %v2474_v40, %v2472_v17  ;;  %v5175_v54 = vpack.c.bf16 %v2473_v13, %v2471_v6  ;;  %5711 = vrcp.f32 %v2368_v55  ;;  %v10158_v40 = vld [vmem:[#allocation21_spill] sm:$0xff]  ;;  %v10159_v6 = vld [vmem:[#allocation19_spill] sm:$0xff]  ;;  %v10160_v13 = vld [vmem:[#allocation16_spill] sm:$0xff] }
 0x648   : > { %5174 = vmatprep.subr.bf16.mxu1 %v5173_v50  ;;  %v5708_v26 = vpop.eup %5707 }
 0x649   : > { %5176 = vmatpush1.bf16.xpose.msra.mxu1 %v5175_v54  ;;  %v2371_v2 = vpop.xlane.xlu0 %2370  ;;  %v2478_v7 = vmul.f32 %v5708_v26, %v7845_v9  ;;  %v2477_v5 = vmul.f32 %v5708_v26, %v7843_v51 }
 0x64a   : > { %5713 = vrcp.f32 %v2371_v2 }
 0x64b   : > { %v5177_v20 = vpack.c.bf16 %v2478_v7, %v2476_v53  ;;  %v5179_v36 = vpack.c.bf16 %v2477_v5, %v2475_v24 }
 0x64c   : > { %v5710_v59 = vpop.eup %5709 }
 0x64d   : > { %5178 = vmatprep.subr.bf16.mxu1 %v5177_v20  ;;  %v2374_v45 = vpop.xlane.xlu1 %2373  ;;  %v2480_v18 = vmul.f32 %v5710_v59, %v7853_v52  ;;  %v2479_v51 = vmul.f32 %v5710_v59, %v7851_v8  ;;  %v10161_v20 = vld [vmem:[#allocation23_spill] sm:$0xff] }
 0x64e   : > { %5715 = vrcp.f32 %v2374_v45  ;;  %v10162_v45 = vld [vmem:[#allocation3_spill] sm:$0xff] }
 0x64f   : > { %v2596_v59 = vrot.slane %v10162_v45, 4 }
 0x650   : > { %v5712_v25 = vpop.eup %5711 }
 0x651   : > { %5180 = vmatpush1.bf16.xpose.msra.mxu1 %v5179_v36  ;;  %v2377_v60 = vpop.xlane.xlu0 %2376  ;;  %v2482_v3 = vmul.f32 %v5712_v25, %v7861_v49  ;;  %v2481_v9 = vmul.f32 %v5712_v25, %v7859_v61 }
 0x652   : > { %5717 = vrcp.f32 %v2377_v60 }
 0x653   : > { %v5181_v23 = vpack.c.bf16 %v2482_v3, %v2480_v18  ;;  %v5183_v14 = vpack.c.bf16 %v2481_v9, %v2479_v51  ;;  %v10163_v51 = vld [vmem:[#allocation22_spill] sm:$0xff] }
 0x654   : > { %v5714_v28 = vpop.eup %5713 }
 0x655   : > { %5182 = vmatprep.subr.bf16.mxu1 %v5181_v23  ;;  %v2380_v57 = vpop.xlane.xlu1 %2379  ;;  %v2484_v10 = vmul.f32 %v5714_v28, %v7869_v30  ;;  %v2483_v61 = vmul.f32 %v5714_v28, %v10156_v19  ;;  %v10164_v23 = vld [vmem:[#allocation27_spill] sm:$0xff]  ;;  %v10168_v19 = vld [vmem:[#allocation26_spill] sm:$0xff] }
 0x656   : > { %5719 = vrcp.f32 %v2380_v57  ;;  %v10166_v57 = vld [vmem:[#allocation20_spill] sm:$0xff] }
 0x658   : > { %v5716_v43 = vpop.eup %5715 }
 0x659   : > { %5184 = vmatpush1.bf16.xpose.msra.mxu1 %v5183_v14  ;;  %v2383_v0 = vpop.xlane.xlu0 %2382  ;;  %v2486_v52 = vmul.f32 %v5716_v43, %v7877_v41  ;;  %v2485_v49 = vmul.f32 %v5716_v43, %v10155_v63  ;;  %v10165_v14 = vld [vmem:[#allocation25_spill] sm:$0xff] }
 0x65a   : > { %5721 = vrcp.f32 %v2383_v0 }
 0x65b   : > { %v5185_v32 = vpack.c.bf16 %v2486_v52, %v2484_v10  ;;  %v5187_v8 = vpack.c.bf16 %v2485_v49, %v2483_v61  ;;  %v10167_v10 = vld [vmem:[#allocation4_spill] sm:$0xff] }
 0x65c   : > { %v5718_v58 = vpop.eup %5717  ;;  %v2597_v52 = vrot.slane %v10167_v10, 4 }
 0x65d   : > { %5186 = vmatprep.subr.bf16.mxu1 %v5185_v32  ;;  %v2386_v1 = vpop.xlane.xlu1 %2385  ;;  %v2488_v17 = vmul.f32 %v5718_v58, %v10157_v46  ;;  %v2487_v50 = vmul.f32 %v5718_v58, %v10160_v13  ;;  %v10169_v32 = vld [vmem:[#allocation29_spill] sm:$0xff] }
 0x65e   : > { %5723 = vrcp.f32 %v2386_v1  ;;  %v10170_v1 = vld [vmem:[#allocation28_spill] sm:$0xff] }
 0x660   : > { %v5720_v62 = vpop.eup %5719 }
 0x661   : > { %5188 = vmatpush1.bf16.xpose.msra.mxu1 %v5187_v8  ;;  %v2389_v47 = vpop.xlane.xlu0 %2388  ;;  %v2490_v30 = vmul.f32 %v5720_v62, %v10158_v40  ;;  %v2489_v41 = vmul.f32 %v5720_v62, %v10159_v6  ;;  %v10171_v62 = vld [vmem:[#allocation24_spill] sm:$0xff] }
 0x662   : > { %5725 = vrcp.f32 %v2389_v47 }
 0x663   : > { %v5189_v55 = vpack.c.bf16 %v2490_v30, %v2488_v17  ;;  %v5191_v54 = vpack.c.bf16 %v2489_v41, %v2487_v50 }
 0x664   : > { %v5722_v26 = vpop.eup %5721 }
 0x665   : > { %5190 = vmatprep.subr.bf16.mxu1 %v5189_v55  ;;  %v2392_v31 = vpop.xlane.xlu1 %2391  ;;  %v2492_v7 = vmul.f32 %v5722_v26, %v7901_v39  ;;  %v2491_v36 = vmul.f32 %v5722_v26, %v10161_v20 }
 0x666   : > { %5727 = vrcp.f32 %v2392_v31 }
 0x668   : > { %v5724_v2 = vpop.eup %5723 }
 0x669   : > { %5192 = vmatpush1.bf16.xpose.msra.mxu1 %v5191_v54  ;;  %v2395_v53 = vpop.xlane.xlu0 %2394  ;;  %v2494_v5 = vmul.f32 %v5724_v2, %v7909_v22  ;;  %v2493_v24 = vmul.f32 %v5724_v2, %v7907_v16 }
 0x66a   : > { %5729 = vrcp.f32 %v2395_v53 }
 0x66b   : > { %v5193_v25 = vpack.c.bf16 %v2494_v5, %v2492_v7  ;;  %v5195_v60 = vpack.c.bf16 %v2493_v24, %v2491_v36 }
 0x66c   : > { %v5726_v3 = vpop.eup %5725 }
 0x66d   : > { %2600 = vxpose.xlu0.b32.start.end [1/1] (short) %v2596_v59, 128  ;;  %5194 = vmatprep.subr.bf16.mxu1 %v5193_v25  ;;  %v2398_v18 = vpop.xlane.xlu1 %2397  ;;  %v2496_v39 = vmul.f32 %v5726_v3, %v10163_v51  ;;  %v2495_v28 = vmul.f32 %v5726_v3, %v10166_v57 }
 0x66e   : > { %5731 = vrcp.f32 %v2398_v18 }
 0x670   : > { %v5728_v9 = vpop.eup %5727 }
 0x671   : > { %5196 = vmatpush1.bf16.xpose.msra.mxu1 %v5195_v60  ;;  %v2498_v22 = vmul.f32 %v5728_v9, %v10164_v23  ;;  %v2497_v16 = vmul.f32 %v5728_v9, %v10165_v14 }
 0x673   : > { %v5197_v43 = vpack.c.bf16 %v2498_v22, %v2496_v39  ;;  %v5199_v0 = vpack.c.bf16 %v2497_v16, %v2495_v28  ;;  %v10172_v28 = vld [vmem:[#allocation6_spill] sm:$0xff] }
 0x674   : > { %v5730_v63 = vpop.eup %5729 }
 0x675   : > { %5198 = vmatprep.subr.bf16.mxu1 %v5197_v43  ;;  %v2500_v61 = vmul.f32 %v5730_v63, %v10168_v19  ;;  %v2499_v47 = vmul.f32 %v5730_v63, %v10171_v62 }
 0x678   : > { %2632 = vxpose.xlu1.b32.start.end [1/1] (short) %v2597_v52, 128  ;;  %v5732_v49 = vpop.eup %5731 }
 0x679   : > { %5200 = vmatpush1.bf16.xpose.msra.mxu1 %v5199_v0  ;;  %v2502_v8 = vmul.f32 %v5732_v49, %v10169_v32  ;;  %v2501_v58 = vmul.f32 %v5732_v49, %v10170_v1  ;;  %v10174_v0 = vld [vmem:[#allocation5_spill] sm:$0xff] }
 0x67a   : > { %v2664_v52 = vrot.slane %v10174_v0, 4 }
 0x67b   : > { %v5201_v46 = vpack.c.bf16 %v2502_v8, %v2500_v61  ;;  %v5203_v17 = vpack.c.bf16 %v2501_v58, %v2499_v47 }
 0x67d   : > { %5202 = vmatprep.subr.bf16.mxu1 %v5201_v46 }
 0x681   : > { %5204 = vmatpush1.bf16.xpose.msra.mxu1 %v5203_v17 }
 0x6b5   : > { %v2401_v40 = vpop.xlane.xlu0 %2400 }
 0x6b6   : > { %5733 = vrcp.f32 %v2401_v40 }
 0x6b9   : > { %v2404_v30 = vpop.xlane.xlu1 %2403 }
 0x6ba   : > { %5735 = vrcp.f32 %v2404_v30 }
 0x6bd   : > { %v2407_v6 = vpop.xlane.xlu0 %2406 }
 0x6be   : > { %5737 = vrcp.f32 %v2407_v6 }
 0x6c0   : > { %v5734_v13 = vpop.eup %5733 }
 0x6c1   : > { %v2410_v41 = vpop.xlane.xlu1 %2409  ;;  %v2504_v54 = vmul.f32 %v5734_v13, %v7953_v33  ;;  %v2503_v26 = vmul.f32 %v5734_v13, %v7951_v42 }
 0x6c2   : > { %5739 = vrcp.f32 %v2410_v41 }
 0x6c4   : > { %v5736_v50 = vpop.eup %5735 }
 0x6c5   : > { %v2413_v55 = vpop.xlane.xlu0 %2412  ;;  %v2506_v31 = vmul.f32 %v5736_v50, %v7961_v29  ;;  %v2505_v2 = vmul.f32 %v5736_v50, %v7959_v48 }
 0x6c6   : > { %5741 = vrcp.f32 %v2413_v55 }
 0x6c7   : > { %v5205_v53 = vpack.c.bf16 %v2506_v31, %v2504_v54  ;;  %v5207_v7 = vpack.c.bf16 %v2505_v2, %v2503_v26 }
 0x6c8   : > { %v5738_v24 = vpop.eup %5737 }
 0x6c9   : > { %5206 = vmatprep.subr.bf16.mxu1 %v5205_v53  ;;  %v2508_v59 = vmul.f32 %v5738_v24, %v7973_v27  ;;  %v2507_v29 = vmul.f32 %v5738_v24, %v7971_v21 }
 0x6ca   : > { %v2416_v5 = vpop.xlane.xlu1 %2415  ;;  %5208 = vmatpush1.bf16.xpose.msra.mxu1 %v5207_v7 }
 0x6cb   : > { %5743 = vrcp.f32 %v2416_v5 }
 0x6cc   : > { %v5740_v20 = vpop.eup %5739 }
 0x6cd   : > { %v2419_v36 = vpop.xlane.xlu0 %2418  ;;  %v2510_v33 = vmul.f32 %v5740_v20, %v7981_v35  ;;  %v2509_v42 = vmul.f32 %v5740_v20, %v7979_v37 }
 0x6ce   : > { %5745 = vrcp.f32 %v2419_v36 }
 0x6cf   : > { %v5209_v25 = vpack.c.bf16 %v2510_v33, %v2508_v59  ;;  %v5211_v48 = vpack.c.bf16 %v2509_v42, %v2507_v29  ;;  %v10176_v59 = vld [vmem:[#allocation8_spill] sm:$0xff] }
 0x6d0   : > { %v5742_v18 = vpop.eup %5741  ;;  %v4486_v33 = vrot.slane %v10176_v59, 6 }
 0x6d1   : > { %5210 = vmatprep.subr.bf16.mxu1 %v5209_v25  ;;  %v2512_v9 = vmul.f32 %v5742_v18, %v7993_v34  ;;  %v2511_v27 = vmul.f32 %v5742_v18, %v7991_v4  ;;  %v2665_v4 = vrot.slane %v10172_v28, 4 }
 0x6d2   : > { %v2422_v60 = vpop.xlane.xlu1 %2421  ;;  %5212 = vmatpush1.bf16.xpose.msra.mxu1 %v5211_v48 }
 0x6d3   : > { %5747 = vrcp.f32 %v2422_v60  ;;  %v10177_v60 = vld [vmem:[#allocation13_spill] sm:$0xff] }
 0x6d5   : > { %v5744_v3 = vpop.eup %5743 }
 0x6d6   : > { %v2514_v51 = vmul.f32 %v5744_v3, %v7999_v38  ;;  %v2513_v35 = vmul.f32 %v5744_v3, %v7997_v44  ;;  %v10173_v44 = vld [vmem:[#allocation7_spill] sm:$0xff] }
 0x6d7   : > { %v2521_v43 = vrot.slane %v10173_v44, 2  ;;  %v10179_v3 = vld [vmem:[#allocation15_spill] sm:$0xff] }
 0x6d8   : > { %v5213_v21 = vpack.c.bf16 %v2514_v51, %v2512_v9  ;;  %v5215_v39 = vpack.c.bf16 %v2513_v35, %v2511_v27  ;;  %v5746_v37 = vpop.eup %5745  ;;  %v6225_v27 = vld [vmem:[%s9900_s3] sm:$0xff] }
 0x6d9   : > { %v2516_v22 = vmul.f32 %v5746_v37, %v8009_v56  ;;  %v2515_v16 = vmul.f32 %v5746_v37, %v8007_v11  ;;  %v10175_v56 = vmov 0.0  }
 0x6da   : > { %5214 = vmatprep.subr.bf16.mxu1 %v5213_v21 }
 0x6db   : > { %5216 = vmatpush1.bf16.xpose.msra.mxu1 %v5215_v39  ;;  %v6226_v39 = vld [vmem:[%s9900_s3 + $0x8] sm:$0xff] }
 0x6dd   : > { %v5748_v23 = vpop.eup %5747 }
 0x6de   : > { %v2518_v14 = vmul.f32 %v5748_v23, %v8015_v12  ;;  %v2517_v34 = vmul.f32 %v5748_v23, %v8013_v15 }
 0x6e0   : > { %v5217_v57 = vpack.c.bf16 %v2518_v14, %v2516_v22  ;;  %v5219_v38 = vpack.c.bf16 %v2517_v34, %v2515_v16  ;;  %v6227_v14 = vld [vmem:[%s9900_s3 + $0x10] sm:$0xff] }
 0x6e2   : > { %5218 = vmatprep.subr.bf16.mxu1 %v5217_v57  ;;  %v6228_v57 = vld [vmem:[%s9900_s3 + $0x18] sm:$0xff] }
 0x6e3   : > { %5220 = vmatpush1.bf16.xpose.msra.mxu1 %v5219_v38 }
 0x6e4   : > { %5016 = vmatprep.subr.msk.mxu1 %vm795_vm1, %v2665_v4 }
 0x6ea   : > { %2590 = vmatmul.mubr.f32.vlgmr.msra.gmra.mrb[74].mxu1 %v2521_v43 }
 0x6eb   : > { %5017 = vmatpush1.msk.msra.mxu1 %vm795_vm1, %v2664_v52  ;;  %2830 = vmatprep.mubr.f32.mxu1 %v10175_v56  ;;  %v6229_v52 = vld [vmem:[%s9900_s3 + $0x20] sm:$0xff] }
 0x6ed   : > { %v2616_v11 = vpop.trf.xlu0 }
 0x6ee   : > { %5018 = vmatmul.mubr.msk.f32.vlgmr.msra.gmra.mrb[76].mxu1 %vm698_vm2, %v2616_v11 }
 0x6ef   : > { %2836 = vmatprep.mubr.f32.mxu1 %v10175_v56 }
 0x6f1   : > { %v2617_v15 = vpop.trf.xlu0 }
 0x6f2   : > { %5019 = vmatmul.mubr.msk.f32.gmra.mrb[78].mxu1 %vm698_vm2, %v2617_v15 }
 0x6f3   : > { %2842 = vmatprep.mubr.f32.mxu1 %v10175_v56 }
 0x6f5   : > { %v2618_v12 = vpop.trf.xlu0 }
 0x6f6   : > { %5020 = vmatmul.mubr.msk.f32.gmra.mrb[80].mxu1 %vm698_vm2, %v2618_v12  ;;  %v6230_v12 = vld [vmem:[%s9900_s3 + $0x28] sm:$0xff] }
 0x6f7   : > { %2848 = vmatprep.mubr.f32.mxu1 %v10175_v56 }
 0x6f8   : > { %v2648_v1 = vpop.trf.xlu1 }
 0x6f9   : > { %v2619_v63 = vpop.trf.xlu0 }
 0x6fa   : > { %5021 = vmatmul.mubr.msk.f32.gmra.mrb[82].mxu1 %vm698_vm2, %v2619_v63 }
 0x6fb   : > { %2854 = vmatprep.mubr.f32.mxu1 %v10175_v56 }
 0x6fc   : > { %v2649_v62 = vpop.trf.xlu1 }
 0x6fd   : > { %v2620_v49 = vpop.trf.xlu0 }
 0x6fe   : > { %5022 = vmatmul.mubr.msk.f32.gmra.mrb[84].mxu1 %vm698_vm2, %v2620_v49 }
 0x6ff   : > { %2860 = vmatprep.mubr.f32.mxu1 %v10175_v56 }
 0x700   : > { %v2650_v17 = vpop.trf.xlu1 }
 0x701   : > { %v2621_v19 = vpop.trf.xlu0 }
 0x702   : > { %5023 = vmatmul.mubr.msk.f32.gmra.mrb[86].mxu1 %vm698_vm2, %v2621_v19 }
 0x703   : > { %2866 = vmatprep.mubr.f32.mxu1 %v10175_v56 }
 0x704   : > { %v2651_v30 = vpop.trf.xlu1 }
 0x705   : > { %v2622_v61 = vpop.trf.xlu0 }
 0x706   : > { %5024 = vmatmul.mubr.msk.f32.gmra.mrb[88].mxu1 %vm698_vm2, %v2622_v61  ;;  %v6231_v61 = vld [vmem:[%s9900_s3 + $0x30] sm:$0xff] }
 0x707   : > { %2872 = vmatprep.mubr.f32.mxu1 %v10175_v56 }
 0x708   : > { %v2652_v13 = vpop.trf.xlu1 }
 0x709   : > { %v2623_v32 = vpop.trf.xlu0 }
 0x70a   : > { %5025 = vmatmul.mubr.msk.f32.gmra.mrb[90].mxu1 %vm698_vm2, %v2623_v32 }
 0x70b   : > { %2878 = vmatprep.mubr.f32.mxu1 %v10175_v56 }
 0x70c   : > { %v2653_v55 = vpop.trf.xlu1 }
 0x70d   : > { %v2624_v8 = vpop.trf.xlu0 }
 0x70e   : > { %5026 = vmatmul.mubr.msk.f32.gmra.mrb[92].mxu1 %vm698_vm2, %v2624_v8 }
 0x70f   : > { %2884 = vmatprep.mubr.f32.mxu1 %v10175_v56 }
 0x710   : > { %v2654_v54 = vpop.trf.xlu1 }
 0x711   : > { %v2625_v58 = vpop.trf.xlu0 }
 0x712   : > { %5027 = vmatmul.mubr.msk.f32.gmra.mrb[94].mxu1 %vm698_vm2, %v2625_v58 }
 0x713   : > { %2890 = vmatprep.mubr.f32.mxu1 %v10175_v56 }
 0x714   : > { %v2655_v31 = vpop.trf.xlu1 }
 0x715   : > { %v2626_v47 = vpop.trf.xlu0 }
 0x716   : > { %5028 = vmatmul.mubr.msk.f32.gmra.mrb[96].mxu1 %vm698_vm2, %v2626_v47 }
 0x717   : > { %2896 = vmatprep.mubr.f32.mxu1 %v10175_v56 }
 0x718   : > { %v2656_v26 = vpop.trf.xlu1 }
 0x719   : > { %v2627_v46 = vpop.trf.xlu0 }
 0x71a   : > { %5029 = vmatmul.mubr.msk.f32.gmra.mrb[98].mxu1 %vm698_vm2, %v2627_v46  ;;  %v6233_v46 = vld [vmem:[%s9900_s3 + $0x40] sm:$0xff] }
 0x71b   : > { %2902 = vmatprep.mubr.f32.mxu1 %v10175_v56 }
 0x71c   : > { %v2657_v2 = vpop.trf.xlu1 }
 0x71d   : > { %v2628_v40 = vpop.trf.xlu0 }
 0x71e   : > { %5030 = vmatmul.mubr.msk.f32.gmra.mrb[100].mxu1 %vm698_vm2, %v2628_v40 }
 0x71f   : > { %2908 = vmatprep.mubr.f32.mxu1 %v10175_v56 }
 0x720   : > { %v2658_v53 = vpop.trf.xlu1 }
 0x721   : > { %v2629_v6 = vpop.trf.xlu0 }
 0x722   : > { %5031 = vmatmul.mubr.msk.f32.gmra.mrb[102].mxu1 %vm698_vm2, %v2629_v6 }
 0x723   : > { %2914 = vmatprep.mubr.f32.mxu1 %v10175_v56 }
 0x724   : > { %v2659_v7 = vpop.trf.xlu1 }
 0x725   : > { %v2630_v41 = vpop.trf.xlu0 }
 0x726   : > { %5032 = vmatmul.mubr.msk.f32.gmra.mrb[104].mxu1 %vm698_vm2, %v2630_v41 }
 0x727   : > { %2920 = vmatprep.mubr.f32.mxu1 %v10175_v56 }
 0x728   : > { %v2660_v5 = vpop.trf.xlu1 }
 0x729   : > { %v2631_v50 = vpop.trf.xlu0 }
 0x72a   : > { %5033 = vmatmul.mubr.msk.f32.gmra.mrb[106].mxu1 %vm698_vm2, %v2631_v50  ;;  %v6235_v50 = vld [vmem:[%s9900_s3 + $0x50] sm:$0xff] }
 0x72b   : > { %2926 = vmatprep.mubr.f32.mxu1 %v10175_v56 }
 0x72c   : > { %v2661_v24 = vpop.trf.xlu1 }
 0x72e   : > { %5034 = vmatmul.mubr.msk.f32.gmra.mrb[108].mxu1 %vm698_vm2, %v2648_v1  ;;  %v6232_v1 = vld [vmem:[%s9900_s3 + $0x38] sm:$0xff] }
 0x72f   : > { %2932 = vmatprep.mubr.f32.mxu1 %v10175_v56 }
 0x730   : > { %v2662_v20 = vpop.trf.xlu1 }
 0x732   : > { %5035 = vmatmul.mubr.msk.f32.gmra.mrb[110].mxu1 %vm698_vm2, %v2649_v62 }
 0x733   : > { %2938 = vmatprep.mubr.f32.mxu1 %v10175_v56 }
 0x734   : > { %v2663_v36 = vpop.trf.xlu1 }
 0x736   : > { %5036 = vmatmul.mubr.msk.f32.gmra.mrb[112].mxu1 %vm698_vm2, %v2650_v17 }
 0x737   : > { %2944 = vmatprep.mubr.f32.mxu1 %v10175_v56 }
 0x73a   : > { %5037 = vmatmul.mubr.msk.f32.gmra.mrb[114].mxu1 %vm698_vm2, %v2651_v30  ;;  %v6234_v30 = vld [vmem:[%s9900_s3 + $0x48] sm:$0xff] }
 0x73b   : > { %2950 = vmatprep.mubr.f32.mxu1 %v10175_v56 }
 0x73e   : > { %5038 = vmatmul.mubr.msk.f32.gmra.mrb[116].mxu1 %vm698_vm2, %v2652_v13 }
 0x73f   : > { %2956 = vmatprep.mubr.f32.mxu1 %v10175_v56 }
 0x742   : > { %5039 = vmatmul.mubr.msk.f32.gmra.mrb[118].mxu1 %vm698_vm2, %v2653_v55 }
 0x743   : > { %2962 = vmatprep.mubr.f32.mxu1 %v10175_v56 }
 0x746   : > { %5040 = vmatmul.mubr.msk.f32.gmra.mrb[120].mxu1 %vm698_vm2, %v2654_v54 }
 0x747   : > { %2968 = vmatprep.mubr.f32.mxu1 %v10175_v56 }
 0x74a   : > { %5041 = vmatmul.mubr.msk.f32.gmra.mrb[122].mxu1 %vm698_vm2, %v2655_v31  ;;  %v6236_v31 = vld [vmem:[%s9900_s3 + $0x58] sm:$0xff] }
 0x74b   : > { %2974 = vmatprep.mubr.f32.mxu1 %v10175_v56 }
 0x74e   : > { %5042 = vmatmul.mubr.msk.f32.gmra.mrb[124].mxu1 %vm698_vm2, %v2656_v26 }
 0x74f   : > { %2980 = vmatprep.mubr.f32.mxu1 %v10175_v56 }
 0x752   : > { %5043 = vmatmul.mubr.msk.f32.gmra.mrb[126].mxu1 %vm698_vm2, %v2657_v2 }
 0x753   : > { %2986 = vmatprep.mubr.f32.mxu1 %v10175_v56 }
 0x756   : > { %5044 = vmatmul.mubr.msk.f32.gmra.mrb[128].mxu1 %vm698_vm2, %v2658_v53 }
 0x757   : > { %2992 = vmatprep.mubr.f32.mxu1 %v10175_v56 }
 0x75a   : > { %5045 = vmatmul.mubr.msk.f32.gmra.mrb[130].mxu1 %vm698_vm2, %v2659_v7  ;;  %v6237_v7 = vld [vmem:[%s9900_s3 + $0x60] sm:$0xff] }
 0x75b   : > { %2998 = vmatprep.mubr.f32.mxu1 %v10175_v56 }
 0x75e   : > { %5046 = vmatmul.mubr.msk.f32.gmra.mrb[132].mxu1 %vm698_vm2, %v2660_v5 }
 0x75f   : > { %3004 = vmatprep.mubr.f32.mxu1 %v10175_v56 }
 0x762   : > { %5047 = vmatmul.mubr.msk.f32.gmra.mrb[134].mxu1 %vm698_vm2, %v2661_v24 }
 0x763   : > { %3010 = vmatprep.mubr.f32.mxu1 %v10175_v56 }
 0x766   : > { %5048 = vmatmul.mubr.msk.f32.gmra.mrb[136].mxu1 %vm698_vm2, %v2662_v20  ;;  %v6238_v20 = vld [vmem:[%s9900_s3 + $0x68] sm:$0xff] }
 0x767   : > { %3016 = vmatprep.mubr.f32.mxu1 %v10175_v56 }
 0x76a   : > { %5049 = vmatmul.mubr.msk.f32.gmra.mrb[138].mxu1 %vm698_vm2, %v2663_v36 }
 0x76b   : > { %4553 = vmatprep.mubr.f32.mxu1 %v4486_v33 }
 0x7bd   : > { %v2591_v29 = vpop.f32.mrb[74].mxu1 }
 0x7be   : > { %v4562_v42 = vrot.slane %v2591_v29, 6  ;;  %v2593_v25 = vpop.f32.mrb[75].mxu1  ;;  %v6239_v29 = vld [vmem:[%s9900_s3 + $0x70] sm:$0xff] }
 0x7bf   : > { %v4563_v48 = vrot.slane %v2593_v25, 6 }
 0x7c0   : > { %v8141_v18 = vsel %vm795_vm1, %v10177_v60, %v4562_v42 }
 0x7c1   : > { %10178 = vst [vmem:[#allocation14_spill] sm:$0xff] %v8141_v18  ;;  %v8145_v9 = vsel %vm795_vm1, %v10179_v3, %v4563_v48  ;;  %v2832_v51 = vpop.f32.mrb[76].mxu1  ;;  %v6240_v48 = vld [vmem:[%s9900_s3 + $0x78] sm:$0xff] }
 0x7c2   : > { %10180 = vst [vmem:[#allocation17_spill] sm:$0xff] %v8145_v9  ;;  %v8150_v35 = vadd.f32 %v6225_v27, %v2832_v51  ;;  %v2834_v21 = vpop.f32.mrb[77].mxu1  ;;  %v6241_v27 = vld [vmem:[%s9900_s3 + $0x80] sm:$0xff] }
 0x7c3   : > { %v8155_v37 = vadd.f32 %v6226_v39, %v2834_v21 }
 0x7c5   : > { %v3023_v23 = vmax.f32 %v8150_v35, %v8155_v37  ;;  %v2838_v22 = vpop.f32.mrb[78].mxu1 }
 0x7c6   : > { %v8162_v16 = vadd.f32 %v6227_v14, %v2838_v22  ;;  %v2840_v34 = vpop.f32.mrb[79].mxu1 }
 0x7c7   : > { %v8167_v38 = vadd.f32 %v6228_v57, %v2840_v34  ;;  %3024 = vmax.xlane.f32.xlu0 %v3023_v23  ;;  %v6242_v23 = vld [vmem:[%s9900_s3 + $0x88] sm:$0xff]  ;;  %v6243_v57 = vld [vmem:[%s9900_s3 + $0x90] sm:$0xff] }
 0x7c9   : > { %v3026_v4 = vmax.f32 %v8162_v16, %v8167_v38  ;;  %v2844_v43 = vpop.f32.mrb[80].mxu1 }
 0x7ca   : > { %v8174_v11 = vadd.f32 %v6229_v52, %v2844_v43  ;;  %v2846_v15 = vpop.f32.mrb[81].mxu1  ;;  %v6244_v52 = vld [vmem:[%s9900_s3 + $0x98] sm:$0xff] }
 0x7cb   : > { %v8179_v63 = vadd.f32 %v6230_v12, %v2846_v15  ;;  %3027 = vmax.xlane.f32.xlu1 %v3026_v4 }
 0x7cd   : > { %v3029_v49 = vmax.f32 %v8174_v11, %v8179_v63  ;;  %v2850_v19 = vpop.f32.mrb[82].mxu1 }
 0x7ce   : > { %v8186_v32 = vadd.f32 %v6231_v61, %v2850_v19  ;;  %v2852_v8 = vpop.f32.mrb[83].mxu1  ;;  %v6245_v19 = vld [vmem:[%s9900_s3 + $0xa0] sm:$0xff] }
 0x7cf   : > { %v8191_v58 = vadd.f32 %v6232_v1, %v2852_v8  ;;  %3030 = vmax.xlane.f32.xlu0 %v3029_v49  ;;  %v6246_v1 = vld [vmem:[%s9900_s3 + $0xa8] sm:$0xff] }
 0x7d1   : > { %v3032_v62 = vmax.f32 %v8186_v32, %v8191_v58  ;;  %v2856_v47 = vpop.f32.mrb[84].mxu1 }
 0x7d2   : > { %v8198_v17 = vadd.f32 %v6233_v46, %v2856_v47  ;;  %v2858_v40 = vpop.f32.mrb[85].mxu1 }
 0x7d3   : > { %v8203_v6 = vadd.f32 %v6234_v30, %v2858_v40  ;;  %3033 = vmax.xlane.f32.xlu1 %v3032_v62  ;;  %v6247_v40 = vld [vmem:[%s9900_s3 + $0xb0] sm:$0xff] }
 0x7d5   : > { %v3035_v41 = vmax.f32 %v8198_v17, %v8203_v6  ;;  %v2862_v13 = vpop.f32.mrb[86].mxu1 }
 0x7d6   : > { %v8210_v55 = vadd.f32 %v6235_v50, %v2862_v13  ;;  %v2864_v54 = vpop.f32.mrb[87].mxu1  ;;  %v6248_v13 = vld [vmem:[%s9900_s3 + $0xb8] sm:$0xff] }
 0x7d7   : > { %v8215_v26 = vadd.f32 %v6236_v31, %v2864_v54  ;;  %3036 = vmax.xlane.f32.xlu0 %v3035_v41 }
 0x7d9   : > { %v3038_v2 = vmax.f32 %v8210_v55, %v8215_v26  ;;  %v2868_v53 = vpop.f32.mrb[88].mxu1 }
 0x7da   : > { %v8222_v5 = vadd.f32 %v6237_v7, %v2868_v53  ;;  %v2870_v24 = vpop.f32.mrb[89].mxu1 }
 0x7db   : > { %v8227_v36 = vadd.f32 %v6238_v20, %v2870_v24  ;;  %3039 = vmax.xlane.f32.xlu1 %v3038_v2  ;;  %v6249_v2 = vld [vmem:[%s9900_s3 + $0xc0] sm:$0xff]  ;;  %v6250_v24 = vld [vmem:[%s9900_s3 + $0xc8] sm:$0xff] }
 0x7dd   : > { %v3041_v59 = vmax.f32 %v8222_v5, %v8227_v36  ;;  %v2874_v33 = vpop.f32.mrb[90].mxu1 }
 0x7de   : > { %v8234_v42 = vadd.f32 %v6239_v29, %v2874_v33  ;;  %v2876_v25 = vpop.f32.mrb[91].mxu1  ;;  %v6251_v29 = vld [vmem:[%s9900_s3 + $0xd0] sm:$0xff] }
 0x7df   : > { %v8239_v60 = vadd.f32 %v6240_v48, %v2876_v25  ;;  %3042 = vmax.xlane.f32.xlu0 %v3041_v59 }
 0x7e1   : > { %v3044_v3 = vmax.f32 %v8234_v42, %v8239_v60  ;;  %v2880_v51 = vpop.f32.mrb[92].mxu1 }
 0x7e2   : > { %v8246_v21 = vadd.f32 %v6241_v27, %v2880_v51  ;;  %v2882_v39 = vpop.f32.mrb[93].mxu1 }
 0x7e3   : > { %v8251_v22 = vadd.f32 %v6242_v23, %v2882_v39  ;;  %3045 = vmax.xlane.f32.xlu1 %v3044_v3  ;;  %v6252_v3 = vld [vmem:[%s9900_s3 + $0xd8] sm:$0xff]  ;;  %v6253_v23 = vld [vmem:[%s9900_s3 + $0xe0] sm:$0xff] }
 0x7e5   : > { %v3047_v14 = vmax.f32 %v8246_v21, %v8251_v22  ;;  %v2886_v34 = vpop.f32.mrb[94].mxu1 }
 0x7e6   : > { %v8258_v4 = vadd.f32 %v6243_v57, %v2886_v34  ;;  %v2888_v43 = vpop.f32.mrb[95].mxu1  ;;  %v6254_v57 = vld [vmem:[%s9900_s3 + $0xe8] sm:$0xff] }
 0x7e7   : > { %v8263_v15 = vadd.f32 %v6244_v52, %v2888_v43  ;;  %3048 = vmax.xlane.f32.xlu0 %v3047_v14 }
 0x7e9   : > { %v3050_v12 = vmax.f32 %v8258_v4, %v8263_v15  ;;  %v2892_v49 = vpop.f32.mrb[96].mxu1 }
 0x7ea   : > { %v8270_v61 = vadd.f32 %v6245_v19, %v2892_v49  ;;  %v2894_v8 = vpop.f32.mrb[97].mxu1  ;;  %v6255_v49 = vld [vmem:[%s9900_s3 + $0xf0] sm:$0xff] }
 0x7eb   : > { %v8275_v62 = vadd.f32 %v6246_v1, %v2894_v8  ;;  %3051 = vmax.xlane.f32.xlu1 %v3050_v12  ;;  %v6256_v1 = vld [vmem:[%s9900_s3 + $0xf8] sm:$0xff] }
 0x7ed   : > { %v3053_v47 = vmax.f32 %v8270_v61, %v8275_v62  ;;  %v2898_v46 = vpop.f32.mrb[98].mxu1 }
 0x7ee   : > { %v8282_v30 = vadd.f32 %v6247_v40, %v2898_v46  ;;  %v2900_v41 = vpop.f32.mrb[99].mxu1 }
 0x7ef   : > { %v8287_v50 = vadd.f32 %v6248_v13, %v2900_v41  ;;  %3054 = vmax.xlane.f32.xlu0 %v3053_v47  ;;  %v6257_v41 = vld [vmem:[%s9900_s3 + $0x100] sm:$0xff] }
 0x7f1   : > { %v3056_v54 = vmax.f32 %v8282_v30, %v8287_v50  ;;  %v2904_v31 = vpop.f32.mrb[100].mxu1 }
 0x7f2   : > { %v8294_v53 = vadd.f32 %v6249_v2, %v2904_v31  ;;  %v2906_v7 = vpop.f32.mrb[101].mxu1  ;;  %v6258_v31 = vld [vmem:[%s9900_s3 + $0x108] sm:$0xff] }
 0x7f3   : > { %v8299_v20 = vadd.f32 %v6250_v24, %v2906_v7  ;;  %3057 = vmax.xlane.f32.xlu1 %v3056_v54 }
 0x7f5   : > { %v3059_v59 = vmax.f32 %v8294_v53, %v8299_v20  ;;  %v2910_v33 = vpop.f32.mrb[102].mxu1 }
 0x7f6   : > { %v8306_v25 = vadd.f32 %v6251_v29, %v2910_v33  ;;  %v2912_v48 = vpop.f32.mrb[103].mxu1 }
 0x7f7   : > { %v8311_v51 = vadd.f32 %v6252_v3, %v2912_v48  ;;  %3060 = vmax.xlane.f32.xlu0 %v3059_v59  ;;  %v6259_v59 = vld [vmem:[%s9900_s3 + $0x110] sm:$0xff]  ;;  %v6260_v48 = vld [vmem:[%s9900_s3 + $0x118] sm:$0xff] }
 0x7f9   : > { %v3062_v27 = vmax.f32 %v8306_v25, %v8311_v51  ;;  %v2916_v39 = vpop.f32.mrb[104].mxu1 }
 0x7fa   : > { %v8318_v14 = vadd.f32 %v6253_v23, %v2916_v39  ;;  %v2918_v34 = vpop.f32.mrb[105].mxu1  ;;  %v6261_v23 = vld [vmem:[%s9900_s3 + $0x120] sm:$0xff] }
 0x7fb   : > { %v8323_v43 = vadd.f32 %v6254_v57, %v2918_v34  ;;  %3063 = vmax.xlane.f32.xlu1 %v3062_v27 }
 0x7fd   : > { %v3065_v52 = vmax.f32 %v8318_v14, %v8323_v43  ;;  %v2922_v12 = vpop.f32.mrb[106].mxu1 }
 0x7fe   : > { %v8330_v19 = vadd.f32 %v6255_v49, %v2922_v12  ;;  %v2924_v8 = vpop.f32.mrb[107].mxu1 }
 0x7ff   : > { %v8335_v47 = vadd.f32 %v6256_v1, %v2924_v8  ;;  %3066 = vmax.xlane.f32.xlu0 %v3065_v52  ;;  %v6262_v52 = vld [vmem:[%s9900_s3 + $0x128] sm:$0xff]  ;;  %v6263_v1 = vld [vmem:[%s9900_s3 + $0x130] sm:$0xff] }
 0x801   : > { %v3068_v46 = vmax.f32 %v8330_v19, %v8335_v47  ;;  %v2928_v40 = vpop.f32.mrb[108].mxu1 }
 0x802   : > { %v8342_v13 = vadd.f32 %v6257_v41, %v2928_v40  ;;  %v2930_v54 = vpop.f32.mrb[109].mxu1  ;;  %v6264_v41 = vld [vmem:[%s9900_s3 + $0x138] sm:$0xff] }
 0x803   : > { %v8347_v2 = vadd.f32 %v6258_v31, %v2930_v54  ;;  %3069 = vmax.xlane.f32.xlu1 %v3068_v46 }
 0x805   : > { %v3071_v7 = vmax.f32 %v8342_v13, %v8347_v2  ;;  %v2934_v24 = vpop.f32.mrb[110].mxu1 }
 0x806   : > { %v8354_v33 = vadd.f32 %v6259_v59, %v2934_v24  ;;  %v2936_v29 = vpop.f32.mrb[111].mxu1  ;;  %v6265_v24 = vld [vmem:[%s9900_s3 + $0x140] sm:$0xff] }
 0x807   : > { %v8359_v3 = vadd.f32 %v6260_v48, %v2936_v29  ;;  %3072 = vmax.xlane.f32.xlu0 %v3071_v7  ;;  %v6266_v48 = vld [vmem:[%s9900_s3 + $0x148] sm:$0xff] }
 0x809   : > { %10181 = vst [vmem:[#allocation18_spill] sm:$0xff] %v8359_v3  ;;  %v3074_v27 = vmax.f32 %v8354_v33, %v8359_v3  ;;  %v2940_v39 = vpop.f32.mrb[112].mxu1 }
 0x80a   : > { %v8366_v34 = vadd.f32 %v6261_v23, %v2940_v39  ;;  %v2942_v57 = vpop.f32.mrb[113].mxu1 }
 0x80b   : > { %v8371_v12 = vadd.f32 %v6262_v52, %v2942_v57  ;;  %3075 = vmax.xlane.f32.xlu1 %v3074_v27  ;;  %v6267_v57 = vld [vmem:[%s9900_s3 + $0x150] sm:$0xff] }
 0x80c   : > { %10182 = vst [vmem:[#allocation21_spill] sm:$0xff] %v8366_v34 }
 0x80d   : > { %10183 = vst [vmem:[#allocation19_spill] sm:$0xff] %v8371_v12  ;;  %v3077_v49 = vmax.f32 %v8366_v34, %v8371_v12  ;;  %v2946_v8 = vpop.f32.mrb[114].mxu1 }
 0x80e   : > { %v8378_v46 = vadd.f32 %v6263_v1, %v2946_v8  ;;  %v2948_v40 = vpop.f32.mrb[115].mxu1  ;;  %v6268_v8 = vld [vmem:[%s9900_s3 + $0x158] sm:$0xff] }
 0x80f   : > { %v8383_v54 = vadd.f32 %v6264_v41, %v2948_v40  ;;  %3078 = vmax.xlane.f32.xlu0 %v3077_v49 }
 0x810   : > { %10184 = vst [vmem:[#allocation16_spill] sm:$0xff] %v8378_v46 }
 0x811   : > { %10185 = vst [vmem:[#allocation23_spill] sm:$0xff] %v8383_v54  ;;  %v3080_v31 = vmax.f32 %v8378_v46, %v8383_v54  ;;  %v2952_v7 = vpop.f32.mrb[116].mxu1 }
 0x812   : > { %v8390_v59 = vadd.f32 %v6265_v24, %v2952_v7  ;;  %v2954_v29 = vpop.f32.mrb[117].mxu1 }
 0x813   : > { %v8395_v27 = vadd.f32 %v6266_v48, %v2954_v29  ;;  %3081 = vmax.xlane.f32.xlu1 %v3080_v31  ;;  %v6269_v31 = vld [vmem:[%s9900_s3 + $0x160] sm:$0xff]  ;;  %v6270_v29 = vld [vmem:[%s9900_s3 + $0x168] sm:$0xff] }
 0x814   : > { %10186 = vst [vmem:[#allocation22_spill] sm:$0xff] %v8390_v59 }
 0x815   : > { %10187 = vst [vmem:[#allocation27_spill] sm:$0xff] %v8395_v27  ;;  %v3083_v39 = vmax.f32 %v8390_v59, %v8395_v27  ;;  %v2958_v23 = vpop.f32.mrb[118].mxu1 }
 0x816   : > { %v8402_v52 = vadd.f32 %v6267_v57, %v2958_v23  ;;  %v2960_v49 = vpop.f32.mrb[119].mxu1  ;;  %v6271_v57 = vld [vmem:[%s9900_s3 + $0x170] sm:$0xff] }
 0x817   : > { %v8407_v1 = vadd.f32 %v6268_v8, %v2960_v49  ;;  %3084 = vmax.xlane.f32.xlu0 %v3083_v39 }
 0x818   : > { %10188 = vst [vmem:[#allocation25_spill] sm:$0xff] %v8402_v52 }
 0x819   : > { %10189 = vst [vmem:[#allocation20_spill] sm:$0xff] %v8407_v1  ;;  %v3086_v40 = vmax.f32 %v8402_v52, %v8407_v1  ;;  %v2964_v41 = vpop.f32.mrb[120].mxu1 }
 0x81a   : > { %v8414_v7 = vadd.f32 %v6269_v31, %v2964_v41  ;;  %v2966_v24 = vpop.f32.mrb[121].mxu1  ;;  %v6272_v41 = vld [vmem:[%s9900_s3 + $0x178] sm:$0xff] }
 0x81b   : > { %v8419_v48 = vadd.f32 %v6270_v29, %v2966_v24  ;;  %3087 = vmax.xlane.f32.xlu1 %v3086_v40 }
 0x81c   : > { %10190 = vst [vmem:[#allocation26_spill] sm:$0xff] %v8414_v7 }
 0x81d   : > { %10191 = vst [vmem:[#allocation29_spill] sm:$0xff] %v8419_v48  ;;  %v3089_v39 = vmax.f32 %v8414_v7, %v8419_v48  ;;  %v2970_v23 = vpop.f32.mrb[122].mxu1 }
 0x81e   : > { %v8426_v49 = vadd.f32 %v6271_v57, %v2970_v23  ;;  %v2972_v8 = vpop.f32.mrb[123].mxu1 }
 0x81f   : > { %v8431_v31 = vadd.f32 %v6272_v41, %v2972_v8  ;;  %3090 = vmax.xlane.f32.xlu0 %v3089_v39 }
 0x820   : > { %10192 = vst [vmem:[#allocation28_spill] sm:$0xff] %v8426_v49 }
 0x821   : > { %10193 = vst [vmem:[#allocation24_spill] sm:$0xff] %v8431_v31  ;;  %v3092_v40 = vmax.f32 %v8426_v49, %v8431_v31  ;;  %v2976_v24 = vpop.f32.mrb[124].mxu1 }
 0x822   : > { %v2978_v29 = vpop.f32.mrb[125].mxu1 }
 0x823   : > { %3093 = vmax.xlane.f32.xlu1 %v3092_v40 }
 0x825   : > { %v2982_v9 = vpop.f32.mrb[126].mxu1 }
 0x826   : > { %v2984_v18 = vpop.f32.mrb[127].mxu1 }
 0x829   : > { %v8435_v56 = vpop.f32.mrb[128].mxu1 }
 0x82a   : > { %v8437_v23 = vpop.f32.mrb[129].mxu1 }
 0x82d   : > { %v8439_v57 = vpop.f32.mrb[130].mxu1 }
 0x82e   : > { %v8441_v0 = vpop.f32.mrb[131].mxu1 }
 0x831   : > { %v8443_v44 = vpop.f32.mrb[132].mxu1 }
 0x832   : > { %v8445_v8 = vpop.f32.mrb[133].mxu1 }
 0x835   : > { %v8447_v39 = vpop.f32.mrb[134].mxu1 }
 0x836   : > { %v8449_v41 = vpop.f32.mrb[135].mxu1 }
 0x839   : > { %v8451_v28 = vpop.f32.mrb[136].mxu1 }
 0x83a   : > { %v8453_v40 = vpop.f32.mrb[137].mxu1 }
 0x83d   : > { %v8455_v10 = vpop.f32.mrb[138].mxu1 }
 0x83e   : > { %v8457_v45 = vpop.f32.mrb[139].mxu1 }
 0x854   : > { %v3025_v31 = vpop.xlane.xlu0 %3024 }
 0x855   : > { %v3119_v49 = vsub.f32 %v8150_v35, %v3025_v31  ;;  %v3120_v48 = vsub.f32 %v8155_v37, %v3025_v31 }
 0x857   : > { %v3183_v7 = vmul.f32 1.442695, %v3119_v49  ;;  %v3185_v1 = vmul.f32 1.442695, %v3120_v48 }
 0x858   : > { %v3028_v52 = vpop.xlane.xlu1 %3027 }
 0x859   : > { %5749 = vpow2.f32 %v3183_v7  ;;  %v3121_v27 = vsub.f32 %v8162_v16, %v3028_v52  ;;  %v3122_v59 = vsub.f32 %v8167_v38, %v3028_v52  ;;  %v6273_v38 = vld [vmem:[%s9900_s3 + $0x180] sm:$0xff] }
 0x85a   : > { %5751 = vpow2.f32 %v3185_v1 }
 0x85b   : > { %v3187_v54 = vmul.f32 1.442695, %v3121_v27  ;;  %v3189_v46 = vmul.f32 1.442695, %v3122_v59  ;;  %v8470_v59 = vadd.f32 %v6273_v38, %v2976_v24  ;;  %v6275_v24 = vld [vmem:[%s9900_s3 + $0x190] sm:$0xff] }
 0x85c   : > { %v3031_v12 = vpop.xlane.xlu0 %3030 }
 0x85d   : > { %5753 = vpow2.f32 %v3187_v54  ;;  %v3123_v34 = vsub.f32 %v8174_v11, %v3031_v12  ;;  %v3124_v3 = vsub.f32 %v8179_v63, %v3031_v12  ;;  %v6274_v11 = vld [vmem:[%s9900_s3 + $0x188] sm:$0xff] }
 0x85e   : > { %5755 = vpow2.f32 %v3189_v46  ;;  %v8475_v63 = vadd.f32 %v6274_v11, %v2978_v29  ;;  %v8492_v29 = vadd.f32 %v6275_v24, %v2982_v9  ;;  %v6277_v9 = vld [vmem:[%s9900_s3 + $0x1a0] sm:$0xff]  ;;  %v6279_v24 = vld [vmem:[%s9900_s3 + $0x1b0] sm:$0xff] }
 0x85f   : > { %v3191_v35 = vmul.f32 1.442695, %v3123_v34  ;;  %v3193_v37 = vmul.f32 1.442695, %v3124_v3  ;;  %v8509_v38 = vadd.f32 %v6277_v9, %v8435_v56 }
 0x860   : > { %v3034_v49 = vpop.xlane.xlu1 %3033  ;;  %v3095_v52 = vmax.f32 %v8470_v59, %v8475_v63 }
 0x861   : > { %5757 = vpow2.f32 %v3191_v35  ;;  %v3125_v7 = vsub.f32 %v8186_v32, %v3034_v49  ;;  %v3126_v16 = vsub.f32 %v8191_v58, %v3034_v49 }
 0x862   : > { %5759 = vpow2.f32 %v3193_v37 }
 0x863   : > { %v8477_v3 = vpop.eup %5749  ;;  %v3195_v34 = vmul.f32 1.442695, %v3125_v7  ;;  %v3197_v12 = vmul.f32 1.442695, %v3126_v16 }
 0x864   : > { %v8479_v32 = vpop.eup %5751  ;;  %v3037_v58 = vpop.xlane.xlu0 %3036 }
 0x865   : > { %5761 = vpow2.f32 %v3195_v34  ;;  %v3127_v46 = vsub.f32 %v8198_v17, %v3037_v58  ;;  %v3128_v54 = vsub.f32 %v8203_v6, %v3037_v58  ;;  %v3311_v27 = vadd.f32 %v8479_v32, %v8477_v3  ;;  %v6276_v17 = vld [vmem:[%s9900_s3 + $0x198] sm:$0xff] }
 0x866   : > { %5763 = vpow2.f32 %v3197_v12  ;;  %v8497_v6 = vadd.f32 %v6276_v17, %v2984_v18  ;;  %v6278_v18 = vld [vmem:[%s9900_s3 + $0x1a8] sm:$0xff] }
 0x867   : > { %v8487_v1 = vpop.eup %5753  ;;  %v3199_v48 = vmul.f32 1.442695, %v3127_v46  ;;  %v3201_v31 = vmul.f32 1.442695, %v3128_v54  ;;  %3312 = vadd.xlane.f32.xlu0 %v3311_v27  ;;  %v8515_v11 = vadd.f32 %v6278_v18, %v8437_v23 }
 0x868   : > { %v8499_v35 = vpop.eup %5755  ;;  %v3040_v37 = vpop.xlane.xlu1 %3039 }
 0x869   : > { %5765 = vpow2.f32 %v3199_v48  ;;  %v3129_v49 = vsub.f32 %v8210_v55, %v3040_v37  ;;  %v3130_v7 = vsub.f32 %v8215_v26, %v3040_v37  ;;  %v3314_v16 = vadd.f32 %v8499_v35, %v8487_v1 }
 0x86a   : > { %5767 = vpow2.f32 %v3201_v31  ;;  %v3098_v26 = vmax.f32 %v8492_v29, %v8497_v6  ;;  %v3101_v27 = vmax.f32 %v8509_v38, %v8515_v11 }
 0x86b   : > { %v8517_v55 = vpop.eup %5757  ;;  %v3203_v34 = vmul.f32 1.442695, %v3129_v49  ;;  %v3205_v12 = vmul.f32 1.442695, %v3130_v7  ;;  %3096 = vmax.xlane.f32.xlu0 %v3095_v52  ;;  %3315 = vadd.xlane.f32.xlu1 %v3314_v16 }
 0x86c   : > { %v8521_v58 = vpop.eup %5759  ;;  %v3043_v56 = vpop.xlane.xlu0 %3042 }
 0x86d   : > { %5769 = vpow2.f32 %v3203_v34  ;;  %v3131_v46 = vsub.f32 %v8222_v5, %v3043_v56  ;;  %v3132_v54 = vsub.f32 %v8227_v36, %v3043_v56  ;;  %v3317_v23 = vadd.f32 %v8521_v58, %v8517_v55  ;;  %v6280_v36 = vld [vmem:[%s9900_s3 + $0x1b8] sm:$0xff] }
 0x86e   : > { %5771 = vpow2.f32 %v3205_v12  ;;  %v8535_v5 = vadd.f32 %v6279_v24, %v8439_v57  ;;  %v8541_v17 = vadd.f32 %v6280_v36, %v8441_v0  ;;  %v6281_v57 = vld [vmem:[%s9900_s3 + $0x1c0] sm:$0xff]  ;;  %v6282_v0 = vld [vmem:[%s9900_s3 + $0x1c8] sm:$0xff]  ;;  %v6283_v24 = vld [vmem:[%s9900_s3 + $0x1d0] sm:$0xff] }
 0x86f   : > { %v8529_v48 = vpop.eup %5761  ;;  %v3207_v31 = vmul.f32 1.442695, %v3131_v46  ;;  %v3209_v52 = vmul.f32 1.442695, %v3132_v54  ;;  %3318 = vadd.xlane.f32.xlu0 %v3317_v23  ;;  %3099 = vmax.xlane.f32.xlu1 %v3098_v26  ;;  %v8553_v18 = vadd.f32 %v6281_v57, %v8443_v44  ;;  %v8559_v26 = vadd.f32 %v6282_v0, %v8445_v8 }
 0x870   : > { %v8543_v37 = vpop.eup %5763  ;;  %v3046_v49 = vpop.xlane.xlu1 %3045 }
 0x871   : > { %5773 = vpow2.f32 %v3207_v31  ;;  %v3133_v7 = vsub.f32 %v8234_v42, %v3046_v49  ;;  %v3134_v16 = vsub.f32 %v8239_v60, %v3046_v49  ;;  %v3320_v9 = vadd.f32 %v8543_v37, %v8529_v48 }
 0x872   : > { %5775 = vpow2.f32 %v3209_v52  ;;  %v3104_v60 = vmax.f32 %v8535_v5, %v8541_v17  ;;  %v3107_v23 = vmax.f32 %v8553_v18, %v8559_v26 }
 0x873   : > { %v8561_v42 = vpop.eup %5765  ;;  %v3211_v34 = vmul.f32 1.442695, %v3133_v7  ;;  %v3213_v12 = vmul.f32 1.442695, %v3134_v16  ;;  %3102 = vmax.xlane.f32.xlu0 %v3101_v27  ;;  %3321 = vadd.xlane.f32.xlu1 %v3320_v9 }
 0x874   : > { %v8565_v56 = vpop.eup %5767  ;;  %v3049_v44 = vpop.xlane.xlu0 %3048 }
 0x875   : > { %5777 = vpow2.f32 %v3211_v34  ;;  %v3135_v46 = vsub.f32 %v8246_v21, %v3049_v44  ;;  %v3136_v54 = vsub.f32 %v8251_v22, %v3049_v44  ;;  %v3323_v8 = vadd.f32 %v8565_v56, %v8561_v42  ;;  %v6284_v22 = vld [vmem:[%s9900_s3 + $0x1d8] sm:$0xff] }
 0x876   : > { %5779 = vpow2.f32 %v3213_v12  ;;  %v8579_v21 = vadd.f32 %v6283_v24, %v8447_v39  ;;  %v8585_v36 = vadd.f32 %v6284_v22, %v8449_v41  ;;  %v6285_v39 = vld [vmem:[%s9900_s3 + $0x1e0] sm:$0xff]  ;;  %v6286_v41 = vld [vmem:[%s9900_s3 + $0x1e8] sm:$0xff]  ;;  %v6287_v24 = vld [vmem:[%s9900_s3 + $0x1f0] sm:$0xff] }
 0x877   : > { %v8573_v31 = vpop.eup %5769  ;;  %v3215_v52 = vmul.f32 1.442695, %v3135_v46  ;;  %v3217_v27 = vmul.f32 1.442695, %v3136_v54  ;;  %3324 = vadd.xlane.f32.xlu0 %v3323_v8  ;;  %3105 = vmax.xlane.f32.xlu1 %v3104_v60  ;;  %v8597_v0 = vadd.f32 %v6285_v39, %v8451_v28  ;;  %v8603_v60 = vadd.f32 %v6286_v41, %v8453_v40 }
 0x878   : > { %v8587_v49 = vpop.eup %5771  ;;  %v3052_v7 = vpop.xlane.xlu1 %3051 }
 0x879   : > { %5781 = vpow2.f32 %v3215_v52  ;;  %v3137_v16 = vsub.f32 %v8258_v4, %v3052_v7  ;;  %v3138_v9 = vsub.f32 %v8263_v15, %v3052_v7  ;;  %v3326_v57 = vadd.f32 %v8587_v49, %v8573_v31 }
 0x87a   : > { %5783 = vpow2.f32 %v3217_v27  ;;  %v3110_v15 = vmax.f32 %v8579_v21, %v8585_v36  ;;  %v3113_v8 = vmax.f32 %v8597_v0, %v8603_v60 }
 0x87b   : > { %v8605_v4 = vpop.eup %5773  ;;  %v3219_v34 = vmul.f32 1.442695, %v3137_v16  ;;  %v3221_v12 = vmul.f32 1.442695, %v3138_v9  ;;  %3108 = vmax.xlane.f32.xlu0 %v3107_v23  ;;  %3327 = vadd.xlane.f32.xlu1 %v3326_v57 }
 0x87c   : > { %v8609_v44 = vpop.eup %5775  ;;  %v3055_v28 = vpop.xlane.xlu0 %3054 }
 0x87d   : > { %5785 = vpow2.f32 %v3219_v34  ;;  %v3139_v46 = vsub.f32 %v8270_v61, %v3055_v28  ;;  %v3140_v54 = vsub.f32 %v8275_v62, %v3055_v28  ;;  %v3329_v40 = vadd.f32 %v8609_v44, %v8605_v4  ;;  %v6288_v62 = vld [vmem:[%s9900_s3 + $0x1f8] sm:$0xff] }
 0x87e   : > { %5787 = vpow2.f32 %v3221_v12  ;;  %v8623_v61 = vadd.f32 %v6287_v24, %v8455_v10  ;;  %v8629_v22 = vadd.f32 %v6288_v62, %v8457_v45 }
 0x87f   : > { %v8617_v52 = vpop.eup %5777  ;;  %v3223_v27 = vmul.f32 1.442695, %v3139_v46  ;;  %v3225_v23 = vmul.f32 1.442695, %v3140_v54  ;;  %3330 = vadd.xlane.f32.xlu0 %v3329_v40  ;;  %3111 = vmax.xlane.f32.xlu1 %v3110_v15 }
 0x880   : > { %v8631_v7 = vpop.eup %5779  ;;  %v3058_v16 = vpop.xlane.xlu1 %3057  ;;  %v3116_v45 = vmax.f32 %v8623_v61, %v8629_v22 }
 0x881   : > { %5789 = vpow2.f32 %v3223_v27  ;;  %v3141_v9 = vsub.f32 %v8282_v30, %v3058_v16  ;;  %v3142_v57 = vsub.f32 %v8287_v50, %v3058_v16  ;;  %v3332_v39 = vadd.f32 %v8631_v7, %v8617_v52 }
 0x882   : > { %5791 = vpow2.f32 %v3225_v23 }
 0x883   : > { %v8637_v10 = vpop.eup %5781  ;;  %v3227_v41 = vmul.f32 1.442695, %v3141_v9  ;;  %v3229_v15 = vmul.f32 1.442695, %v3142_v57  ;;  %3114 = vmax.xlane.f32.xlu0 %v3113_v8  ;;  %3333 = vadd.xlane.f32.xlu1 %v3332_v39 }
 0x884   : > { %v8641_v34 = vpop.eup %5783  ;;  %v3061_v12 = vpop.xlane.xlu0 %3060 }
 0x885   : > { %5793 = vpow2.f32 %v3227_v41  ;;  %v3143_v30 = vsub.f32 %v8294_v53, %v3061_v12  ;;  %v3144_v50 = vsub.f32 %v8299_v20, %v3061_v12  ;;  %v3335_v28 = vadd.f32 %v8641_v34, %v8637_v10 }
 0x886   : > { %5795 = vpow2.f32 %v3229_v15 }
 0x887   : > { %v8647_v46 = vpop.eup %5785  ;;  %v3231_v54 = vmul.f32 1.442695, %v3143_v30  ;;  %v3233_v40 = vmul.f32 1.442695, %v3144_v50  ;;  %3336 = vadd.xlane.f32.xlu0 %v3335_v28  ;;  %3117 = vmax.xlane.f32.xlu1 %v3116_v45 }
 0x888   : > { %v8649_v8 = vpop.eup %5787  ;;  %v3064_v27 = vpop.xlane.xlu1 %3063 }
 0x889   : > { %5797 = vpow2.f32 %v3231_v54  ;;  %v3145_v23 = vsub.f32 %v8306_v25, %v3064_v27  ;;  %v3146_v53 = vsub.f32 %v8311_v51, %v3064_v27  ;;  %v3338_v20 = vadd.f32 %v8649_v8, %v8647_v46 }
 0x88a   : > { %5799 = vpow2.f32 %v3233_v40 }
 0x88b   : > { %v8655_v24 = vpop.eup %5789  ;;  %v3235_v62 = vmul.f32 1.442695, %v3145_v23  ;;  %v3237_v16 = vmul.f32 1.442695, %v3146_v53  ;;  %3339 = vadd.xlane.f32.xlu1 %v3338_v20 }
 0x88c   : > { %v8657_v9 = vpop.eup %5791  ;;  %v3067_v57 = vpop.xlane.xlu0 %3066 }
 0x88d   : > { %5801 = vpow2.f32 %v3235_v62  ;;  %v3147_v39 = vsub.f32 %v8318_v14, %v3067_v57  ;;  %v3148_v41 = vsub.f32 %v8323_v43, %v3067_v57  ;;  %v3341_v25 = vadd.f32 %v8657_v9, %v8655_v24 }
 0x88e   : > { %5803 = vpow2.f32 %v3237_v16 }
 0x88f   : > { %v8663_v51 = vpop.eup %5793  ;;  %v3239_v15 = vmul.f32 1.442695, %v3147_v39  ;;  %v3241_v45 = vmul.f32 1.442695, %v3148_v41  ;;  %3342 = vadd.xlane.f32.xlu0 %v3341_v25  ;;  %v10194_v25 = vld [vmem:[#allocation18_spill] sm:$0xff] }
 0x890   : > { %v8665_v12 = vpop.eup %5795  ;;  %v3070_v30 = vpop.xlane.xlu1 %3069 }
 0x891   : > { %5805 = vpow2.f32 %v3239_v15  ;;  %v3149_v50 = vsub.f32 %v8330_v19, %v3070_v30  ;;  %v3150_v28 = vsub.f32 %v8335_v47, %v3070_v30  ;;  %v3344_v14 = vadd.f32 %v8665_v12, %v8663_v51 }
 0x892   : > { %5807 = vpow2.f32 %v3241_v45 }
 0x893   : > { %v8671_v43 = vpop.eup %5797  ;;  %v3243_v54 = vmul.f32 1.442695, %v3149_v50  ;;  %v3245_v40 = vmul.f32 1.442695, %v3150_v28  ;;  %3345 = vadd.xlane.f32.xlu1 %v3344_v14  ;;  %v10196_v14 = vld [vmem:[#allocation21_spill] sm:$0xff] }
 0x894   : > { %v8673_v27 = vpop.eup %5799  ;;  %v3073_v23 = vpop.xlane.xlu0 %3072 }
 0x895   : > { %5809 = vpow2.f32 %v3243_v54  ;;  %v3151_v53 = vsub.f32 %v8342_v13, %v3073_v23  ;;  %v3152_v20 = vsub.f32 %v8347_v2, %v3073_v23  ;;  %v3347_v19 = vadd.f32 %v8673_v27, %v8671_v43 }
 0x896   : > { %5811 = vpow2.f32 %v3245_v40  ;;  %v10197_v40 = vld [vmem:[#allocation19_spill] sm:$0xff] }
 0x897   : > { %v8679_v47 = vpop.eup %5801  ;;  %v3247_v62 = vmul.f32 1.442695, %v3151_v53  ;;  %v3249_v16 = vmul.f32 1.442695, %v3152_v20  ;;  %3348 = vadd.xlane.f32.xlu0 %v3347_v19 }
 0x898   : > { %v8681_v57 = vpop.eup %5803  ;;  %v3076_v39 = vpop.xlane.xlu1 %3075 }
 0x899   : > { %5813 = vpow2.f32 %v3247_v62  ;;  %v3153_v41 = vsub.f32 %v8354_v33, %v3076_v39  ;;  %v3154_v15 = vsub.f32 %v10194_v25, %v3076_v39  ;;  %v3350_v13 = vadd.f32 %v8681_v57, %v8679_v47  ;;  %v10199_v39 = vld [vmem:[#allocation16_spill] sm:$0xff]  ;;  %v10200_v25 = vld [vmem:[#allocation23_spill] sm:$0xff] }
 0x89a   : > { %5815 = vpow2.f32 %v3249_v16 }
 0x89b   : > { %v8687_v2 = vpop.eup %5805  ;;  %v3251_v45 = vmul.f32 1.442695, %v3153_v41  ;;  %v3253_v30 = vmul.f32 1.442695, %v3154_v15  ;;  %3351 = vadd.xlane.f32.xlu1 %v3350_v13 }
 0x89c   : > { %10195 = vst [vmem:[#allocation8_spill] sm:$0xff] %v8687_v2  ;;  %v8689_v50 = vpop.eup %5807  ;;  %v3079_v28 = vpop.xlane.xlu0 %3078 }
 0x89d   : > { %5817 = vpow2.f32 %v3251_v45  ;;  %v3155_v54 = vsub.f32 %v10196_v14, %v3079_v28  ;;  %v3156_v23 = vsub.f32 %v10197_v40, %v3079_v28  ;;  %v3353_v33 = vadd.f32 %v8689_v50, %v8687_v2  ;;  %v10203_v40 = vld [vmem:[#allocation22_spill] sm:$0xff] }
 0x89e   : > { %5819 = vpow2.f32 %v3253_v30 }
 0x89f   : > { %v8695_v53 = vpop.eup %5809  ;;  %v3255_v20 = vmul.f32 1.442695, %v3155_v54  ;;  %v3257_v19 = vmul.f32 1.442695, %v3156_v23  ;;  %3354 = vadd.xlane.f32.xlu0 %v3353_v33  ;;  %v10204_v33 = vld [vmem:[#allocation27_spill] sm:$0xff] }
 0x8a0   : > { %10198 = vst [vmem:[#allocation13_spill] sm:$0xff] %v8695_v53  ;;  %v8697_v62 = vpop.eup %5811  ;;  %v3082_v16 = vpop.xlane.xlu1 %3081 }
 0x8a1   : > { %5821 = vpow2.f32 %v3255_v20  ;;  %v3157_v41 = vsub.f32 %v10199_v39, %v3082_v16  ;;  %v3158_v15 = vsub.f32 %v10200_v25, %v3082_v16  ;;  %v3356_v13 = vadd.f32 %v8697_v62, %v8695_v53 }
 0x8a2   : > { %5823 = vpow2.f32 %v3257_v19 }
 0x8a3   : > { %v8703_v45 = vpop.eup %5813  ;;  %v3259_v30 = vmul.f32 1.442695, %v3157_v41  ;;  %v3261_v28 = vmul.f32 1.442695, %v3158_v15  ;;  %3357 = vadd.xlane.f32.xlu1 %v3356_v13  ;;  %v10207_v13 = vld [vmem:[#allocation25_spill] sm:$0xff] }
 0x8a4   : > { %10201 = vst [vmem:[#allocation15_spill] sm:$0xff] %v8703_v45  ;;  %v8705_v14 = vpop.eup %5815  ;;  %v3085_v54 = vpop.xlane.xlu0 %3084 }
 0x8a5   : > { %10202 = vst [vmem:[#allocation18_spill] sm:$0xff] %v8705_v14  ;;  %5825 = vpow2.f32 %v3259_v30  ;;  %v3159_v23 = vsub.f32 %v10203_v40, %v3085_v54  ;;  %v3160_v20 = vsub.f32 %v10204_v33, %v3085_v54  ;;  %v3359_v16 = vadd.f32 %v8705_v14, %v8703_v45  ;;  %v10208_v30 = vld [vmem:[#allocation20_spill] sm:$0xff] }
 0x8a6   : > { %5827 = vpow2.f32 %v3261_v28 }
 0x8a7   : > { %v8711_v39 = vpop.eup %5817  ;;  %v3263_v19 = vmul.f32 1.442695, %v3159_v23  ;;  %v3265_v25 = vmul.f32 1.442695, %v3160_v20  ;;  %3360 = vadd.xlane.f32.xlu0 %v3359_v16  ;;  %v10210_v16 = vld [vmem:[#allocation26_spill] sm:$0xff] }
 0x8a8   : > { %10205 = vst [vmem:[#allocation21_spill] sm:$0xff] %v8711_v39  ;;  %v8713_v41 = vpop.eup %5819  ;;  %v3088_v15 = vpop.xlane.xlu1 %3087 }
 0x8a9   : > { %10206 = vst [vmem:[#allocation19_spill] sm:$0xff] %v8713_v41  ;;  %5829 = vpow2.f32 %v3263_v19  ;;  %v3161_v2 = vsub.f32 %v10207_v13, %v3088_v15  ;;  %v3162_v53 = vsub.f32 %v10208_v30, %v3088_v15  ;;  %v3362_v54 = vadd.f32 %v8713_v41, %v8711_v39  ;;  %v10211_v19 = vld [vmem:[#allocation29_spill] sm:$0xff] }
 0x8aa   : > { %5831 = vpow2.f32 %v3265_v25 }
 0x8ab   : > { %v8719_v40 = vpop.eup %5821  ;;  %v3267_v28 = vmul.f32 1.442695, %v3161_v2  ;;  %v3269_v33 = vmul.f32 1.442695, %v3162_v53  ;;  %3363 = vadd.xlane.f32.xlu1 %v3362_v54  ;;  %v10212_v54 = vld [vmem:[#allocation28_spill] sm:$0xff] }
 0x8ac   : > { %10209 = vst [vmem:[#allocation16_spill] sm:$0xff] %v8719_v40  ;;  %v8721_v23 = vpop.eup %5823  ;;  %v3091_v20 = vpop.xlane.xlu0 %3090 }
 0x8ad   : > { %5833 = vpow2.f32 %v3267_v28  ;;  %v3163_v45 = vsub.f32 %v10210_v16, %v3091_v20  ;;  %v3164_v14 = vsub.f32 %v10211_v19, %v3091_v20  ;;  %v3365_v15 = vadd.f32 %v8721_v23, %v8719_v40  ;;  %v10213_v28 = vld [vmem:[#allocation24_spill] sm:$0xff] }
 0x8ae   : > { %5835 = vpow2.f32 %v3269_v33 }
 0x8af   : > { %v8727_v13 = vpop.eup %5825  ;;  %v3271_v25 = vmul.f32 1.442695, %v3163_v45  ;;  %v3273_v30 = vmul.f32 1.442695, %v3164_v14  ;;  %3366 = vadd.xlane.f32.xlu0 %v3365_v15 }
 0x8b0   : > { %v8729_v2 = vpop.eup %5827  ;;  %v3094_v53 = vpop.xlane.xlu1 %3093 }
 0x8b1   : > { %5837 = vpow2.f32 %v3271_v25  ;;  %v3165_v39 = vsub.f32 %v10212_v54, %v3094_v53  ;;  %v3166_v41 = vsub.f32 %v10213_v28, %v3094_v53  ;;  %v3368_v20 = vadd.f32 %v8729_v2, %v8727_v13 }
 0x8b2   : > { %5839 = vpow2.f32 %v3273_v30 }
 0x8b3   : > { %v8735_v16 = vpop.eup %5829  ;;  %v3275_v33 = vmul.f32 1.442695, %v3165_v39  ;;  %v3277_v19 = vmul.f32 1.442695, %v3166_v41  ;;  %3369 = vadd.xlane.f32.xlu1 %v3368_v20 }
 0x8b4   : > { %10214 = vst [vmem:[#allocation23_spill] sm:$0xff] %v8735_v16  ;;  %v8737_v45 = vpop.eup %5831 }
 0x8b5   : > { %10215 = vst [vmem:[#allocation22_spill] sm:$0xff] %v8737_v45  ;;  %5841 = vpow2.f32 %v3275_v33  ;;  %v3371_v14 = vadd.f32 %v8737_v45, %v8735_v16 }
 0x8b6   : > { %5843 = vpow2.f32 %v3277_v19 }
 0x8b7   : > { %v8741_v15 = vpop.eup %5833  ;;  %3372 = vadd.xlane.f32.xlu0 %v3371_v14 }
 0x8b8   : > { %10216 = vst [vmem:[#allocation27_spill] sm:$0xff] %v8741_v15  ;;  %v8743_v25 = vpop.eup %5835 }
 0x8b9   : > { %10217 = vst [vmem:[#allocation25_spill] sm:$0xff] %v8743_v25  ;;  %v3374_v30 = vadd.f32 %v8743_v25, %v8741_v15 }
 0x8bb   : > { %v8747_v53 = vpop.eup %5837  ;;  %3375 = vadd.xlane.f32.xlu1 %v3374_v30 }
 0x8bc   : > { %10218 = vst [vmem:[#allocation20_spill] sm:$0xff] %v8747_v53  ;;  %v8749_v39 = vpop.eup %5839 }
 0x8bd   : > { %10219 = vst [vmem:[#allocation26_spill] sm:$0xff] %v8749_v39  ;;  %v3377_v41 = vadd.f32 %v8749_v39, %v8747_v53 }
 0x8bf   : > { %v8753_v54 = vpop.eup %5841  ;;  %3378 = vadd.xlane.f32.xlu0 %v3377_v41 }
 0x8c0   : > { %10220 = vst [vmem:[#allocation29_spill] sm:$0xff] %v8753_v54  ;;  %v8755_v28 = vpop.eup %5843 }
 0x8c1   : > { %10221 = vst [vmem:[#allocation28_spill] sm:$0xff] %v8755_v28  ;;  %v3380_v20 = vadd.f32 %v8755_v28, %v8753_v54 }
 0x8c3   : > { %3381 = vadd.xlane.f32.xlu1 %v3380_v20 }
 0x8f4   : > { %v3313_v33 = vpop.xlane.xlu0 %3312 }
 0x8f5   : > { %5845 = vrcp.f32 %v3313_v33 }
 0x8f8   : > { %v3097_v19 = vpop.xlane.xlu0 %3096  ;;  %v3316_v14 = vpop.xlane.xlu1 %3315 }
 0x8f9   : > { %v3167_v30 = vsub.f32 %v8470_v59, %v3097_v19  ;;  %v3168_v16 = vsub.f32 %v8475_v63, %v3097_v19  ;;  %5847 = vrcp.f32 %v3316_v14 }
 0x8fb   : > { %v3279_v15 = vmul.f32 1.442695, %v3167_v30  ;;  %v3281_v53 = vmul.f32 1.442695, %v3168_v16 }
 0x8fc   : > { %v3319_v39 = vpop.xlane.xlu0 %3318  ;;  %v3100_v25 = vpop.xlane.xlu1 %3099 }
 0x8fd   : > { %5849 = vpow2.f32 %v3279_v15  ;;  %v3169_v41 = vsub.f32 %v8492_v29, %v3100_v25  ;;  %v3170_v45 = vsub.f32 %v8497_v6, %v3100_v25 }
 0x8fe   : > { %5851 = vpow2.f32 %v3281_v53 }
 0x8ff   : > { %5853 = vrcp.f32 %v3319_v39  ;;  %v3283_v20 = vmul.f32 1.442695, %v3169_v41  ;;  %v3285_v33 = vmul.f32 1.442695, %v3170_v45  ;;  %v5846_v40 = vpop.eup %5845 }
 0x900   : > { %v3103_v54 = vpop.xlane.xlu0 %3102  ;;  %v3322_v28 = vpop.xlane.xlu1 %3321  ;;  %v3440_v6 = vmul.f32 %v5846_v40, %v8479_v32  ;;  %v3439_v45 = vmul.f32 %v5846_v40, %v8477_v3 }
 0x901   : > { %5855 = vpow2.f32 %v3283_v20  ;;  %v3171_v59 = vsub.f32 %v8509_v38, %v3103_v54  ;;  %v3172_v63 = vsub.f32 %v8515_v11, %v3103_v54 }
 0x902   : > { %5857 = vpow2.f32 %v3285_v33 }
 0x903   : > { %v5848_v16 = vpop.eup %5847  ;;  %v3287_v19 = vmul.f32 1.442695, %v3171_v59  ;;  %v3289_v15 = vmul.f32 1.442695, %v3172_v63  ;;  %5859 = vrcp.f32 %v3322_v28 }
 0x904   : > { %v3325_v29 = vpop.xlane.xlu0 %3324  ;;  %v3106_v14 = vpop.xlane.xlu1 %3105  ;;  %v3442_v25 = vmul.f32 %v5848_v16, %v8499_v35  ;;  %v3441_v53 = vmul.f32 %v5848_v16, %v8487_v1 }
 0x905   : > { %5861 = vpow2.f32 %v3287_v19  ;;  %v3173_v38 = vsub.f32 %v8535_v5, %v3106_v14  ;;  %v3174_v11 = vsub.f32 %v8541_v17, %v3106_v14 }
 0x906   : > { %5863 = vpow2.f32 %v3289_v15  ;;  %v5221_v39 = vpack.c.bf16 %v3442_v25, %v3440_v6  ;;  %v5223_v54 = vpack.c.bf16 %v3441_v53, %v3439_v45 }
 0x907   : > { %v8771_v30 = vpop.eup %5849  ;;  %5865 = vrcp.f32 %v3325_v29  ;;  %v3291_v28 = vmul.f32 1.442695, %v3173_v38  ;;  %v3293_v41 = vmul.f32 1.442695, %v3174_v11 }
 0x908   : > { %v8773_v32 = vpop.eup %5851  ;;  %v3109_v35 = vpop.xlane.xlu0 %3108  ;;  %5222 = vmatprep.subr.bf16.mxu0 %v5221_v39 }
 0x909   : > { %v3328_v3 = vpop.xlane.xlu1 %3327  ;;  %v5854_v40 = vpop.eup %5853  ;;  %5867 = vpow2.f32 %v3291_v28  ;;  %v3175_v1 = vsub.f32 %v8553_v18, %v3109_v35  ;;  %v3176_v5 = vsub.f32 %v8559_v26, %v3109_v35  ;;  %5224 = vmatpush1.bf16.xpose.msra.mxu0 %v5223_v54  ;;  %v3383_v17 = vadd.f32 %v8773_v32, %v8771_v30 }
 0x90a   : > { %5869 = vpow2.f32 %v3293_v41  ;;  %v3444_v15 = vmul.f32 %v5854_v40, %v8521_v58  ;;  %v3443_v25 = vmul.f32 %v5854_v40, %v8517_v55 }
 0x90b   : > { %v8779_v20 = vpop.eup %5855  ;;  %v3295_v33 = vmul.f32 1.442695, %v3175_v1  ;;  %v3297_v59 = vmul.f32 1.442695, %v3176_v5  ;;  %5871 = vrcp.f32 %v3328_v3  ;;  %3384 = vadd.xlane.f32.xlu0 %v3383_v17 }
 0x90c   : > { %v8781_v63 = vpop.eup %5857  ;;  %v3331_v16 = vpop.xlane.xlu0 %3330 }
 0x90d   : > { %v3112_v19 = vpop.xlane.xlu1 %3111  ;;  %v5860_v18 = vpop.eup %5859  ;;  %5873 = vpow2.f32 %v3295_v33  ;;  %v3386_v14 = vadd.f32 %v8781_v63, %v8779_v20 }
 0x90e   : > { %v3177_v26 = vsub.f32 %v8579_v21, %v3112_v19  ;;  %v3178_v29 = vsub.f32 %v8585_v36, %v3112_v19  ;;  %5875 = vpow2.f32 %v3297_v59  ;;  %v3446_v6 = vmul.f32 %v5860_v18, %v8543_v37 }
 0x90f   : > { %v3445_v45 = vmul.f32 %v5860_v18, %v8529_v48  ;;  %v8791_v53 = vpop.eup %5861  ;;  %3387 = vadd.xlane.f32.xlu1 %v3386_v14  ;;  %5877 = vrcp.f32 %v3331_v16 }
 0x910   : > { %v3299_v38 = vmul.f32 1.442695, %v3177_v26  ;;  %v3301_v58 = vmul.f32 1.442695, %v3178_v29  ;;  %v8793_v11 = vpop.eup %5863  ;;  %v3115_v21 = vpop.xlane.xlu0 %3114  ;;  %v5225_v36 = vpack.c.bf16 %v3446_v6, %v3444_v15 }
 0x911   : > { %v3334_v39 = vpop.xlane.xlu1 %3333  ;;  %v5227_v54 = vpack.c.bf16 %v3445_v45, %v3443_v25  ;;  %v5866_v28 = vpop.eup %5865  ;;  %v3179_v37 = vsub.f32 %v8597_v0, %v3115_v21  ;;  %v3180_v55 = vsub.f32 %v8603_v60, %v3115_v21  ;;  %v3389_v48 = vadd.f32 %v8793_v11, %v8791_v53 }
 0x912   : > { %5879 = vpow2.f32 %v3299_v38  ;;  %5226 = vmatprep.subr.bf16.mxu0 %v5225_v36  ;;  %v3448_v5 = vmul.f32 %v5866_v28, %v8565_v56  ;;  %v3447_v19 = vmul.f32 %v5866_v28, %v8561_v42 }
 0x913   : > { %5881 = vpow2.f32 %v3301_v58  ;;  %v8799_v41 = vpop.eup %5867  ;;  %v3303_v35 = vmul.f32 1.442695, %v3179_v37  ;;  %v3305_v3 = vmul.f32 1.442695, %v3180_v55  ;;  %5228 = vmatpush1.bf16.xpose.msra.mxu0 %v5227_v54  ;;  %3390 = vadd.xlane.f32.xlu0 %v3389_v48 }
 0x914   : > { %5883 = vrcp.f32 %v3334_v39  ;;  %v8801_v40 = vpop.eup %5869  ;;  %v3337_v60 = vpop.xlane.xlu0 %3336 }
 0x915   : > { %v3118_v1 = vpop.xlane.xlu1 %3117  ;;  %v5872_v0 = vpop.eup %5871  ;;  %5885 = vpow2.f32 %v3303_v35  ;;  %v3392_v59 = vadd.f32 %v8801_v40, %v8799_v41 }
 0x916   : > { %v3181_v17 = vsub.f32 %v8623_v61, %v3118_v1  ;;  %v3182_v33 = vsub.f32 %v8629_v22, %v3118_v1  ;;  %5887 = vpow2.f32 %v3305_v3  ;;  %v3450_v16 = vmul.f32 %v5872_v0, %v8587_v49 }
 0x917   : > { %v3449_v15 = vmul.f32 %v5872_v0, %v8573_v31  ;;  %v8811_v18 = vpop.eup %5873  ;;  %3393 = vadd.xlane.f32.xlu1 %v3392_v59  ;;  %5889 = vrcp.f32 %v3337_v60 }
 0x918   : > { %v3307_v56 = vmul.f32 1.442695, %v3181_v17  ;;  %v3309_v26 = vmul.f32 1.442695, %v3182_v33  ;;  %v8813_v29 = vpop.eup %5875  ;;  %v5229_v61 = vpack.c.bf16 %v3450_v16, %v3448_v5 }
 0x919   : > { %v3340_v22 = vpop.xlane.xlu1 %3339  ;;  %v5231_v14 = vpack.c.bf16 %v3449_v15, %v3447_v19  ;;  %v3395_v6 = vadd.f32 %v8813_v29, %v8811_v18  ;;  %v5878_v49 = vpop.eup %5877 }
 0x91a   : > { %5891 = vpow2.f32 %v3307_v56  ;;  %5230 = vmatprep.subr.bf16.mxu0 %v5229_v61  ;;  %v3452_v58 = vmul.f32 %v5878_v49, %v8609_v44  ;;  %v3451_v36 = vmul.f32 %v5878_v49, %v8605_v4 }
 0x91b   : > { %5893 = vpow2.f32 %v3309_v26  ;;  %5232 = vmatpush1.bf16.xpose.msra.mxu0 %v5231_v14  ;;  %3396 = vadd.xlane.f32.xlu0 %v3395_v6 }
 0x91c   : > { %v8817_v42 = vpop.eup %5879  ;;  %5895 = vrcp.f32 %v3340_v22  ;;  %v3343_v25 = vpop.xlane.xlu0 %3342 }
 0x91d   : > { %v8819_v31 = vpop.eup %5881  ;;  %5897 = vrcp.f32 %v3343_v25 }
 0x91e   : > { %v5884_v45 = vpop.eup %5883  ;;  %v3398_v38 = vadd.f32 %v8819_v31, %v8817_v42 }
 0x91f   : > { %v3454_v21 = vmul.f32 %v5884_v45, %v8631_v7  ;;  %v3453_v39 = vmul.f32 %v5884_v45, %v8617_v52  ;;  %v8827_v54 = vpop.eup %5885 }
 0x920   : > { %3399 = vadd.xlane.f32.xlu1 %v3398_v38  ;;  %v8829_v28 = vpop.eup %5887  ;;  %v3346_v55 = vpop.xlane.xlu1 %3345 }
 0x921   : > { %v5233_v37 = vpack.c.bf16 %v3454_v21, %v3452_v58  ;;  %v5235_v48 = vpack.c.bf16 %v3453_v39, %v3451_v36  ;;  %5899 = vrcp.f32 %v3346_v55  ;;  %v3401_v35 = vadd.f32 %v8829_v28, %v8827_v54  ;;  %v5890_v44 = vpop.eup %5889  ;;  %v10223_v55 = vld [vmem:[#allocation8_spill] sm:$0xff] }
 0x922   : > { %v3456_v5 = vmul.f32 %v5890_v44, %v8641_v34  ;;  %v3455_v60 = vmul.f32 %v5890_v44, %v8637_v10 }
 0x923   : > { %5234 = vmatprep.subr.bf16.mxu0 %v5233_v37  ;;  %3402 = vadd.xlane.f32.xlu0 %v3401_v35  ;;  %v10222_v37 = vld [vmem:[#allocation13_spill] sm:$0xff] }
 0x924   : > { %v8833_v7 = vpop.eup %5891  ;;  %5236 = vmatpush1.bf16.xpose.msra.mxu0 %v5235_v48  ;;  %v3349_v52 = vpop.xlane.xlu0 %3348 }
 0x925   : > { %v8835_v4 = vpop.eup %5893  ;;  %5901 = vrcp.f32 %v3349_v52 }
 0x926   : > { %v5896_v3 = vpop.eup %5895  ;;  %v3404_v1 = vadd.f32 %v8835_v4, %v8833_v7 }
 0x927   : > { %v3458_v0 = vmul.f32 %v5896_v3, %v8649_v8  ;;  %v3457_v17 = vmul.f32 %v5896_v3, %v8647_v46  ;;  %v5898_v19 = vpop.eup %5897 }
 0x928   : > { %3405 = vadd.xlane.f32.xlu1 %v3404_v1  ;;  %v3352_v59 = vpop.xlane.xlu1 %3351  ;;  %v3460_v26 = vmul.f32 %v5898_v19, %v8657_v9  ;;  %v3459_v10 = vmul.f32 %v5898_v19, %v8655_v24  ;;  %v10224_v1 = vld [vmem:[#allocation18_spill] sm:$0xff] }
 0x929   : > { %v5237_v33 = vpack.c.bf16 %v3458_v0, %v3456_v5  ;;  %v5239_v16 = vpack.c.bf16 %v3457_v17, %v3455_v60  ;;  %5903 = vrcp.f32 %v3352_v59  ;;  %v10225_v0 = vld [vmem:[#allocation19_spill] sm:$0xff]  ;;  %v10226_v60 = vld [vmem:[#allocation21_spill] sm:$0xff] }
 0x92a   : > { %v10227_v17 = vld [vmem:[#allocation15_spill] sm:$0xff] }
 0x92b   : > { %5238 = vmatprep.subr.bf16.mxu0 %v5237_v33  ;;  %v5900_v15 = vpop.eup %5899 }
 0x92c   : > { %5240 = vmatpush1.bf16.xpose.msra.mxu0 %v5239_v16  ;;  %v3355_v56 = vpop.xlane.xlu0 %3354  ;;  %v3462_v34 = vmul.f32 %v5900_v15, %v8665_v12  ;;  %v3461_v8 = vmul.f32 %v5900_v15, %v8663_v51 }
 0x92d   : > { %5905 = vrcp.f32 %v3355_v56 }
 0x92e   : > { %v5241_v46 = vpack.c.bf16 %v3462_v34, %v3460_v26  ;;  %v5243_v61 = vpack.c.bf16 %v3461_v8, %v3459_v10 }
 0x92f   : > { %v5902_v14 = vpop.eup %5901 }
 0x930   : > { %5242 = vmatprep.subr.bf16.mxu0 %v5241_v46  ;;  %v3358_v22 = vpop.xlane.xlu1 %3357  ;;  %v3464_v25 = vmul.f32 %v5902_v14, %v8673_v27  ;;  %v3463_v51 = vmul.f32 %v5902_v14, %v8671_v43  ;;  %v10228_v46 = vld [vmem:[#allocation16_spill] sm:$0xff] }
 0x931   : > { %5907 = vrcp.f32 %v3358_v22  ;;  %v10229_v22 = vld [vmem:[#allocation3_spill] sm:$0xff] }
 0x932   : > { %v3578_v14 = vrot.slane %v10229_v22, 6 }
 0x933   : > { %v5904_v6 = vpop.eup %5903 }
 0x934   : > { %5244 = vmatpush1.bf16.xpose.msra.mxu0 %v5243_v61  ;;  %v3361_v49 = vpop.xlane.xlu0 %3360  ;;  %v3466_v9 = vmul.f32 %v5904_v6, %v8681_v57  ;;  %v3465_v12 = vmul.f32 %v5904_v6, %v8679_v47 }
 0x935   : > { %5909 = vrcp.f32 %v3361_v49 }
 0x936   : > { %v5245_v45 = vpack.c.bf16 %v3466_v9, %v3464_v25  ;;  %v5247_v24 = vpack.c.bf16 %v3465_v12, %v3463_v51  ;;  %v10230_v51 = vld [vmem:[#allocation22_spill] sm:$0xff] }
 0x937   : > { %v5906_v58 = vpop.eup %5905 }
 0x938   : > { %5246 = vmatprep.subr.bf16.mxu0 %v5245_v45  ;;  %v3364_v38 = vpop.xlane.xlu1 %3363  ;;  %v3468_v39 = vmul.f32 %v5906_v58, %v8689_v50  ;;  %v3467_v47 = vmul.f32 %v5906_v58, %v10223_v55  ;;  %v10231_v45 = vld [vmem:[#allocation25_spill] sm:$0xff]  ;;  %v10235_v55 = vld [vmem:[#allocation26_spill] sm:$0xff] }
 0x939   : > { %5911 = vrcp.f32 %v3364_v38  ;;  %v10233_v38 = vld [vmem:[#allocation23_spill] sm:$0xff] }
 0x93b   : > { %v5908_v21 = vpop.eup %5907 }
 0x93c   : > { %5248 = vmatpush1.bf16.xpose.msra.mxu0 %v5247_v24  ;;  %v3367_v36 = vpop.xlane.xlu0 %3366  ;;  %v3470_v27 = vmul.f32 %v5908_v21, %v8697_v62  ;;  %v3469_v57 = vmul.f32 %v5908_v21, %v10222_v37  ;;  %v10232_v24 = vld [vmem:[#allocation27_spill] sm:$0xff] }
 0x93d   : > { %5913 = vrcp.f32 %v3367_v36 }
 0x93e   : > { %v5249_v48 = vpack.c.bf16 %v3470_v27, %v3468_v39  ;;  %v5251_v43 = vpack.c.bf16 %v3469_v57, %v3467_v47  ;;  %v10234_v39 = vld [vmem:[#allocation4_spill] sm:$0xff] }
 0x93f   : > { %v5910_v44 = vpop.eup %5909  ;;  %v3579_v27 = vrot.slane %v10234_v39, 6 }
 0x940   : > { %5250 = vmatprep.subr.bf16.mxu0 %v5249_v48  ;;  %v3370_v35 = vpop.xlane.xlu1 %3369  ;;  %v3472_v5 = vmul.f32 %v5910_v44, %v10224_v1  ;;  %v3471_v33 = vmul.f32 %v5910_v44, %v10227_v17  ;;  %v10236_v48 = vld [vmem:[#allocation28_spill] sm:$0xff] }
 0x941   : > { %5915 = vrcp.f32 %v3370_v35  ;;  %v10237_v35 = vld [vmem:[#allocation29_spill] sm:$0xff] }
 0x943   : > { %v5912_v52 = vpop.eup %5911 }
 0x944   : > { %5252 = vmatpush1.bf16.xpose.msra.mxu0 %v5251_v43  ;;  %v3373_v3 = vpop.xlane.xlu0 %3372  ;;  %v3474_v50 = vmul.f32 %v5912_v52, %v10225_v0  ;;  %v3473_v62 = vmul.f32 %v5912_v52, %v10226_v60  ;;  %v10238_v52 = vld [vmem:[#allocation20_spill] sm:$0xff] }
 0x945   : > { %5917 = vrcp.f32 %v3373_v3 }
 0x946   : > { %v5253_v59 = vpack.c.bf16 %v3474_v50, %v3472_v5  ;;  %v5255_v16 = vpack.c.bf16 %v3473_v62, %v3471_v33 }
 0x947   : > { %v5914_v15 = vpop.eup %5913 }
 0x948   : > { %5254 = vmatprep.subr.bf16.mxu0 %v5253_v59  ;;  %v3376_v19 = vpop.xlane.xlu1 %3375  ;;  %v3476_v34 = vmul.f32 %v5914_v15, %v8721_v23  ;;  %v3475_v61 = vmul.f32 %v5914_v15, %v10228_v46 }
 0x949   : > { %5919 = vrcp.f32 %v3376_v19 }
 0x94b   : > { %v5916_v56 = vpop.eup %5915 }
 0x94c   : > { %5256 = vmatpush1.bf16.xpose.msra.mxu0 %v5255_v16  ;;  %v3379_v26 = vpop.xlane.xlu0 %3378  ;;  %v3478_v8 = vmul.f32 %v5916_v56, %v8729_v2  ;;  %v3477_v10 = vmul.f32 %v5916_v56, %v8727_v13 }
 0x94d   : > { %5921 = vrcp.f32 %v3379_v26 }
 0x94e   : > { %v5257_v6 = vpack.c.bf16 %v3478_v8, %v3476_v34  ;;  %v5259_v49 = vpack.c.bf16 %v3477_v10, %v3475_v61 }
 0x94f   : > { %v5918_v9 = vpop.eup %5917 }
 0x950   : > { %3582 = vxpose.xlu0.b32.start.end [1/1] (short) %v3578_v14, 128  ;;  %5258 = vmatprep.subr.bf16.mxu0 %v5257_v6  ;;  %v3382_v25 = vpop.xlane.xlu1 %3381  ;;  %v3480_v23 = vmul.f32 %v5918_v9, %v10230_v51  ;;  %v3479_v58 = vmul.f32 %v5918_v9, %v10233_v38  ;;  %v10239_v38 = vld [vmem:[#allocation6_spill] sm:$0xff] }
 0x951   : > { %5923 = vrcp.f32 %v3382_v25 }
 0x953   : > { %v5920_v12 = vpop.eup %5919 }
 0x954   : > { %5260 = vmatpush1.bf16.xpose.msra.mxu0 %v5259_v49  ;;  %v3482_v2 = vmul.f32 %v5920_v12, %v10231_v45  ;;  %v3481_v13 = vmul.f32 %v5920_v12, %v10232_v24 }
 0x956   : > { %v5261_v21 = vpack.c.bf16 %v3482_v2, %v3480_v23  ;;  %v5263_v36 = vpack.c.bf16 %v3481_v13, %v3479_v58 }
 0x957   : > { %v5922_v37 = vpop.eup %5921 }
 0x958   : > { %5262 = vmatprep.subr.bf16.mxu0 %v5261_v21  ;;  %v3484_v47 = vmul.f32 %v5922_v37, %v10235_v55  ;;  %v3483_v3 = vmul.f32 %v5922_v37, %v10238_v52  ;;  %v10241_v21 = vld [vmem:[#allocation5_spill] sm:$0xff] }
 0x95b   : > { %3614 = vxpose.xlu1.b32.start.end [1/1] (short) %v3579_v27, 128  ;;  %v5924_v57 = vpop.eup %5923 }
 0x95c   : > { %5264 = vmatpush1.bf16.xpose.msra.mxu0 %v5263_v36  ;;  %v3486_v43 = vmul.f32 %v5924_v57, %v10236_v48  ;;  %v3485_v44 = vmul.f32 %v5924_v57, %v10237_v35  ;;  %v3646_v36 = vrot.slane %v10241_v21, 6 }
 0x95e   : > { %v5265_v1 = vpack.c.bf16 %v3486_v43, %v3484_v47  ;;  %v5267_v5 = vpack.c.bf16 %v3485_v44, %v3483_v3 }
 0x960   : > { %5266 = vmatprep.subr.bf16.mxu0 %v5265_v1 }
 0x964   : > { %5268 = vmatpush1.bf16.xpose.msra.mxu0 %v5267_v5 }
 0x998   : > { %v3385_v0 = vpop.xlane.xlu0 %3384 }
 0x999   : > { %5925 = vrcp.f32 %v3385_v0 }
 0x99c   : > { %v3388_v50 = vpop.xlane.xlu1 %3387 }
 0x99d   : > { %5927 = vrcp.f32 %v3388_v50 }
 0x9a0   : > { %v3391_v60 = vpop.xlane.xlu0 %3390 }
 0x9a1   : > { %5929 = vrcp.f32 %v3391_v60 }
 0x9a3   : > { %v5926_v17 = vpop.eup %5925 }
 0x9a4   : > { %v3394_v62 = vpop.xlane.xlu1 %3393  ;;  %v3488_v16 = vmul.f32 %v5926_v17, %v8773_v32  ;;  %v3487_v15 = vmul.f32 %v5926_v17, %v8771_v30 }
 0x9a5   : > { %5931 = vrcp.f32 %v3394_v62 }
 0x9a7   : > { %v5928_v33 = vpop.eup %5927 }
 0x9a8   : > { %v3397_v59 = vpop.xlane.xlu0 %3396  ;;  %v3490_v19 = vmul.f32 %v5928_v33, %v8781_v63  ;;  %v3489_v56 = vmul.f32 %v5928_v33, %v8779_v20 }
 0x9a9   : > { %5933 = vrcp.f32 %v3397_v59 }
 0x9aa   : > { %v5269_v26 = vpack.c.bf16 %v3490_v19, %v3488_v16  ;;  %v5271_v34 = vpack.c.bf16 %v3489_v56, %v3487_v15 }
 0x9ab   : > { %v5930_v10 = vpop.eup %5929 }
 0x9ac   : > { %5270 = vmatprep.subr.bf16.mxu0 %v5269_v26  ;;  %v3492_v22 = vmul.f32 %v5930_v10, %v8793_v11  ;;  %v3491_v63 = vmul.f32 %v5930_v10, %v8791_v53  ;;  %v6362_v26 = vmov 0  }
 0x9ad   : > { %v3400_v8 = vpop.xlane.xlu1 %3399  ;;  %5272 = vmatpush1.bf16.xpose.msra.mxu0 %v5271_v34  ;;  %5364 = vset.pattern.permute.xlu1 %v6362_v26 }
 0x9ae   : > { %5935 = vrcp.f32 %v3400_v8  ;;  %5363 = vset.pattern.permute.xlu0 %v6362_v26 }
 0x9af   : > { %v5932_v46 = vpop.eup %5931 }
 0x9b0   : > { %v3403_v61 = vpop.xlane.xlu0 %3402  ;;  %v3494_v32 = vmul.f32 %v5932_v46, %v8801_v40  ;;  %v3493_v30 = vmul.f32 %v5932_v46, %v8799_v41 }
 0x9b1   : > { %5937 = vrcp.f32 %v3403_v61 }
 0x9b2   : > { %v5273_v14 = vpack.c.bf16 %v3494_v32, %v3492_v22  ;;  %v5275_v20 = vpack.c.bf16 %v3493_v30, %v3491_v63  ;;  %v10243_v30 = vld [vmem:[#allocation14_spill] sm:$0xff] }
 0x9b3   : > { %v5934_v49 = vpop.eup %5933 }
 0x9b4   : > { %5274 = vmatprep.subr.bf16.mxu0 %v5273_v14  ;;  %v3496_v9 = vmul.f32 %v5934_v49, %v8813_v29  ;;  %v3495_v11 = vmul.f32 %v5934_v49, %v8811_v18  ;;  %v3647_v18 = vrot.slane %v10239_v38, 6 }
 0x9b5   : > { %v3406_v6 = vpop.xlane.xlu1 %3405  ;;  %5276 = vmatpush1.bf16.xpose.msra.mxu0 %v5275_v20  ;;  %v10245_v20 = vld [vmem:[#allocation17_spill] sm:$0xff] }
 0x9b6   : > { %5939 = vrcp.f32 %v3406_v6 }
 0x9b8   : > { %v5936_v25 = vpop.eup %5935 }
 0x9b9   : > { %v3498_v12 = vmul.f32 %v5936_v25, %v8819_v31  ;;  %v3497_v40 = vmul.f32 %v5936_v25, %v8817_v42  ;;  %v10240_v42 = vld [vmem:[#allocation7_spill] sm:$0xff] }
 0x9ba   : > { %v3503_v58 = vrot.slane %v10240_v42, 4  ;;  %v6289_v25 = vld [vmem:[%s9900_s3] sm:$0xff] }
 0x9bb   : > { %v5277_v53 = vpack.c.bf16 %v3498_v12, %v3496_v9  ;;  %v5279_v51 = vpack.c.bf16 %v3497_v40, %v3495_v11  ;;  %v5938_v41 = vpop.eup %5937  ;;  %v6290_v11 = vld [vmem:[%s9900_s3 + $0x8] sm:$0xff] }
 0x9bc   : > { %v3500_v45 = vmul.f32 %v5938_v41, %v8829_v28  ;;  %v3499_v24 = vmul.f32 %v5938_v41, %v8827_v54  ;;  %v10242_v28 = vmov 0.0   ;;  %v6291_v41 = vld [vmem:[%s9900_s3 + $0x10] sm:$0xff] }
 0x9bd   : > { %5278 = vmatprep.subr.bf16.mxu0 %v5277_v53 }
 0x9be   : > { %5280 = vmatpush1.bf16.xpose.msra.mxu0 %v5279_v51 }
 0x9c0   : > { %v5940_v23 = vpop.eup %5939 }
 0x9c1   : > { %v3502_v2 = vmul.f32 %v5940_v23, %v8835_v4  ;;  %v3501_v29 = vmul.f32 %v5940_v23, %v8833_v7 }
 0x9c3   : > { %v5281_v13 = vpack.c.bf16 %v3502_v2, %v3500_v45  ;;  %v5283_v31 = vpack.c.bf16 %v3501_v29, %v3499_v24  ;;  %v6292_v2 = vld [vmem:[%s9900_s3 + $0x18] sm:$0xff] }
 0x9c5   : > { %5282 = vmatprep.subr.bf16.mxu0 %v5281_v13 }
 0x9c6   : > { %5284 = vmatpush1.bf16.xpose.msra.mxu0 %v5283_v31  ;;  %v6293_v31 = vld [vmem:[%s9900_s3 + $0x20] sm:$0xff] }
 0x9c7   : > { %5050 = vmatprep.subr.msk.mxu0 %vm795_vm1, %v3647_v18 }
 0x9cd   : > { %3572 = vmatmul.mubr.f32.vlgmr.msra.gmra.mrb[66].mxu0 %v3503_v58  ;;  %v6294_v58 = vld [vmem:[%s9900_s3 + $0x28] sm:$0xff] }
 0x9ce   : > { %5051 = vmatpush1.msk.msra.mxu0 %vm795_vm1, %v3646_v36  ;;  %3812 = vmatprep.mubr.f32.mxu0 %v10242_v28 }
 0x9d0   : > { %v3598_v54 = vpop.trf.xlu0 }
 0x9d1   : > { %5052 = vmatmul.mubr.msk.f32.vlgmr.msra.gmra.mrb[68].mxu0 %vm698_vm2, %v3598_v54 }
 0x9d2   : > { %3818 = vmatprep.mubr.f32.mxu0 %v10242_v28 }
 0x9d4   : > { %v3599_v7 = vpop.trf.xlu0 }
 0x9d5   : > { %5053 = vmatmul.mubr.msk.f32.gmra.mrb[70].mxu0 %vm698_vm2, %v3599_v7  ;;  %v6295_v7 = vld [vmem:[%s9900_s3 + $0x30] sm:$0xff] }
 0x9d6   : > { %3824 = vmatprep.mubr.f32.mxu0 %v10242_v28 }
 0x9d8   : > { %v3600_v4 = vpop.trf.xlu0 }
 0x9d9   : > { %5054 = vmatmul.mubr.msk.f32.gmra.mrb[72].mxu0 %vm698_vm2, %v3600_v4 }
 0x9da   : > { %3830 = vmatprep.mubr.f32.mxu0 %v10242_v28 }
 0x9db   : > { %v3630_v43 = vpop.trf.xlu1 }
 0x9dc   : > { %v3601_v39 = vpop.trf.xlu0 }
 0x9dd   : > { %5055 = vmatmul.mubr.msk.f32.gmra.mrb[74].mxu0 %vm698_vm2, %v3601_v39 }
 0x9de   : > { %3836 = vmatprep.mubr.f32.mxu0 %v10242_v28 }
 0x9df   : > { %v3631_v52 = vpop.trf.xlu1 }
 0x9e0   : > { %v3602_v27 = vpop.trf.xlu0 }
 0x9e1   : > { %5056 = vmatmul.mubr.msk.f32.gmra.mrb[76].mxu0 %vm698_vm2, %v3602_v27  ;;  %v6296_v27 = vld [vmem:[%s9900_s3 + $0x38] sm:$0xff] }
 0x9e2   : > { %3842 = vmatprep.mubr.f32.mxu0 %v10242_v28 }
 0x9e3   : > { %v3632_v1 = vpop.trf.xlu1 }
 0x9e4   : > { %v3603_v37 = vpop.trf.xlu0 }
 0x9e5   : > { %5057 = vmatmul.mubr.msk.f32.gmra.mrb[78].mxu0 %vm698_vm2, %v3603_v37 }
 0x9e6   : > { %3848 = vmatprep.mubr.f32.mxu0 %v10242_v28 }
 0x9e7   : > { %v3633_v50 = vpop.trf.xlu1 }
 0x9e8   : > { %v3604_v57 = vpop.trf.xlu0 }
 0x9e9   : > { %5058 = vmatmul.mubr.msk.f32.gmra.mrb[80].mxu0 %vm698_vm2, %v3604_v57 }
 0x9ea   : > { %3854 = vmatprep.mubr.f32.mxu0 %v10242_v28 }
 0x9eb   : > { %v3634_v62 = vpop.trf.xlu1 }
 0x9ec   : > { %v3605_v55 = vpop.trf.xlu0 }
 0x9ed   : > { %5059 = vmatmul.mubr.msk.f32.gmra.mrb[82].mxu0 %vm698_vm2, %v3605_v55 }
 0x9ee   : > { %3860 = vmatprep.mubr.f32.mxu0 %v10242_v28 }
 0x9ef   : > { %v3635_v17 = vpop.trf.xlu1 }
 0x9f0   : > { %v3606_v47 = vpop.trf.xlu0 }
 0x9f1   : > { %5060 = vmatmul.mubr.msk.f32.gmra.mrb[84].mxu0 %vm698_vm2, %v3606_v47 }
 0x9f2   : > { %3866 = vmatprep.mubr.f32.mxu0 %v10242_v28 }
 0x9f3   : > { %v3636_v33 = vpop.trf.xlu1 }
 0x9f4   : > { %v3607_v48 = vpop.trf.xlu0 }
 0x9f5   : > { %5061 = vmatmul.mubr.msk.f32.gmra.mrb[86].mxu0 %vm698_vm2, %v3607_v48 }
 0x9f6   : > { %3872 = vmatprep.mubr.f32.mxu0 %v10242_v28 }
 0x9f7   : > { %v3637_v59 = vpop.trf.xlu1 }
 0x9f8   : > { %v3608_v35 = vpop.trf.xlu0 }
 0x9f9   : > { %5062 = vmatmul.mubr.msk.f32.gmra.mrb[88].mxu0 %vm698_vm2, %v3608_v35 }
 0x9fa   : > { %3878 = vmatprep.mubr.f32.mxu0 %v10242_v28 }
 0x9fb   : > { %v3638_v16 = vpop.trf.xlu1 }
 0x9fc   : > { %v3609_v44 = vpop.trf.xlu0 }
 0x9fd   : > { %5063 = vmatmul.mubr.msk.f32.gmra.mrb[90].mxu0 %vm698_vm2, %v3609_v44 }
 0x9fe   : > { %3884 = vmatprep.mubr.f32.mxu0 %v10242_v28 }
 0x9ff   : > { %v3639_v19 = vpop.trf.xlu1 }
 0xa00   : > { %v3610_v3 = vpop.trf.xlu0 }
 0xa01   : > { %5064 = vmatmul.mubr.msk.f32.gmra.mrb[92].mxu0 %vm698_vm2, %v3610_v3 }
 0xa02   : > { %3890 = vmatprep.mubr.f32.mxu0 %v10242_v28 }
 0xa03   : > { %v3640_v15 = vpop.trf.xlu1 }
 0xa04   : > { %v3611_v5 = vpop.trf.xlu0 }
 0xa05   : > { %5065 = vmatmul.mubr.msk.f32.gmra.mrb[94].mxu0 %vm698_vm2, %v3611_v5 }
 0xa06   : > { %3896 = vmatprep.mubr.f32.mxu0 %v10242_v28 }
 0xa07   : > { %v3641_v56 = vpop.trf.xlu1 }
 0xa08   : > { %v3612_v0 = vpop.trf.xlu0 }
 0xa09   : > { %5066 = vmatmul.mubr.msk.f32.gmra.mrb[96].mxu0 %vm698_vm2, %v3612_v0  ;;  %v539_v0 = vld [vmem:[%s9903_s6] sm:$0xff] }
 0xa0a   : > { %3902 = vmatprep.mubr.f32.mxu0 %v10242_v28 }
 0xa0b   : > { %v3642_v34 = vpop.trf.xlu1 }
 0xa0c   : > { %v3613_v60 = vpop.trf.xlu0 }
 0xa0d   : > { %5067 = vmatmul.mubr.msk.f32.gmra.mrb[98].mxu0 %vm698_vm2, %v3613_v60 }
 0xa0e   : > { %3908 = vmatprep.mubr.f32.mxu0 %v10242_v28 }
 0xa0f   : > { %v3643_v8 = vpop.trf.xlu1 }
 0xa11   : > { %5068 = vmatmul.mubr.msk.f32.gmra.mrb[100].mxu0 %vm698_vm2, %v3630_v43 }
 0xa12   : > { %3914 = vmatprep.mubr.f32.mxu0 %v10242_v28 }
 0xa13   : > { %v3644_v10 = vpop.trf.xlu1 }
 0xa15   : > { %5069 = vmatmul.mubr.msk.f32.gmra.mrb[102].mxu0 %vm698_vm2, %v3631_v52 }
 0xa16   : > { %3920 = vmatprep.mubr.f32.mxu0 %v10242_v28 }
 0xa17   : > { %v3645_v46 = vpop.trf.xlu1 }
 0xa19   : > { %5070 = vmatmul.mubr.msk.f32.gmra.mrb[104].mxu0 %vm698_vm2, %v3632_v1  ;;  %v540_v1 = vld [vmem:[%s9903_s6 + $0x8] sm:$0xff] }
 0xa1a   : > { %3926 = vmatprep.mubr.f32.mxu0 %v10242_v28 }
 0xa1d   : > { %5071 = vmatmul.mubr.msk.f32.gmra.mrb[106].mxu0 %vm698_vm2, %v3633_v50 }
 0xa1e   : > { %3932 = vmatprep.mubr.f32.mxu0 %v10242_v28 }
 0xa21   : > { %5072 = vmatmul.mubr.msk.f32.gmra.mrb[108].mxu0 %vm698_vm2, %v3634_v62 }
 0xa22   : > { %3938 = vmatprep.mubr.f32.mxu0 %v10242_v28 }
 0xa25   : > { %5073 = vmatmul.mubr.msk.f32.gmra.mrb[110].mxu0 %vm698_vm2, %v3635_v17 }
 0xa26   : > { %3944 = vmatprep.mubr.f32.mxu0 %v10242_v28 }
 0xa29   : > { %5074 = vmatmul.mubr.msk.f32.gmra.mrb[112].mxu0 %vm698_vm2, %v3636_v33 }
 0xa2a   : > { %3950 = vmatprep.mubr.f32.mxu0 %v10242_v28 }
 0xa2d   : > { %5075 = vmatmul.mubr.msk.f32.gmra.mrb[114].mxu0 %vm698_vm2, %v3637_v59 }
 0xa2e   : > { %3956 = vmatprep.mubr.f32.mxu0 %v10242_v28 }
 0xa31   : > { %5076 = vmatmul.mubr.msk.f32.gmra.mrb[116].mxu0 %vm698_vm2, %v3638_v16 }
 0xa32   : > { %3962 = vmatprep.mubr.f32.mxu0 %v10242_v28 }
 0xa35   : > { %5077 = vmatmul.mubr.msk.f32.gmra.mrb[118].mxu0 %vm698_vm2, %v3639_v19 }
 0xa36   : > { %3968 = vmatprep.mubr.f32.mxu0 %v10242_v28 }
 0xa39   : > { %5078 = vmatmul.mubr.msk.f32.gmra.mrb[120].mxu0 %vm698_vm2, %v3640_v15 }
 0xa3a   : > { %3974 = vmatprep.mubr.f32.mxu0 %v10242_v28 }
 0xa3d   : > { %5079 = vmatmul.mubr.msk.f32.gmra.mrb[122].mxu0 %vm698_vm2, %v3641_v56 }
 0xa3e   : > { %3980 = vmatprep.mubr.f32.mxu0 %v10242_v28 }
 0xa41   : > { %5080 = vmatmul.mubr.msk.f32.gmra.mrb[124].mxu0 %vm698_vm2, %v3642_v34 }
 0xa42   : > { %3986 = vmatprep.mubr.f32.mxu0 %v10242_v28 }
 0xa45   : > { %5081 = vmatmul.mubr.msk.f32.gmra.mrb[126].mxu0 %vm698_vm2, %v3643_v8 }
 0xa46   : > { %3992 = vmatprep.mubr.f32.mxu0 %v10242_v28 }
 0xa49   : > { %5082 = vmatmul.mubr.msk.f32.gmra.mrb[128].mxu0 %vm698_vm2, %v3644_v10  ;;  %v6297_v10 = vld [vmem:[%s9900_s3 + $0x50] sm:$0xff] }
 0xa4a   : > { %3998 = vmatprep.mubr.f32.mxu0 %v10242_v28 }
 0xa4d   : > { %5083 = vmatmul.mubr.msk.f32.gmra.mrb[130].mxu0 %vm698_vm2, %v3645_v46 }
 0xaa0   : > { %v3573_v61 = vpop.f32.mrb[66].mxu0 }
 0xaa1   : > { %v4568_v22 = vrot.slane %v3573_v61, 4  ;;  %v3575_v32 = vpop.f32.mrb[67].mxu0  ;;  %v6298_v61 = vld [vmem:[%s9900_s3 + $0x58] sm:$0xff] }
 0xaa2   : > { %v4569_v63 = vrot.slane %v3575_v32, 4 }
 0xaa3   : > { %v8959_v14 = vsel %vm4580_vm3, %v10243_v30, %v4568_v22 }
 0xaa4   : > { %10244 = vst [vmem:[#allocation24_spill] sm:$0xff] %v8959_v14  ;;  %v8962_v6 = vsel %vm4580_vm3, %v10245_v20, %v4569_v63  ;;  %v3814_v49 = vpop.f32.mrb[68].mxu0  ;;  %v6299_v20 = vld [vmem:[%s9900_s3 + $0xb0] sm:$0xff] }
 0xaa5   : > { %10246 = vst [vmem:[#allocation13_spill] sm:$0xff] %v8962_v6  ;;  %v8967_v9 = vadd.f32 %v6289_v25, %v3814_v49  ;;  %v3816_v12 = vpop.f32.mrb[69].mxu0  ;;  %v6300_v25 = vld [vmem:[%s9900_s3 + $0xb8] sm:$0xff] }
 0xaa6   : > { %v8972_v40 = vadd.f32 %v6290_v11, %v3816_v12 }
 0xaa8   : > { %v4005_v53 = vmax.f32 %v8967_v9, %v8972_v40  ;;  %v3820_v51 = vpop.f32.mrb[70].mxu0 }
 0xaa9   : > { %v8979_v23 = vadd.f32 %v6291_v41, %v3820_v51  ;;  %v3822_v45 = vpop.f32.mrb[71].mxu0  ;;  %v6302_v41 = vld [vmem:[%s9900_s3 + $0x48] sm:$0xff] }
 0xaaa   : > { %v8984_v24 = vadd.f32 %v6292_v2, %v3822_v45  ;;  %4006 = vmax.xlane.f32.xlu0 %v4005_v53  ;;  %v6301_v53 = vld [vmem:[%s9900_s3 + $0x40] sm:$0xff] }
 0xaac   : > { %v4008_v29 = vmax.f32 %v8979_v23, %v8984_v24  ;;  %v3826_v13 = vpop.f32.mrb[72].mxu0 }
 0xaad   : > { %v8991_v38 = vadd.f32 %v6293_v31, %v3826_v13  ;;  %v3828_v18 = vpop.f32.mrb[73].mxu0  ;;  %v6304_v31 = vld [vmem:[%s9900_s3 + $0x68] sm:$0xff] }
 0xaae   : > { %v8996_v21 = vadd.f32 %v6294_v58, %v3828_v18  ;;  %4009 = vmax.xlane.f32.xlu1 %v4008_v29  ;;  %v6303_v29 = vld [vmem:[%s9900_s3 + $0x60] sm:$0xff] }
 0xab0   : > { %v4011_v36 = vmax.f32 %v8991_v38, %v8996_v21  ;;  %v3832_v54 = vpop.f32.mrb[74].mxu0 }
 0xab1   : > { %v9003_v4 = vadd.f32 %v6295_v7, %v3832_v54  ;;  %v3834_v39 = vpop.f32.mrb[75].mxu0  ;;  %v6306_v7 = vld [vmem:[%s9900_s3 + $0xd8] sm:$0xff] }
 0xab2   : > { %v9008_v37 = vadd.f32 %v6296_v27, %v3834_v39  ;;  %4012 = vmax.xlane.f32.xlu0 %v4011_v36  ;;  %v6305_v36 = vld [vmem:[%s9900_s3 + $0xd0] sm:$0xff] }
 0xab4   : > { %v4014_v57 = vmax.f32 %v9003_v4, %v9008_v37  ;;  %v3838_v55 = vpop.f32.mrb[76].mxu0 }
 0xab5   : > { %v3840_v47 = vpop.f32.mrb[77].mxu0  ;;  %v9065_v51 = vadd.f32 %v6301_v53, %v3838_v55 }
 0xab6   : > { %4015 = vmax.xlane.f32.xlu1 %v4014_v57  ;;  %v9070_v45 = vadd.f32 %v6302_v41, %v3840_v47 }
 0xab8   : > { %v3844_v48 = vpop.f32.mrb[78].mxu0  ;;  %v4017_v57 = vmax.f32 %v9065_v51, %v9070_v45 }
 0xab9   : > { %v3846_v43 = vpop.f32.mrb[79].mxu0  ;;  %v9041_v46 = vadd.f32 %v6297_v10, %v3844_v48  ;;  %v6307_v48 = vld [vmem:[%s9900_s3 + $0x70] sm:$0xff]  ;;  %v6311_v10 = vld [vmem:[%s9900_s3 + $0x80] sm:$0xff] }
 0xaba   : > { %v9046_v22 = vadd.f32 %v6298_v61, %v3846_v43 }
 0xabc   : > { %v3850_v35 = vpop.f32.mrb[80].mxu0  ;;  %v4020_v30 = vmax.f32 %v9041_v46, %v9046_v22 }
 0xabd   : > { %v3852_v44 = vpop.f32.mrb[81].mxu0  ;;  %v9077_v13 = vadd.f32 %v6303_v29, %v3850_v35  ;;  %v6308_v35 = vld [vmem:[%s9900_s3 + $0x78] sm:$0xff] }
 0xabe   : > { %v9082_v18 = vadd.f32 %v6304_v31, %v3852_v44  ;;  %v6315_v31 = vld [vmem:[%s9900_s3 + $0x90] sm:$0xff] }
 0xac0   : > { %v3856_v52 = vpop.f32.mrb[82].mxu0  ;;  %v4023_v47 = vmax.f32 %v9077_v13, %v9082_v18 }
 0xac1   : > { %v3858_v3 = vpop.f32.mrb[83].mxu0  ;;  %v9103_v43 = vadd.f32 %v6307_v48, %v3856_v52  ;;  %v6310_v52 = vld [vmem:[%s9900_s3 + $0xf8] sm:$0xff] }
 0xac2   : > { %v9108_v44 = vadd.f32 %v6308_v35, %v3858_v3 }
 0xac4   : > { %v9015_v5 = vpop.f32.mrb[84].mxu0 }
 0xac5   : > { %v9020_v50 = vpop.f32.mrb[85].mxu0  ;;  %v9132_v61 = vadd.f32 %v6311_v10, %v9015_v5  ;;  %v6314_v5 = vld [vmem:[%s9900_s3 + $0x118] sm:$0xff] }
 0xac7   : > { %548 = vperm.xlu1 %5364, %v540_v1  }
 0xac8   : > { %543 = vperm.xlu0 %5363, %v539_v0   ;;  %v9022_v60 = vpop.f32.mrb[86].mxu0  ;;  %v6309_v0 = vld [vmem:[%s9900_s3 + $0xf0] sm:$0xff] }
 0xac9   : > { %v9024_v62 = vpop.f32.mrb[87].mxu0 }
 0xacc   : > { %v9026_v17 = vpop.f32.mrb[88].mxu0 }
 0xacd   : > { %v9028_v33 = vpop.f32.mrb[89].mxu0 }
 0xad0   : > { %v3880_v59 = vpop.f32.mrb[90].mxu0 }
 0xad1   : > { %v3882_v16 = vpop.f32.mrb[91].mxu0  ;;  %v9053_v49 = vadd.f32 %v6299_v20, %v3880_v59  ;;  %v6313_v20 = vld [vmem:[%s9900_s3 + $0x110] sm:$0xff] }
 0xad2   : > { %v9058_v12 = vadd.f32 %v6300_v25, %v3882_v16 }
 0xad4   : > { %v9030_v19 = vpop.f32.mrb[92].mxu0  ;;  %v4038_v58 = vmax.f32 %v9053_v49, %v9058_v12 }
 0xad5   : > { %v9032_v15 = vpop.f32.mrb[93].mxu0 }
 0xad8   : > { %v3892_v56 = vpop.f32.mrb[94].mxu0 }
 0xad9   : > { %v3894_v26 = vpop.f32.mrb[95].mxu0  ;;  %v9089_v54 = vadd.f32 %v6305_v36, %v3892_v56  ;;  %v6316_v36 = vld [vmem:[%s9900_s3 + $0x98] sm:$0xff] }
 0xada   : > { %v9094_v39 = vadd.f32 %v6306_v7, %v3894_v26  ;;  %v4026_v26 = vmax.f32 %v9103_v43, %v9108_v44  ;;  %v9164_v7 = vadd.f32 %v6316_v36, %v9024_v62 }
 0xadc   : > { %v9034_v34 = vpop.f32.mrb[96].mxu0  ;;  %v4044_v1 = vmax.f32 %v9089_v54, %v9094_v39 }
 0xadd   : > { %v9036_v8 = vpop.f32.mrb[97].mxu0 }
 0xae0   : > { %v3904_v32 = vpop.f32.mrb[98].mxu0 }
 0xae1   : > { %v3906_v63 = vpop.f32.mrb[99].mxu0  ;;  %v9115_v59 = vadd.f32 %v6309_v0, %v3904_v32  ;;  %v6312_v32 = vld [vmem:[%s9900_s3 + $0x88] sm:$0xff] }
 0xae2   : > { %v9120_v16 = vadd.f32 %v6310_v52, %v3906_v63  ;;  %v9138_v63 = vadd.f32 %v6312_v32, %v9020_v50  ;;  %v6320_v52 = vld [vmem:[%s9900_s3 + $0xa8] sm:$0xff] }
 0xae4   : > { %v9060_v11 = vpop.f32.mrb[100].mxu0  ;;  %v4029_v29 = vmax.f32 %v9132_v61, %v9138_v63 }
 0xae5   : > { %v9072_v2 = vpop.f32.mrb[101].mxu0 }
 0xae7   : > { %4021 = vmax.xlane.f32.xlu0 %v4020_v30  ;;  %v4050_v30 = vmax.f32 %v9115_v59, %v9120_v16 }
 0xae8   : > { %v3916_v27 = vpop.f32.mrb[102].mxu0 }
 0xae9   : > { %v3918_v55 = vpop.f32.mrb[103].mxu0  ;;  %v9145_v25 = vadd.f32 %v6313_v20, %v3916_v27 }
 0xaea   : > { %v9150_v53 = vadd.f32 %v6314_v5, %v3918_v55  ;;  %v6322_v5 = vld [vmem:[%s9900_s3 + $0x158] sm:$0xff] }
 0xaeb   : > { %4018 = vmax.xlane.f32.xlu1 %v4017_v57  ;;  %4039 = vmax.xlane.f32.xlu0 %v4038_v58  ;;  %v9158_v58 = vadd.f32 %v6315_v31, %v9022_v60  ;;  %v6317_v57 = vld [vmem:[%s9900_s3 + $0x130] sm:$0xff]  ;;  %v6318_v60 = vld [vmem:[%s9900_s3 + $0x138] sm:$0xff]  ;;  %v6324_v31 = vld [vmem:[%s9900_s3 + $0xc8] sm:$0xff] }
 0xaec   : > { %v9122_v56 = vpop.f32.mrb[104].mxu0  ;;  %10247 = vst [vmem:[#allocation8_spill] sm:$0xff] %v9150_v53  ;;  %v4056_v27 = vmax.f32 %v9145_v25, %v9150_v53  ;;  %v9216_v36 = vadd.f32 %v6324_v31, %v9032_v15  ;;  %v6326_v15 = vld [vmem:[%s9900_s3 + $0xe8] sm:$0xff] }
 0xaed   : > { %v9124_v3 = vpop.f32.mrb[105].mxu0  ;;  %v4032_v35 = vmax.f32 %v9158_v58, %v9164_v7 }
 0xaef   : > { %4024 = vmax.xlane.f32.xlu1 %v4023_v47  ;;  %4045 = vmax.xlane.f32.xlu0 %v4044_v1  ;;  %v6319_v1 = vld [vmem:[%s9900_s3 + $0xa0] sm:$0xff] }
 0xaf0   : > { %v3928_v41 = vpop.f32.mrb[106].mxu0  ;;  %v9184_v0 = vadd.f32 %v6319_v1, %v9026_v17  ;;  %v6325_v1 = vld [vmem:[%s9900_s3 + $0xe0] sm:$0xff] }
 0xaf1   : > { %v3930_v50 = vpop.f32.mrb[107].mxu0  ;;  %v9171_v55 = vadd.f32 %v6317_v57, %v3928_v41 }
 0xaf2   : > { %v9176_v47 = vadd.f32 %v6318_v60, %v3930_v50  ;;  %v6323_v50 = vld [vmem:[%s9900_s3 + $0xc0] sm:$0xff] }
 0xaf3   : > { %4027 = vmax.xlane.f32.xlu1 %v4026_v26  ;;  %4051 = vmax.xlane.f32.xlu0 %v4050_v30  ;;  %10248 = vst [vmem:[#allocation18_spill] sm:$0xff] %v9171_v55  ;;  %v9190_v26 = vadd.f32 %v6320_v52, %v9028_v33  ;;  %v6321_v30 = vld [vmem:[%s9900_s3 + $0x150] sm:$0xff]  ;;  %v9230_v52 = vadd.f32 %v6325_v1, %v9034_v34  ;;  %v6327_v34 = vld [vmem:[%s9900_s3 + $0x100] sm:$0xff] }
 0xaf4   : > { %10249 = vst [vmem:[#allocation19_spill] sm:$0xff] %v9176_v47  ;;  %v3934_v48 = vpop.f32.mrb[108].mxu0  ;;  %v4062_v10 = vmax.f32 %v9171_v55, %v9176_v47 }
 0xaf5   : > { %v3936_v62 = vpop.f32.mrb[109].mxu0  ;;  %v4035_v33 = vmax.f32 %v9184_v0, %v9190_v26  ;;  %10252 = vst [vmem:[#allocation16_spill] sm:$0xff] %v9230_v52 }
 0xaf7   : > { %4030 = vmax.xlane.f32.xlu1 %v4029_v29  ;;  %4057 = vmax.xlane.f32.xlu0 %v4056_v27  ;;  %v9210_v29 = vadd.f32 %v6323_v50, %v9030_v19 }
 0xaf8   : > { %v3940_v32 = vpop.f32.mrb[110].mxu0 }
 0xaf9   : > { %v9197_v20 = vadd.f32 %v6321_v30, %v3940_v32  ;;  %v3942_v17 = vpop.f32.mrb[111].mxu0  ;;  %v4041_v19 = vmax.f32 %v9210_v29, %v9216_v36 }
 0xafa   : > { %v9202_v41 = vadd.f32 %v6322_v5, %v3942_v17  ;;  %v9248_v17 = vadd.f32 %v6327_v34, %v9060_v11  ;;  %v6329_v11 = vld [vmem:[%s9900_s3 + $0x120] sm:$0xff] }
 0xafb   : > { %10250 = vst [vmem:[#allocation21_spill] sm:$0xff] %v9197_v20  ;;  %4033 = vmax.xlane.f32.xlu1 %v4032_v35  ;;  %4063 = vmax.xlane.f32.xlu0 %v4062_v10  ;;  %v9236_v35 = vadd.f32 %v6326_v15, %v9036_v8  ;;  %v6328_v8 = vld [vmem:[%s9900_s3 + $0x108] sm:$0xff] }
 0xafc   : > { %10251 = vst [vmem:[#allocation15_spill] sm:$0xff] %v9202_v41  ;;  %v4068_v27 = vmax.f32 %v9197_v20, %v9202_v41  ;;  %v9220_v57 = vpop.f32.mrb[112].mxu0  ;;  %10254 = vst [vmem:[#allocation22_spill] sm:$0xff] %v9248_v17  ;;  %v9254_v5 = vadd.f32 %v6328_v8, %v9072_v2  ;;  %v6330_v2 = vld [vmem:[%s9900_s3 + $0x128] sm:$0xff] }
 0xafd   : > { %v9222_v60 = vpop.f32.mrb[113].mxu0  ;;  %10253 = vst [vmem:[#allocation3_spill] sm:$0xff] %v9236_v35  ;;  %v4047_v30 = vmax.f32 %v9230_v52, %v9236_v35 }
 0xafe   : > { %10255 = vst [vmem:[#allocation25_spill] sm:$0xff] %v9254_v5  ;;  %v4053_v31 = vmax.f32 %v9248_v17, %v9254_v5 }
 0xaff   : > { %4036 = vmax.xlane.f32.xlu1 %v4035_v33  ;;  %4069 = vmax.xlane.f32.xlu0 %v4068_v27  ;;  %v9266_v27 = vadd.f32 %v6329_v11, %v9122_v56  ;;  %v6331_v56 = vld [vmem:[%s9900_s3 + $0x140] sm:$0xff]  ;;  %v6332_v11 = vld [vmem:[%s9900_s3 + $0x148] sm:$0xff] }
 0xb00   : > { %v9238_v10 = vpop.f32.mrb[114].mxu0  ;;  %v9283_v8 = vadd.f32 %v6331_v56, %v3934_v48 }
 0xb01   : > { %v9240_v32 = vpop.f32.mrb[115].mxu0  ;;  %10256 = vst [vmem:[#allocation27_spill] sm:$0xff] %v9266_v27 }
 0xb02   : > { %10258 = vst [vmem:[#allocation4_spill] sm:$0xff] %v9283_v8 }
 0xb03   : > { %4042 = vmax.xlane.f32.xlu1 %v4041_v19  ;;  %v9272_v19 = vadd.f32 %v6330_v2, %v9124_v3  ;;  %v9288_v3 = vadd.f32 %v6332_v11, %v3936_v62 }
 0xb04   : > { %v9256_v33 = vpop.f32.mrb[116].mxu0 }
 0xb05   : > { %v9258_v50 = vpop.f32.mrb[117].mxu0  ;;  %10257 = vst [vmem:[#allocation23_spill] sm:$0xff] %v9272_v19  ;;  %v4059_v34 = vmax.f32 %v9266_v27, %v9272_v19  ;;  %10259 = vst [vmem:[#allocation26_spill] sm:$0xff] %v9288_v3  ;;  %v4065_v6 = vmax.f32 %v9283_v8, %v9288_v3 }
 0xb07   : > { %4048 = vmax.xlane.f32.xlu1 %v4047_v30 }
 0xb08   : > { %v9274_v1 = vpop.f32.mrb[118].mxu0 }
 0xb09   : > { %v9276_v15 = vpop.f32.mrb[119].mxu0 }
 0xb0b   : > { %4054 = vmax.xlane.f32.xlu1 %v4053_v31 }
 0xb0c   : > { %v9290_v30 = vpop.f32.mrb[120].mxu0 }
 0xb0d   : > { %v9292_v2 = vpop.f32.mrb[121].mxu0 }
 0xb0f   : > { %4060 = vmax.xlane.f32.xlu1 %v4059_v34 }
 0xb10   : > { %v9296_v14 = vpop.f32.mrb[122].mxu0 }
 0xb11   : > { %v9298_v28 = vpop.f32.mrb[123].mxu0 }
 0xb13   : > { %4066 = vmax.xlane.f32.xlu1 %v4065_v6 }
 0xb14   : > { %v9300_v48 = vpop.f32.mrb[124].mxu0 }
 0xb15   : > { %v9302_v56 = vpop.f32.mrb[125].mxu0 }
 0xb18   : > { %v9304_v62 = vpop.f32.mrb[126].mxu0 }
 0xb19   : > { %v9306_v31 = vpop.f32.mrb[127].mxu0 }
 0xb1c   : > { %v9308_v11 = vpop.f32.mrb[128].mxu0 }
 0xb1d   : > { %v9310_v42 = vpop.f32.mrb[129].mxu0 }
 0xb1e   : > { %10260 = vst [vmem:[#allocation28_spill] sm:$0xff] %v9310_v42 }
 0xb20   : > { %v9312_v41 = vpop.f32.mrb[130].mxu0 }
 0xb21   : > { %v9314_v34 = vpop.f32.mrb[131].mxu0 }
 0xb37   : > { %v4007_v3 = vpop.xlane.xlu0 %4006 }
 0xb38   : > { %v4101_v8 = vsub.f32 %v8967_v9, %v4007_v3  ;;  %v4102_v20 = vsub.f32 %v8972_v40, %v4007_v3 }
 0xb3a   : > { %v4165_v5 = vmul.f32 1.442695, %v4101_v8  ;;  %v4167_v17 = vmul.f32 1.442695, %v4102_v20  ;;  %v6333_v20 = vld [vmem:[%s9900_s3 + $0x160] sm:$0xff] }
 0xb3b   : > { %v4010_v6 = vpop.xlane.xlu1 %4009 }
 0xb3c   : > { %v4103_v19 = vsub.f32 %v8979_v23, %v4010_v6  ;;  %v4104_v27 = vsub.f32 %v8984_v24, %v4010_v6  ;;  %5941 = vpow2.f32 %v4165_v5  ;;  %v9328_v5 = vadd.f32 %v6333_v20, %v9220_v57  ;;  %v10264_v57 = vld [vmem:[#allocation12_spill] sm:$0xff] }
 0xb3d   : > { %5943 = vpow2.f32 %v4167_v17 }
 0xb3e   : > { %v4169_v55 = vmul.f32 1.442695, %v4103_v19  ;;  %v4171_v35 = vmul.f32 1.442695, %v4104_v27  ;;  %v6335_v19 = vld [vmem:[%s9900_s3 + $0x170] sm:$0xff] }
 0xb3f   : > { %v4013_v47 = vpop.xlane.xlu0 %4012 }
 0xb40   : > { %v4105_v52 = vsub.f32 %v8991_v38, %v4013_v47  ;;  %v4106_v42 = vsub.f32 %v8996_v21, %v4013_v47  ;;  %5945 = vpow2.f32 %v4169_v55  ;;  %v6334_v38 = vld [vmem:[%s9900_s3 + $0x168] sm:$0xff]  ;;  %v10261_v55 = vld [vmem:[#allocation9_spill] sm:$0xff] }
 0xb41   : > { %5947 = vpow2.f32 %v4171_v35  ;;  %v9334_v21 = vadd.f32 %v6334_v38, %v9222_v60  ;;  %v9352_v60 = vadd.f32 %v6335_v19, %v9238_v10  ;;  %v6337_v38 = vld [vmem:[%s9900_s3 + $0x180] sm:$0xff] }
 0xb42   : > { %v4173_v23 = vmul.f32 1.442695, %v4105_v52  ;;  %v10263_v52 = vld [vmem:[#allocation11_spill] sm:$0xff] }
 0xb43   : > { %v4016_v53 = vpop.xlane.xlu1 %4015  ;;  %v4071_v10 = vmax.f32 %v9328_v5, %v9334_v21 }
 0xb44   : > { %v4107_v9 = vsub.f32 %v9003_v4, %v4016_v53  ;;  %v4108_v40 = vsub.f32 %v9008_v37, %v4016_v53  ;;  %v4175_v4 = vmul.f32 1.442695, %v4106_v42  ;;  %v10262_v53 = vld [vmem:[#allocation10_spill] sm:$0xff]  ;;  %5949 = vpow2.f32 %v4173_v23 }
 0xb45   : > { %v6336_v42 = vld [vmem:[%s9900_s3 + $0x178] sm:$0xff] }
 0xb46   : > { %v4177_v17 = vmul.f32 1.442695, %v4107_v9  ;;  %v9358_v3 = vadd.f32 %v6336_v42, %v9240_v32  ;;  %v4179_v6 = vmul.f32 1.442695, %v4108_v40  ;;  %5951 = vpow2.f32 %v4175_v4 }
 0xb47   : > { %v544_v24 = vpop.permute.xlu0 %543  ;;  %v549_v8 = vpop.permute.xlu1 %548  ;;  %v9380_v4 = vadd.f32 %v6337_v38, %v9256_v33  ;;  %v6340_v33 = vld [vmem:[%s9900_s3 + $0x198] sm:$0xff]  ;;  %v6342_v38 = vld [vmem:[%s9900_s3 + $0x1a8] sm:$0xff] }
 0xb48   : > { %v9337_v37 = vadd.f32 %v10261_v55, %v544_v24  ;;  %v9340_v47 = vadd.f32 %v10262_v53, %v544_v24  ;;  %v9343_v35 = vadd.f32 %v10263_v52, %v549_v8  ;;  %v9346_v27 = vadd.f32 %v10264_v57, %v549_v8  ;;  %v9366_v8 = vpop.eup %5941  ;;  %v6338_v55 = vld [vmem:[%s9900_s3 + $0x188] sm:$0xff]  ;;  %v6339_v52 = vld [vmem:[%s9900_s3 + $0x190] sm:$0xff] }
 0xb49   : > { %5953 = vpow2.f32 %v4177_v17  ;;  %v4074_v32 = vmax.f32 %v9352_v60, %v9358_v3  ;;  %v9370_v40 = vpop.eup %5943  ;;  %v9386_v53 = vadd.f32 %v6338_v55, %v9258_v50  ;;  %v9392_v17 = vadd.f32 %v6339_v52, %v9274_v1  ;;  %v6343_v52 = vld [vmem:[%s9900_s3 + $0x1b0] sm:$0xff] }
 0xb4a   : > { %v4586_v9 = vadd.f32 %v9340_v47, %v9337_v37  ;;  %v4589_v24 = vadd.f32 %v9346_v27, %v9343_v35  ;;  %5955 = vpow2.f32 %v4179_v6  ;;  %v9372_v20 = vpop.eup %5945  ;;  %v9398_v57 = vadd.f32 %v6340_v33, %v9276_v15 }
 0xb4b   : > { %v9374_v23 = vpop.eup %5947  ;;  %v4293_v19 = vadd.f32 %v9370_v40, %v9366_v8  ;;  %v4077_v42 = vmax.f32 %v9380_v4, %v9386_v53  ;;  %v9426_v55 = vadd.f32 %v6342_v38, %v9292_v2  ;;  %v9432_v33 = vadd.f32 %v6343_v52, %v9296_v14 }
 0xb4c   : > { %4587 = vadd.xlane.f32.xlu1 %v4586_v9  ;;  %4590 = vadd.xlane.f32.xlu0 %v4589_v24  ;;  %v4296_v50 = vadd.f32 %v9374_v23, %v9372_v20  ;;  %v4080_v1 = vmax.f32 %v9392_v17, %v9398_v57 }
 0xb4e   : > { %v9406_v6 = vpop.eup %5949 }
 0xb4f   : > { %10265 = vst [vmem:[#allocation29_spill] sm:$0xff] %v9406_v6 }
 0xb50   : > { %4072 = vmax.xlane.f32.xlu1 %v4071_v10  ;;  %4075 = vmax.xlane.f32.xlu0 %v4074_v32  ;;  %v9410_v9 = vpop.eup %5951  ;;  %v6341_v10 = vld [vmem:[%s9900_s3 + $0x1a0] sm:$0xff] }
 0xb51   : > { %10266 = vst [vmem:[#allocation20_spill] sm:$0xff] %v9410_v9  ;;  %v9420_v32 = vadd.f32 %v6341_v10, %v9290_v30  ;;  %v6344_v30 = vld [vmem:[%s9900_s3 + $0x1b8] sm:$0xff] }
 0xb53   : > { %v9412_v15 = vpop.eup %5953 }
 0xb54   : > { %4294 = vadd.xlane.f32.xlu1 %v4293_v19  ;;  %4297 = vadd.xlane.f32.xlu0 %v4296_v50  ;;  %10267 = vst [vmem:[#allocation6_spill] sm:$0xff] %v9412_v15  ;;  %v9414_v24 = vpop.eup %5955  ;;  %v9438_v19 = vadd.f32 %v6344_v30, %v9298_v28  ;;  %v4299_v50 = vadd.f32 %v9410_v9, %v9406_v6 }
 0xb55   : > { %10268 = vst [vmem:[#allocation5_spill] sm:$0xff] %v9414_v24  ;;  %v4302_v2 = vadd.f32 %v9414_v24, %v9412_v15 }
 0xb56   : > { %v4086_v14 = vmax.f32 %v9432_v33, %v9438_v19 }
 0xb58   : > { %4078 = vmax.xlane.f32.xlu1 %v4077_v42  ;;  %4081 = vmax.xlane.f32.xlu0 %v4080_v1  ;;  %v4083_v42 = vmax.f32 %v9420_v32, %v9426_v55 }
 0xb5c   : > { %4300 = vadd.xlane.f32.xlu1 %v4299_v50  ;;  %4303 = vadd.xlane.f32.xlu0 %v4302_v2 }
 0xb60   : > { %4084 = vmax.xlane.f32.xlu1 %v4083_v42  ;;  %4087 = vmax.xlane.f32.xlu0 %v4086_v14 }
 0xb74   : > { %v4022_v1 = vpop.xlane.xlu0 %4021 }
 0xb75   : > { %v4111_v28 = vsub.f32 %v9041_v46, %v4022_v1  ;;  %v4112_v10 = vsub.f32 %v9046_v22, %v4022_v1 }
 0xb77   : > { %v4185_v38 = vmul.f32 1.442695, %v4111_v28  ;;  %v4187_v52 = vmul.f32 1.442695, %v4112_v10 }
 0xb78   : > { %v4019_v30 = vpop.xlane.xlu1 %4018  ;;  %v4040_v9 = vpop.xlane.xlu0 %4039 }
 0xb79   : > { %5957 = vpow2.f32 %v4185_v38  ;;  %v4109_v6 = vsub.f32 %v9065_v51, %v4019_v30  ;;  %v4110_v50 = vsub.f32 %v9070_v45, %v4019_v30  ;;  %v4123_v51 = vsub.f32 %v9053_v49, %v4040_v9 }
 0xb7a   : > { %5959 = vpow2.f32 %v4187_v52 }
 0xb7b   : > { %v4181_v15 = vmul.f32 1.442695, %v4109_v6  ;;  %v4183_v24 = vmul.f32 1.442695, %v4110_v50  ;;  %v4124_v6 = vsub.f32 %v9058_v12, %v4040_v9 }
 0xb7c   : > { %v4025_v2 = vpop.xlane.xlu1 %4024  ;;  %v4046_v22 = vpop.xlane.xlu0 %4045 }
 0xb7d   : > { %v4113_v42 = vsub.f32 %v9077_v13, %v4025_v2  ;;  %v4114_v14 = vsub.f32 %v9082_v18, %v4025_v2  ;;  %5961 = vpow2.f32 %v4181_v15  ;;  %v4127_v18 = vsub.f32 %v9089_v54, %v4046_v22 }
 0xb7e   : > { %5963 = vpow2.f32 %v4183_v24  ;;  %v6345_v24 = vld [vmem:[%s9900_s3 + $0x1d0] sm:$0xff]  ;;  %v4209_v54 = vmul.f32 1.442695, %v4123_v51 }
 0xb7f   : > { %v4189_v1 = vmul.f32 1.442695, %v4113_v42  ;;  %v4191_v10 = vmul.f32 1.442695, %v4114_v14  ;;  %v4217_v42 = vmul.f32 1.442695, %v4127_v18 }
 0xb80   : > { %v4028_v46 = vpop.xlane.xlu1 %4027  ;;  %v4052_v2 = vpop.xlane.xlu0 %4051 }
 0xb81   : > { %v4115_v28 = vsub.f32 %v9103_v43, %v4028_v46  ;;  %v4116_v45 = vsub.f32 %v9108_v44, %v4028_v46  ;;  %v9467_v43 = vadd.f32 %v6345_v24, %v9304_v62  ;;  %v6346_v44 = vld [vmem:[%s9900_s3 + $0x1d8] sm:$0xff]  ;;  %5965 = vpow2.f32 %v4189_v1 }
 0xb82   : > { %v9473_v12 = vadd.f32 %v6346_v44, %v9306_v31  ;;  %5967 = vpow2.f32 %v4191_v10  ;;  %v4211_v62 = vmul.f32 1.442695, %v4124_v6  ;;  %v4131_v51 = vsub.f32 %v9115_v59, %v4052_v2  ;;  %v6347_v6 = vld [vmem:[%s9900_s3 + $0x1c0] sm:$0xff] }
 0xb83   : > { %v9457_v38 = vpop.eup %5957  ;;  %v4193_v52 = vmul.f32 1.442695, %v4115_v28  ;;  %v4195_v15 = vmul.f32 1.442695, %v4116_v45 }
 0xb84   : > { %v9460_v13 = vpop.eup %5959  ;;  %v4031_v49 = vpop.xlane.xlu1 %4030  ;;  %v4092_v14 = vmax.f32 %v9467_v43, %v9473_v12  ;;  %v4225_v44 = vmul.f32 1.442695, %v4131_v51 }
 0xb85   : > { %v4117_v9 = vsub.f32 %v9132_v61, %v4031_v49  ;;  %v4118_v30 = vsub.f32 %v9138_v63, %v4031_v49  ;;  %v4308_v50 = vadd.f32 %v9460_v13, %v9457_v38  ;;  %5969 = vpow2.f32 %v4193_v52  ;;  %v4058_v24 = vpop.xlane.xlu0 %4057 }
 0xb86   : > { %5971 = vpow2.f32 %v4195_v15  ;;  %v4128_v61 = vsub.f32 %v9094_v39, %v4046_v22  ;;  %v9493_v52 = vadd.f32 %v6347_v6, %v9300_v48  ;;  %v6348_v39 = vld [vmem:[%s9900_s3 + $0x1c8] sm:$0xff]  ;;  %v4132_v49 = vsub.f32 %v9120_v16, %v4052_v2  ;;  %v6349_v16 = vld [vmem:[%s9900_s3 + $0x1f0] sm:$0xff] }
 0xb87   : > { %4309 = vadd.xlane.f32.xlu0 %v4308_v50  ;;  %v9481_v46 = vpop.eup %5961  ;;  %v4197_v1 = vmul.f32 1.442695, %v4117_v9  ;;  %5973 = vpow2.f32 %v4209_v54  ;;  %v4199_v10 = vmul.f32 1.442695, %v4118_v30  ;;  %v9517_v2 = vadd.f32 %v6349_v16, %v9312_v41 }
 0xb88   : > { %v4034_v31 = vpop.xlane.xlu1 %4033  ;;  %v9485_v28 = vpop.eup %5963  ;;  %5975 = vpow2.f32 %v4211_v62  ;;  %v4219_v15 = vmul.f32 1.442695, %v4128_v61  ;;  %v4135_v62 = vsub.f32 %v9145_v25, %v4058_v24  ;;  %v4227_v41 = vmul.f32 1.442695, %v4132_v49 }
 0xb89   : > { %v4119_v63 = vsub.f32 %v9158_v58, %v4034_v31  ;;  %v4120_v45 = vsub.f32 %v9164_v7, %v4034_v31  ;;  %v9499_v58 = vadd.f32 %v6348_v39, %v9302_v56  ;;  %5977 = vpow2.f32 %v4217_v42 }
 0xb8a   : > { %v4305_v7 = vadd.f32 %v9485_v28, %v9481_v46  ;;  %5979 = vpow2.f32 %v4197_v1 }
 0xb8b   : > { %v4201_v22 = vmul.f32 1.442695, %v4119_v63  ;;  %v4203_v59 = vmul.f32 1.442695, %v4120_v45  ;;  %4093 = vmax.xlane.f32.xlu0 %v4092_v14  ;;  %5981 = vpow2.f32 %v4199_v10  ;;  %v9506_v9 = vpop.eup %5965  ;;  %v4089_v54 = vmax.f32 %v9493_v52, %v9499_v58  ;;  %v6350_v14 = vld [vmem:[%s9900_s3 + $0x1f8] sm:$0xff]  ;;  %v6351_v63 = vld [vmem:[%s9900_s3 + $0x1e0] sm:$0xff] }
 0xb8c   : > { %v4037_v18 = vpop.xlane.xlu1 %4036  ;;  %4306 = vadd.xlane.f32.xlu1 %v4305_v7  ;;  %v9510_v50 = vpop.eup %5967  ;;  %v9525_v31 = vadd.f32 %v6350_v14, %v9314_v34  ;;  %v9535_v51 = vadd.f32 %v6351_v63, %v9308_v11  ;;  %v6352_v34 = vld [vmem:[%s9900_s3 + $0x1e8] sm:$0xff]  ;;  %v4233_v11 = vmul.f32 1.442695, %v4135_v62  ;;  %v10274_v62 = vld [vmem:[#allocation18_spill] sm:$0xff] }
 0xb8d   : > { %v4121_v48 = vsub.f32 %v9184_v0, %v4037_v18  ;;  %v4122_v56 = vsub.f32 %v9190_v26, %v4037_v18  ;;  %5983 = vpow2.f32 %v4201_v22  ;;  %v10269_v10 = vld [vmem:[#allocation28_spill] sm:$0xff]  ;;  %v4064_v7 = vpop.xlane.xlu0 %4063  ;;  %v4311_v18 = vadd.f32 %v9510_v50, %v9506_v9  ;;  %v10275_v63 = vld [vmem:[#allocation19_spill] sm:$0xff] }
 0xb8e   : > { %5985 = vpow2.f32 %v4203_v59  ;;  %v9541_v45 = vadd.f32 %v6352_v34, %v10269_v10  ;;  %v10270_v22 = vld [vmem:[#allocation8_spill] sm:$0xff]  ;;  %v4098_v49 = vmax.f32 %v9517_v2, %v9525_v31  ;;  %v4140_v34 = vsub.f32 %v10275_v63, %v4064_v7 }
 0xb8f   : > { %v4205_v30 = vmul.f32 1.442695, %v4121_v48  ;;  %v4207_v0 = vmul.f32 1.442695, %v4122_v56  ;;  %v9519_v42 = vpop.eup %5969  ;;  %5987 = vpow2.f32 %v4219_v15  ;;  %v4136_v59 = vsub.f32 %v10270_v22, %v4058_v24  ;;  %v10277_v22 = vld [vmem:[#allocation25_spill] sm:$0xff] }
 0xb90   : > { %v4043_v26 = vpop.xlane.xlu1 %4042  ;;  %v9529_v1 = vpop.eup %5971  ;;  %5989 = vpow2.f32 %v4225_v44  ;;  %4090 = vmax.xlane.f32.xlu1 %v4089_v54  ;;  %v10271_v44 = vld [vmem:[#allocation16_spill] sm:$0xff]  ;;  %v10272_v54 = vld [vmem:[#allocation3_spill] sm:$0xff]  ;;  %v4095_v10 = vmax.f32 %v9535_v51, %v9541_v45 }
 0xb91   : > { %v4125_v25 = vsub.f32 %v9210_v29, %v4043_v26  ;;  %v4126_v61 = vsub.f32 %v9216_v36, %v4043_v26  ;;  %5991 = vpow2.f32 %v4205_v30  ;;  %v4314_v6 = vadd.f32 %v9529_v1, %v9519_v42  ;;  %v9545_v39 = vpop.eup %5973 }
 0xb92   : > { %5993 = vpow2.f32 %v4207_v0  ;;  %v9550_v48 = vpop.eup %5975  ;;  %v4139_v0 = vsub.f32 %v10274_v62, %v4064_v7 }
 0xb93   : > { %v4213_v29 = vmul.f32 1.442695, %v4125_v25  ;;  %v4215_v36 = vmul.f32 1.442695, %v4126_v61  ;;  %4315 = vadd.xlane.f32.xlu0 %v4314_v6  ;;  %v9556_v16 = vpop.eup %5977  ;;  %v4235_v61 = vmul.f32 1.442695, %v4136_v59 }
 0xb94   : > { %v4049_v15 = vpop.xlane.xlu1 %4048  ;;  %10273 = vst [vmem:[#allocation14_spill] sm:$0xff] %v9556_v16  ;;  %4312 = vadd.xlane.f32.xlu1 %v4311_v18  ;;  %v9558_v24 = vpop.eup %5979  ;;  %v4241_v59 = vmul.f32 1.442695, %v4139_v0  ;;  %v10281_v0 = vld [vmem:[#allocation23_spill] sm:$0xff] }
 0xb95   : > { %5995 = vpow2.f32 %v4213_v29  ;;  %v4129_v56 = vsub.f32 %v10271_v44, %v4049_v15  ;;  %v4130_v30 = vsub.f32 %v10272_v54, %v4049_v15  ;;  %v9561_v25 = vpop.eup %5981 }
 0xb96   : > { %5997 = vpow2.f32 %v4215_v36  ;;  %v10276_v36 = vld [vmem:[#allocation22_spill] sm:$0xff] }
 0xb97   : > { %5999 = vpow2.f32 %v4227_v41  ;;  %v4221_v26 = vmul.f32 1.442695, %v4129_v56  ;;  %v4223_v14 = vmul.f32 1.442695, %v4130_v30  ;;  %v9566_v6 = vpop.eup %5983  ;;  %4099 = vmax.xlane.f32.xlu0 %v4098_v49  ;;  %v4243_v49 = vmul.f32 1.442695, %v4140_v34 }
 0xb98   : > { %6001 = vpow2.f32 %v4233_v11  ;;  %v4055_v29 = vpop.xlane.xlu1 %4054  ;;  %v9570_v15 = vpop.eup %5985  ;;  %4096 = vmax.xlane.f32.xlu1 %v4095_v10  ;;  %v4317_v30 = vadd.f32 %v9561_v25, %v9558_v24 }
 0xb99   : > { %6003 = vpow2.f32 %v4221_v26  ;;  %v4133_v41 = vsub.f32 %v10276_v36, %v4055_v29  ;;  %v4134_v18 = vsub.f32 %v10277_v22, %v4055_v29  ;;  %v9572_v11 = vpop.eup %5987  ;;  %v4320_v56 = vadd.f32 %v9570_v15, %v9566_v6 }
 0xb9a   : > { %6005 = vpow2.f32 %v4223_v14  ;;  %10278 = vst [vmem:[#allocation17_spill] sm:$0xff] %v9572_v11  ;;  %v9576_v54 = vpop.eup %5989  ;;  %v10280_v14 = vld [vmem:[#allocation27_spill] sm:$0xff] }
 0xb9b   : > { %v4229_v7 = vmul.f32 1.442695, %v4133_v41  ;;  %v4231_v44 = vmul.f32 1.442695, %v4134_v18  ;;  %10279 = vst [vmem:[#allocation9_spill] sm:$0xff] %v9576_v54  ;;  %6007 = vpow2.f32 %v4235_v61  ;;  %v9580_v26 = vpop.eup %5991  ;;  %4321 = vadd.xlane.f32.xlu0 %v4320_v56  ;;  %v4326_v61 = vadd.f32 %v9550_v48, %v9545_v39 }
 0xb9c   : > { %v4061_v62 = vpop.xlane.xlu1 %4060  ;;  %v9584_v29 = vpop.eup %5993  ;;  %4318 = vadd.xlane.f32.xlu1 %v4317_v30  ;;  %v4332_v30 = vadd.f32 %v9572_v11, %v9556_v16  ;;  %v10295_v16 = vld [vmem:[#allocation26_spill] sm:$0xff] }
 0xb9d   : > { %6009 = vpow2.f32 %v4229_v7  ;;  %v4137_v63 = vsub.f32 %v10280_v14, %v4061_v62  ;;  %v4138_v10 = vsub.f32 %v10281_v0, %v4061_v62  ;;  %v4323_v22 = vadd.f32 %v9584_v29, %v9580_v26 }
 0xb9e   : > { %6011 = vpow2.f32 %v4231_v44 }
 0xb9f   : > { %v9588_v34 = vpop.eup %5995  ;;  %6013 = vpow2.f32 %v4241_v59  ;;  %v4237_v36 = vmul.f32 1.442695, %v4137_v63  ;;  %v4239_v41 = vmul.f32 1.442695, %v4138_v10  ;;  %4327 = vadd.xlane.f32.xlu0 %v4326_v61 }
 0xba0   : > { %10282 = vst [vmem:[#allocation10_spill] sm:$0xff] %v9588_v34  ;;  %v9592_v18 = vpop.eup %5997  ;;  %6015 = vpow2.f32 %v4243_v49  ;;  %4324 = vadd.xlane.f32.xlu1 %v4323_v22 }
 0xba1   : > { %10283 = vst [vmem:[#allocation11_spill] sm:$0xff] %v9592_v18  ;;  %v9594_v7 = vpop.eup %5999  ;;  %6017 = vpow2.f32 %v4237_v36  ;;  %v4329_v56 = vadd.f32 %v9592_v18, %v9588_v34 }
 0xba2   : > { %10284 = vst [vmem:[#allocation12_spill] sm:$0xff] %v9594_v7  ;;  %v9596_v44 = vpop.eup %6001  ;;  %6019 = vpow2.f32 %v4239_v41  ;;  %v4338_v0 = vadd.f32 %v9594_v7, %v9576_v54  ;;  %v10294_v7 = vld [vmem:[#allocation4_spill] sm:$0xff] }
 0xba3   : > { %10285 = vst [vmem:[#allocation28_spill] sm:$0xff] %v9596_v44  ;;  %v9600_v59 = vpop.eup %6003  ;;  %4333 = vadd.xlane.f32.xlu0 %v4332_v30 }
 0xba4   : > { %10286 = vst [vmem:[#allocation8_spill] sm:$0xff] %v9600_v59  ;;  %v9604_v62 = vpop.eup %6005  ;;  %4330 = vadd.xlane.f32.xlu1 %v4329_v56 }
 0xba5   : > { %10287 = vst [vmem:[#allocation16_spill] sm:$0xff] %v9604_v62  ;;  %v9606_v49 = vpop.eup %6007  ;;  %v4335_v14 = vadd.f32 %v9604_v62, %v9600_v59  ;;  %v4067_v59 = vpop.xlane.xlu1 %4066 }
 0xba6   : > { %10288 = vst [vmem:[#allocation3_spill] sm:$0xff] %v9606_v49  ;;  %v4344_v56 = vadd.f32 %v9606_v49, %v9596_v44  ;;  %v4141_v62 = vsub.f32 %v10294_v7, %v4067_v59  ;;  %v4142_v44 = vsub.f32 %v10295_v16, %v4067_v59  ;;  %v10296_v49 = vld [vmem:[#allocation15_spill] sm:$0xff] }
 0xba7   : > { %v9610_v63 = vpop.eup %6009  ;;  %4339 = vadd.xlane.f32.xlu0 %v4338_v0 }
 0xba8   : > { %10289 = vst [vmem:[#allocation18_spill] sm:$0xff] %v9610_v63  ;;  %v9614_v10 = vpop.eup %6011  ;;  %4336 = vadd.xlane.f32.xlu1 %v4335_v14  ;;  %v4070_v14 = vpop.xlane.xlu0 %4069  ;;  %v4247_v11 = vmul.f32 1.442695, %v4142_v44 }
 0xba9   : > { %10290 = vst [vmem:[#allocation19_spill] sm:$0xff] %v9614_v10  ;;  %v9616_v61 = vpop.eup %6013  ;;  %v4341_v41 = vadd.f32 %v9614_v10, %v9610_v63  ;;  %v10293_v63 = vld [vmem:[#allocation21_spill] sm:$0xff]  ;;  %v4144_v34 = vsub.f32 %v10296_v49, %v4070_v14 }
 0xbaa   : > { %10291 = vst [vmem:[#allocation22_spill] sm:$0xff] %v9616_v61  ;;  %v9618_v36 = vpop.eup %6015  ;;  %v4143_v10 = vsub.f32 %v10293_v63, %v4070_v14 }
 0xbab   : > { %v9622_v22 = vpop.eup %6017  ;;  %4345 = vadd.xlane.f32.xlu0 %v4344_v56  ;;  %v4350_v0 = vadd.f32 %v9618_v36, %v9616_v61  ;;  %v4251_v18 = vmul.f32 1.442695, %v4144_v34 }
 0xbac   : > { %10292 = vst [vmem:[#allocation25_spill] sm:$0xff] %v9622_v22  ;;  %v9626_v30 = vpop.eup %6019  ;;  %4342 = vadd.xlane.f32.xlu1 %v4341_v41  ;;  %v4249_v56 = vmul.f32 1.442695, %v4143_v10  ;;  %v4245_v41 = vmul.f32 1.442695, %v4141_v62 }
 0xbad   : > { %v4347_v54 = vadd.f32 %v9626_v30, %v9622_v22 }
 0xbae   : > { %6021 = vpow2.f32 %v4249_v56 }
 0xbaf   : > { %4351 = vadd.xlane.f32.xlu0 %v4350_v0  ;;  %6023 = vpow2.f32 %v4245_v41 }
 0xbb0   : > { %4348 = vadd.xlane.f32.xlu1 %v4347_v54  ;;  %6025 = vpow2.f32 %v4247_v11 }
 0xbb1   : > { %6027 = vpow2.f32 %v4251_v18 }
 0xbd9   : > { %v4588_v0 = vpop.xlane.xlu1 %4587  ;;  %v4591_v54 = vpop.xlane.xlu0 %4590 }
 0xbda   : > { %v4593_v61 = vmul.f32 0.00390625, %v4588_v0  ;;  %v4594_v22 = vmul.f32 0.00390625, %v4591_v54 }
 0xbdc   : > { %v9637_v63 = vsub.f32 %v9337_v37, %v4593_v61  ;;  %v9640_v7 = vsub.f32 %v9340_v47, %v4593_v61  ;;  %v9643_v16 = vsub.f32 %v9343_v35, %v4594_v22  ;;  %v9646_v44 = vsub.f32 %v9346_v27, %v4594_v22  ;;  %v9654_v47 = vpop.eup %6021 }
 0xbdd   : > { %v4073_v34 = vpop.xlane.xlu1 %4072  ;;  %v4076_v59 = vpop.xlane.xlu0 %4075 }
 0xbde   : > { %10297 = vst [vmem:[#allocation27_spill] sm:$0xff] %v9643_v16  ;;  %v4599_v11 = vmul.f32 %v9637_v63, %v9637_v63  ;;  %v4600_v18 = vmul.f32 %v9640_v7, %v9640_v7  ;;  %v4145_v37 = vsub.f32 %v9328_v5, %v4073_v34  ;;  %v4146_v62 = vsub.f32 %v9334_v21, %v4073_v34  ;;  %v9662_v61 = vpop.eup %6023 }
 0xbdf   : > { %v4601_v35 = vmul.f32 %v9643_v16, %v9643_v16  ;;  %v4602_v27 = vmul.f32 %v9646_v44, %v9646_v44  ;;  %v4147_v49 = vsub.f32 %v9352_v60, %v4076_v59  ;;  %v4148_v10 = vsub.f32 %v9358_v3, %v4076_v59  ;;  %v9664_v56 = vpop.eup %6025 }
 0xbe0   : > { %v4253_v22 = vmul.f32 1.442695, %v4145_v37  ;;  %v4603_v14 = vadd.f32 %v4600_v18, %v4599_v11  ;;  %v4255_v41 = vmul.f32 1.442695, %v4146_v62  ;;  %v9666_v34 = vpop.eup %6027  ;;  %v4353_v60 = vadd.f32 %v9664_v56, %v9662_v61 }
 0xbe1   : > { %v4257_v5 = vmul.f32 1.442695, %v4147_v49  ;;  %v4259_v21 = vmul.f32 1.442695, %v4148_v10  ;;  %v4295_v0 = vpop.xlane.xlu1 %4294  ;;  %v4606_v54 = vadd.f32 %v4602_v27, %v4601_v35  ;;  %v4298_v16 = vpop.xlane.xlu0 %4297  ;;  %v4356_v11 = vadd.f32 %v9666_v34, %v9654_v47 }
 0xbe2   : > { %6029 = vpow2.f32 %v4253_v22  ;;  %4604 = vadd.xlane.f32.xlu1 %v4603_v14 }
 0xbe3   : > { %6031 = vpow2.f32 %v4257_v5  ;;  %4607 = vadd.xlane.f32.xlu0 %v4606_v54 }
 0xbe4   : > { %6033 = vpow2.f32 %v4259_v21 }
 0xbe5   : > { %6035 = vpow2.f32 %v4255_v41  ;;  %v4079_v3 = vpop.xlane.xlu1 %4078  ;;  %v4082_v18 = vpop.xlane.xlu0 %4081 }
 0xbe6   : > { %6037 = vrcp.f32 %v4298_v16  ;;  %v4149_v59 = vsub.f32 %v9380_v4, %v4079_v3  ;;  %v4150_v37 = vsub.f32 %v9386_v53, %v4079_v3  ;;  %4354 = vadd.xlane.f32.xlu1 %v4353_v60  ;;  %v4151_v62 = vsub.f32 %v9392_v17, %v4082_v18 }
 0xbe7   : > { %6039 = vrcp.f32 %v4295_v0  ;;  %v4152_v35 = vsub.f32 %v9398_v57, %v4082_v18  ;;  %4357 = vadd.xlane.f32.xlu0 %v4356_v11 }
 0xbe8   : > { %v4261_v27 = vmul.f32 1.442695, %v4149_v59  ;;  %v4265_v49 = vmul.f32 1.442695, %v4151_v62  ;;  %v4263_v22 = vmul.f32 1.442695, %v4150_v37 }
 0xbe9   : > { %v4267_v10 = vmul.f32 1.442695, %v4152_v35  ;;  %v4301_v14 = vpop.xlane.xlu1 %4300  ;;  %v4304_v5 = vpop.xlane.xlu0 %4303 }
 0xbea   : > { %6041 = vpow2.f32 %v4261_v27 }
 0xbeb   : > { %6043 = vpow2.f32 %v4265_v49 }
 0xbec   : > { %v9676_v16 = vpop.eup %6029  ;;  %6045 = vpow2.f32 %v4267_v10 }
 0xbed   : > { %v9678_v4 = vpop.eup %6031  ;;  %6047 = vpow2.f32 %v4263_v22  ;;  %v4085_v53 = vpop.xlane.xlu1 %4084 }
 0xbee   : > { %v9680_v21 = vpop.eup %6033  ;;  %6049 = vrcp.f32 %v4304_v5  ;;  %v4088_v17 = vpop.xlane.xlu0 %4087  ;;  %v4153_v57 = vsub.f32 %v9420_v32, %v4085_v53  ;;  %v4154_v41 = vsub.f32 %v9426_v55, %v4085_v53 }
 0xbef   : > { %v9684_v0 = vpop.eup %6035  ;;  %6051 = vrcp.f32 %v4301_v14  ;;  %v4155_v54 = vsub.f32 %v9432_v33, %v4088_v17  ;;  %v4156_v60 = vsub.f32 %v9438_v19, %v4088_v17  ;;  %v4362_v3 = vadd.f32 %v9680_v21, %v9678_v4  ;;  %v10298_v17 = vld [vmem:[#allocation5_spill] sm:$0xff] }
 0xbf0   : > { %v6038_v11 = vpop.eup %6037  ;;  %v4269_v18 = vmul.f32 1.442695, %v4153_v57  ;;  %v4271_v59 = vmul.f32 1.442695, %v4154_v41  ;;  %v4359_v37 = vadd.f32 %v9684_v0, %v9676_v16  ;;  %v10299_v41 = vld [vmem:[#allocation6_spill] sm:$0xff] }
 0xbf1   : > { %v6040_v62 = vpop.eup %6039  ;;  %v4273_v32 = vmul.f32 1.442695, %v4155_v54  ;;  %v4275_v35 = vmul.f32 1.442695, %v4156_v60  ;;  %4363 = vadd.xlane.f32.xlu0 %v4362_v3  ;;  %v4424_v55 = vmul.f32 %v6038_v11, %v9374_v23  ;;  %v4423_v27 = vmul.f32 %v6038_v11, %v9372_v20  ;;  %v10300_v60 = vld [vmem:[#allocation20_spill] sm:$0xff]  ;;  %v10301_v11 = vld [vmem:[#allocation29_spill] sm:$0xff] }
 0xbf2   : > { %6053 = vpow2.f32 %v4269_v18  ;;  %4360 = vadd.xlane.f32.xlu1 %v4359_v37  ;;  %v4422_v33 = vmul.f32 %v6040_v62, %v9370_v40  ;;  %v4421_v19 = vmul.f32 %v6040_v62, %v9366_v8 }
 0xbf3   : > { %6055 = vpow2.f32 %v4273_v32 }
 0xbf4   : > { %v9696_v49 = vpop.eup %6041  ;;  %6057 = vpow2.f32 %v4275_v35  ;;  %v5285_v10 = vpack.c.bf16 %v4424_v55, %v4422_v33  ;;  %v5287_v22 = vpack.c.bf16 %v4423_v27, %v4421_v19 }
 0xbf5   : > { %v9698_v14 = vpop.eup %6043  ;;  %6059 = vpow2.f32 %v4271_v59 }
 0xbf6   : > { %v9700_v5 = vpop.eup %6045  ;;  %5286 = vmatprep.subr.bf16.mxu1 %v5285_v10 }
 0xbf7   : > { %v9702_v23 = vpop.eup %6047  ;;  %5288 = vmatpush1.bf16.xpose.msra.mxu1 %v5287_v22  ;;  %v4368_v40 = vadd.f32 %v9700_v5, %v9698_v14 }
 0xbf8   : > { %v6050_v20 = vpop.eup %6049  ;;  %v4365_v8 = vadd.f32 %v9702_v23, %v9696_v49 }
 0xbf9   : > { %v6052_v53 = vpop.eup %6051  ;;  %4369 = vadd.xlane.f32.xlu0 %v4368_v40  ;;  %v4428_v57 = vmul.f32 %v6050_v20, %v10298_v17  ;;  %v4427_v54 = vmul.f32 %v6050_v20, %v10299_v41 }
 0xbfa   : > { %4366 = vadd.xlane.f32.xlu1 %v4365_v8  ;;  %v4426_v3 = vmul.f32 %v6052_v53, %v10300_v60  ;;  %v4425_v18 = vmul.f32 %v6052_v53, %v10301_v11 }
 0xbfc   : > { %v9712_v59 = vpop.eup %6053  ;;  %v5289_v37 = vpack.c.bf16 %v4428_v57, %v4426_v3  ;;  %v5291_v62 = vpack.c.bf16 %v4427_v54, %v4425_v18 }
 0xbfd   : > { %v9714_v32 = vpop.eup %6055 }
 0xbfe   : > { %v9716_v35 = vpop.eup %6057  ;;  %5290 = vmatprep.subr.bf16.mxu1 %v5289_v37 }
 0xbff   : > { %v9718_v55 = vpop.eup %6059  ;;  %5292 = vmatpush1.bf16.xpose.msra.mxu1 %v5291_v62  ;;  %v4374_v27 = vadd.f32 %v9716_v35, %v9714_v32 }
 0xc00   : > { %v4371_v33 = vadd.f32 %v9718_v55, %v9712_v59 }
 0xc01   : > { %4375 = vadd.xlane.f32.xlu0 %v4374_v27 }
 0xc02   : > { %4372 = vadd.xlane.f32.xlu1 %v4371_v33 }
 0xc14   : > { %v4310_v19 = vpop.xlane.xlu0 %4309 }
 0xc15   : > { %6061 = vrcp.f32 %v4310_v19 }
 0xc18   : > { %v4094_v10 = vpop.xlane.xlu0 %4093 }
 0xc19   : > { %v4159_v22 = vsub.f32 %v9467_v43, %v4094_v10  ;;  %v4160_v40 = vsub.f32 %v9473_v12, %v4094_v10  ;;  %v4307_v20 = vpop.xlane.xlu1 %4306 }
 0xc1a   : > { %6063 = vrcp.f32 %v4307_v20 }
 0xc1b   : > { %v4281_v8 = vmul.f32 1.442695, %v4159_v22  ;;  %v4283_v53 = vmul.f32 1.442695, %v4160_v40 }
 0xc1d   : > { %6065 = vpow2.f32 %v4281_v8  ;;  %v4091_v17 = vpop.xlane.xlu1 %4090 }
 0xc1e   : > { %6067 = vpow2.f32 %v4283_v53  ;;  %v4157_v57 = vsub.f32 %v9493_v52, %v4091_v17  ;;  %v4158_v41 = vsub.f32 %v9499_v58, %v4091_v17 }
 0xc1f   : > { %v6062_v11 = vpop.eup %6061 }
 0xc20   : > { %v4277_v54 = vmul.f32 1.442695, %v4157_v57  ;;  %v4279_v60 = vmul.f32 1.442695, %v4158_v41  ;;  %v4316_v3 = vpop.xlane.xlu0 %4315  ;;  %v4432_v37 = vmul.f32 %v6062_v11, %v9460_v13  ;;  %v4431_v62 = vmul.f32 %v6062_v11, %v9457_v38 }
 0xc21   : > { %6069 = vrcp.f32 %v4316_v3  ;;  %v4313_v18 = vpop.xlane.xlu1 %4312 }
 0xc22   : > { %6071 = vpow2.f32 %v4277_v54 }
 0xc23   : > { %6073 = vpow2.f32 %v4279_v60 }
 0xc24   : > { %v6064_v43 = vpop.eup %6063  ;;  %6075 = vrcp.f32 %v4313_v18  ;;  %v4100_v12 = vpop.xlane.xlu0 %4099 }
 0xc25   : > { %v4163_v27 = vsub.f32 %v9517_v2, %v4100_v12  ;;  %v4164_v52 = vsub.f32 %v9525_v31, %v4100_v12  ;;  %v4097_v58 = vpop.xlane.xlu1 %4096  ;;  %v4430_v33 = vmul.f32 %v6064_v43, %v9485_v28  ;;  %v4429_v19 = vmul.f32 %v6064_v43, %v9481_v46 }
 0xc26   : > { %v4161_v22 = vsub.f32 %v9535_v51, %v4097_v58  ;;  %v4162_v40 = vsub.f32 %v9541_v45, %v4097_v58 }
 0xc27   : > { %v9734_v10 = vpop.eup %6065  ;;  %v4289_v13 = vmul.f32 1.442695, %v4163_v27  ;;  %v4291_v8 = vmul.f32 1.442695, %v4164_v52  ;;  %v5293_v38 = vpack.c.bf16 %v4432_v37, %v4430_v33  ;;  %v5295_v53 = vpack.c.bf16 %v4431_v62, %v4429_v19 }
 0xc28   : > { %v9738_v20 = vpop.eup %6067  ;;  %v4285_v2 = vmul.f32 1.442695, %v4161_v22  ;;  %v4287_v17 = vmul.f32 1.442695, %v4162_v40  ;;  %v4322_v31 = vpop.xlane.xlu0 %4321 }
 0xc29   : > { %v4380_v28 = vadd.f32 %v9738_v20, %v9734_v10  ;;  %6077 = vpow2.f32 %v4289_v13  ;;  %5294 = vmatprep.subr.bf16.mxu1 %v5293_v38  ;;  %v4319_v46 = vpop.xlane.xlu1 %4318 }
 0xc2a   : > { %6079 = vpow2.f32 %v4291_v8  ;;  %5296 = vmatpush1.bf16.xpose.msra.mxu1 %v5295_v53 }
 0xc2b   : > { %4381 = vadd.xlane.f32.xlu0 %v4380_v28  ;;  %v6070_v51 = vpop.eup %6069  ;;  %6081 = vpow2.f32 %v4285_v2 }
 0xc2c   : > { %v9742_v45 = vpop.eup %6071  ;;  %6083 = vpow2.f32 %v4287_v17  ;;  %v4328_v57 = vpop.xlane.xlu0 %4327  ;;  %v4436_v60 = vmul.f32 %v6070_v51, %v9529_v1  ;;  %v4435_v3 = vmul.f32 %v6070_v51, %v9519_v42 }
 0xc2d   : > { %v9744_v41 = vpop.eup %6073  ;;  %6085 = vrcp.f32 %v4322_v31  ;;  %v4325_v54 = vpop.xlane.xlu1 %4324 }
 0xc2e   : > { %v6076_v11 = vpop.eup %6075  ;;  %6087 = vrcp.f32 %v4319_v46  ;;  %v4377_v18 = vadd.f32 %v9744_v41, %v9742_v45 }
 0xc2f   : > { %6089 = vrcp.f32 %v4328_v57  ;;  %v4434_v43 = vmul.f32 %v6076_v11, %v9510_v50  ;;  %v4433_v12 = vmul.f32 %v6076_v11, %v9506_v9  ;;  %v10302_v11 = vld [vmem:[#allocation11_spill] sm:$0xff] }
 0xc30   : > { %6091 = vrcp.f32 %v4325_v54  ;;  %4378 = vadd.xlane.f32.xlu1 %v4377_v18  ;;  %v4334_v37 = vpop.xlane.xlu0 %4333  ;;  %v10303_v18 = vld [vmem:[#allocation17_spill] sm:$0xff] }
 0xc31   : > { %v5297_v62 = vpack.c.bf16 %v4436_v60, %v4434_v43  ;;  %v4331_v27 = vpop.xlane.xlu1 %4330  ;;  %v5299_v52 = vpack.c.bf16 %v4435_v3, %v4433_v12  ;;  %6093 = vrcp.f32 %v4334_v37 }
 0xc32   : > { %6095 = vrcp.f32 %v4331_v27  ;;  %v4728_v27 = vld [vmem:[#allocation2] sm:$0x1] }
 0xc33   : > { %v9752_v58 = vpop.eup %6077  ;;  %5298 = vmatprep.subr.bf16.mxu1 %v5297_v62 }
 0xc34   : > { %v9754_v42 = vpop.eup %6079  ;;  %5300 = vmatpush1.bf16.xpose.msra.mxu1 %v5299_v52  ;;  %v4340_v40 = vpop.xlane.xlu0 %4339 }
 0xc35   : > { %v9756_v1 = vpop.eup %6081  ;;  %v4386_v50 = vadd.f32 %v9754_v42, %v9752_v58  ;;  %v4337_v53 = vpop.xlane.xlu1 %4336  ;;  %6097 = vrcp.f32 %v4340_v40 }
 0xc36   : > { %v9760_v9 = vpop.eup %6083  ;;  %6099 = vrcp.f32 %v4337_v53 }
 0xc37   : > { %v6086_v33 = vpop.eup %6085  ;;  %4387 = vadd.xlane.f32.xlu0 %v4386_v50  ;;  %v4383_v19 = vadd.f32 %v9760_v9, %v9756_v1  ;;  %v10304_v50 = vld [vmem:[#allocation10_spill] sm:$0xff] }
 0xc38   : > { %v6088_v22 = vpop.eup %6087  ;;  %v4440_v13 = vmul.f32 %v6086_v33, %v9570_v15  ;;  %v4439_v8 = vmul.f32 %v6086_v33, %v9566_v6  ;;  %v4346_v60 = vpop.xlane.xlu0 %4345 }
 0xc39   : > { %v6090_v38 = vpop.eup %6089  ;;  %4384 = vadd.xlane.f32.xlu1 %v4383_v19  ;;  %v4438_v2 = vmul.f32 %v6088_v22, %v9561_v25  ;;  %v4437_v17 = vmul.f32 %v6088_v22, %v9558_v24  ;;  %v4343_v3 = vpop.xlane.xlu1 %4342  ;;  %6101 = vrcp.f32 %v4346_v60  ;;  %v10306_v22 = vld [vmem:[#allocation16_spill] sm:$0xff] }
 0xc3a   : > { %v6092_v31 = vpop.eup %6091  ;;  %v4444_v28 = vmul.f32 %v6090_v38, %v9550_v48  ;;  %v4443_v24 = vmul.f32 %v6090_v38, %v9545_v39  ;;  %6103 = vrcp.f32 %v4343_v3 }
 0xc3b   : > { %v5301_v46 = vpack.c.bf16 %v4440_v13, %v4438_v2  ;;  %v5303_v51 = vpack.c.bf16 %v4439_v8, %v4437_v17  ;;  %v4442_v57 = vmul.f32 %v6092_v31, %v9584_v29  ;;  %v6094_v54 = vpop.eup %6093  ;;  %v4441_v25 = vmul.f32 %v6092_v31, %v9580_v26  ;;  %v10305_v26 = vld [vmem:[#allocation14_spill] sm:$0xff]  ;;  %v10307_v13 = vld [vmem:[#allocation12_spill] sm:$0xff] }
 0xc3c   : > { %v6096_v6 = vpop.eup %6095  ;;  %v4448_v43 = vmul.f32 %v6094_v54, %v10303_v18  ;;  %v4352_v52 = vpop.xlane.xlu0 %4351  ;;  %v4447_v19 = vmul.f32 %v6094_v54, %v10305_v26  ;;  %v10308_v31 = vld [vmem:[#allocation8_spill] sm:$0xff] }
 0xc3d   : > { %5302 = vmatprep.subr.bf16.mxu1 %v5301_v46  ;;  %v5305_v15 = vpack.c.bf16 %v4444_v28, %v4442_v57  ;;  %v4446_v48 = vmul.f32 %v6096_v6, %v10302_v11  ;;  %v5307_v29 = vpack.c.bf16 %v4443_v24, %v4441_v25  ;;  %v4445_v33 = vmul.f32 %v6096_v6, %v10304_v50  ;;  %v4349_v39 = vpop.xlane.xlu1 %4348  ;;  %v10309_v46 = vld [vmem:[#allocation9_spill] sm:$0xff]  ;;  %v10310_v57 = vld [vmem:[#allocation19_spill] sm:$0xff]  ;;  %v10312_v11 = vld [vmem:[#allocation18_spill] sm:$0xff] }
 0xc3e   : > { %5304 = vmatpush1.bf16.xpose.msra.mxu1 %v5303_v51  ;;  %6105 = vrcp.f32 %v4352_v52  ;;  %v10313_v18 = vld [vmem:[#allocation28_spill] sm:$0xff]  ;;  %v10315_v50 = vld [vmem:[#allocation22_spill] sm:$0xff] }
 0xc3f   : > { %5306 = vmatprep.subr.bf16.mxu1 %v5305_v15  ;;  %v6098_v12 = vpop.eup %6097  ;;  %v5309_v37 = vpack.c.bf16 %v4448_v43, %v4446_v48  ;;  %6107 = vrcp.f32 %v4349_v39  ;;  %v5311_v38 = vpack.c.bf16 %v4447_v19, %v4445_v33  ;;  %v10311_v15 = vld [vmem:[#allocation3_spill] sm:$0xff] }
 0xc40   : > { %v6100_v62 = vpop.eup %6099  ;;  %v4452_v8 = vmul.f32 %v6098_v12, %v10307_v13  ;;  %v4451_v51 = vmul.f32 %v6098_v12, %v10309_v46 }
 0xc41   : > { %v4450_v40 = vmul.f32 %v6100_v62, %v10306_v22  ;;  %v4449_v28 = vmul.f32 %v6100_v62, %v10308_v31 }
 0xc43   : > { %v6102_v53 = vpop.eup %6101  ;;  %v5313_v2 = vpack.c.bf16 %v4452_v8, %v4450_v40  ;;  %v5315_v60 = vpack.c.bf16 %v4451_v51, %v4449_v28 }
 0xc44   : > { %v6104_v17 = vpop.eup %6103  ;;  %v4456_v6 = vmul.f32 %v6102_v53, %v10311_v15  ;;  %v4455_v43 = vmul.f32 %v6102_v53, %v10313_v18 }
 0xc45   : > { %v4454_v54 = vmul.f32 %v6104_v17, %v10310_v57  ;;  %v4453_v48 = vmul.f32 %v6104_v17, %v10312_v11 }
 0xc46   : > { %5308 = vmatpush1.bf16.xpose.msra.mxu1 %v5307_v29 }
 0xc47   : > { %5310 = vmatprep.subr.bf16.mxu1 %v5309_v37  ;;  %v5317_v24 = vpack.c.bf16 %v4456_v6, %v4454_v54  ;;  %v5319_v62 = vpack.c.bf16 %v4455_v43, %v4453_v48  ;;  %v10316_v54 = vld [vmem:[#allocation27_spill] sm:$0xff] }
 0xc48   : > { %v6106_v25 = vpop.eup %6105 }
 0xc49   : > { %v6108_v3 = vpop.eup %6107  ;;  %v4460_v37 = vmul.f32 %v6106_v25, %v9618_v36  ;;  %v4459_v33 = vmul.f32 %v6106_v25, %v10315_v50 }
 0xc4a   : > { %4731 = vperm.xlu1 %5364, %v4728_v27   ;;  %v4458_v29 = vmul.f32 %v6108_v3, %v9626_v30  ;;  %v10314_v27 = vld [vmem:[#allocation25_spill] sm:$0xff] }
 0xc4b   : > { %v4457_v52 = vmul.f32 %v6108_v3, %v10314_v27 }
 0xc4c   : > { %v5321_v12 = vpack.c.bf16 %v4460_v37, %v4458_v29 }
 0xc4d   : > { %v5323_v26 = vpack.c.bf16 %v4459_v33, %v4457_v52 }
 0xc4e   : > { %5312 = vmatpush1.bf16.xpose.msra.mxu1 %v5311_v38 }
 0xc4f   : > { %5314 = vmatprep.subr.bf16.mxu1 %v5313_v2 }
 0xc56   : > { %5316 = vmatpush1.bf16.xpose.msra.mxu1 %v5315_v60 }
 0xc57   : > { %5318 = vmatprep.subr.bf16.mxu1 %v5317_v24 }
 0xc5e   : > { %5320 = vmatpush1.bf16.xpose.msra.mxu1 %v5319_v62 }
 0xc5f   : > { %5322 = vmatprep.subr.bf16.mxu1 %v5321_v12 }
 0xc66   : > { %5324 = vmatpush1.bf16.xpose.msra.mxu1 %v5323_v26 }
 0xc6f   : > { %v4605_v19 = vpop.xlane.xlu1 %4604 }
 0xc70   : > { %v4608_v39 = vpop.xlane.xlu0 %4607  ;;  %v4609_v22 = vmul.f32 0.00390625, %v4605_v19 }
 0xc71   : > { %v4610_v40 = vmul.f32 0.00390625, %v4608_v39 }
 0xc72   : > { %v4611_v13 = vadd.f32 1e-05, %v4609_v22 }
 0xc73   : > { %v4612_v8 = vadd.f32 1e-05, %v4610_v40  ;;  %v4355_v38 = vpop.xlane.xlu1 %4354 }
 0xc74   : > { %6109 = vrsqrt.f32 %v4611_v13  ;;  %v4358_v30 = vpop.xlane.xlu0 %4357 }
 0xc75   : > { %6111 = vrsqrt.f32 %v4612_v8 }
 0xc76   : > { %6113 = vrcp.f32 %v4358_v30 }
 0xc77   : > { %6115 = vrcp.f32 %v4355_v38 }
 0xc7e   : > { %v6110_v36 = vpop.eup %6109  ;;  %v4364_v53 = vpop.xlane.xlu0 %4363 }
 0xc7f   : > { %v6112_v2 = vpop.eup %6111  ;;  %6117 = vrcp.f32 %v4364_v53  ;;  %v4361_v17 = vpop.xlane.xlu1 %4360  ;;  %v9789_v31 = vmul.f32 %v6110_v36, %v9640_v7  ;;  %v9792_v46 = vmul.f32 %v6110_v36, %v9637_v63 }
 0xc80   : > { %v6114_v28 = vpop.eup %6113  ;;  %6119 = vrcp.f32 %v4361_v17  ;;  %v9795_v51 = vmul.f32 %v6112_v2, %v9646_v44  ;;  %v9798_v15 = vmul.f32 %v6112_v2, %v10316_v54 }
 0xc81   : > { %v6116_v57 = vpop.eup %6115  ;;  %v4464_v6 = vmul.f32 %v6114_v28, %v9666_v34  ;;  %v4463_v60 = vmul.f32 %v6114_v28, %v9654_v47  ;;  %v9805_v24 = vmul.f32 0.70710677, %v9789_v31  ;;  %v9811_v44 = vmul.f32 0.70710677, %v9792_v46 }
 0xc82   : > { %v4462_v25 = vmul.f32 %v6116_v57, %v9664_v56  ;;  %v4461_v7 = vmul.f32 %v6116_v57, %v9662_v61  ;;  %v9808_v63 = vmul.f32 0.70710677, %v9795_v51  ;;  %v9814_v48 = vmul.f32 0.70710677, %v9798_v15 }
 0xc83   : > { %v9817_v47 = vand.u32 2147483647, %v9805_v24  ;;  %v9824_v43 = vand.u32 2147483647, %v9811_v44  ;;  %vm4708_vm4 = vcmp.ge.f32.partialorder %v9805_v24, 0.0  ;;  %vm4707_vm6 = vcmp.ge.f32.partialorder %v9811_v44, 0.0 }
 0xc84   : > { %v5325_v3 = vpack.c.bf16 %v4464_v6, %v4462_v25  ;;  %v5327_v11 = vpack.c.bf16 %v4463_v60, %v4461_v7  ;;  %v9820_v61 = vand.u32 2147483647, %v9808_v63  ;;  %v9828_v62 = vand.u32 2147483647, %v9814_v48 }
 0xc85   : > { %v4632_v18 = vmul.f32 0.3275911, %v9817_v47  ;;  %v4631_v39 = vmul.f32 0.3275911, %v9824_v43  ;;  %vm4710_vm5 = vcmp.ge.f32.partialorder %v9808_v63, 0.0  ;;  %vm4709_vm7 = vcmp.ge.f32.partialorder %v9814_v48, 0.0 }
 0xc86   : > { %5326 = vmatprep.subr.bf16.mxu1 %v5325_v3  ;;  %v4370_v56 = vpop.xlane.xlu0 %4369  ;;  %v4634_v29 = vmul.f32 0.3275911, %v9820_v61  ;;  %v4633_v22 = vmul.f32 0.3275911, %v9828_v62  ;;  %v4621_v44 = vmul.f32 0.5, %v9798_v15 }
 0xc87   : > { %6121 = vrcp.f32 %v4370_v56  ;;  %5328 = vmatpush1.bf16.xpose.msra.mxu1 %v5327_v11  ;;  %v4367_v34 = vpop.xlane.xlu1 %4366  ;;  %v4636_v12 = vadd.f32 1.0, %v4632_v18 }
 0xc88   : > { %6123 = vrcp.f32 %v4367_v34  ;;  %v4638_v19 = vadd.f32 1.0, %v4634_v29 }
 0xc89   : > { %v6118_v37 = vpop.eup %6117  ;;  %6125 = vrcp.f32 %v4636_v12 }
 0xc8a   : > { %v6120_v27 = vpop.eup %6119  ;;  %v4468_v52 = vmul.f32 %v6118_v37, %v9680_v21  ;;  %v4467_v50 = vmul.f32 %v6118_v37, %v9678_v4  ;;  %6127 = vrcp.f32 %v4638_v19  ;;  %v4635_v21 = vadd.f32 1.0, %v4631_v39 }
 0xc8b   : > { %v4466_v33 = vmul.f32 %v6120_v27, %v9684_v0  ;;  %v4465_v26 = vmul.f32 %v6120_v27, %v9676_v16  ;;  %v4637_v0 = vadd.f32 1.0, %v4633_v22 }
 0xc8d   : > { %v5329_v40 = vpack.c.bf16 %v4468_v52, %v4466_v33  ;;  %v5331_v13 = vpack.c.bf16 %v4467_v50, %v4465_v26  ;;  %v4684_v50 = vsub.f32 0.0, %v9817_v47  ;;  %v4686_v33 = vsub.f32 0.0, %v9820_v61 }
 0xc8e   : > { %v4376_v8 = vpop.xlane.xlu0 %4375 }
 0xc8f   : > { %6129 = vrcp.f32 %v4376_v8  ;;  %5330 = vmatprep.subr.bf16.mxu1 %v5329_v40  ;;  %v4373_v30 = vpop.xlane.xlu1 %4372  ;;  %v4688_v40 = vmul.f32 %v4684_v50, %v9817_v47  ;;  %v4690_v8 = vmul.f32 %v4686_v33, %v9820_v61 }
 0xc90   : > { %6131 = vrcp.f32 %v4373_v30  ;;  %5332 = vmatpush1.bf16.xpose.msra.mxu1 %v5331_v13  ;;  %v4683_v13 = vsub.f32 0.0, %v9824_v43 }
 0xc91   : > { %v6122_v4 = vpop.eup %6121  ;;  %6133 = vrcp.f32 %v4635_v21 }
 0xc92   : > { %v6124_v38 = vpop.eup %6123  ;;  %v4472_v16 = vmul.f32 %v6122_v4, %v9700_v5  ;;  %v4471_v36 = vmul.f32 %v6122_v4, %v9698_v14  ;;  %6135 = vrcp.f32 %v4637_v0  ;;  %v4685_v4 = vsub.f32 0.0, %v9828_v62 }
 0xc93   : > { %v4470_v53 = vmul.f32 %v6124_v38, %v9702_v23  ;;  %v4469_v2 = vmul.f32 %v6124_v38, %v9696_v49  ;;  %v9840_v57 = vpop.eup %6125 }
 0xc94   : > { %v6128_v54 = vpop.eup %6127  ;;  %v4648_v3 = vmul.f32 1.0614054, %v9840_v57 }
 0xc95   : > { %v5333_v17 = vpack.c.bf16 %v4472_v16, %v4470_v53  ;;  %v5335_v28 = vpack.c.bf16 %v4471_v36, %v4469_v2  ;;  %v4650_v11 = vmul.f32 1.0614054, %v6128_v54  ;;  %v4693_v16 = vmul.f32 1.442695, %v4688_v40 }
 0xc96   : > { %v4652_v18 = vadd.f32 -1.4531521, %v4648_v3  ;;  %v4687_v36 = vmul.f32 %v4683_v13, %v9824_v43  ;;  %v4697_v53 = vmul.f32 1.442695, %v4690_v8 }
 0xc97   : > { %5334 = vmatprep.subr.bf16.mxu1 %v5333_v17  ;;  %v4654_v29 = vadd.f32 -1.4531521, %v4650_v11  ;;  %6137 = vpow2.f32 %v4693_v16 }
 0xc98   : > { %5336 = vmatpush1.bf16.xpose.msra.mxu1 %v5335_v28  ;;  %v4689_v28 = vmul.f32 %v4685_v4, %v9828_v62  ;;  %6139 = vpow2.f32 %v4697_v53 }
 0xc99   : > { %v6130_v6 = vpop.eup %6129 }
 0xc9a   : > { %v6132_v60 = vpop.eup %6131  ;;  %v4476_v25 = vmul.f32 %v6130_v6, %v9716_v35  ;;  %v4475_v5 = vmul.f32 %v6130_v6, %v9714_v32  ;;  %v4656_v35 = vmul.f32 %v9840_v57, %v4652_v18  ;;  %v4658_v32 = vmul.f32 %v6128_v54, %v4654_v29 }
 0xc9b   : > { %v4474_v14 = vmul.f32 %v6132_v60, %v9718_v55  ;;  %v4473_v23 = vmul.f32 %v6132_v60, %v9712_v59  ;;  %v6134_v56 = vpop.eup %6133  ;;  %v4691_v60 = vmul.f32 1.442695, %v4687_v36 }
 0xc9c   : > { %v6136_v34 = vpop.eup %6135  ;;  %v4647_v37 = vmul.f32 1.0614054, %v6134_v56  ;;  %v4660_v52 = vadd.f32 1.4214138, %v4656_v35  ;;  %v4662_v59 = vadd.f32 1.4214138, %v4658_v32 }
 0xc9d   : > { %v5337_v49 = vpack.c.bf16 %v4476_v25, %v4474_v14  ;;  %v5339_v7 = vpack.c.bf16 %v4475_v5, %v4473_v23  ;;  %v4649_v12 = vmul.f32 1.0614054, %v6136_v34  ;;  %v4695_v5 = vmul.f32 1.442695, %v4689_v28 }
 0xc9e   : > { %v4651_v27 = vadd.f32 -1.4531521, %v4647_v37  ;;  %v4664_v39 = vmul.f32 %v9840_v57, %v4660_v52  ;;  %v4666_v22 = vmul.f32 %v6128_v54, %v4662_v59  ;;  %6141 = vpow2.f32 %v4691_v60 }
 0xc9f   : > { %5338 = vmatprep.subr.bf16.mxu1 %v5337_v49  ;;  %v4653_v55 = vadd.f32 -1.4531521, %v4649_v12  ;;  %6143 = vpow2.f32 %v4695_v5 }
 0xca0   : > { %5340 = vmatpush1.bf16.xpose.msra.mxu1 %v5339_v7  ;;  %v4655_v26 = vmul.f32 %v6134_v56, %v4651_v27  ;;  %v4668_v0 = vadd.f32 -0.28449672, %v4664_v39  ;;  %v4670_v38 = vadd.f32 -0.28449672, %v4666_v22 }
 0xca1   : > { %v4657_v19 = vmul.f32 %v6136_v34, %v4653_v55  ;;  %v6138_v29 = vpop.eup %6137 }
 0xca2   : > { %v4659_v30 = vadd.f32 1.4214138, %v4655_v26  ;;  %v4672_v47 = vmul.f32 %v9840_v57, %v4668_v0  ;;  %v4674_v6 = vmul.f32 %v6128_v54, %v4670_v38  ;;  %v6140_v12 = vpop.eup %6139 }
 0xca3   : > { %v4661_v21 = vadd.f32 1.4214138, %v4657_v19 }
 0xca4   : > { %v4663_v2 = vmul.f32 %v6134_v56, %v4659_v30  ;;  %v4676_v14 = vadd.f32 0.2548296, %v4672_v47  ;;  %v4678_v23 = vadd.f32 0.2548296, %v4674_v6 }
 0xca5   : > { %v4665_v17 = vmul.f32 %v6136_v34, %v4661_v21 }
 0xca6   : > { %v4667_v61 = vadd.f32 -0.28449672, %v4663_v2  ;;  %v4680_v3 = vmul.f32 %v9840_v57, %v4676_v14  ;;  %v4682_v11 = vmul.f32 %v6128_v54, %v4678_v23 }
 0xca7   : > { %v4669_v25 = vadd.f32 -0.28449672, %v4665_v17 }
 0xca8   : > { %v4671_v49 = vmul.f32 %v6134_v56, %v4667_v61  ;;  %v4700_v35 = vmul.f32 %v6138_v29, %v4680_v3  ;;  %v4702_v32 = vmul.f32 %v6140_v12, %v4682_v11  ;;  %v6142_v52 = vpop.eup %6141  ;;  %v4727_v3 = vld [vmem:[%s9904_s7] sm:$0x1]  ;;  %v4734_v11 = vlaneseq }
 0xca9   : > { %v4673_v7 = vmul.f32 %v6136_v34, %v4669_v25  ;;  %v6144_v59 = vpop.eup %6143 }
 0xcaa   : > { %v4675_v62 = vadd.f32 0.2548296, %v4671_v49  ;;  %v4704_v50 = vsub.f32 1.0, %v4700_v35  ;;  %v4706_v33 = vsub.f32 1.0, %v4702_v32  ;;  %v10319_v32 = vld [vmem:[#allocation24_spill] sm:$0xff] }
 0xcab   : > { %v4677_v18 = vadd.f32 0.2548296, %v4673_v7  ;;  %v10317_v7 = vld [vmem:[#allocation7_spill] sm:$0xff] }
 0xcac   : > { %v4679_v27 = vmul.f32 %v6134_v56, %v4675_v62  ;;  %v4712_v22 = vsub.f32 0.0, %v4704_v50  ;;  %v4714_v40 = vsub.f32 0.0, %v4706_v33 }
 0xcad   : > { %v4681_v55 = vmul.f32 %v6136_v34, %v4677_v18 }
 0xcae   : > { %v4699_v19 = vmul.f32 %v6142_v52, %v4679_v27  ;;  %v4716_v16 = vsel %vm4708_vm4, %v4704_v50, %v4712_v22  ;;  %v4718_v36 = vsel %vm4710_vm5, %v4706_v33, %v4714_v40 }
 0xcaf   : > { %v4701_v39 = vmul.f32 %v6144_v59, %v4681_v55  ;;  %v4720_v17 = vadd.f32 1.0, %v4716_v16  ;;  %v10320_v55 = vld [vmem:[#allocation13_spill] sm:$0xff]  ;;  %v4841_v16 = vld [vmem:[%s369_s29] sm:$0xff] }
 0xcb0   : > { %v4703_v8 = vsub.f32 1.0, %v4699_v19 }
 0xcb1   : > { %v4705_v30 = vsub.f32 1.0, %v4701_v39 }
 0xcb2   : > { %v4711_v53 = vsub.f32 0.0, %v4703_v8 }
 0xcb3   : > { %v4713_v2 = vsub.f32 0.0, %v4705_v30 }
 0xcb4   : > { %v4715_v47 = vsel %vm4707_vm6, %v4703_v8, %v4711_v53  ;;  %v4842_v53 = vld [vmem:[%s369_s29 + $0x8] sm:$0xff] }
 0xcb5   : > { %v4717_v6 = vsel %vm4709_vm7, %v4705_v30, %v4713_v2 }
 0xcb6   : > { %v4721_v23 = vadd.f32 1.0, %v4717_v6 }
 0xcb8   : > { %v4382_v43 = vpop.xlane.xlu0 %4381  ;;  %v4725_v49 = vmul.f32 %v4721_v23, %v4621_v44 }
 0xcb9   : > { %6145 = vrcp.f32 %v4382_v43 }
 0xcbd   : > { %v4379_v37 = vpop.xlane.xlu1 %4378 }
 0xcbe   : > { %6147 = vrcp.f32 %v4379_v37 }
 0xcc3   : > { %v6146_v57 = vpop.eup %6145 }
 0xcc4   : > { %v4388_v26 = vpop.xlane.xlu0 %4387  ;;  %v4480_v56 = vmul.f32 %v6146_v57, %v9738_v20  ;;  %v4479_v4 = vmul.f32 %v6146_v57, %v9734_v10  ;;  %v4620_v20 = vmul.f32 0.5, %v9789_v31 }
 0xcc5   : > { %6149 = vrcp.f32 %v4388_v26 }
 0xcc6   : > { %v4385_v54 = vpop.xlane.xlu1 %4384  ;;  %v4724_v25 = vmul.f32 %v4720_v17, %v4620_v20 }
 0xcc7   : > { %6151 = vrcp.f32 %v4385_v54 }
 0xcc8   : > { %v6148_v13 = vpop.eup %6147 }
 0xcc9   : > { %v4478_v21 = vmul.f32 %v6148_v13, %v9744_v41  ;;  %v4477_v34 = vmul.f32 %v6148_v13, %v9742_v45  ;;  %v4722_v41 = vadd.f32 1.0, %v4718_v36  ;;  %v4622_v45 = vmul.f32 0.5, %v9795_v51 }
 0xcca   : > { %v4719_v51 = vadd.f32 1.0, %v4715_v47  ;;  %v4732_v15 = vpop.permute.xlu1 %4731 }
 0xccb   : > { %v5341_v0 = vpack.c.bf16 %v4480_v56, %v4478_v21  ;;  %v5343_v38 = vpack.c.bf16 %v4479_v4, %v4477_v34  ;;  %v4726_v5 = vmul.f32 %v4722_v41, %v4622_v45  ;;  %v4837_v4 = vld [vmem:[%s364_s26] sm:$0xff] }
 0xccd   : > { %5342 = vmatprep.subr.bf16.mxu1 %v5341_v0  ;;  %v4838_v0 = vld [vmem:[%s364_s26 + $0x8] sm:$0xff] }
 0xcce   : > { %5344 = vmatpush1.bf16.xpose.msra.mxu1 %v5343_v38 }
 0xccf   : > { %v6150_v28 = vpop.eup %6149 }
 0xcd0   : > { %v4484_v10 = vmul.f32 %v6150_v28, %v9754_v42  ;;  %v4483_v24 = vmul.f32 %v6150_v28, %v9752_v58  ;;  %v5349_v42 = vpack.c.bf16 %v4726_v5, %v4724_v25  ;;  %v4619_v58 = vmul.f32 0.5, %v9792_v46 }
 0xcd1   : > { %v6152_v63 = vpop.eup %6151  ;;  %v4735_v46 = vshrl.u32 %v4734_v11, 7 }
 0xcd2   : > { %v4482_v60 = vmul.f32 %v6152_v63, %v9760_v9  ;;  %v4481_v61 = vmul.f32 %v6152_v63, %v9756_v1  ;;  %v4723_v48 = vmul.f32 %v4719_v51, %v4619_v58  ;;  %v4485_v9 = vrot.slane %v10317_v7, 6 }
 0xcd3   : > { %v10318_v1 = vmov 0.0   ;;  %v4736_v62 = vsub.s32 0, %v4735_v46 }
 0xcd4   : > { %v5345_v31 = vpack.c.bf16 %v4484_v10, %v4482_v60  ;;  %v5347_v14 = vpack.c.bf16 %v4483_v24, %v4481_v61  ;;  %v5351_v43 = vpack.c.bf16 %v4725_v49, %v4723_v48 }
 0xcd5   : > { %v4737_v35 = vrot.slane %v4732_v15, %v4736_v62 }
 0xcd6   : > { %5346 = vmatprep.subr.bf16.mxu1 %v5345_v31 }
 0xcd7   : > { %5348 = vmatpush1.bf16.xpose.msra.mxu1 %v5347_v14 }
 0xcd8   : > { %5350 = vmatprep.subr.bf16.mxu1 %v5349_v42 }
 0xcde   : > { %4554 = vmatmul.mubr.f32.vlgmr.msra.gmra.mrb[140].mxu1 %v4485_v9 }
 0xcdf   : > { %5352 = vmatpush1.bf16.msra.mxu1 %v5351_v43  ;;  %4806 = vmatprep.mubr.f32.mxu1 %v10318_v1 }
 0xce2   : > { %5084 = vmatmul.mubr.msk.f32.vlgmr.msra.gmra.mrb[142].mxu1 %vm4738_vm8, %v4727_v3 }
 0xdb1   : > { %v4555_v18 = vpop.f32.mrb[140].mxu1 }
 0xdb2   : > { %v4574_v29 = vrot.slane %v4555_v18, 2  ;;  %v4557_v37 = vpop.f32.mrb[141].mxu1 }
 0xdb3   : > { %v4575_v12 = vrot.slane %v4557_v37, 2 }
 0xdb4   : > { %v4584_v27 = vsel %vm4583_vm9, %v10319_v32, %v4574_v29 }
 0xdb5   : > { %v4585_v52 = vsel %vm4583_vm9, %v10320_v55, %v4575_v12  ;;  %v4808_v59 = vpop.f32.mrb[142].mxu1 }
 0xdb6   : > { %v4809_v50 = vadd.f32 %v4808_v59, %v4737_v35  ;;  %v4810_v33 = vpop.f32.mrb[143].mxu1 }
 0xdb7   : > { %v4811_v26 = vadd.f32 %v4810_v33, %v4737_v35 }
 0xdb8   : > { %v4813_v19 = vmax.f32 %v4809_v50, 0.0 }
 0xdb9   : > { %v4814_v39 = vmax.f32 %v4811_v26, 0.0 }
 0xdba   : > { %v4818_v57 = vrot.slane %v4813_v19, %v4736_v62 }
 0xdbb   : > { %v4822_v54 = vrot.slane %v4814_v39, %v4736_v62 }
 0xdbc   : > { %v4823_v22 = vmul.f32 %v4818_v57, %v4584_v27 }
 0xdbd   : > { %v4824_v40 = vmul.f32 %v4822_v54, %v4585_v52 }
 0xdbe   : > { %v5085_v13 = vmul.f32 -1.442695, %v4823_v22 }
 0xdbf   : > { %v5086_v8 = vmul.f32 -1.442695, %v4824_v40 }
 0xdc0   : > { %6153 = vpow2.f32 %v5085_v13 }
 0xdc1   : > { %6155 = vpow2.f32 %v5086_v8 }
 0xdca   : > { %v6154_v30 = vpop.eup %6153 }
 0xdcb   : > { %v6156_v21 = vpop.eup %6155  ;;  %v4831_v56 = vadd.f32 1.0, %v6154_v30 }
 0xdcc   : > { %v4832_v34 = vadd.f32 1.0, %v6156_v21 }
 0xdcd   : > { %6157 = vrcp.f32 %v4831_v56 }
 0xdce   : > { %6159 = vrcp.f32 %v4832_v34 }
 0xdd7   : > { %v6158_v38 = vpop.eup %6157 }
 0xdd8   : > { %v6160_v36 = vpop.eup %6159  ;;  %v4839_v2 = vmul.f32 %v6158_v38, %v4837_v4  ;;  %v4843_v17 = vsub.f32 1.0, %v6158_v38 }
 0xdd9   : > { %v4840_v41 = vmul.f32 %v6160_v36, %v4838_v0  ;;  %v4844_v28 = vsub.f32 1.0, %v6160_v36 }
 0xdda   : > { %v4845_v20 = vmul.f32 %v4843_v17, %v4841_v16 }
 0xddb   : > { %v4846_v45 = vmul.f32 %v4844_v28, %v4842_v53 }
 0xddc   : > { %v4847_v10 = vadd.f32 %v4845_v20, %v4839_v2 }
 0xddd   : > { %v4848_v24 = vadd.f32 %v4846_v45, %v4840_v41 }
 0xdde   : > { %4849 = vst [vmem:[%s374_s12] sm:$0xff] %v4847_v10 }
 0xddf   : > { %4850 = vst [vmem:[%s374_s12 + $0x8] sm:$0xff] %v4848_v24 }
 0xde0 PF: > { %s21_s11 = sadd.s32 1, %s6359_s11  }
 0xde1   : > { %p18_p4 = scmp.ge.s32.totalorder %s21_s11, 4  }
 0xde3   :  { %20 = sbr.rel (!%p18_p4) target bundleno = 3 (0x3), region = 92 }

</bundles_post_ra>
